<compile_context>
chip_gen: v6e
topology: v6e:2x2x1
jax: 0.10.0
libtpu: 0.0.40
codegen_flags: <defaults>
</compile_context>

<pallas_src>
import functools

import jax
import jax.numpy as jnp
from jax.experimental import pallas as pl
from jax.experimental.pallas import tpu as pltpu


def _sage_conv_kernel(a_ref, invdeg_ref, x_ref, wl_ref, wr_ref, b_ref, o_ref,
                      acc_ref, *, tm, tk, apply_relu):
    """One SAGEConv layer, tiled over (output-node rows, neighbor chunks).

    a_ref      : (TM, TK)        int8 block of raw edge counts (dst rows, src cols)
    invdeg_ref : (TM, 1)         f32 reciprocal in-degree for this row block
    x_ref      : (N, Fin)        bf16 node features, fully resident in VMEM
    wl_ref     : (Fin, Fout)     bf16 neighbor-projection weights (lin_l)
    wr_ref     : (Fin, Fout)     bf16 self-projection weights (lin_r)
    b_ref      : (1, Fout)       f32 bias (lin_l bias)
    o_ref      : (TM, Fout)      output block (bf16 for layer 1, f32 for layer 2)
    acc_ref    : (TM, Fin)       f32 VMEM accumulator for the neighbor sum
    """
    i = pl.program_id(0)
    k = pl.program_id(1)

    @pl.when(k == 0)
    def _init():
        acc_ref[...] = jnp.zeros_like(acc_ref)

    # Partial neighbor aggregation: int8 counts -> f32 -> bf16 (portable path; v7x MXU
    # has no int support), bf16 MXU matmul, f32 accumulation. X chunk is sliced from
    # the resident VMEM copy -- no per-row-block re-streaming from HBM.
    a_bf = a_ref[...].astype(jnp.float32).astype(jnp.bfloat16)
    xk = x_ref[pl.ds(pl.multiple_of(k * tk, 128), tk), :]
    acc_ref[...] += jnp.dot(a_bf, xk, preferred_element_type=jnp.float32)

    @pl.when(k == pl.num_programs(1) - 1)
    def _finalize():
        # Exact mean: f32 reciprocal in-degree applied to the f32 accumulator.
        agg = (acc_ref[...] * invdeg_ref[...]).astype(jnp.bfloat16)
        xs = x_ref[pl.ds(pl.multiple_of(i * tm, 128), tm), :]
        out = (jnp.dot(agg, wl_ref[...], preferred_element_type=jnp.float32)
               + jnp.dot(xs, wr_ref[...], preferred_element_type=jnp.float32)
               + b_ref[...])
        if apply_relu:
            out = jnp.maximum(out, 0.0)
        o_ref[...] = out.astype(o_ref.dtype)


def _vmem_limit_bytes(n, f_in, f_out, tm, tk, out_bytes):
    """Conservative VMEM budget (double-buffered inputs + conversion temps)."""
    a_bufs = 2 * tm * tk * 1                 # int8 A tiles
    conv_tmp = tm * tk * 6                   # int8 -> f32 -> bf16 temps
    x_res = 2 * n * f_in * 2                 # resident bf16 X
    w_bufs = 2 * 2 * f_in * f_out * 2        # W_l, W_r
    inv_bufs = 2 * tm * 128 * 4              # (tm, 1) f32, lane-padded
    b_bufs = 2 * 8 * f_out * 4               # bias, sublane-padded
    o_bufs = 2 * tm * f_out * out_bytes
    acc = tm * f_in * 4
    est = a_bufs + conv_tmp + x_res + w_bufs + inv_bufs + b_bufs + o_bufs + acc
    return int(min(100 * (1 << 20), max(32 * (1 << 20), 2 * est)))


def sage_conv(a_counts, inv_deg, x, w_l, w_r, b, *, apply_relu, out_dtype, tm, tk):
    """a_counts: (N, N) int8, inv_deg: (N, 1) f32, x: (N, Fin) bf16,
    w_l/w_r: (Fin, Fout) bf16, b: (1, Fout) f32."""
    n, f_in = x.shape
    f_out = w_l.shape[1]
    assert a_counts.shape == (n, n) and inv_deg.shape == (n, 1)
    assert w_l.shape == w_r.shape == (f_in, f_out) and b.shape == (1, f_out)
    assert n % tm == 0 and n % tk == 0, "node count must be tile-aligned (pad first)"
    assert tm % 128 == 0 and tk % 128 == 0 and f_in % 128 == 0 and f_out % 128 == 0

    out_bytes = jnp.dtype(out_dtype).itemsize
    kernel = functools.partial(_sage_conv_kernel, tm=tm, tk=tk,
                               apply_relu=apply_relu)
    return pl.pallas_call(
        kernel,
        out_shape=jax.ShapeDtypeStruct((n, f_out), out_dtype),
        grid_spec=pltpu.PrefetchScalarGridSpec(
            num_scalar_prefetch=0,
            grid=(n // tm, n // tk),                                 # (rows, neighbor chunks)
            in_specs=[
                pl.BlockSpec((tm, tk), lambda i, k: (i, k)),         # A counts tile (int8)
                pl.BlockSpec((tm, 1), lambda i, k: (i, 0)),          # 1/in_degree (f32)
                pl.BlockSpec((n, f_in), lambda i, k: (0, 0)),        # X resident in VMEM
                pl.BlockSpec((f_in, f_out), lambda i, k: (0, 0)),    # W_l
                pl.BlockSpec((f_in, f_out), lambda i, k: (0, 0)),    # W_r
                pl.BlockSpec((1, f_out), lambda i, k: (0, 0)),       # bias
            ],
            out_specs=pl.BlockSpec((tm, f_out), lambda i, k: (i, 0)),
            scratch_shapes=[pltpu.VMEM((tm, f_in), jnp.float32)],    # neighbor-sum acc
        ),
        compiler_params=pltpu.CompilerParams(
            dimension_semantics=("parallel", "arbitrary"),
            vmem_limit_bytes=_vmem_limit_bytes(n, f_in, f_out, tm, tk, out_bytes)),
    )(a_counts, inv_deg, x, w_l, w_r, b)


def _round_up(v, m):
    return ((v + m - 1) // m) * m


def _pad2(arr, rows, cols):
    r, c = arr.shape
    return jnp.pad(arr, ((0, rows - r), (0, cols - c)))


def _pick_row_tile(n_pad, candidates=(512, 384, 256, 128)):
    divs = [t for t in candidates if n_pad % t == 0]
    if not divs:
        return n_pad
    even = [t for t in divs if (n_pad // t) % 2 == 0]      # even #blocks -> both v7x TCs busy
    if even:
        return even[0]
    multi = [t for t in divs if n_pad // t >= 2]
    return multi[0] if multi else divs[0]


def _pick_k_tile(n_pad, candidates=(8192, 6144, 4096, 3072, 2048, 1536, 1024,
                                    768, 512, 384, 256, 128)):
    for t in candidates:
        if n_pad % t == 0:
            return t
    return n_pad


def graphsage_forward(x, edge_index, params):
    n, f_in = x.shape
    hidden = params["w1_l"].shape[1]
    f_out = params["w2_l"].shape[1]

    # Pad nodes to a tile-friendly multiple; pad feature dims to lane width (128).
    n_pad = _round_up(n, 256)
    f_in_p = _round_up(f_in, 128)
    hid_p = _round_up(hidden, 128)
    out_p = _round_up(f_out, 128)

    src = edge_index[0]
    dst = edge_index[1]

    # Exact integer edge counts, stored int8 (halves the dominant HBM stream).
    # TODO(synk): build counts directly in int8 / CSR gather path for large sparse graphs.
    counts = jnp.zeros((n_pad, n_pad), jnp.int32).at[dst, src].add(1)
    counts = counts.astype(jnp.int8)      # assumes < 128 parallel edges per (src, dst) pair

    # Reciprocal in-degree straight from the edge list (no N^2 reduction), exact f32.
    deg = jnp.zeros((n_pad, 1), jnp.float32).at[dst, 0].add(1.0)
    inv_deg = 1.0 / jnp.maximum(deg, 1.0)

    x_p = _pad2(x, n_pad, f_in_p).astype(jnp.bfloat16)
    w1l = _pad2(params["w1_l"], f_in_p, hid_p).astype(jnp.bfloat16)
    w1r = _pad2(params["w1_r"], f_in_p, hid_p).astype(jnp.bfloat16)
    b1 = _pad2(params["b1"], 1, hid_p)
    w2l = _pad2(params["w2_l"], hid_p, out_p).astype(jnp.bfloat16)
    w2r = _pad2(params["w2_r"], hid_p, out_p).astype(jnp.bfloat16)
    b2 = _pad2(params["b2"], 1, out_p)

    tm = _pick_row_tile(n_pad)
    tk = _pick_k_tile(n_pad)

    # conv1 + ReLU fused; layer-1 output emitted directly in bf16 (feeds conv2 as-is).
    h = sage_conv(counts, inv_deg, x_p, w1l, w1r, b1,
                  apply_relu=True, out_dtype=jnp.bfloat16, tm=tm, tk=tk)
    # dropout(0.2) -> identity in eval mode
    out = sage_conv(counts, inv_deg, h, w2l, w2r, b2,
                    apply_relu=False, out_dtype=jnp.float32, tm=tm, tk=tk)
    return out[:n, :f_out]


# ---------------------------------------------------------------------------
# Pure-JAX (f32) reference for a sanity check.
def graphsage_reference(x, edge_index, params):
    n = x.shape[0]
    src, dst = edge_index[0], edge_index[1]
    a = jnp.zeros((n, n), jnp.float32).at[dst, src].add(1.0)
    deg = a.sum(axis=1, keepdims=True)
    a = a / jnp.maximum(deg, 1.0)
    h = a @ x @ params["w1_l"] + x @ params["w1_r"] + params["b1"]
    h = jnp.maximum(h, 0.0)
    return a @ h @ params["w2_l"] + h @ params["w2_r"] + params["b2"]


if __name__ == "__main__":
    # Small shapes consistent with the module: one synthetic PPI-like graph
    # (600 nodes, ~avg degree 5, 50 input features, hidden 512, 121 classes).
    N = 600
    E = 3000
    IN_FEATS = 50
    HIDDEN = 512
    OUT_FEATS = 121

    key = jax.random.PRNGKey(0)
    k_x, k_e, k1l, k1r, k2l, k2r = jax.random.split(key, 6)

    x = jax.random.normal(k_x, (N, IN_FEATS), dtype=jnp.float32)
    edge_index = jax.random.randint(k_e, (2, E), 0, N, dtype=jnp.int32)

    # Deterministic parameter init (shapes from SAGEConv(in, out)).
    params = {
        "w1_l": 0.1 * jax.random.normal(k1l, (IN_FEATS, HIDDEN), jnp.float32),
        "w1_r": 0.1 * jax.random.normal(k1r, (IN_FEATS, HIDDEN), jnp.float32),
        "b1": jnp.zeros((1, HIDDEN), jnp.float32),
        "w2_l": 0.1 * jax.random.normal(k2l, (HIDDEN, OUT_FEATS), jnp.float32),
        "w2_r": 0.1 * jax.random.normal(k2r, (HIDDEN, OUT_FEATS), jnp.float32),
        "b2": jnp.zeros((1, OUT_FEATS), jnp.float32),
    }

    out = jax.jit(graphsage_forward)(x, edge_index, params)
    out = jax.block_until_ready(out)

    ref = graphsage_reference(x, edge_index, params)
    assert out.shape == (N, OUT_FEATS)
    # bf16 MXU inputs (f32 accumulation, exact f32 1/deg) => loosened tolerance vs f32 ref.
    max_err = float(jnp.max(jnp.abs(out - ref)))
    scale = float(jnp.max(jnp.abs(ref)))
    assert max_err <= 5e-2 * scale + 1e-3, f"mismatch vs reference: {max_err} (scale {scale})"

    print("KERNEL_OK")
</pallas_src>

<mosaic_0001>
module attributes {stable_mosaic.version = 11 : i64} {
  func.func private @main(%arg0: i32) attributes {dimension_semantics = [#tpu.dimension_semantics<core_parallel>], iteration_bounds = array<i64: 2>, tpu.core_type = #tpu.core_type<sc_scalar_subcore>, window_params = []} {
    return
  }
}

module attributes {stable_mosaic.version = 11 : i64} {
  func.func private @main(%arg0: i32) attributes {dimension_semantics = [#tpu.dimension_semantics<core_parallel>], iteration_bounds = array<i64: 2>, tpu.core_type = #tpu.core_type<sc_scalar_subcore>, window_params = []} {
    return
  }
}

module attributes {stable_mosaic.version = 11 : i64} {
  func.func @_sage_conv_kernel(%arg0: i32, %arg1: i32, %arg2: memref<384x768xi8, #tpu.memory_space<vmem>>, %arg3: memref<384x1xf32, #tpu.memory_space<vmem>>, %arg4: memref<768x128xbf16, #tpu.memory_space<vmem>>, %arg5: memref<128x512xbf16, #tpu.memory_space<vmem>>, %arg6: memref<128x512xbf16, #tpu.memory_space<vmem>>, %arg7: memref<1x512xf32, #tpu.memory_space<vmem>>, %arg8: memref<384x512xbf16, #tpu.memory_space<vmem>>, %arg9: memref<384x128xf32, #tpu.memory_space<vmem>>) attributes {dimension_semantics = [#tpu.dimension_semantics<parallel>, #tpu.dimension_semantics<arbitrary>], iteration_bounds = array<i64: 2, 1>, scalar_prefetch = 0 : i64, scratch_operands = 1 : i64, tpu.core_type = #tpu.core_type<tc>, window_params = [{transform_indices = @transform_0, window_bounds = array<i64: 384, 768>}, {transform_indices = @transform_1, window_bounds = array<i64: 384, 1>}, {pipeline_mode = #tpu.pipeline_mode<synchronous>, transform_indices = @transform_2, window_bounds = array<i64: 768, 128>}, {pipeline_mode = #tpu.pipeline_mode<synchronous>, transform_indices = @transform_3, window_bounds = array<i64: 128, 512>}, {pipeline_mode = #tpu.pipeline_mode<synchronous>, transform_indices = @transform_4, window_bounds = array<i64: 128, 512>}, {pipeline_mode = #tpu.pipeline_mode<synchronous>, transform_indices = @transform_5, window_bounds = array<i64: 1, 512>}, {transform_indices = @transform_6, window_bounds = array<i64: 384, 512>}]} {
    %c0_i32 = arith.constant 0 : i32
    %0 = arith.cmpi eq, %arg1, %c0_i32 : i32
    %1 = arith.extui %0 : i1 to i32
    %c0_i32_0 = arith.constant 0 : i32
    %2 = arith.cmpi ne, %1, %c0_i32_0 : i32
    scf.if %2 {
      %cst_9 = arith.constant 0.000000e+00 : f32
      %17 = vector.broadcast %cst_9 : f32 to vector<384x128xf32>
      %c0_10 = arith.constant 0 : index
      %c0_11 = arith.constant 0 : index
      %18 = vector.load %arg9[%c0_10, %c0_11] : memref<384x128xf32, #tpu.memory_space<vmem>>, vector<384x128xf32>
      tpu.vector_store %arg9[%c0_10, %c0_11], %17 {strides = array<i32>} : memref<384x128xf32, #tpu.memory_space<vmem>>, vector<384x128xf32>,
    } else {
    }
    %c0 = arith.constant 0 : index
    %c0_1 = arith.constant 0 : index
    %3 = vector.load %arg2[%c0, %c0_1] : memref<384x768xi8, #tpu.memory_space<vmem>>, vector<384x768xi8>
    %4 = arith.sitofp %3 : vector<384x768xi8> to vector<384x768xf32>
    %5 = arith.truncf %4 : vector<384x768xf32> to vector<384x768xbf16>
    %c768_i32 = arith.constant 768 : i32
    %6 = arith.muli %arg1, %c768_i32 : i32
    %7 = tpu.assume_multiple %6, 128 : i32
    %8 = arith.index_cast %7 : i32 to index
    %c0_2 = arith.constant 0 : index
    %9 = vector.load %arg4[%8, %c0_2] : memref<768x128xbf16, #tpu.memory_space<vmem>>, vector<768x128xbf16>
    %c0_3 = arith.constant 0 : index
    %c0_4 = arith.constant 0 : index
    %10 = vector.load %arg9[%c0_3, %c0_4] : memref<384x128xf32, #tpu.memory_space<vmem>>, vector<384x128xf32>
    %cst = arith.constant dense<0.000000e+00> : vector<384x128xf32>
    %11 = tpu.matmul %5, %9, %cst {dimension_numbers = #tpu.dot_dimension_numbers<[1], [0], [0], [1], [0, 0, 1, 1], [], []>} : vector<384x768xbf16>, vector<768x128xbf16>, vector<384x128xf32> -> vector<384x128xf32>
    %12 = arith.addf %10, %11 : vector<384x128xf32>
    %c0_5 = arith.constant 0 : index
    %c0_6 = arith.constant 0 : index
    %13 = vector.load %arg9[%c0_5, %c0_6] : memref<384x128xf32, #tpu.memory_space<vmem>>, vector<384x128xf32>
    tpu.vector_store %arg9[%c0_5, %c0_6], %12 {strides = array<i32>} : memref<384x128xf32, #tpu.memory_space<vmem>>, vector<384x128xf32>,
    %c0_i32_7 = arith.constant 0 : i32
    %14 = arith.cmpi eq, %arg1, %c0_i32_7 : i32
    %15 = arith.extui %14 : i1 to i32
    %c0_i32_8 = arith.constant 0 : i32
    %16 = arith.cmpi ne, %15, %c0_i32_8 : i32
    scf.if %16 {
      %c0_9 = arith.constant 0 : index
      %c0_10 = arith.constant 0 : index
      %17 = vector.load %arg9[%c0_9, %c0_10] : memref<384x128xf32, #tpu.memory_space<vmem>>, vector<384x128xf32>
      %c0_11 = arith.constant 0 : index
      %c0_12 = arith.constant 0 : index
      %18 = vector.load %arg3[%c0_11, %c0_12] : memref<384x1xf32, #tpu.memory_space<vmem>>, vector<384x1xf32>
      %19 = vector.broadcast %18 : vector<384x1xf32> to vector<384x128xf32>
      %20 = arith.mulf %17, %19 : vector<384x128xf32>
      %21 = arith.truncf %20 : vector<384x128xf32> to vector<384x128xbf16>
      %c384_i32 = arith.constant 384 : i32
      %22 = arith.muli %arg0, %c384_i32 : i32
      %23 = tpu.assume_multiple %22, 128 : i32
      %24 = arith.index_cast %23 : i32 to index
      %c0_13 = arith.constant 0 : index
      %25 = vector.load %arg4[%24, %c0_13] : memref<768x128xbf16, #tpu.memory_space<vmem>>, vector<384x128xbf16>
      %c0_14 = arith.constant 0 : index
      %c0_15 = arith.constant 0 : index
      %26 = vector.load %arg5[%c0_14, %c0_15] : memref<128x512xbf16, #tpu.memory_space<vmem>>, vector<128x512xbf16>
      %cst_16 = arith.constant dense<0.000000e+00> : vector<384x512xf32>
      %27 = tpu.matmul %21, %26, %cst_16 {dimension_numbers = #tpu.dot_dimension_numbers<[1], [0], [0], [1], [0, 0, 1, 1], [], []>} : vector<384x128xbf16>, vector<128x512xbf16>, vector<384x512xf32> -> vector<384x512xf32>
      %c0_17 = arith.constant 0 : index
      %c0_18 = arith.constant 0 : index
      %28 = vector.load %arg6[%c0_17, %c0_18] : memref<128x512xbf16, #tpu.memory_space<vmem>>, vector<128x512xbf16>
      %cst_19 = arith.constant dense<0.000000e+00> : vector<384x512xf32>
      %29 = tpu.matmul %25, %28, %cst_19 {dimension_numbers = #tpu.dot_dimension_numbers<[1], [0], [0], [1], [0, 0, 1, 1], [], []>} : vector<384x128xbf16>, vector<128x512xbf16>, vector<384x512xf32> -> vector<384x512xf32>
      %30 = arith.addf %27, %29 : vector<384x512xf32>
      %c0_20 = arith.constant 0 : index
      %c0_21 = arith.constant 0 : index
      %31 = vector.load %arg7[%c0_20, %c0_21] : memref<1x512xf32, #tpu.memory_space<vmem>>, vector<1x512xf32>
      %32 = vector.broadcast %31 : vector<1x512xf32> to vector<384x512xf32>
      %33 = arith.addf %30, %32 : vector<384x512xf32>
      %cst_22 = arith.constant 0.000000e+00 : f32
      %34 = vector.broadcast %cst_22 : f32 to vector<384x512xf32>
      %35 = arith.maximumf %33, %34 : vector<384x512xf32>
      %36 = arith.truncf %35 : vector<384x512xf32> to vector<384x512xbf16>
      %c0_23 = arith.constant 0 : index
      %c0_24 = arith.constant 0 : index
      %37 = vector.load %arg8[%c0_23, %c0_24] : memref<384x512xbf16, #tpu.memory_space<vmem>>, vector<384x512xbf16>
      tpu.vector_store %arg8[%c0_23, %c0_24], %36 {strides = array<i32>} : memref<384x512xbf16, #tpu.memory_space<vmem>>, vector<384x512xbf16>,
    } else {
    }
    return
  }
  func.func @transform_0(%arg0: i32, %arg1: i32) -> (i32, i32) {
    %c0_i32 = arith.constant 0 : i32
    return %arg0, %arg1 : i32, i32
  }
  func.func @transform_1(%arg0: i32, %arg1: i32) -> (i32, i32) {
    %c0_i32 = arith.constant 0 : i32
    %c0_i32_0 = arith.constant 0 : i32
    return %arg0, %c0_i32 : i32, i32
  }
  func.func @transform_2(%arg0: i32, %arg1: i32) -> (i32, i32) {
    %c0_i32 = arith.constant 0 : i32
    %c0_i32_0 = arith.constant 0 : i32
    %c0_i32_1 = arith.constant 0 : i32
    return %c0_i32, %c0_i32_0 : i32, i32
  }
  func.func @transform_3(%arg0: i32, %arg1: i32) -> (i32, i32) {
    %c0_i32 = arith.constant 0 : i32
    %c0_i32_0 = arith.constant 0 : i32
    %c0_i32_1 = arith.constant 0 : i32
    return %c0_i32, %c0_i32_0 : i32, i32
  }
  func.func @transform_4(%arg0: i32, %arg1: i32) -> (i32, i32) {
    %c0_i32 = arith.constant 0 : i32
    %c0_i32_0 = arith.constant 0 : i32
    %c0_i32_1 = arith.constant 0 : i32
    return %c0_i32, %c0_i32_0 : i32, i32
  }
  func.func @transform_5(%arg0: i32, %arg1: i32) -> (i32, i32) {
    %c0_i32 = arith.constant 0 : i32
    %c0_i32_0 = arith.constant 0 : i32
    %c0_i32_1 = arith.constant 0 : i32
    return %c0_i32, %c0_i32_0 : i32, i32
  }
  func.func @transform_6(%arg0: i32, %arg1: i32) -> (i32, i32) {
    %c0_i32 = arith.constant 0 : i32
    %c0_i32_0 = arith.constant 0 : i32
    return %arg0, %c0_i32 : i32, i32
  }
}

module attributes {stable_mosaic.version = 11 : i64} {
  func.func @_sage_conv_kernel(%arg0: i32, %arg1: i32, %arg2: memref<384x768xi8, #tpu.memory_space<vmem>>, %arg3: memref<384x1xf32, #tpu.memory_space<vmem>>, %arg4: memref<768x512xbf16, #tpu.memory_space<vmem>>, %arg5: memref<512x128xbf16, #tpu.memory_space<vmem>>, %arg6: memref<512x128xbf16, #tpu.memory_space<vmem>>, %arg7: memref<1x128xf32, #tpu.memory_space<vmem>>, %arg8: memref<384x128xf32, #tpu.memory_space<vmem>>, %arg9: memref<384x512xf32, #tpu.memory_space<vmem>>) attributes {dimension_semantics = [#tpu.dimension_semantics<parallel>, #tpu.dimension_semantics<arbitrary>], iteration_bounds = array<i64: 2, 1>, scalar_prefetch = 0 : i64, scratch_operands = 1 : i64, tpu.core_type = #tpu.core_type<tc>, window_params = [{transform_indices = @transform_0, window_bounds = array<i64: 384, 768>}, {transform_indices = @transform_1, window_bounds = array<i64: 384, 1>}, {pipeline_mode = #tpu.pipeline_mode<synchronous>, transform_indices = @transform_2, window_bounds = array<i64: 768, 512>}, {pipeline_mode = #tpu.pipeline_mode<synchronous>, transform_indices = @transform_3, window_bounds = array<i64: 512, 128>}, {pipeline_mode = #tpu.pipeline_mode<synchronous>, transform_indices = @transform_4, window_bounds = array<i64: 512, 128>}, {pipeline_mode = #tpu.pipeline_mode<synchronous>, transform_indices = @transform_5, window_bounds = array<i64: 1, 128>}, {transform_indices = @transform_6, window_bounds = array<i64: 384, 128>}]} {
    %c0_i32 = arith.constant 0 : i32
    %0 = arith.cmpi eq, %arg1, %c0_i32 : i32
    %1 = arith.extui %0 : i1 to i32
    %c0_i32_0 = arith.constant 0 : i32
    %2 = arith.cmpi ne, %1, %c0_i32_0 : i32
    scf.if %2 {
      %cst_9 = arith.constant 0.000000e+00 : f32
      %17 = vector.broadcast %cst_9 : f32 to vector<384x512xf32>
      %c0_10 = arith.constant 0 : index
      %c0_11 = arith.constant 0 : index
      %18 = vector.load %arg9[%c0_10, %c0_11] : memref<384x512xf32, #tpu.memory_space<vmem>>, vector<384x512xf32>
      tpu.vector_store %arg9[%c0_10, %c0_11], %17 {strides = array<i32>} : memref<384x512xf32, #tpu.memory_space<vmem>>, vector<384x512xf32>,
    } else {
    }
    %c0 = arith.constant 0 : index
    %c0_1 = arith.constant 0 : index
    %3 = vector.load %arg2[%c0, %c0_1] : memref<384x768xi8, #tpu.memory_space<vmem>>, vector<384x768xi8>
    %4 = arith.sitofp %3 : vector<384x768xi8> to vector<384x768xf32>
    %5 = arith.truncf %4 : vector<384x768xf32> to vector<384x768xbf16>
    %c768_i32 = arith.constant 768 : i32
    %6 = arith.muli %arg1, %c768_i32 : i32
    %7 = tpu.assume_multiple %6, 128 : i32
    %8 = arith.index_cast %7 : i32 to index
    %c0_2 = arith.constant 0 : index
    %9 = vector.load %arg4[%8, %c0_2] : memref<768x512xbf16, #tpu.memory_space<vmem>>, vector<768x512xbf16>
    %c0_3 = arith.constant 0 : index
    %c0_4 = arith.constant 0 : index
    %10 = vector.load %arg9[%c0_3, %c0_4] : memref<384x512xf32, #tpu.memory_space<vmem>>, vector<384x512xf32>
    %cst = arith.constant dense<0.000000e+00> : vector<384x512xf32>
    %11 = tpu.matmul %5, %9, %cst {dimension_numbers = #tpu.dot_dimension_numbers<[1], [0], [0], [1], [0, 0, 1, 1], [], []>} : vector<384x768xbf16>, vector<768x512xbf16>, vector<384x512xf32> -> vector<384x512xf32>
    %12 = arith.addf %10, %11 : vector<384x512xf32>
    %c0_5 = arith.constant 0 : index
    %c0_6 = arith.constant 0 : index
    %13 = vector.load %arg9[%c0_5, %c0_6] : memref<384x512xf32, #tpu.memory_space<vmem>>, vector<384x512xf32>
    tpu.vector_store %arg9[%c0_5, %c0_6], %12 {strides = array<i32>} : memref<384x512xf32, #tpu.memory_space<vmem>>, vector<384x512xf32>,
    %c0_i32_7 = arith.constant 0 : i32
    %14 = arith.cmpi eq, %arg1, %c0_i32_7 : i32
    %15 = arith.extui %14 : i1 to i32
    %c0_i32_8 = arith.constant 0 : i32
    %16 = arith.cmpi ne, %15, %c0_i32_8 : i32
    scf.if %16 {
      %c0_9 = arith.constant 0 : index
      %c0_10 = arith.constant 0 : index
      %17 = vector.load %arg9[%c0_9, %c0_10] : memref<384x512xf32, #tpu.memory_space<vmem>>, vector<384x512xf32>
      %c0_11 = arith.constant 0 : index
      %c0_12 = arith.constant 0 : index
      %18 = vector.load %arg3[%c0_11, %c0_12] : memref<384x1xf32, #tpu.memory_space<vmem>>, vector<384x1xf32>
      %19 = vector.broadcast %18 : vector<384x1xf32> to vector<384x512xf32>
      %20 = arith.mulf %17, %19 : vector<384x512xf32>
      %21 = arith.truncf %20 : vector<384x512xf32> to vector<384x512xbf16>
      %c384_i32 = arith.constant 384 : i32
      %22 = arith.muli %arg0, %c384_i32 : i32
      %23 = tpu.assume_multiple %22, 128 : i32
      %24 = arith.index_cast %23 : i32 to index
      %c0_13 = arith.constant 0 : index
      %25 = vector.load %arg4[%24, %c0_13] : memref<768x512xbf16, #tpu.memory_space<vmem>>, vector<384x512xbf16>
      %c0_14 = arith.constant 0 : index
      %c0_15 = arith.constant 0 : index
      %26 = vector.load %arg5[%c0_14, %c0_15] : memref<512x128xbf16, #tpu.memory_space<vmem>>, vector<512x128xbf16>
      %cst_16 = arith.constant dense<0.000000e+00> : vector<384x128xf32>
      %27 = tpu.matmul %21, %26, %cst_16 {dimension_numbers = #tpu.dot_dimension_numbers<[1], [0], [0], [1], [0, 0, 1, 1], [], []>} : vector<384x512xbf16>, vector<512x128xbf16>, vector<384x128xf32> -> vector<384x128xf32>
      %c0_17 = arith.constant 0 : index
      %c0_18 = arith.constant 0 : index
      %28 = vector.load %arg6[%c0_17, %c0_18] : memref<512x128xbf16, #tpu.memory_space<vmem>>, vector<512x128xbf16>
      %cst_19 = arith.constant dense<0.000000e+00> : vector<384x128xf32>
      %29 = tpu.matmul %25, %28, %cst_19 {dimension_numbers = #tpu.dot_dimension_numbers<[1], [0], [0], [1], [0, 0, 1, 1], [], []>} : vector<384x512xbf16>, vector<512x128xbf16>, vector<384x128xf32> -> vector<384x128xf32>
      %30 = arith.addf %27, %29 : vector<384x128xf32>
      %c0_20 = arith.constant 0 : index
      %c0_21 = arith.constant 0 : index
      %31 = vector.load %arg7[%c0_20, %c0_21] : memref<1x128xf32, #tpu.memory_space<vmem>>, vector<1x128xf32>
      %32 = vector.broadcast %31 : vector<1x128xf32> to vector<384x128xf32>
      %33 = arith.addf %30, %32 : vector<384x128xf32>
      %c0_22 = arith.constant 0 : index
      %c0_23 = arith.constant 0 : index
      %34 = vector.load %arg8[%c0_22, %c0_23] : memref<384x128xf32, #tpu.memory_space<vmem>>, vector<384x128xf32>
      tpu.vector_store %arg8[%c0_22, %c0_23], %33 {strides = array<i32>} : memref<384x128xf32, #tpu.memory_space<vmem>>, vector<384x128xf32>,
    } else {
    }
    return
  }
  func.func @transform_0(%arg0: i32, %arg1: i32) -> (i32, i32) {
    %c0_i32 = arith.constant 0 : i32
    return %arg0, %arg1 : i32, i32
  }
  func.func @transform_1(%arg0: i32, %arg1: i32) -> (i32, i32) {
    %c0_i32 = arith.constant 0 : i32
    %c0_i32_0 = arith.constant 0 : i32
    return %arg0, %c0_i32 : i32, i32
  }
  func.func @transform_2(%arg0: i32, %arg1: i32) -> (i32, i32) {
    %c0_i32 = arith.constant 0 : i32
    %c0_i32_0 = arith.constant 0 : i32
    %c0_i32_1 = arith.constant 0 : i32
    return %c0_i32, %c0_i32_0 : i32, i32
  }
  func.func @transform_3(%arg0: i32, %arg1: i32) -> (i32, i32) {
    %c0_i32 = arith.constant 0 : i32
    %c0_i32_0 = arith.constant 0 : i32
    %c0_i32_1 = arith.constant 0 : i32
    return %c0_i32, %c0_i32_0 : i32, i32
  }
  func.func @transform_4(%arg0: i32, %arg1: i32) -> (i32, i32) {
    %c0_i32 = arith.constant 0 : i32
    %c0_i32_0 = arith.constant 0 : i32
    %c0_i32_1 = arith.constant 0 : i32
    return %c0_i32, %c0_i32_0 : i32, i32
  }
  func.func @transform_5(%arg0: i32, %arg1: i32) -> (i32, i32) {
    %c0_i32 = arith.constant 0 : i32
    %c0_i32_0 = arith.constant 0 : i32
    %c0_i32_1 = arith.constant 0 : i32
    return %c0_i32, %c0_i32_0 : i32, i32
  }
  func.func @transform_6(%arg0: i32, %arg1: i32) -> (i32, i32) {
    %c0_i32 = arith.constant 0 : i32
    %c0_i32_0 = arith.constant 0 : i32
    return %arg0, %c0_i32 : i32, i32
  }
}

</mosaic_0001>

<bundles_post_ra>
// kernel: graphsage_forward.2
= control target key start
LH: loop header
LB: loop body
LE: loop exit
PB: predicated region body
PF: predicated region fallthrough
CT: control target
= control target key end

     0   :  { %s5667_s21 = smov 0   ;;  %s5669_s22 = smov 0   ;;  %s7488_s0 = inlined_call_operand.vmem [shape: s8[768,768], index: 0, kind: input, shape index: {}]   ;;  %s7489_s1 = inlined_call_operand.vmem [shape: f32[768,1], index: 1, kind: input, shape index: {}]   ;;  %s7490_s2 = inlined_call_operand.vmem [shape: bf16[768,128], index: 2, kind: input, shape index: {}]   ;;  %s7491_s3 = inlined_call_operand.vmem [shape: bf16[128,512], index: 3, kind: input, shape index: {}]   ;;  %s7492_s4 = inlined_call_operand.vmem [shape: bf16[128,512], index: 4, kind: input, shape index: {}]   ;;  %s7493_s5 = inlined_call_operand.vmem [shape: f32[1,512], index: 5, kind: input, shape index: {}]   ;;  %s7494_s6 = inlined_call_operand.vmem [shape: bf16[768,512], index: 6, kind: output, shape index: {}]  }
   0x1   :  { %s5671_s23 = smov 0  }
   0x2 LB: > { %s28_s24 = sadd.s32 1, %s5625_s22  ;;  %p5042_p0 = scmp.ge.s32.totalorder %s5629_s23, 1  ;;  %s5629_s23 = sphi %s5671_s23, %s16_s23   ;;  %s5625_s22 = sphi %s5669_s22, %s7797_s22   ;;  %s5621_s21 = sphi %s5667_s21, %s7796_s21  }
   0x3   : > { %p30_p1 = scmp.ge.s32.totalorder %s28_s24, 2  ;;  %p244_p2 = scmp.lt.s32.totalorder %s5629_s23, 3 }
   0x5   : > { %s7799_s24 = smov (%p30_p1, %s28_s24), 0  ;;  %p245_p3 = pnand %p5042_p0, %p244_p2 }
   0x7   : > { %248 = sbr.rel (%p245_p3) target bundleno = 949 (0x3b5), region = 44 }
   0xc   : > { %v5439_v0 = vld [vmem:[%s7490_s2 + $0x38] sm:$0xff]   ;;  %v7495_v1 = vmov 0   ;;  %s285_s27 = smul.u32 12, %s5621_s21  ;;  %v5440_v2 = vld [vmem:[%s7490_s2 + $0x30] sm:$0xff]   ;;  %v5441_v3 = vld [vmem:[%s7490_s2 + $0x28] sm:$0xff]  }
   0xd   : > { %1016 = vmatprep.subr.bf16.mxu0 %v7495_v1  ;;  %5379 = vmatprep.subr.bf16.mxu1 %v7495_v1  ;;  %v5442_v4 = vld [vmem:[%s7490_s2 + $0x20] sm:$0xff]   ;;  %v5443_v5 = vld [vmem:[%s7490_s2 + $0x18] sm:$0xff]   ;;  %v5444_v10 = vld [vmem:[%s7490_s2 + $0x10] sm:$0xff]   ;;  %s297_s17 = smul.u32 48, %s5621_s21 }
   0xe   : > { %1017 = vmatpush1.bf16.msra.mxu0 %v5439_v0  ;;  %5395 = vmatpush1.bf16.msra.mxu1 %v5439_v0  ;;  %p287_p4 = scmp.lt.s32.totalorder %s285_s27, 23  ;;  %v5445_v11 = vld [vmem:[%s7490_s2 + $0x8] sm:$0xff]   ;;  %v5446_v12 = vld [vmem:[%s7490_s2] sm:$0xff]   ;;  %v5447_v13 = vld [vmem:[%s7490_s2 + $0x78] sm:$0xff]  }
   0xf   : > { %1018 = vmatprep.subr.bf16.mxu0 %v7495_v1  ;;  %5380 = vmatprep.subr.bf16.mxu1 %v7495_v1  ;;  %v5448_v14 = vld [vmem:[%s7490_s2 + $0x70] sm:$0xff]   ;;  %v5449_v15 = vld [vmem:[%s7490_s2 + $0x68] sm:$0xff]   ;;  %v5450_v16 = vld [vmem:[%s7490_s2 + $0x60] sm:$0xff]   ;;  %p298_p5 = scmp.lt.s32.totalorder %s297_s17, 95 }
  0x10   : > { %5437 = vset.pattern.permute.xlu0 %v7495_v1  ;;  %5438 = vset.pattern.permute.xlu1 %v7495_v1  ;;  %s7801_s27 = smov (!%p287_p4, %s285_s27), 23  ;;  %v5451_v17 = vld [vmem:[%s7490_s2 + $0x58] sm:$0xff]   ;;  %v5452_v18 = vld [vmem:[%s7490_s2 + $0x50] sm:$0xff]   ;;  %v5453_v19 = vld [vmem:[%s7490_s2 + $0x48] sm:$0xff]  }
  0x11   : > { %s5411_s8 = smul.u32 48, %s7801_s27  ;;  %v5454_v20 = vld [vmem:[%s7490_s2 + $0x40] sm:$0xff]   ;;  %v5455_v25 = vld [vmem:[%s7490_s2 + $0xb8] sm:$0xff]   ;;  %v5457_v29 = vld [vmem:[%s7490_s2 + $0xb0] sm:$0xff]   ;;  %s7803_s17 = smov (!%p298_p5, %s297_s17), 95 }
  0x12   : > { %1019 = vmatpush1.bf16.msra.mxu0 %v5440_v2  ;;  %5396 = vmatpush1.bf16.msra.mxu1 %v5440_v2  ;;  %v5456_v26 = vld [vmem:[%s7490_s2 + $0x138] sm:$0xff]   ;;  %v5458_v30 = vld [vmem:[%s7490_s2 + $0x130] sm:$0xff]   ;;  %v5459_v33 = vld [vmem:[%s7490_s2 + $0xa8] sm:$0xff]   ;;  %s5044_s30 = sshll.u32 %s7803_s17, 3  ;;  %s5282_s26 = sshll.u32 %s7803_s17, 4 }
  0x13   : > { %1020 = vmatprep.subr.bf16.mxu0 %v7495_v1  ;;  %5381 = vmatprep.subr.bf16.mxu1 %v7495_v1  ;;  %s5713_s13 = scalar_lea.vmem %s7488_s0, %s5411_s8  ;;  %v5460_v34 = vld [vmem:[%s7490_s2 + $0x128] sm:$0xff]   ;;  %v5461_v41 = vld [vmem:[%s7490_s2 + $0xa0] sm:$0xff]   ;;  %v5463_v45 = vld [vmem:[%s7490_s2 + $0x98] sm:$0xff]   ;;  %s5892_s9 = scalar_lea.vmem %s7489_s1, %s5044_s30 }
  0x14   : > { %v5721_v6 = vld [vmem:[%s5713_s13 + $0x8] sm:$0xff]  ;;  %v363_v21 = vld [vmem:[%s5713_s13] sm:$0xff]  ;;  %v370_v31 = vld [vmem:[%s5713_s13 + $0x38] sm:$0xff]  ;;  %s2198_s8 = smul.u32 384, %s5621_s21  ;;  %s7009_s28 = scalar_lea.vmem %s7494_s6, %s5282_s26 }
  0x15   : > { %v5724_v7 = vld [vmem:[%s5713_s13 + $0x128] sm:$0xff]  ;;  %v436_v8 = vunpack.c.l.s8.bf16 %v5721_v6  ;;  %v399_v22 = vld [vmem:[%s5713_s13 + $0x120] sm:$0xff]  ;;  %v435_v23 = vunpack.c.l.s8.bf16 %v363_v21  ;;  %v442_v27 = vunpack.c.h.s8.bf16 %v5721_v6  ;;  %v406_v32 = vld [vmem:[%s5713_s13 + $0x158] sm:$0xff]  ;;  %v441_v35 = vunpack.c.h.s8.bf16 %v363_v21 }
  0x16   : > { %1021 = vmatpush1.bf16.msra.mxu0 %v5441_v3  ;;  %5397 = vmatpush1.bf16.msra.mxu1 %v5441_v3  ;;  %v508_v9 = vunpack.c.l.s8.bf16 %v5724_v7  ;;  %v507_v24 = vunpack.c.l.s8.bf16 %v399_v22  ;;  %v514_v28 = vunpack.c.h.s8.bf16 %v5724_v7  ;;  %v513_v36 = vunpack.c.h.s8.bf16 %v399_v22  ;;  %v369_v39 = vld [vmem:[%s5713_s13 + $0x30] sm:$0xff]  ;;  %v5462_v42 = vld [vmem:[%s7490_s2 + $0x120] sm:$0xff]   ;;  %v5464_v48 = vld [vmem:[%s7490_s2 + $0x118] sm:$0xff]   ;;  %s2199_s10 = sshra.s32 %s2198_s8, 3 }
  0x17   : > { %1022 = vmatprep.subr.bf16.mxu0 %v7495_v1  ;;  %5382 = vmatprep.subr.bf16.mxu1 %v7495_v1  ;;  %v448_v37 = vunpack.c.l.s8.bf16 %v370_v31  ;;  %v520_v38 = vunpack.c.l.s8.bf16 %v406_v32  ;;  %v405_v40 = vld [vmem:[%s5713_s13 + $0x150] sm:$0xff]  ;;  %v447_v43 = vunpack.c.l.s8.bf16 %v369_v39  ;;  %v454_v46 = vunpack.c.h.s8.bf16 %v370_v31  ;;  %v376_v49 = vld [vmem:[%s5713_s13 + $0x68] sm:$0xff]  ;;  %v375_v59 = vld [vmem:[%s5713_s13 + $0x60] sm:$0xff]  ;;  %s5095_s11 = sshll.u32 %s2199_s10, 2 }
  0x18   : > { %1048 = vmatprep.mubr.bf16.mxu0 %v436_v8  ;;  %1144 = vmatprep.mubr.bf16.mxu1 %v508_v9  ;;  %v519_v44 = vunpack.c.l.s8.bf16 %v405_v40  ;;  %v526_v47 = vunpack.c.h.s8.bf16 %v406_v32  ;;  %v412_v50 = vld [vmem:[%s5713_s13 + $0x188] sm:$0xff]  ;;  %v5465_v51 = vld [vmem:[%s7490_s2 + $0x90] sm:$0xff]   ;;  %v453_v53 = vunpack.c.h.s8.bf16 %v369_v39  ;;  %v525_v54 = vunpack.c.h.s8.bf16 %v405_v40  ;;  %v411_v60 = vld [vmem:[%s5713_s13 + $0x180] sm:$0xff]  ;;  %s6094_s15 = scalar_lea.vmem %s7490_s2, %s5095_s11 }
  0x19   : > { %v5466_v52 = vld [vmem:[%s7490_s2 + $0x110] sm:$0xff]   ;;  %v460_v55 = vunpack.c.l.s8.bf16 %v376_v49  ;;  %v532_v56 = vunpack.c.l.s8.bf16 %v412_v50  ;;  %v5467_v57 = vld [vmem:[%s7490_s2 + $0x88] sm:$0xff]   ;;  %v5469_v61 = vld [vmem:[%s7490_s2 + $0x80] sm:$0xff]   ;;  %v459_v63 = vunpack.c.l.s8.bf16 %v375_v59  ;;  %v531_v0 = vunpack.c.l.s8.bf16 %v411_v60 }
  0x1a   : > { %1023 = vmatpush1.bf16.msra.mxu0 %v5442_v4  ;;  %5398 = vmatpush1.bf16.msra.mxu1 %v5442_v4  ;;  %v5468_v58 = vld [vmem:[%s7490_s2 + $0x108] sm:$0xff]   ;;  %v5470_v62 = vld [vmem:[%s7490_s2 + $0x100] sm:$0xff]   ;;  %v466_v2 = vunpack.c.h.s8.bf16 %v376_v49  ;;  %v538_v3 = vunpack.c.h.s8.bf16 %v412_v50  ;;  %v5471_v4 = vld [vmem:[%s7490_s2 + $0xf8] sm:$0xff]  }
  0x1b   : > { %1024 = vmatprep.subr.bf16.mxu0 %v7495_v1  ;;  %5383 = vmatprep.subr.bf16.mxu1 %v7495_v1  ;;  %v382_v6 = vld [vmem:[%s5713_s13 + $0x98] sm:$0xff]  ;;  %v5473_v8 = vld [vmem:[%s7490_s2 + $0xf0] sm:$0xff]   ;;  %v387_v39 = vld [vmem:[%s5713_s13 + $0xc0] sm:$0xff] }
  0x1c   : > { %v418_v7 = vld [vmem:[%s5713_s13 + $0x1b8] sm:$0xff]  ;;  %v5474_v9 = vld [vmem:[%s7490_s2 + $0x170] sm:$0xff]   ;;  %v423_v40 = vld [vmem:[%s5713_s13 + $0x1e0] sm:$0xff] }
  0x1d   : > { %v5481_v31 = vld [vmem:[%s7490_s2 + $0xd0] sm:$0xff]  }
  0x1e   : > { %1025 = vmatpush1.bf16.msra.mxu0 %v5443_v5  ;;  %5399 = vmatpush1.bf16.msra.mxu1 %v5443_v5  ;;  %v5472_v5 = vld [vmem:[%s7490_s2 + $0x178] sm:$0xff]   ;;  %v5482_v32 = vld [vmem:[%s7490_s2 + $0x150] sm:$0xff]  }
  0x1f   : > { %1026 = vmatprep.subr.bf16.mxu0 %v7495_v1  ;;  %5384 = vmatprep.subr.bf16.mxu1 %v7495_v1 }
  0x22   : > { %1027 = vmatpush1.bf16.msra.mxu0 %v5444_v10  ;;  %5400 = vmatpush1.bf16.msra.mxu1 %v5444_v10  ;;  %v465_v10 = vunpack.c.h.s8.bf16 %v375_v59 }
  0x23   : > { %1028 = vmatprep.subr.bf16.mxu0 %v7495_v1  ;;  %5385 = vmatprep.subr.bf16.mxu1 %v7495_v1 }
  0x26   : > { %1029 = vmatpush1.bf16.msra.mxu0 %v5445_v11  ;;  %5401 = vmatpush1.bf16.msra.mxu1 %v5445_v11  ;;  %v537_v11 = vunpack.c.h.s8.bf16 %v411_v60  ;;  %v1846_v60 = vld [vmem:[%s5892_s9 + $0x40] sm:$0xff] }
  0x27   : > { %1030 = vmatprep.subr.bf16.mxu0 %v7495_v1  ;;  %5386 = vmatprep.subr.bf16.mxu1 %v7495_v1 }
  0x2a   : > { %1031 = vmatpush1.bf16.msra.mxu0 %v5446_v12  ;;  %5402 = vmatpush1.bf16.msra.mxu1 %v5446_v12  ;;  %v472_v12 = vunpack.c.l.s8.bf16 %v382_v6 }
  0x2b   : > { %1032 = vmatprep.subr.bf16.mxu0 %v7495_v1  ;;  %5387 = vmatprep.subr.bf16.mxu1 %v7495_v1 }
  0x2e   : > { %1033 = vmatpush2.bf16.msra.mxu0 %v5447_v13  ;;  %5403 = vmatpush2.bf16.msra.mxu1 %v5447_v13  ;;  %v544_v13 = vunpack.c.l.s8.bf16 %v418_v7 }
  0x2f   : > { %1034 = vmatprep.subr.bf16.mxu0 %v7495_v1  ;;  %5388 = vmatprep.subr.bf16.mxu1 %v7495_v1 }
  0x32   : > { %1035 = vmatpush2.bf16.msra.mxu0 %v5448_v14  ;;  %5404 = vmatpush2.bf16.msra.mxu1 %v5448_v14  ;;  %v5475_v14 = vld [vmem:[%s7490_s2 + $0xe8] sm:$0xff]  }
  0x33   : > { %1036 = vmatprep.subr.bf16.mxu0 %v7495_v1  ;;  %5389 = vmatprep.subr.bf16.mxu1 %v7495_v1 }
  0x36   : > { %1037 = vmatpush2.bf16.msra.mxu0 %v5449_v15  ;;  %5405 = vmatpush2.bf16.msra.mxu1 %v5449_v15  ;;  %v5476_v15 = vld [vmem:[%s7490_s2 + $0x168] sm:$0xff]  }
  0x37   : > { %1038 = vmatprep.subr.bf16.mxu0 %v7495_v1  ;;  %5390 = vmatprep.subr.bf16.mxu1 %v7495_v1 }
  0x3a   : > { %1039 = vmatpush2.bf16.msra.mxu0 %v5450_v16  ;;  %5406 = vmatpush2.bf16.msra.mxu1 %v5450_v16  ;;  %v381_v16 = vld [vmem:[%s5713_s13 + $0x90] sm:$0xff] }
  0x3b   : > { %1040 = vmatprep.subr.bf16.mxu0 %v7495_v1  ;;  %5391 = vmatprep.subr.bf16.mxu1 %v7495_v1  ;;  %v471_v21 = vunpack.c.l.s8.bf16 %v381_v16 }
  0x3e   : > { %1041 = vmatpush2.bf16.msra.mxu0 %v5451_v17  ;;  %5407 = vmatpush2.bf16.msra.mxu1 %v5451_v17  ;;  %v417_v17 = vld [vmem:[%s5713_s13 + $0x1b0] sm:$0xff] }
  0x3f   : > { %1042 = vmatprep.subr.bf16.mxu0 %v7495_v1  ;;  %5392 = vmatprep.subr.bf16.mxu1 %v7495_v1  ;;  %v543_v22 = vunpack.c.l.s8.bf16 %v417_v17 }
  0x42   : > { %1043 = vmatpush2.bf16.msra.mxu0 %v5452_v18  ;;  %5408 = vmatpush2.bf16.msra.mxu1 %v5452_v18  ;;  %v1838_v18 = vld [vmem:[%s5892_s9] sm:$0xff] }
  0x43   : > { %1044 = vmatprep.subr.bf16.mxu0 %v7495_v1  ;;  %5393 = vmatprep.subr.bf16.mxu1 %v7495_v1 }
  0x44   : > { %1888 = vperm.xlu0 %5437, %v1838_v18   ;;  %v1851_v18 = vld [vmem:[%s5892_s9 + $0x68] sm:$0xff] }
  0x46   : > { %1045 = vmatpush2.bf16.msra.mxu0 %v5453_v19  ;;  %5409 = vmatpush2.bf16.msra.mxu1 %v5453_v19  ;;  %v5477_v19 = vld [vmem:[%s7490_s2 + $0xe0] sm:$0xff]  }
  0x47   : > { %1046 = vmatprep.subr.bf16.mxu0 %v7495_v1  ;;  %5394 = vmatprep.subr.bf16.mxu1 %v7495_v1 }
  0x4a   : > { %1047 = vmatpush2.bf16.msra.mxu0 %v5454_v20  ;;  %5410 = vmatpush2.bf16.msra.mxu1 %v5454_v20  ;;  %v5478_v20 = vld [vmem:[%s7490_s2 + $0x160] sm:$0xff]  }
  0x4b   : > { %1241 = vmatprep.subr.bf16.mxu1 %v7495_v1  ;;  %1466 = vmatprep.subr.bf16.mxu0 %v7495_v1 }
  0x4d   : > { %1049 = vmatmul.mubr.bf16.vlgmr.msra.gmra.mxu0 %v435_v23  ;;  %1145 = vmatmul.mubr.bf16.vlgmr.msra.gmra.mxu1 %v507_v24  ;;  %v478_v23 = vunpack.c.h.s8.bf16 %v382_v6  ;;  %v550_v24 = vunpack.c.h.s8.bf16 %v418_v7  ;;  %v366_v6 = vld [vmem:[%s5713_s13 + $0x18] sm:$0xff]  ;;  %v368_v7 = vld [vmem:[%s5713_s13 + $0x28] sm:$0xff] }
  0x4e   : > { %1242 = vmatpush1.bf16.msra.mxu1 %v5455_v25  ;;  %1467 = vmatpush1.bf16.msra.mxu0 %v5456_v26  ;;  %v5479_v25 = vld [vmem:[%s7490_s2 + $0xd8] sm:$0xff]  }
  0x4f   : > { %1243 = vmatprep.subr.bf16.mxu1 %v7495_v1  ;;  %1468 = vmatprep.subr.bf16.mxu0 %v7495_v1  ;;  %v5480_v26 = vld [vmem:[%s7490_s2 + $0x158] sm:$0xff]  }
  0x50   : > { %1056 = vmatprep.mubr.bf16.mxu0 %v442_v27  ;;  %1152 = vmatprep.mubr.bf16.mxu1 %v514_v28  ;;  %v388_v27 = vld [vmem:[%s5713_s13 + $0xc8] sm:$0xff] }
  0x51   : > { %v1839_v28 = vld [vmem:[%s5892_s9 + $0x8] sm:$0xff]  ;;  %v490_v49 = vunpack.c.h.s8.bf16 %v388_v27 }
  0x52   : > { %1244 = vmatpush1.bf16.msra.mxu1 %v5457_v29  ;;  %1469 = vmatpush1.bf16.msra.mxu0 %v5458_v30  ;;  %v1840_v29 = vld [vmem:[%s5892_s9 + $0x10] sm:$0xff]  ;;  %v424_v30 = vld [vmem:[%s5713_s13 + $0x1e8] sm:$0xff] }
  0x53   : > { %1245 = vmatprep.subr.bf16.mxu1 %v7495_v1  ;;  %1470 = vmatprep.subr.bf16.mxu0 %v7495_v1  ;;  %v562_v50 = vunpack.c.h.s8.bf16 %v424_v30 }
  0x54   : > { %1893 = vperm.xlu0 %5437, %v1839_v28   ;;  %1898 = vperm.xlu1 %5438, %v1840_v29   ;;  %v1852_v28 = vld [vmem:[%s5892_s9 + $0x70] sm:$0xff]  ;;  %v374_v29 = vld [vmem:[%s5713_s13 + $0x58] sm:$0xff] }
  0x55   : > { %1057 = vmatmul.mubr.bf16.gmra.mxu0 %v441_v35  ;;  %1153 = vmatmul.mubr.bf16.gmra.mxu1 %v513_v36  ;;  %v484_v35 = vunpack.c.l.s8.bf16 %v388_v27  ;;  %v556_v36 = vunpack.c.l.s8.bf16 %v424_v30  ;;  %v5496_v27 = vld [vmem:[%s7492_s4 + $0xc8] ss:$16 sps:$4 sm:$0xff]   ;;  %v5501_v30 = vld [vmem:[%s7492_s4 + $0xa4] ss:$16 sps:$4 sm:$0xff]  }
  0x56   : > { %1246 = vmatpush1.bf16.msra.mxu1 %v5459_v33  ;;  %1471 = vmatpush1.bf16.msra.mxu0 %v5460_v34  ;;  %v477_v33 = vunpack.c.h.s8.bf16 %v381_v16  ;;  %v549_v34 = vunpack.c.h.s8.bf16 %v417_v17 }
  0x57   : > { %1064 = vmatprep.mubr.bf16.mxu0 %v448_v37  ;;  %1160 = vmatprep.mubr.bf16.mxu1 %v520_v38  ;;  %v5483_v37 = vld [vmem:[%s7490_s2 + $0xc8] sm:$0xff]  }
  0x58   : > { %1247 = vmatprep.subr.bf16.mxu1 %v7495_v1  ;;  %1472 = vmatprep.subr.bf16.mxu0 %v7495_v1  ;;  %v5484_v38 = vld [vmem:[%s7490_s2 + $0x148] sm:$0xff]  }
  0x5a   : > { %1248 = vmatpush1.bf16.msra.mxu1 %v5461_v41  ;;  %1473 = vmatpush1.bf16.msra.mxu0 %v5462_v42  ;;  %v1841_v41 = vld [vmem:[%s5892_s9 + $0x18] sm:$0xff]  ;;  %v1842_v42 = vld [vmem:[%s5892_s9 + $0x20] sm:$0xff] }
  0x5b   : > { %1249 = vmatprep.subr.bf16.mxu1 %v7495_v1  ;;  %1474 = vmatprep.subr.bf16.mxu0 %v7495_v1 }
  0x5c   : > { %1903 = vperm.xlu1 %5438, %v1841_v41   ;;  %1908 = vperm.xlu0 %5437, %v1842_v42   ;;  %v371_v41 = vld [vmem:[%s5713_s13 + $0x40] sm:$0xff]  ;;  %v373_v42 = vld [vmem:[%s5713_s13 + $0x50] sm:$0xff] }
  0x5d   : > { %1065 = vmatmul.mubr.bf16.gmra.mxu0 %v447_v43  ;;  %1161 = vmatmul.mubr.bf16.gmra.mxu1 %v519_v44  ;;  %v5485_v43 = vld [vmem:[%s7490_s2 + $0xc0] sm:$0xff]  }
  0x5e   : > { %1072 = vmatprep.mubr.bf16.mxu0 %v454_v46  ;;  %1168 = vmatprep.mubr.bf16.mxu1 %v526_v47  ;;  %v5486_v44 = vld [vmem:[%s7490_s2 + $0x140] sm:$0xff]   ;;  %v5492_v46 = vld [vmem:[%s7492_s4 + $0xec] ss:$16 sps:$4 sm:$0xff]   ;;  %v483_v47 = vunpack.c.l.s8.bf16 %v387_v39 }
  0x5f   : > { %1250 = vmatpush1.bf16.msra.mxu1 %v5463_v45  ;;  %1475 = vmatpush1.bf16.msra.mxu0 %v5464_v48  ;;  %v5489_v45 = vld [vmem:[%s7492_s4 + $0xe4] ss:$16 sps:$4 sm:$0xff]   ;;  %v555_v48 = vunpack.c.l.s8.bf16 %v423_v40 }
  0x60   : > { %1251 = vmatprep.subr.bf16.mxu1 %v7495_v1  ;;  %1476 = vmatprep.subr.bf16.mxu0 %v7495_v1 }
  0x63   : > { %1252 = vmatpush1.bf16.msra.mxu1 %v5465_v51  ;;  %1477 = vmatpush1.bf16.msra.mxu0 %v5466_v52  ;;  %v1843_v51 = vld [vmem:[%s5892_s9 + $0x28] sm:$0xff]  ;;  %v1844_v52 = vld [vmem:[%s5892_s9 + $0x30] sm:$0xff] }
  0x64   : > { %1253 = vmatprep.subr.bf16.mxu1 %v7495_v1  ;;  %1478 = vmatprep.subr.bf16.mxu0 %v7495_v1 }
  0x65   : > { %1073 = vmatmul.mubr.bf16.gmra.mxu0 %v453_v53  ;;  %1169 = vmatmul.mubr.bf16.gmra.mxu1 %v525_v54  ;;  %v394_v53 = vld [vmem:[%s5713_s13 + $0xf8] sm:$0xff] }
  0x66   : > { %1080 = vmatprep.mubr.bf16.mxu0 %v460_v55  ;;  %1176 = vmatprep.mubr.bf16.mxu1 %v532_v56  ;;  %v430_v54 = vld [vmem:[%s5713_s13 + $0x218] sm:$0xff]  ;;  %v489_v55 = vunpack.c.h.s8.bf16 %v387_v39  ;;  %v561_v56 = vunpack.c.h.s8.bf16 %v423_v40  ;;  %v5507_v39 = vld [vmem:[%s7492_s4 + $0x84] ss:$16 sps:$4 sm:$0xff]  }
  0x67   : > { %1254 = vmatpush1.bf16.msra.mxu1 %v5467_v57  ;;  %1479 = vmatpush1.bf16.msra.mxu0 %v5468_v58  ;;  %v1845_v57 = vld [vmem:[%s5892_s9 + $0x38] sm:$0xff]  ;;  %v496_v58 = vunpack.c.l.s8.bf16 %v394_v53  ;;  %v568_v59 = vunpack.c.l.s8.bf16 %v430_v54 }
  0x68   : > { %1255 = vmatprep.subr.bf16.mxu1 %v7495_v1  ;;  %1480 = vmatprep.subr.bf16.mxu0 %v7495_v1  ;;  %v5510_v40 = vld [vmem:[%s7492_s4 + $0x8c] ss:$16 sps:$4 sm:$0xff]  }
  0x69   : > { %1913 = vperm.xlu1 %5438, %v1843_v51   ;;  %1918 = vperm.xlu0 %5437, %v1844_v52   ;;  %v458_v52 = vunpack.c.h.s8.bf16 %v374_v29 }
  0x6b   : > { %1256 = vmatpush1.bf16.msra.mxu1 %v5469_v61  ;;  %1481 = vmatpush1.bf16.msra.mxu0 %v5470_v62  ;;  %v393_v61 = vld [vmem:[%s5713_s13 + $0xf0] sm:$0xff] }
  0x6c   : > { %1257 = vmatprep.subr.bf16.mxu1 %v7495_v1  ;;  %1482 = vmatprep.subr.bf16.mxu0 %v7495_v1  ;;  %v429_v62 = vld [vmem:[%s5713_s13 + $0x210] sm:$0xff] }
  0x6d   : > { %1081 = vmatmul.mubr.bf16.gmra.mxu0 %v459_v63  ;;  %1177 = vmatmul.mubr.bf16.gmra.mxu1 %v531_v0  ;;  %v495_v63 = vunpack.c.l.s8.bf16 %v393_v61  ;;  %v567_v0 = vunpack.c.l.s8.bf16 %v429_v62 }
  0x6e   : > { %1088 = vmatprep.mubr.bf16.mxu0 %v466_v2  ;;  %1184 = vmatprep.mubr.bf16.mxu1 %v538_v3  ;;  %v1847_v2 = vld [vmem:[%s5892_s9 + $0x48] sm:$0xff]  ;;  %v502_v3 = vunpack.c.h.s8.bf16 %v394_v53  ;;  %v5511_v53 = vld [vmem:[%s7492_s4 + $0x60] ss:$16 sps:$4 sm:$0xff]  }
  0x6f   : > { %1258 = vmatpush2.bf16.msra.mxu1 %v5471_v4  ;;  %1483 = vmatpush2.bf16.msra.mxu0 %v5472_v5  ;;  %v574_v4 = vunpack.c.h.s8.bf16 %v430_v54  ;;  %v1848_v5 = vld [vmem:[%s5892_s9 + $0x50] sm:$0xff]  ;;  %v5514_v54 = vld [vmem:[%s7492_s4 + $0x68] ss:$16 sps:$4 sm:$0xff]  }
  0x70   : > { %1259 = vmatprep.subr.bf16.mxu1 %v7495_v1  ;;  %1484 = vmatprep.subr.bf16.mxu0 %v7495_v1 }
  0x71   : > { %1923 = vperm.xlu1 %5438, %v1845_v57   ;;  %1928 = vperm.xlu0 %5437, %v1846_v60   ;;  %v378_v57 = vld [vmem:[%s5713_s13 + $0x78] sm:$0xff]  ;;  %v5517_v60 = vld [vmem:[%s7492_s4 + $0x40] ss:$16 sps:$4 sm:$0xff]  }
  0x73   : > { %1260 = vmatpush2.bf16.msra.mxu1 %v5473_v8  ;;  %1485 = vmatpush2.bf16.msra.mxu0 %v5474_v9  ;;  %v501_v8 = vunpack.c.h.s8.bf16 %v393_v61  ;;  %v573_v9 = vunpack.c.h.s8.bf16 %v429_v62  ;;  %v5520_v61 = vld [vmem:[%s7492_s4 + $0x48] ss:$16 sps:$4 sm:$0xff]   ;;  %v5525_v62 = vld [vmem:[%s7492_s4 + $0x24] ss:$16 sps:$4 sm:$0xff]  }
  0x74   : > { %1261 = vmatprep.subr.bf16.mxu1 %v7495_v1  ;;  %1486 = vmatprep.subr.bf16.mxu0 %v7495_v1 }
  0x75   : > { %1089 = vmatmul.mubr.bf16.gmra.mxu0 %v465_v10  ;;  %1185 = vmatmul.mubr.bf16.gmra.mxu1 %v537_v11  ;;  %v1849_v10 = vld [vmem:[%s5892_s9 + $0x58] sm:$0xff]  ;;  %v438_v11 = vunpack.c.l.s8.bf16 %v366_v6 }
  0x76   : > { %1096 = vmatprep.mubr.bf16.mxu0 %v472_v12  ;;  %1192 = vmatprep.mubr.bf16.mxu1 %v544_v13  ;;  %v440_v12 = vunpack.c.l.s8.bf16 %v368_v7  ;;  %v365_v13 = vld [vmem:[%s5713_s13 + $0x10] sm:$0xff] }
  0x77   : > { %1262 = vmatpush2.bf16.msra.mxu1 %v5475_v14  ;;  %1487 = vmatpush2.bf16.msra.mxu0 %v5476_v15  ;;  %v367_v14 = vld [vmem:[%s5713_s13 + $0x20] sm:$0xff]  ;;  %v437_v16 = vunpack.c.l.s8.bf16 %v365_v13 }
  0x78   : > { %1263 = vmatprep.subr.bf16.mxu1 %v7495_v1  ;;  %1488 = vmatprep.subr.bf16.mxu0 %v7495_v1  ;;  %v1850_v15 = vld [vmem:[%s5892_s9 + $0x60] sm:$0xff]  ;;  %v439_v17 = vunpack.c.l.s8.bf16 %v367_v14 }
  0x79   : > { %1933 = vperm.xlu1 %5438, %v1847_v2   ;;  %1938 = vperm.xlu0 %5437, %v1848_v5   ;;  %v457_v2 = vunpack.c.h.s8.bf16 %v373_v42 }
  0x7b   : > { %1264 = vmatpush2.bf16.msra.mxu1 %v5477_v19  ;;  %1489 = vmatpush2.bf16.msra.mxu0 %v5478_v20  ;;  %v5487_v19 = vld [vmem:[%s7492_s4 + $0xe0] ss:$16 sps:$4 sm:$0xff]   ;;  %v5490_v20 = vld [vmem:[%s7492_s4 + $0xe8] ss:$16 sps:$4 sm:$0xff]  }
  0x7c   : > { %1265 = vmatprep.subr.bf16.mxu1 %v7495_v1  ;;  %1490 = vmatprep.subr.bf16.mxu0 %v7495_v1 }
  0x7d   : > { %1097 = vmatmul.mubr.bf16.gmra.mxu0 %v471_v21  ;;  %1193 = vmatmul.mubr.bf16.gmra.mxu1 %v543_v22  ;;  %v444_v21 = vunpack.c.h.s8.bf16 %v366_v6  ;;  %v446_v22 = vunpack.c.h.s8.bf16 %v368_v7  ;;  %v5523_v6 = vld [vmem:[%s7492_s4 + $0x20] ss:$16 sps:$4 sm:$0xff]   ;;  %v5526_v7 = vld [vmem:[%s7492_s4 + $0x28] ss:$16 sps:$4 sm:$0xff]  }
  0x7e   : > { %1104 = vmatprep.mubr.bf16.mxu0 %v478_v23  ;;  %1200 = vmatprep.mubr.bf16.mxu1 %v550_v24  ;;  %v5495_v23 = vld [vmem:[%s7492_s4 + $0xc4] ss:$16 sps:$4 sm:$0xff]   ;;  %v5498_v24 = vld [vmem:[%s7492_s4 + $0xcc] ss:$16 sps:$4 sm:$0xff]  }
  0x7f   : > { %1266 = vmatpush2.bf16.msra.mxu1 %v5479_v25  ;;  %1491 = vmatpush2.bf16.msra.mxu0 %v5480_v26  ;;  %v372_v25 = vld [vmem:[%s5713_s13 + $0x48] sm:$0xff]  ;;  %v5493_v26 = vld [vmem:[%s7492_s4 + $0xc0] ss:$16 sps:$4 sm:$0xff]  }
  0x80   : > { %1267 = vmatprep.subr.bf16.mxu1 %v7495_v1  ;;  %1492 = vmatprep.subr.bf16.mxu0 %v7495_v1  ;;  %v456_v51 = vunpack.c.h.s8.bf16 %v372_v25 }
  0x81   : > { %1943 = vperm.xlu1 %5438, %v1849_v10   ;;  %1948 = vperm.xlu0 %5437, %v1850_v15   ;;  %v379_v10 = vld [vmem:[%s5713_s13 + $0x80] sm:$0xff] }
  0x83   : > { %1268 = vmatpush2.bf16.msra.mxu1 %v5481_v31  ;;  %1493 = vmatpush2.bf16.msra.mxu0 %v5482_v32  ;;  %v5504_v31 = vld [vmem:[%s7492_s4 + $0xac] ss:$16 sps:$4 sm:$0xff]   ;;  %v443_v32 = vunpack.c.h.s8.bf16 %v365_v13 }
  0x84   : > { %1269 = vmatprep.subr.bf16.mxu1 %v7495_v1  ;;  %1494 = vmatprep.subr.bf16.mxu0 %v7495_v1  ;;  %v1859_v13 = vld [vmem:[%s5892_s9 + $0xa8] sm:$0xff] }
  0x85   : > { %1105 = vmatmul.mubr.bf16.gmra.mxu0 %v477_v33  ;;  %1201 = vmatmul.mubr.bf16.gmra.mxu1 %v549_v34  ;;  %v445_v33 = vunpack.c.h.s8.bf16 %v367_v14  ;;  %v1853_v34 = vld [vmem:[%s5892_s9 + $0x78] sm:$0xff]  ;;  %v468_v14 = vunpack.c.h.s8.bf16 %v378_v57 }
  0x86   : > { %1112 = vmatprep.mubr.bf16.mxu0 %v484_v35  ;;  %1208 = vmatprep.mubr.bf16.mxu1 %v556_v36  ;;  %v450_v35 = vunpack.c.l.s8.bf16 %v372_v25  ;;  %v452_v36 = vunpack.c.l.s8.bf16 %v374_v29  ;;  %v5529_v25 = vld [vmem:[%s7492_s4] ss:$16 sps:$4 sm:$0xff]   ;;  %v5534_v29 = vld [vmem:[%s7492_s4 + $0xc] ss:$16 sps:$4 sm:$0xff]  }
  0x87   : > { %1270 = vmatpush2.bf16.msra.mxu1 %v5483_v37  ;;  %1495 = vmatpush2.bf16.msra.mxu0 %v5484_v38  ;;  %v5499_v37 = vld [vmem:[%s7492_s4 + $0xa0] ss:$16 sps:$4 sm:$0xff]   ;;  %v5502_v38 = vld [vmem:[%s7492_s4 + $0xa8] ss:$16 sps:$4 sm:$0xff]  }
  0x88   : > { %1271 = vmatprep.subr.bf16.mxu1 %v7495_v1  ;;  %1496 = vmatprep.subr.bf16.mxu0 %v7495_v1 }
  0x89   : > { %1953 = vperm.xlu1 %5438, %v1851_v18   ;;  %1958 = vperm.xlu0 %5437, %v1852_v28   ;;  %v386_v18 = vld [vmem:[%s5713_s13 + $0xb8] sm:$0xff]  ;;  %v385_v28 = vld [vmem:[%s5713_s13 + $0xb0] sm:$0xff] }
  0x8b   : > { %1272 = vmatpush2.bf16.msra.mxu1 %v5485_v43  ;;  %1497 = vmatpush2.bf16.msra.mxu0 %v5486_v44  ;;  %v1854_v43 = vld [vmem:[%s5892_s9 + $0x80] sm:$0xff] }
  0x8c   : > { %2619 = vmatprep.subr.bf16.mxu1 %v5489_v45  ;;  %2892 = vmatprep.subr.bf16.mxu0 %v5492_v46  ;;  %v5505_v44 = vld [vmem:[%s7492_s4 + $0x80] ss:$16 sps:$4 sm:$0xff]   ;;  %v5508_v45 = vld [vmem:[%s7492_s4 + $0x88] ss:$16 sps:$4 sm:$0xff]   ;;  %v5513_v46 = vld [vmem:[%s7492_s4 + $0x64] ss:$16 sps:$4 sm:$0xff]  }
  0x8d   : > { %1113 = vmatmul.mubr.bf16.gmra.mxu0 %v483_v47  ;;  %1209 = vmatmul.mubr.bf16.gmra.mxu1 %v555_v48  ;;  %v5516_v47 = vld [vmem:[%s7492_s4 + $0x6c] ss:$16 sps:$4 sm:$0xff]   ;;  %v449_v48 = vunpack.c.l.s8.bf16 %v371_v41 }
  0x8e   : > { %1120 = vmatprep.mubr.bf16.mxu0 %v490_v49  ;;  %1216 = vmatprep.mubr.bf16.mxu1 %v562_v50  ;;  %v451_v49 = vunpack.c.l.s8.bf16 %v373_v42  ;;  %v1855_v50 = vld [vmem:[%s5892_s9 + $0x88] sm:$0xff] }
  0x8f   : > { %1963 = vperm.xlu1 %5438, %v1853_v34   ;;  %1968 = vperm.xlu0 %5437, %v1854_v43  }
  0x93   : > { %1973 = vperm.xlu1 %5438, %v1855_v50  }
  0x95   : > { %1121 = vmatmul.mubr.bf16.gmra.mxu0 %v489_v55  ;;  %1217 = vmatmul.mubr.bf16.gmra.mxu1 %v561_v56  ;;  %v5519_v55 = vld [vmem:[%s7492_s4 + $0x44] ss:$16 sps:$4 sm:$0xff]   ;;  %v5522_v56 = vld [vmem:[%s7492_s4 + $0x4c] ss:$16 sps:$4 sm:$0xff]  }
  0x96   : > { %1128 = vmatprep.mubr.bf16.mxu0 %v496_v58  ;;  %1224 = vmatprep.mubr.bf16.mxu1 %v568_v59  ;;  %v1856_v58 = vld [vmem:[%s5892_s9 + $0x90] sm:$0xff]  ;;  %v380_v59 = vld [vmem:[%s5713_s13 + $0x88] sm:$0xff] }
  0x97   : > { %1978 = vperm.xlu0 %5437, %v1856_v58   ;;  %v464_v5 = vunpack.c.l.s8.bf16 %v380_v59  ;;  %v470_v15 = vunpack.c.h.s8.bf16 %v380_v59  ;;  %v5541_v58 = vld [vmem:[%s7491_s3 + $0xec] ss:$16 sps:$4 sm:$0xff]  }
  0x98   : > { %v1869_v59 = vld [vmem:[%s5892_s9 + $0xf8] sm:$0xff] }
  0x9d   : > { %1129 = vmatmul.mubr.bf16.gmra.mxu0 %v495_v63  ;;  %1225 = vmatmul.mubr.bf16.gmra.mxu1 %v567_v0  ;;  %v5528_v63 = vld [vmem:[%s7492_s4 + $0x2c] ss:$16 sps:$4 sm:$0xff]   ;;  %v455_v0 = vunpack.c.h.s8.bf16 %v371_v41 }
  0x9e   : > { %1136 = vmatprep.mubr.bf16.mxu0 %v502_v3  ;;  %1232 = vmatprep.mubr.bf16.mxu1 %v574_v4  ;;  %v1857_v3 = vld [vmem:[%s5892_s9 + $0x98] sm:$0xff]  ;;  %v462_v4 = vunpack.c.l.s8.bf16 %v378_v57 }
  0x9f   : > { %1983 = vperm.xlu1 %5438, %v1857_v3   ;;  %v1865_v41 = vld [vmem:[%s5892_s9 + $0xd8] sm:$0xff] }
  0xa3   : > { %1993 = vperm.xlu1 %5438, %v1859_v13  }
  0xa5   : > { %1137 = vmatmul.mubr.bf16.gmra.mxu0 %v501_v8  ;;  %1233 = vmatmul.mubr.bf16.gmra.mxu1 %v573_v9  ;;  %v1858_v8 = vld [vmem:[%s5892_s9 + $0xa0] sm:$0xff]  ;;  %v377_v9 = vld [vmem:[%s5713_s13 + $0x70] sm:$0xff] }
  0xa6   : > { %1273 = vmatprep.mubr.bf16.mxu1 %v438_v11  ;;  %1498 = vmatprep.mubr.bf16.mxu0 %v440_v12  ;;  %v461_v11 = vunpack.c.l.s8.bf16 %v377_v9  ;;  %v463_v12 = vunpack.c.l.s8.bf16 %v379_v10 }
  0xa7   : > { %1988 = vperm.xlu0 %5437, %v1858_v8   ;;  %v402_v8 = vld [vmem:[%s5713_s13 + $0x138] sm:$0xff] }
  0xa8   : > { %v510_v13 = vunpack.c.l.s8.bf16 %v402_v8 }
  0xad   : > { %1274 = vmatmul.mubr.bf16.vlgmr.msra.gmra.mxu1 %v437_v16  ;;  %1499 = vmatmul.mubr.bf16.vlgmr.msra.gmra.mxu0 %v439_v17  ;;  %v1860_v16 = vld [vmem:[%s5892_s9 + $0xb0] sm:$0xff]  ;;  %v384_v17 = vld [vmem:[%s5713_s13 + $0xa8] sm:$0xff] }
  0xae   : > { %2620 = vmatpush1.bf16.msra.mxu1 %v5487_v19  ;;  %2893 = vmatpush1.bf16.msra.mxu0 %v5490_v20  ;;  %v467_v19 = vunpack.c.h.s8.bf16 %v377_v9  ;;  %v469_v20 = vunpack.c.h.s8.bf16 %v379_v10  ;;  %v480_v34 = vunpack.c.h.s8.bf16 %v384_v17  ;;  %v404_v9 = vld [vmem:[%s5713_s13 + $0x148] sm:$0xff] }
  0xaf   : > { %1281 = vmatprep.mubr.bf16.mxu1 %v444_v21  ;;  %1506 = vmatprep.mubr.bf16.mxu0 %v446_v22  ;;  %v1861_v21 = vld [vmem:[%s5892_s9 + $0xb8] sm:$0xff]  ;;  %v474_v22 = vunpack.c.l.s8.bf16 %v384_v17  ;;  %v403_v17 = vld [vmem:[%s5713_s13 + $0x140] sm:$0xff] }
  0xb0   : > { %2621 = vmatprep.subr.bf16.mxu1 %v5495_v23  ;;  %2894 = vmatprep.subr.bf16.mxu0 %v5498_v24  ;;  %v476_v23 = vunpack.c.l.s8.bf16 %v386_v18  ;;  %v383_v24 = vld [vmem:[%s5713_s13 + $0xa0] sm:$0xff] }
  0xb1   : > { %1998 = vperm.xlu0 %5437, %v1860_v16   ;;  %2003 = vperm.xlu1 %5438, %v1861_v21   ;;  %v401_v16 = vld [vmem:[%s5713_s13 + $0x130] sm:$0xff]  ;;  %v516_v21 = vunpack.c.h.s8.bf16 %v402_v8  ;;  %v1882_v8 = vld [vmem:[%s5892_s9 + $0x160] sm:$0xff] }
  0xb2   : > { %2622 = vmatpush1.bf16.msra.mxu1 %v5493_v26  ;;  %2895 = vmatpush1.bf16.msra.mxu0 %v5496_v27  ;;  %v5531_v26 = vld [vmem:[%s7492_s4 + $0x4] ss:$16 sps:$4 sm:$0xff]   ;;  %v5532_v27 = vld [vmem:[%s7492_s4 + $0x8] ss:$16 sps:$4 sm:$0xff]  }
  0xb3   : > { %2623 = vmatprep.subr.bf16.mxu1 %v5501_v30  ;;  %2896 = vmatprep.subr.bf16.mxu0 %v5504_v31  ;;  %v1862_v30 = vld [vmem:[%s5892_s9 + $0xc0] sm:$0xff]  ;;  %v473_v31 = vunpack.c.l.s8.bf16 %v383_v24 }
  0xb5   : > { %1282 = vmatmul.mubr.bf16.gmra.mxu1 %v443_v32  ;;  %1507 = vmatmul.mubr.bf16.gmra.mxu0 %v445_v33  ;;  %v475_v32 = vunpack.c.l.s8.bf16 %v385_v28  ;;  %v1863_v33 = vld [vmem:[%s5892_s9 + $0xc8] sm:$0xff] }
  0xb6   : > { %1289 = vmatprep.mubr.bf16.mxu1 %v450_v35  ;;  %1514 = vmatprep.mubr.bf16.mxu0 %v452_v36  ;;  %v482_v35 = vunpack.c.h.s8.bf16 %v386_v18  ;;  %v1864_v36 = vld [vmem:[%s5892_s9 + $0xd0] sm:$0xff]  ;;  %v509_v18 = vunpack.c.l.s8.bf16 %v401_v16 }
  0xb7   : > { %2624 = vmatpush1.bf16.msra.mxu1 %v5499_v37  ;;  %2897 = vmatpush1.bf16.msra.mxu0 %v5502_v38  ;;  %v390_v37 = vld [vmem:[%s5713_s13 + $0xd8] sm:$0xff]  ;;  %v392_v38 = vld [vmem:[%s5713_s13 + $0xe8] sm:$0xff] }
  0xb8   : > { %2625 = vmatprep.subr.bf16.mxu1 %v5507_v39  ;;  %2898 = vmatprep.subr.bf16.mxu0 %v5510_v40  ;;  %v479_v39 = vunpack.c.h.s8.bf16 %v383_v24  ;;  %v481_v40 = vunpack.c.h.s8.bf16 %v385_v28  ;;  %v486_v42 = vunpack.c.l.s8.bf16 %v390_v37  ;;  %v488_v43 = vunpack.c.l.s8.bf16 %v392_v38  ;;  %v408_v28 = vld [vmem:[%s5713_s13 + $0x168] sm:$0xff] }
  0xb9   : > { %2008 = vperm.xlu0 %5437, %v1862_v30   ;;  %2013 = vperm.xlu1 %5438, %v1863_v33   ;;  %v492_v50 = vunpack.c.h.s8.bf16 %v390_v37  ;;  %v517_v33 = vunpack.c.h.s8.bf16 %v403_v17 }
  0xbb   : > { %2626 = vmatpush1.bf16.msra.mxu1 %v5505_v44  ;;  %2899 = vmatpush1.bf16.msra.mxu0 %v5508_v45  ;;  %v1866_v44 = vld [vmem:[%s5892_s9 + $0xe0] sm:$0xff]  ;;  %v389_v45 = vld [vmem:[%s5713_s13 + $0xd0] sm:$0xff] }
  0xbc   : > { %2627 = vmatprep.subr.bf16.mxu1 %v5513_v46  ;;  %2900 = vmatprep.subr.bf16.mxu0 %v5516_v47  ;;  %v391_v46 = vld [vmem:[%s5713_s13 + $0xe0] sm:$0xff]  ;;  %v485_v47 = vunpack.c.l.s8.bf16 %v389_v45 }
  0xbd   : > { %1290 = vmatmul.mubr.bf16.gmra.mxu1 %v449_v48  ;;  %1515 = vmatmul.mubr.bf16.gmra.mxu0 %v451_v49  ;;  %v487_v48 = vunpack.c.l.s8.bf16 %v391_v46  ;;  %v1867_v49 = vld [vmem:[%s5892_s9 + $0xe8] sm:$0xff]  ;;  %v493_v57 = vunpack.c.h.s8.bf16 %v391_v46 }
  0xbe   : > { %1297 = vmatprep.mubr.bf16.mxu1 %v456_v51  ;;  %1522 = vmatprep.mubr.bf16.mxu0 %v458_v52  ;;  %v494_v51 = vunpack.c.h.s8.bf16 %v392_v38  ;;  %v396_v52 = vld [vmem:[%s5713_s13 + $0x108] sm:$0xff] }
  0xbf   : > { %2628 = vmatpush1.bf16.msra.mxu1 %v5511_v53  ;;  %2901 = vmatpush1.bf16.msra.mxu0 %v5514_v54  ;;  %v398_v53 = vld [vmem:[%s5713_s13 + $0x118] sm:$0xff]  ;;  %v1868_v54 = vld [vmem:[%s5892_s9 + $0xf0] sm:$0xff] }
  0xc0   : > { %2629 = vmatprep.subr.bf16.mxu1 %v5519_v55  ;;  %2902 = vmatprep.subr.bf16.mxu0 %v5522_v56  ;;  %v5538_v55 = vld [vmem:[%s7491_s3 + $0xe4] ss:$16 sps:$4 sm:$0xff]   ;;  %v491_v56 = vunpack.c.h.s8.bf16 %v389_v45 }
  0xc1   : > { %2018 = vperm.xlu0 %5437, %v1864_v36   ;;  %2023 = vperm.xlu1 %5438, %v1865_v41   ;;  %v1878_v41 = vld [vmem:[%s5892_s9 + $0x140] sm:$0xff] }
  0xc3   : > { %2630 = vmatpush1.bf16.msra.mxu1 %v5517_v60  ;;  %2903 = vmatpush1.bf16.msra.mxu0 %v5520_v61  ;;  %v498_v60 = vunpack.c.l.s8.bf16 %v396_v52  ;;  %v500_v61 = vunpack.c.l.s8.bf16 %v398_v53 }
  0xc4   : > { %2631 = vmatprep.subr.bf16.mxu1 %v5525_v62  ;;  %2904 = vmatprep.subr.bf16.mxu0 %v5528_v63  ;;  %v395_v62 = vld [vmem:[%s5713_s13 + $0x100] sm:$0xff]  ;;  %v397_v63 = vld [vmem:[%s5713_s13 + $0x110] sm:$0xff] }
  0xc5   : > { %1298 = vmatmul.mubr.bf16.gmra.mxu1 %v455_v0  ;;  %1523 = vmatmul.mubr.bf16.gmra.mxu0 %v457_v2  ;;  %v1870_v0 = vld [vmem:[%s5892_s9 + $0x100] sm:$0xff]  ;;  %v497_v2 = vunpack.c.l.s8.bf16 %v395_v62  ;;  %v499_v3 = vunpack.c.l.s8.bf16 %v397_v63  ;;  %v503_v10 = vunpack.c.h.s8.bf16 %v395_v62 }
  0xc6   : > { %1305 = vmatprep.mubr.bf16.mxu1 %v462_v4  ;;  %1530 = vmatprep.mubr.bf16.mxu0 %v464_v5  ;;  %v1871_v4 = vld [vmem:[%s5892_s9 + $0x108] sm:$0xff]  ;;  %v504_v5 = vunpack.c.h.s8.bf16 %v396_v52 }
  0xc7   : > { %2632 = vmatpush1.bf16.msra.mxu1 %v5523_v6  ;;  %2905 = vmatpush1.bf16.msra.mxu0 %v5526_v7  ;;  %v506_v6 = vunpack.c.h.s8.bf16 %v398_v53  ;;  %v1872_v7 = vld [vmem:[%s5892_s9 + $0x110] sm:$0xff] }
  0xc8   : > { %2633 = vmatprep.subr.bf16.mxu1 %v5531_v26  ;;  %2906 = vmatprep.subr.bf16.mxu0 %v5534_v29  ;;  %v410_v29 = vld [vmem:[%s5713_s13 + $0x178] sm:$0xff] }
  0xc9   : > { %2028 = vperm.xlu0 %5437, %v1866_v44   ;;  %2033 = vperm.xlu1 %5438, %v1867_v49   ;;  %v524_v36 = vunpack.c.l.s8.bf16 %v410_v29  ;;  %v530_v52 = vunpack.c.h.s8.bf16 %v410_v29 }
  0xcb   : > { %2634 = vmatpush1.bf16.msra.mxu1 %v5529_v25  ;;  %2907 = vmatpush1.bf16.msra.mxu0 %v5532_v27  ;;  %v1876_v25 = vld [vmem:[%s5892_s9 + $0x130] sm:$0xff] }
  0xcc   : > { %3325 = vmatprep.subr.bf16.mxu1 %v5538_v55  ;;  %3598 = vmatprep.subr.bf16.mxu0 %v5541_v58 }
  0xcd   : > { %1306 = vmatmul.mubr.bf16.gmra.mxu1 %v461_v11  ;;  %1531 = vmatmul.mubr.bf16.gmra.mxu0 %v463_v12  ;;  %v505_v11 = vunpack.c.h.s8.bf16 %v397_v63  ;;  %v1873_v12 = vld [vmem:[%s5892_s9 + $0x118] sm:$0xff] }
  0xce   : > { %1313 = vmatprep.mubr.bf16.mxu1 %v468_v14  ;;  %1538 = vmatprep.mubr.bf16.mxu0 %v470_v15  ;;  %v512_v14 = vunpack.c.l.s8.bf16 %v404_v9  ;;  %v1874_v15 = vld [vmem:[%s5892_s9 + $0x120] sm:$0xff] }
  0xcf   : > { %2038 = vperm.xlu0 %5437, %v1868_v54   ;;  %2043 = vperm.xlu1 %5438, %v1869_v59  }
  0xd3   : > { %2048 = vperm.xlu0 %5437, %v1870_v0   ;;  %2053 = vperm.xlu1 %5438, %v1871_v4  }
  0xd5   : > { %1314 = vmatmul.mubr.bf16.gmra.mxu1 %v467_v19  ;;  %1539 = vmatmul.mubr.bf16.gmra.mxu0 %v469_v20  ;;  %v511_v19 = vunpack.c.l.s8.bf16 %v403_v17  ;;  %v1875_v20 = vld [vmem:[%s5892_s9 + $0x128] sm:$0xff] }
  0xd6   : > { %1321 = vmatprep.mubr.bf16.mxu1 %v474_v22  ;;  %1546 = vmatprep.mubr.bf16.mxu0 %v476_v23  ;;  %v518_v22 = vunpack.c.h.s8.bf16 %v404_v9 }
  0xd7   : > { %2058 = vperm.xlu0 %5437, %v1872_v7   ;;  %2063 = vperm.xlu1 %5438, %v1873_v12   ;;  %v415_v12 = vld [vmem:[%s5713_s13 + $0x1a0] sm:$0xff] }
  0xdb   : > { %2068 = vperm.xlu0 %5437, %v1874_v15   ;;  %2073 = vperm.xlu1 %5438, %v1875_v20   ;;  %v1884_v15 = vld [vmem:[%s5892_s9 + $0x170] sm:$0xff]  ;;  %v1883_v20 = vld [vmem:[%s5892_s9 + $0x168] sm:$0xff] }
  0xdd   : > { %1322 = vmatmul.mubr.bf16.gmra.mxu1 %v473_v31  ;;  %1547 = vmatmul.mubr.bf16.gmra.mxu0 %v475_v32  ;;  %v515_v32 = vunpack.c.h.s8.bf16 %v401_v16 }
  0xde   : > { %1329 = vmatprep.mubr.bf16.mxu1 %v480_v34  ;;  %1554 = vmatprep.mubr.bf16.mxu0 %v482_v35  ;;  %v1877_v34 = vld [vmem:[%s5892_s9 + $0x138] sm:$0xff]  ;;  %v522_v35 = vunpack.c.l.s8.bf16 %v408_v28 }
  0xdf   : > { %2078 = vperm.xlu0 %5437, %v1876_v25   ;;  %2083 = vperm.xlu1 %5438, %v1877_v34   ;;  %v422_v34 = vld [vmem:[%s5713_s13 + $0x1d8] sm:$0xff] }
  0xe3   : > { %2088 = vperm.xlu0 %5437, %v1878_v41   ;;  %v541_v41 = vunpack.c.h.s8.bf16 %v415_v12 }
  0xe5   : > { %1330 = vmatmul.mubr.bf16.gmra.mxu1 %v479_v39  ;;  %1555 = vmatmul.mubr.bf16.gmra.mxu0 %v481_v40 }
  0xe6   : > { %1337 = vmatprep.mubr.bf16.mxu1 %v486_v42  ;;  %1562 = vmatprep.mubr.bf16.mxu0 %v488_v43  ;;  %v407_v42 = vld [vmem:[%s5713_s13 + $0x160] sm:$0xff]  ;;  %v409_v43 = vld [vmem:[%s5713_s13 + $0x170] sm:$0xff] }
  0xe7   : > { %v523_v49 = vunpack.c.l.s8.bf16 %v409_v43  ;;  %v527_v0 = vunpack.c.h.s8.bf16 %v407_v42 }
  0xed   : > { %1338 = vmatmul.mubr.bf16.gmra.mxu1 %v485_v47  ;;  %1563 = vmatmul.mubr.bf16.gmra.mxu0 %v487_v48  ;;  %v521_v48 = vunpack.c.l.s8.bf16 %v407_v42 }
  0xee   : > { %1345 = vmatprep.mubr.bf16.mxu1 %v492_v50  ;;  %1570 = vmatprep.mubr.bf16.mxu0 %v494_v51  ;;  %v1879_v50 = vld [vmem:[%s5892_s9 + $0x148] sm:$0xff]  ;;  %v528_v51 = vunpack.c.h.s8.bf16 %v408_v28 }
  0xef   : > { %2093 = vperm.xlu1 %5438, %v1879_v50   ;;  %v419_v50 = vld [vmem:[%s5713_s13 + $0x1c0] sm:$0xff] }
  0xf5   : > { %1346 = vmatmul.mubr.bf16.gmra.mxu1 %v491_v56  ;;  %1571 = vmatmul.mubr.bf16.gmra.mxu0 %v493_v57  ;;  %v1880_v57 = vld [vmem:[%s5892_s9 + $0x150] sm:$0xff] }
  0xf6   : > { %1353 = vmatprep.mubr.bf16.mxu1 %v498_v60  ;;  %1578 = vmatprep.mubr.bf16.mxu0 %v500_v61  ;;  %v414_v60 = vld [vmem:[%s5713_s13 + $0x198] sm:$0xff]  ;;  %v416_v61 = vld [vmem:[%s5713_s13 + $0x1a8] sm:$0xff] }
  0xf7   : > { %2098 = vperm.xlu0 %5437, %v1880_v57   ;;  %v534_v4 = vunpack.c.l.s8.bf16 %v414_v60 }
  0xfb   : > { %2108 = vperm.xlu0 %5437, %v1882_v8   ;;  %v428_v8 = vld [vmem:[%s5713_s13 + $0x208] sm:$0xff] }
  0xfd   : > { %1354 = vmatmul.mubr.bf16.gmra.mxu1 %v497_v2  ;;  %1579 = vmatmul.mubr.bf16.gmra.mxu0 %v499_v3  ;;  %v529_v2 = vunpack.c.h.s8.bf16 %v409_v43  ;;  %v1881_v3 = vld [vmem:[%s5892_s9 + $0x158] sm:$0xff]  ;;  %v548_v43 = vunpack.c.l.s8.bf16 %v422_v34 }
  0xfe   : > { %1361 = vmatprep.mubr.bf16.mxu1 %v504_v5  ;;  %1586 = vmatprep.mubr.bf16.mxu0 %v506_v6  ;;  %v536_v5 = vunpack.c.l.s8.bf16 %v416_v61 }
  0xff   : > { %2103 = vperm.xlu1 %5438, %v1881_v3   ;;  %2118 = vperm.xlu0 %5437, %v1884_v15  }
 0x103   : > { %2113 = vperm.xlu1 %5438, %v1883_v20  }
 0x105   : > { %1362 = vmatmul.mubr.bf16.gmra.mxu1 %v503_v10  ;;  %1587 = vmatmul.mubr.bf16.gmra.mxu0 %v505_v11  ;;  %v413_v11 = vld [vmem:[%s5713_s13 + $0x190] sm:$0xff] }
 0x106   : > { %1369 = vmatprep.mubr.bf16.mxu1 %v510_v13  ;;  %1594 = vmatprep.mubr.bf16.mxu0 %v512_v14 }
 0x10d   : > { %v6118_v23 = vpop.f32.mrf.mxu0  ;;  %v6120_v24 = vpop.f32.mrf.mxu1  ;;  %1370 = vmatmul.mubr.bf16.gmra.mxu1 %v509_v18  ;;  %1595 = vmatmul.mubr.bf16.gmra.mxu0 %v511_v19  ;;  %v533_v18 = vunpack.c.l.s8.bf16 %v413_v11  ;;  %v535_v19 = vunpack.c.l.s8.bf16 %v415_v12 }
 0x10e   : > { %1377 = vmatprep.mubr.bf16.mxu1 %v516_v21  ;;  %1602 = vmatprep.mubr.bf16.mxu0 %v518_v22  ;;  %v540_v21 = vunpack.c.h.s8.bf16 %v414_v60  ;;  %v542_v22 = vunpack.c.h.s8.bf16 %v416_v61  ;;  %v554_v61 = vunpack.c.h.s8.bf16 %v422_v34 }
 0x10f   : > { %v1052_v26 = vpop.f32.mrf.mxu0  ;;  %v1148_v27 = vpop.f32.mrf.mxu1 }
 0x111   : > { %v6125_v30 = vpop.f32.mrf.mxu0  ;;  %v6127_v31 = vpop.f32.mrf.mxu1 }
 0x113   : > { %v1055_v37 = vpop.f32.mrf.mxu0  ;;  %v1151_v38 = vpop.f32.mrf.mxu1 }
 0x114   : > { %v539_v38 = vunpack.c.h.s8.bf16 %v413_v11 }
 0x115   : > { %v6130_v39 = vpop.f32.mrf.mxu0  ;;  %v6132_v40 = vpop.f32.mrf.mxu1  ;;  %1378 = vmatmul.mubr.bf16.gmra.mxu1 %v515_v32  ;;  %1603 = vmatmul.mubr.bf16.gmra.mxu0 %v517_v33  ;;  %v420_v33 = vld [vmem:[%s5713_s13 + $0x1c8] sm:$0xff] }
 0x116   : > { %1385 = vmatprep.mubr.bf16.mxu1 %v522_v35  ;;  %1610 = vmatprep.mubr.bf16.mxu0 %v524_v36  ;;  %v1885_v35 = vld [vmem:[%s5892_s9 + $0x178] sm:$0xff]  ;;  %v546_v42 = vunpack.c.l.s8.bf16 %v420_v33  ;;  %v552_v60 = vunpack.c.h.s8.bf16 %v420_v33 }
 0x117   : > { %v1060_v44 = vpop.f32.mrf.mxu0  ;;  %v1156_v45 = vpop.f32.mrf.mxu1  ;;  %2123 = vperm.xlu1 %5438, %v1885_v35  }
 0x119   : > { %v6137_v46 = vpop.f32.mrf.mxu0  ;;  %v6139_v47 = vpop.f32.mrf.mxu1 }
 0x11b   : > { %v1063_v53 = vpop.f32.mrf.mxu0  ;;  %v1159_v54 = vpop.f32.mrf.mxu1 }
 0x11d   : > { %v6142_v55 = vpop.f32.mrf.mxu0  ;;  %v6144_v56 = vpop.f32.mrf.mxu1  ;;  %1386 = vmatmul.mubr.bf16.gmra.mxu1 %v521_v48  ;;  %1611 = vmatmul.mubr.bf16.gmra.mxu0 %v523_v49 }
 0x11e   : > { %1393 = vmatprep.mubr.bf16.mxu1 %v528_v51  ;;  %1618 = vmatprep.mubr.bf16.mxu0 %v530_v52  ;;  %v421_v51 = vld [vmem:[%s5713_s13 + $0x1d0] sm:$0xff] }
 0x11f   : > { %v1068_v58 = vpop.f32.mrf.mxu0  ;;  %v1164_v59 = vpop.f32.mrf.mxu1 }
 0x120   : > { %v545_v58 = vunpack.c.l.s8.bf16 %v419_v50  ;;  %v547_v59 = vunpack.c.l.s8.bf16 %v421_v51 }
 0x121   : > { %v6149_v62 = vpop.f32.mrf.mxu0  ;;  %v6151_v63 = vpop.f32.mrf.mxu1 }
 0x123   : > { %v1071_v6 = vpop.f32.mrf.mxu0  ;;  %v1167_v7 = vpop.f32.mrf.mxu1 }
 0x124   : > { %v426_v7 = vld [vmem:[%s5713_s13 + $0x1f8] sm:$0xff] }
 0x125   : > { %v6155_v9 = vpop.f32.mrf.mxu0  ;;  %v6157_v10 = vpop.f32.mrf.mxu1  ;;  %1394 = vmatmul.mubr.bf16.gmra.mxu1 %v527_v0  ;;  %1619 = vmatmul.mubr.bf16.gmra.mxu0 %v529_v2  ;;  %v558_v15 = vunpack.c.l.s8.bf16 %v426_v7 }
 0x126   : > { %1401 = vmatprep.mubr.bf16.mxu1 %v534_v4  ;;  %1626 = vmatprep.mubr.bf16.mxu0 %v536_v5 }
 0x127   : > { %v1076_v13 = vpop.f32.mrf.mxu0  ;;  %v1172_v14 = vpop.f32.mrf.mxu1 }
 0x128   : > { %v551_v13 = vunpack.c.h.s8.bf16 %v419_v50  ;;  %v553_v14 = vunpack.c.h.s8.bf16 %v421_v51 }
 0x129   : > { %v6162_v16 = vpop.f32.mrf.mxu0  ;;  %v6164_v17 = vpop.f32.mrf.mxu1 }
 0x12b   : > { %v1079_v25 = vpop.f32.mrf.mxu0  ;;  %v1175_v26 = vpop.f32.mrf.mxu1 }
 0x12c   : > { %v425_v25 = vld [vmem:[%s5713_s13 + $0x1f0] sm:$0xff]  ;;  %v427_v26 = vld [vmem:[%s5713_s13 + $0x200] sm:$0xff] }
 0x12d   : > { %v6167_v27 = vpop.f32.mrf.mxu0  ;;  %v6169_v28 = vpop.f32.mrf.mxu1  ;;  %1402 = vmatmul.mubr.bf16.gmra.mxu1 %v533_v18  ;;  %1627 = vmatmul.mubr.bf16.gmra.mxu0 %v535_v19  ;;  %v560_v18 = vunpack.c.l.s8.bf16 %v428_v8  ;;  %v557_v35 = vunpack.c.l.s8.bf16 %v425_v25 }
 0x12e   : > { %1409 = vmatprep.mubr.bf16.mxu1 %v540_v21  ;;  %1634 = vmatprep.mubr.bf16.mxu0 %v542_v22 }
 0x12f   : > { %v1084_v29 = vpop.f32.mrf.mxu0  ;;  %v1180_v32 = vpop.f32.mrf.mxu1 }
 0x131   : > { %v6174_v36 = vpop.f32.mrf.mxu0  ;;  %v6176_v37 = vpop.f32.mrf.mxu1 }
 0x133   : > { %v1087_v44 = vpop.f32.mrf.mxu0  ;;  %v1183_v45 = vpop.f32.mrf.mxu1 }
 0x135   : > { %v6178_v48 = vpop.f32.mrf.mxu0  ;;  %v6180_v49 = vpop.f32.mrf.mxu1  ;;  %1410 = vmatmul.mubr.bf16.gmra.mxu1 %v539_v38  ;;  %1635 = vmatmul.mubr.bf16.gmra.mxu0 %v541_v41  ;;  %v559_v38 = vunpack.c.l.s8.bf16 %v427_v26  ;;  %v564_v41 = vunpack.c.h.s8.bf16 %v426_v7 }
 0x136   : > { %1417 = vmatprep.mubr.bf16.mxu1 %v546_v42  ;;  %1642 = vmatprep.mubr.bf16.mxu0 %v548_v43  ;;  %v566_v42 = vunpack.c.h.s8.bf16 %v428_v8 }
 0x137   : > { %v1092_v52 = vpop.f32.mrf.mxu0  ;;  %v1188_v53 = vpop.f32.mrf.mxu1 }
 0x138   : > { %v432_v53 = vld [vmem:[%s5713_s13 + $0x228] sm:$0xff] }
 0x139   : > { %v6184_v54 = vpop.f32.mrf.mxu0  ;;  %v6186_v57 = vpop.f32.mrf.mxu1 }
 0x13b   : > { %v1095_v0 = vpop.f32.mrf.mxu0  ;;  %v1191_v2 = vpop.f32.mrf.mxu1 }
 0x13c   : > { %v565_v0 = vunpack.c.h.s8.bf16 %v427_v26  ;;  %v570_v2 = vunpack.c.l.s8.bf16 %v432_v53 }
 0x13d   : > { %v6188_v3 = vpop.f32.mrf.mxu0  ;;  %v6190_v4 = vpop.f32.mrf.mxu1  ;;  %1418 = vmatmul.mubr.bf16.gmra.mxu1 %v545_v58  ;;  %1643 = vmatmul.mubr.bf16.gmra.mxu0 %v547_v59  ;;  %v434_v58 = vld [vmem:[%s5713_s13 + $0x238] sm:$0xff] }
 0x13e   : > { %1425 = vmatprep.mubr.bf16.mxu1 %v552_v60  ;;  %1650 = vmatprep.mubr.bf16.mxu0 %v554_v61  ;;  %v563_v61 = vunpack.c.h.s8.bf16 %v425_v25 }
 0x13f   : > { %v1100_v5 = vpop.f32.mrf.mxu0  ;;  %v1196_v6 = vpop.f32.mrf.mxu1 }
 0x140   : > { %v572_v5 = vunpack.c.l.s8.bf16 %v434_v58 }
 0x141   : > { %v6194_v11 = vpop.f32.mrf.mxu0  ;;  %v6196_v12 = vpop.f32.mrf.mxu1 }
 0x143   : > { %v1103_v19 = vpop.f32.mrf.mxu0  ;;  %v1199_v20 = vpop.f32.mrf.mxu1 }
 0x145   : > { %v6198_v21 = vpop.f32.mrf.mxu0  ;;  %v6200_v22 = vpop.f32.mrf.mxu1  ;;  %1426 = vmatmul.mubr.bf16.gmra.mxu1 %v551_v13  ;;  %1651 = vmatmul.mubr.bf16.gmra.mxu0 %v553_v14  ;;  %v431_v14 = vld [vmem:[%s5713_s13 + $0x220] sm:$0xff] }
 0x146   : > { %1433 = vmatprep.mubr.bf16.mxu1 %v558_v15  ;;  %1658 = vmatprep.mubr.bf16.mxu0 %v560_v18  ;;  %v433_v15 = vld [vmem:[%s5713_s13 + $0x230] sm:$0xff]  ;;  %v569_v26 = vunpack.c.l.s8.bf16 %v431_v14 }
 0x147   : > { %v1108_v29 = vpop.f32.mrf.mxu0  ;;  %v1204_v32 = vpop.f32.mrf.mxu1 }
 0x148   : > { %v571_v29 = vunpack.c.l.s8.bf16 %v433_v15  ;;  %v576_v32 = vunpack.c.h.s8.bf16 %v432_v53  ;;  %v577_v53 = vunpack.c.h.s8.bf16 %v433_v15  ;;  %v5536_v15 = vld [vmem:[%s7491_s3 + $0xe0] ss:$16 sps:$4 sm:$0xff]  }
 0x149   : > { %v6204_v33 = vpop.f32.mrf.mxu0  ;;  %v6206_v34 = vpop.f32.mrf.mxu1 }
 0x14b   : > { %v1111_v43 = vpop.f32.mrf.mxu0  ;;  %v1207_v44 = vpop.f32.mrf.mxu1 }
 0x14d   : > { %v6208_v45 = vpop.f32.mrf.mxu0  ;;  %v6210_v50 = vpop.f32.mrf.mxu1  ;;  %1434 = vmatmul.mubr.bf16.gmra.mxu1 %v557_v35  ;;  %1659 = vmatmul.mubr.bf16.gmra.mxu0 %v559_v38  ;;  %v578_v35 = vunpack.c.h.s8.bf16 %v434_v58 }
 0x14e   : > { %1441 = vmatprep.mubr.bf16.mxu1 %v564_v41  ;;  %1666 = vmatprep.mubr.bf16.mxu0 %v566_v42 }
 0x14f   : > { %v1116_v51 = vpop.f32.mrf.mxu0  ;;  %v1212_v52 = vpop.f32.mrf.mxu1 }
 0x151   : > { %v6214_v59 = vpop.f32.mrf.mxu0  ;;  %v6216_v60 = vpop.f32.mrf.mxu1 }
 0x153   : > { %v1119_v6 = vpop.f32.mrf.mxu0  ;;  %v1215_v7 = vpop.f32.mrf.mxu1 }
 0x155   : > { %v6218_v8 = vpop.f32.mrf.mxu0  ;;  %v6220_v13 = vpop.f32.mrf.mxu1  ;;  %1442 = vmatmul.mubr.bf16.gmra.mxu1 %v563_v61  ;;  %1667 = vmatmul.mubr.bf16.gmra.mxu0 %v565_v0  ;;  %v575_v0 = vunpack.c.h.s8.bf16 %v431_v14  ;;  %v5535_v14 = vld [vmem:[%s6094_s15] sm:$0xff]  }
 0x156   : > { %1449 = vmatprep.mubr.bf16.mxu1 %v570_v2  ;;  %1674 = vmatprep.mubr.bf16.mxu0 %v572_v5 }
 0x157   : > { %v1124_v18 = vpop.f32.mrf.mxu0  ;;  %v1220_v19 = vpop.f32.mrf.mxu1 }
 0x159   : > { %v6224_v20 = vpop.f32.mrf.mxu0  ;;  %v6226_v25 = vpop.f32.mrf.mxu1 }
 0x15b   : > { %v1127_v38 = vpop.f32.mrf.mxu0  ;;  %v1223_v41 = vpop.f32.mrf.mxu1 }
 0x15c   : > { %v1889_v38 = vpop.permute.xlu0 %1888  ;;  %v5547_v41 = vld [vmem:[%s7491_s3 + $0xc4] ss:$16 sps:$4 sm:$0xff]  }
 0x15d   : > { %v6228_v42 = vpop.f32.mrf.mxu0  ;;  %v6230_v43 = vpop.f32.mrf.mxu1  ;;  %1450 = vmatmul.mubr.bf16.gmra.mxu1 %v569_v26  ;;  %1675 = vmatmul.mubr.bf16.gmra.mxu0 %v571_v29  ;;  %v5539_v29 = vld [vmem:[%s7491_s3 + $0xe8] ss:$16 sps:$4 sm:$0xff]  }
 0x15e   : > { %1457 = vmatprep.mubr.bf16.mxu1 %v576_v32  ;;  %1682 = vmatprep.mubr.bf16.mxu0 %v578_v35 }
 0x15f   : > { %v1132_v44 = vpop.f32.mrf.mxu0  ;;  %v1228_v51 = vpop.f32.mrf.mxu1 }
 0x160   : > { %v5550_v44 = vld [vmem:[%s7491_s3 + $0xcc] ss:$16 sps:$4 sm:$0xff]  }
 0x161   : > { %v6232_v52 = vpop.f32.mrf.mxu0  ;;  %v6234_v61 = vpop.f32.mrf.mxu1 }
 0x163   : > { %v1135_v58 = vpop.f32.mrf.mxu0  ;;  %v1231_v2 = vpop.f32.mrf.mxu1 }
 0x164   : > { %v5545_v58 = vld [vmem:[%s7491_s3 + $0xc0] ss:$16 sps:$4 sm:$0xff]   ;;  %v5548_v2 = vld [vmem:[%s7491_s3 + $0xc8] ss:$16 sps:$4 sm:$0xff]  }
 0x165   : > { %v6236_v5 = vpop.f32.mrf.mxu0  ;;  %v6238_v6 = vpop.f32.mrf.mxu1  ;;  %1458 = vmatmul.mubr.bf16.gmra.mxu1 %v575_v0  ;;  %1683 = vmatmul.mubr.bf16.gmra.mxu0 %v577_v53 }
 0x166   : > { %2651 = vmatprep.mubr.bf16.mxu1 %v7495_v1  ;;  %2924 = vmatprep.mubr.bf16.mxu0 %v7495_v1 }
 0x167   : > { %v1140_v7 = vpop.f32.mrf.mxu0  ;;  %v1236_v18 = vpop.f32.mrf.mxu1 }
 0x169   : > { %v6242_v19 = vpop.f32.mrf.mxu0  ;;  %v6244_v26 = vpop.f32.mrf.mxu1 }
 0x16a   : > { %7497 = vst [vmem:[#allocation3_spill] sm:$0xff] %v6244_v26  ;;  %v5554_v26 = vld [vmem:[%s7491_s3 + $0xa0] ss:$16 sps:$4 sm:$0xff]  }
 0x16b   : > { %v1143_v32 = vpop.f32.mrf.mxu0  ;;  %v1239_v35 = vpop.f32.mrf.mxu1 }
 0x16c   : > { %v5542_v35 = vld [vmem:[%s6094_s15 + $0x8] sm:$0xff]  }
 0x16d   : > { %v1275_v51 = vpop.f32.mrf.mxu1  ;;  %v1500_v0 = vpop.f32.mrf.mxu0  ;;  %2652 = vmatmul.mubr.bf16.vlgmr.msra.gmra.mxu1 %v5535_v14  ;;  %2925 = vmatmul.mubr.bf16.vlgmr.msra.gmra.mxu0 %v5535_v14  ;;  %v5559_v14 = vld [vmem:[%s7491_s3 + $0xac] ss:$16 sps:$4 sm:$0xff]  }
 0x16e   : > { %v1276_v53 = vadd.f32 %v1275_v51, %v6118_v23  ;;  %3326 = vmatpush1.bf16.msra.mxu1 %v5536_v15  ;;  %3599 = vmatpush1.bf16.msra.mxu0 %v5539_v29  ;;  %v5556_v23 = vld [vmem:[%s7491_s3 + $0xa4] ss:$16 sps:$4 sm:$0xff]  }
 0x16f   : > { %v1277_v7 = vpop.f32.mrf.mxu1  ;;  %v1502_v18 = vpop.f32.mrf.mxu0  ;;  %2661 = vmatprep.mubr.bf16.mxu1 %v7495_v1  ;;  %2934 = vmatprep.mubr.bf16.mxu0 %v7495_v1 }
 0x170   : > { %v1501_v15 = vadd.f32 %v1500_v0, %v1276_v53  ;;  %3327 = vmatprep.subr.bf16.mxu1 %v5547_v41  ;;  %3600 = vmatprep.subr.bf16.mxu0 %v5550_v44  ;;  %v1894_v7 = vpop.permute.xlu0 %1893  ;;  %v5557_v41 = vld [vmem:[%s7491_s3 + $0xa8] ss:$16 sps:$4 sm:$0xff]   ;;  %v1899_v0 = vpop.permute.xlu1 %1898 }
 0x171   : > { %v1278_v29 = vpop.f32.mrf.mxu1  ;;  %v1503_v32 = vpop.f32.mrf.mxu0 }
 0x172   : > { %v1279_v51 = vadd.f32 %v1278_v29, %v6125_v30  ;;  %3328 = vmatpush1.bf16.msra.mxu1 %v5545_v58  ;;  %3601 = vmatpush1.bf16.msra.mxu0 %v5548_v2  ;;  %v5565_v30 = vld [vmem:[%s7491_s3 + $0x84] ss:$16 sps:$4 sm:$0xff]   ;;  %v2126_v2 = vmul.f32 %v1889_v38, %v1501_v15  ;;  %v5566_v38 = vld [vmem:[%s7491_s3 + $0x88] ss:$16 sps:$4 sm:$0xff]  }
 0x173   : > { %v1280_v18 = vpop.f32.mrf.mxu1  ;;  %v1505_v1 = vpop.f32.mrf.mxu0  ;;  %3329 = vmatprep.subr.bf16.mxu1 %v5556_v23  ;;  %3602 = vmatprep.subr.bf16.mxu0 %v5559_v14 }
 0x174   : > { %v1504_v44 = vadd.f32 %v1503_v32, %v1279_v51  ;;  %v5568_v1 = vld [vmem:[%s7491_s3 + $0x8c] ss:$16 sps:$4 sm:$0xff]   ;;  %v7498_v18 = vmov 0   ;;  %v5563_v51 = vld [vmem:[%s7491_s3 + $0x80] ss:$16 sps:$4 sm:$0xff]  }
 0x175   : > { %v1283_v53 = vpop.f32.mrf.mxu1  ;;  %v1508_v58 = vpop.f32.mrf.mxu0  ;;  %2662 = vmatmul.mubr.bf16.gmra.mxu1 %v5542_v35  ;;  %2935 = vmatmul.mubr.bf16.gmra.mxu0 %v5542_v35  ;;  %v5574_v35 = vld [vmem:[%s7491_s3 + $0x64] ss:$16 sps:$4 sm:$0xff]  }
 0x176   : > { %v2127_v23 = vmul.f32 %v1894_v7, %v1504_v44  ;;  %v1284_v29 = vadd.f32 %v1283_v53, %v6130_v39  ;;  %2671 = vmatprep.mubr.bf16.mxu1 %v7498_v18  ;;  %2944 = vmatprep.mubr.bf16.mxu0 %v7498_v18  ;;  %v5543_v44 = vld [vmem:[%s6094_s15 + $0x10] sm:$0xff]  }
 0x177   : > { %v1285_v14 = vpop.f32.mrf.mxu1  ;;  %v1510_v32 = vpop.f32.mrf.mxu0  ;;  %3330 = vmatpush1.bf16.msra.mxu1 %v5554_v26  ;;  %3603 = vmatpush1.bf16.msra.mxu0 %v5557_v41  ;;  %v5577_v26 = vld [vmem:[%s7491_s3 + $0x6c] ss:$16 sps:$4 sm:$0xff]  }
 0x178   : > { %v6297_v15 = vpack.c.bf16 %v2127_v23, %v2126_v2  ;;  %v1509_v39 = vadd.f32 %v1508_v58, %v1284_v29  ;;  %3331 = vmatprep.subr.bf16.mxu1 %v5565_v30  ;;  %3604 = vmatprep.subr.bf16.mxu0 %v5568_v1  ;;  %v1904_v14 = vpop.permute.xlu1 %1903  ;;  %v5572_v30 = vld [vmem:[%s7491_s3 + $0x60] ss:$16 sps:$4 sm:$0xff]   ;;  %v5575_v1 = vld [vmem:[%s7491_s3 + $0x68] ss:$16 sps:$4 sm:$0xff]   ;;  %v5586_v23 = vld [vmem:[%s7491_s3 + $0x4c] ss:$16 sps:$4 sm:$0xff]  }
 0x179   : > { %v1286_v7 = vpop.f32.mrf.mxu1  ;;  %v1511_v41 = vpop.f32.mrf.mxu0 }
 0x17a   : > { %v1287_v53 = vadd.f32 %v1286_v7, %v6137_v46  ;;  %v5583_v46 = vld [vmem:[%s7491_s3 + $0x44] ss:$16 sps:$4 sm:$0xff]  }
 0x17b   : > { %v1288_v32 = vpop.f32.mrf.mxu1  ;;  %v1513_v2 = vpop.f32.mrf.mxu0  ;;  %3332 = vmatpush1.bf16.msra.mxu1 %v5563_v51  ;;  %3605 = vmatpush1.bf16.msra.mxu0 %v5566_v38  ;;  %v2128_v38 = vmul.f32 %v1899_v0, %v1509_v39  ;;  %v5584_v0 = vld [vmem:[%s7491_s3 + $0x48] ss:$16 sps:$4 sm:$0xff]  }
 0x17c   : > { %v1512_v58 = vadd.f32 %v1511_v41, %v1287_v53  ;;  %3333 = vmatprep.subr.bf16.mxu1 %v5574_v35  ;;  %3606 = vmatprep.subr.bf16.mxu0 %v5577_v26  ;;  %v5581_v41 = vld [vmem:[%s7491_s3 + $0x40] ss:$16 sps:$4 sm:$0xff]   ;;  %v5544_v2 = vld [vmem:[%s6094_s15 + $0x18] sm:$0xff]  }
 0x17d   : > { %v1291_v29 = vpop.f32.mrf.mxu1  ;;  %v1516_v51 = vpop.f32.mrf.mxu0  ;;  %2672 = vmatmul.mubr.bf16.gmra.mxu1 %v5543_v44  ;;  %2945 = vmatmul.mubr.bf16.gmra.mxu0 %v5543_v44  ;;  %v5592_v44 = vld [vmem:[%s7491_s3 + $0x24] ss:$16 sps:$4 sm:$0xff]  }
 0x17e   : > { %v2129_v7 = vmul.f32 %v1904_v14, %v1512_v58  ;;  %v1292_v32 = vadd.f32 %v1291_v29, %v6142_v55  ;;  %2681 = vmatprep.mubr.bf16.mxu1 %v7498_v18  ;;  %2954 = vmatprep.mubr.bf16.mxu0 %v7498_v18  ;;  %v1914_v29 = vpop.permute.xlu1 %1913 }
 0x17f   : > { %v1293_v35 = vpop.f32.mrf.mxu1  ;;  %v1518_v26 = vpop.f32.mrf.mxu0  ;;  %3334 = vmatpush1.bf16.msra.mxu1 %v5572_v30  ;;  %3607 = vmatpush1.bf16.msra.mxu0 %v5575_v1  ;;  %v5595_v30 = vld [vmem:[%s7491_s3 + $0x2c] ss:$16 sps:$4 sm:$0xff]  }
 0x180   : > { %v6328_v39 = vpack.c.bf16 %v2129_v7, %v2128_v38  ;;  %v1517_v55 = vadd.f32 %v1516_v51, %v1292_v32  ;;  %3335 = vmatprep.subr.bf16.mxu1 %v5583_v46  ;;  %3608 = vmatprep.subr.bf16.mxu0 %v5586_v23  ;;  %v1909_v1 = vpop.permute.xlu0 %1908  ;;  %v5590_v46 = vld [vmem:[%s7491_s3 + $0x20] ss:$16 sps:$4 sm:$0xff]   ;;  %v5593_v23 = vld [vmem:[%s7491_s3 + $0x28] ss:$16 sps:$4 sm:$0xff]  }
 0x181   : > { %v1294_v53 = vpop.f32.mrf.mxu1  ;;  %v1519_v14 = vpop.f32.mrf.mxu0 }
 0x182   : > { %v1295_v58 = vadd.f32 %v1294_v53, %v6149_v62  ;;  %v2130_v62 = vmul.f32 %v1909_v1, %v1517_v55 }
 0x183   : > { %v1296_v38 = vpop.f32.mrf.mxu1  ;;  %v1521_v7 = vpop.f32.mrf.mxu0  ;;  %3336 = vmatpush1.bf16.msra.mxu1 %v5581_v41  ;;  %3609 = vmatpush1.bf16.msra.mxu0 %v5584_v0 }
 0x184   : > { %v1520_v51 = vadd.f32 %v1519_v14, %v1295_v58  ;;  %3337 = vmatprep.subr.bf16.mxu1 %v5592_v44  ;;  %3610 = vmatprep.subr.bf16.mxu0 %v5595_v30  ;;  %v5551_v38 = vld [vmem:[%s6094_s15 + $0x20] sm:$0xff]   ;;  %v1919_v7 = vpop.permute.xlu0 %1918 }
 0x185   : > { %v1299_v32 = vpop.f32.mrf.mxu1  ;;  %v1524_v35 = vpop.f32.mrf.mxu0  ;;  %2682 = vmatmul.mubr.bf16.gmra.mxu1 %v5544_v2  ;;  %2955 = vmatmul.mubr.bf16.gmra.mxu0 %v5544_v2 }
 0x186   : > { %v2131_v26 = vmul.f32 %v1914_v29, %v1520_v51  ;;  %v1300_v41 = vadd.f32 %v1299_v32, %v6155_v9  ;;  %2691 = vmatprep.mubr.bf16.mxu1 %v7498_v18  ;;  %2964 = vmatprep.mubr.bf16.mxu0 %v7498_v18  ;;  %v1924_v2 = vpop.permute.xlu1 %1923 }
 0x187   : > { %v1301_v0 = vpop.f32.mrf.mxu1  ;;  %v1526_v53 = vpop.f32.mrf.mxu0  ;;  %3338 = vmatpush1.bf16.msra.mxu1 %v5590_v46  ;;  %3611 = vmatpush1.bf16.msra.mxu0 %v5593_v23 }
 0x188   : > { %v6347_v14 = vpack.c.bf16 %v2131_v26, %v2130_v62  ;;  %v1525_v44 = vadd.f32 %v1524_v35, %v1300_v41 }
 0x189   : > { %v1302_v30 = vpop.f32.mrf.mxu1  ;;  %v1527_v58 = vpop.f32.mrf.mxu0 }
 0x18a   : > { %v1303_v55 = vadd.f32 %v1302_v30, %v6162_v16  ;;  %v2132_v46 = vmul.f32 %v1919_v7, %v1525_v44  ;;  %v5552_v30 = vld [vmem:[%s6094_s15 + $0x28] sm:$0xff]  }
 0x18b   : > { %v1304_v1 = vpop.f32.mrf.mxu1  ;;  %v1529_v9 = vpop.f32.mrf.mxu0 }
 0x18c   : > { %v1528_v29 = vadd.f32 %v1527_v58, %v1303_v55  ;;  %v1929_v58 = vpop.permute.xlu0 %1928 }
 0x18d   : > { %v1307_v51 = vpop.f32.mrf.mxu1  ;;  %v1532_v32 = vpop.f32.mrf.mxu0  ;;  %2692 = vmatmul.mubr.bf16.gmra.mxu1 %v5551_v38  ;;  %2965 = vmatmul.mubr.bf16.gmra.mxu0 %v5551_v38 }
 0x18e   : > { %v2133_v23 = vmul.f32 %v1924_v2, %v1528_v29  ;;  %v1308_v62 = vadd.f32 %v1307_v51, %v6167_v27  ;;  %2701 = vmatprep.mubr.bf16.mxu1 %v7498_v18  ;;  %2974 = vmatprep.mubr.bf16.mxu0 %v7498_v18  ;;  %v1934_v38 = vpop.permute.xlu1 %1933 }
 0x18f   : > { %v1309_v35 = vpop.f32.mrf.mxu1  ;;  %v1534_v26 = vpop.f32.mrf.mxu0 }
 0x190   : > { %v6354_v16 = vpack.c.bf16 %v2133_v23, %v2132_v46  ;;  %v1533_v41 = vadd.f32 %v1532_v32, %v1308_v62  ;;  %v5599_v62 = vld [vmem:[%s7491_s3] ss:$16 sps:$4 sm:$0xff]   ;;  %v5601_v35 = vld [vmem:[%s7491_s3 + $0x4] ss:$16 sps:$4 sm:$0xff]  }
 0x191   : > { %v1310_v0 = vpop.f32.mrf.mxu1  ;;  %v1535_v53 = vpop.f32.mrf.mxu0  ;;  %3339 = vmatprep.subr.bf16.mxu1 %v5601_v35 }
 0x192   : > { %v1311_v55 = vadd.f32 %v1310_v0, %v6174_v36  ;;  %v2134_v9 = vmul.f32 %v1929_v58, %v1533_v41  ;;  %v5553_v0 = vld [vmem:[%s6094_s15 + $0x30] sm:$0xff]   ;;  %3340 = vmatpush1.bf16.msra.mxu1 %v5599_v62 }
 0x193   : > { %v1312_v44 = vpop.f32.mrf.mxu1  ;;  %v1537_v7 = vpop.f32.mrf.mxu0 }
 0x194   : > { %v1536_v2 = vadd.f32 %v1535_v53, %v1311_v55  ;;  %v5604_v53 = vld [vmem:[%s7491_s3 + $0xc] ss:$16 sps:$4 sm:$0xff]   ;;  %v1944_v55 = vpop.permute.xlu1 %1943 }
 0x195   : > { %v1315_v27 = vpop.f32.mrf.mxu1  ;;  %v1540_v1 = vpop.f32.mrf.mxu0  ;;  %2702 = vmatmul.mubr.bf16.gmra.mxu1 %v5552_v30  ;;  %2975 = vmatmul.mubr.bf16.gmra.mxu0 %v5552_v30 }
 0x196   : > { %v2135_v29 = vmul.f32 %v1934_v38, %v1536_v2  ;;  %v1316_v51 = vadd.f32 %v1315_v27, %v6178_v48  ;;  %2711 = vmatprep.mubr.bf16.mxu1 %v7498_v18  ;;  %2984 = vmatprep.mubr.bf16.mxu0 %v7498_v18  ;;  %v5602_v48 = vld [vmem:[%s7491_s3 + $0x8] ss:$16 sps:$4 sm:$0xff]   ;;  %v1939_v30 = vpop.permute.xlu0 %1938 }
 0x197   : > { %v1317_v32 = vpop.f32.mrf.mxu1  ;;  %v1542_v46 = vpop.f32.mrf.mxu0  ;;  %3612 = vmatprep.subr.bf16.mxu0 %v5604_v53 }
 0x198   : > { %v6361_v36 = vpack.c.bf16 %v2135_v29, %v2134_v9  ;;  %v1541_v23 = vadd.f32 %v1540_v1, %v1316_v51  ;;  %3613 = vmatpush1.bf16.msra.mxu0 %v5602_v48  ;;  %v5560_v48 = vld [vmem:[%s6094_s15 + $0x38] sm:$0xff]  }
 0x199   : > { %v1318_v26 = vpop.f32.mrf.mxu1  ;;  %v1543_v41 = vpop.f32.mrf.mxu0 }
 0x19a   : > { %v1319_v58 = vadd.f32 %v1318_v26, %v6184_v54  ;;  %v2136_v1 = vmul.f32 %v1939_v30, %v1541_v23  ;;  %v1949_v26 = vpop.permute.xlu0 %1948 }
 0x19b   : > { %v1320_v38 = vpop.f32.mrf.mxu1  ;;  %v1545_v44 = vpop.f32.mrf.mxu0 }
 0x19c   : > { %v1544_v7 = vadd.f32 %v1543_v41, %v1319_v58 }
 0x19d   : > { %v1323_v2 = vpop.f32.mrf.mxu1  ;;  %v1548_v27 = vpop.f32.mrf.mxu0  ;;  %2712 = vmatmul.mubr.bf16.gmra.mxu1 %v5553_v0  ;;  %2985 = vmatmul.mubr.bf16.gmra.mxu0 %v5553_v0 }
 0x19e   : > { %v2137_v9 = vmul.f32 %v1944_v55, %v1544_v7  ;;  %v1324_v29 = vadd.f32 %v1323_v2, %v6188_v3  ;;  %2721 = vmatprep.mubr.bf16.mxu1 %v7498_v18  ;;  %2994 = vmatprep.mubr.bf16.mxu0 %v7498_v18  ;;  %v1954_v0 = vpop.permute.xlu1 %1953 }
 0x19f   : > { %v1325_v54 = vpop.f32.mrf.mxu1  ;;  %v1550_v51 = vpop.f32.mrf.mxu0 }
 0x1a0   : > { %v6380_v32 = vpack.c.bf16 %v2137_v9, %v2136_v1  ;;  %v1549_v46 = vadd.f32 %v1548_v27, %v1324_v29  ;;  %v5561_v29 = vld [vmem:[%s6094_s15 + $0x40] sm:$0xff]   ;;  %v1959_v54 = vpop.permute.xlu0 %1958 }
 0x1a1   : > { %v1326_v62 = vpop.f32.mrf.mxu1  ;;  %v1551_v35 = vpop.f32.mrf.mxu0 }
 0x1a2   : > { %v1327_v41 = vadd.f32 %v1326_v62, %v6194_v11  ;;  %v2138_v55 = vmul.f32 %v1949_v26, %v1549_v46  ;;  %v1964_v62 = vpop.permute.xlu1 %1963 }
 0x1a3   : > { %v1328_v23 = vpop.f32.mrf.mxu1  ;;  %v1553_v53 = vpop.f32.mrf.mxu0 }
 0x1a4   : > { %v1552_v30 = vadd.f32 %v1551_v35, %v1327_v41 }
 0x1a5   : > { %v1331_v3 = vpop.f32.mrf.mxu1  ;;  %v1556_v58 = vpop.f32.mrf.mxu0  ;;  %2722 = vmatmul.mubr.bf16.gmra.mxu1 %v5560_v48  ;;  %2995 = vmatmul.mubr.bf16.gmra.mxu0 %v5560_v48 }
 0x1a6   : > { %v2139_v38 = vmul.f32 %v1954_v0, %v1552_v30  ;;  %v1332_v44 = vadd.f32 %v1331_v3, %v6198_v21  ;;  %2731 = vmatprep.mubr.bf16.mxu1 %v7498_v18  ;;  %3004 = vmatprep.mubr.bf16.mxu0 %v7498_v18 }
 0x1a7   : > { %v1333_v7 = vpop.f32.mrf.mxu1  ;;  %v1558_v2 = vpop.f32.mrf.mxu0 }
 0x1a8   : > { %v6387_v11 = vpack.c.bf16 %v2139_v38, %v2138_v55  ;;  %v1557_v27 = vadd.f32 %v1556_v58, %v1332_v44  ;;  %v5562_v38 = vld [vmem:[%s6094_s15 + $0x48] sm:$0xff]   ;;  %v1969_v44 = vpop.permute.xlu0 %1968  ;;  %v1974_v2 = vpop.permute.xlu1 %1973 }
 0x1a9   : > { %v1334_v1 = vpop.f32.mrf.mxu1  ;;  %v1559_v9 = vpop.f32.mrf.mxu0 }
 0x1aa   : > { %v1335_v51 = vadd.f32 %v1334_v1, %v6204_v33  ;;  %v2140_v41 = vmul.f32 %v1959_v54, %v1557_v27 }
 0x1ab   : > { %v1336_v46 = vpop.f32.mrf.mxu1  ;;  %v1561_v35 = vpop.f32.mrf.mxu0 }
 0x1ac   : > { %v1560_v48 = vadd.f32 %v1559_v9, %v1335_v51 }
 0x1ad   : > { %v1339_v21 = vpop.f32.mrf.mxu1  ;;  %v1564_v26 = vpop.f32.mrf.mxu0  ;;  %2732 = vmatmul.mubr.bf16.gmra.mxu1 %v5561_v29  ;;  %3005 = vmatmul.mubr.bf16.gmra.mxu0 %v5561_v29 }
 0x1ae   : > { %v2141_v0 = vmul.f32 %v1964_v62, %v1560_v48  ;;  %v1340_v23 = vadd.f32 %v1339_v21, %v6208_v45  ;;  %2741 = vmatprep.mubr.bf16.mxu1 %v7498_v18  ;;  %3014 = vmatprep.mubr.bf16.mxu0 %v7498_v18 }
 0x1af   : > { %v1341_v53 = vpop.f32.mrf.mxu1  ;;  %v1566_v30 = vpop.f32.mrf.mxu0 }
 0x1b0   : > { %v6394_v33 = vpack.c.bf16 %v2141_v0, %v2140_v41  ;;  %v1565_v3 = vadd.f32 %v1564_v26, %v1340_v23  ;;  %v5569_v41 = vld [vmem:[%s6094_s15 + $0x50] sm:$0xff]   ;;  %v1979_v0 = vpop.permute.xlu0 %1978  ;;  %v1984_v53 = vpop.permute.xlu1 %1983 }
 0x1b1   : > { %v1342_v58 = vpop.f32.mrf.mxu1  ;;  %v1567_v55 = vpop.f32.mrf.mxu0 }
 0x1b2   : > { %v1343_v7 = vadd.f32 %v1342_v58, %v6214_v59  ;;  %v2142_v54 = vmul.f32 %v1969_v44, %v1565_v3 }
 0x1b3   : > { %v1344_v27 = vpop.f32.mrf.mxu1  ;;  %v1569_v1 = vpop.f32.mrf.mxu0 }
 0x1b4   : > { %v1568_v9 = vadd.f32 %v1567_v55, %v1343_v7 }
 0x1b5   : > { %v1347_v45 = vpop.f32.mrf.mxu1  ;;  %v1572_v29 = vpop.f32.mrf.mxu0  ;;  %2742 = vmatmul.mubr.bf16.gmra.mxu1 %v5562_v38  ;;  %3015 = vmatmul.mubr.bf16.gmra.mxu0 %v5562_v38 }
 0x1b6   : > { %v2143_v51 = vmul.f32 %v1974_v2, %v1568_v9  ;;  %v1348_v62 = vadd.f32 %v1347_v45, %v6218_v8  ;;  %2751 = vmatprep.mubr.bf16.mxu1 %v7498_v18  ;;  %3024 = vmatprep.mubr.bf16.mxu0 %v7498_v18 }
 0x1b7   : > { %v1349_v46 = vpop.f32.mrf.mxu1  ;;  %v1574_v35 = vpop.f32.mrf.mxu0 }
 0x1b8   : > { %v6401_v59 = vpack.c.bf16 %v2143_v51, %v2142_v54  ;;  %v1573_v48 = vadd.f32 %v1572_v29, %v1348_v62  ;;  %v5570_v29 = vld [vmem:[%s6094_s15 + $0x58] sm:$0xff]   ;;  %v1989_v54 = vpop.permute.xlu0 %1988  ;;  %v1994_v62 = vpop.permute.xlu1 %1993 }
 0x1b9   : > { %v1350_v21 = vpop.f32.mrf.mxu1  ;;  %v1575_v26 = vpop.f32.mrf.mxu0 }
 0x1ba   : > { %v1351_v23 = vadd.f32 %v1350_v21, %v6224_v20  ;;  %v2144_v38 = vmul.f32 %v1979_v0, %v1573_v48 }
 0x1bb   : > { %v1352_v30 = vpop.f32.mrf.mxu1  ;;  %v1577_v3 = vpop.f32.mrf.mxu0 }
 0x1bc   : > { %v1576_v58 = vadd.f32 %v1575_v26, %v1351_v23 }
 0x1bd   : > { %v1355_v8 = vpop.f32.mrf.mxu1  ;;  %v1580_v55 = vpop.f32.mrf.mxu0  ;;  %2752 = vmatmul.mubr.bf16.gmra.mxu1 %v5569_v41  ;;  %3025 = vmatmul.mubr.bf16.gmra.mxu0 %v5569_v41 }
 0x1be   : > { %v2145_v44 = vmul.f32 %v1984_v53, %v1576_v58  ;;  %v1356_v7 = vadd.f32 %v1355_v8, %v6228_v42  ;;  %2761 = vmatprep.mubr.bf16.mxu1 %v7498_v18  ;;  %3034 = vmatprep.mubr.bf16.mxu0 %v7498_v18  ;;  %v5571_v8 = vld [vmem:[%s6094_s15 + $0x60] sm:$0xff]  }
 0x1bf   : > { %v1357_v2 = vpop.f32.mrf.mxu1  ;;  %v1582_v27 = vpop.f32.mrf.mxu0 }
 0x1c0   : > { %v6408_v20 = vpack.c.bf16 %v2145_v44, %v2144_v38  ;;  %v1581_v1 = vadd.f32 %v1580_v55, %v1356_v7  ;;  %v1999_v55 = vpop.permute.xlu0 %1998  ;;  %v2004_v44 = vpop.permute.xlu1 %2003 }
 0x1c1   : > { %v1358_v9 = vpop.f32.mrf.mxu1  ;;  %v1583_v45 = vpop.f32.mrf.mxu0 }
 0x1c2   : > { %v1359_v51 = vadd.f32 %v1358_v9, %v6232_v52  ;;  %v2146_v26 = vmul.f32 %v1989_v54, %v1581_v1 }
 0x1c3   : > { %v1360_v46 = vpop.f32.mrf.mxu1  ;;  %v1585_v35 = vpop.f32.mrf.mxu0 }
 0x1c4   : > { %v1584_v48 = vadd.f32 %v1583_v45, %v1359_v51 }
 0x1c5   : > { %v1363_v42 = vpop.f32.mrf.mxu1  ;;  %v1588_v21 = vpop.f32.mrf.mxu0  ;;  %2762 = vmatmul.mubr.bf16.gmra.mxu1 %v5570_v29  ;;  %3035 = vmatmul.mubr.bf16.gmra.mxu0 %v5570_v29 }
 0x1c6   : > { %v2147_v41 = vmul.f32 %v1994_v62, %v1584_v48  ;;  %v1364_v0 = vadd.f32 %v1363_v42, %v6236_v5  ;;  %2771 = vmatprep.mubr.bf16.mxu1 %v7498_v18  ;;  %3044 = vmatprep.mubr.bf16.mxu0 %v7498_v18  ;;  %v5578_v48 = vld [vmem:[%s6094_s15 + $0x68] sm:$0xff]   ;;  %v2009_v42 = vpop.permute.xlu0 %2008 }
 0x1c7   : > { %v1365_v23 = vpop.f32.mrf.mxu1  ;;  %v1590_v53 = vpop.f32.mrf.mxu0 }
 0x1c8   : > { %v6415_v52 = vpack.c.bf16 %v2147_v41, %v2146_v26  ;;  %v1589_v30 = vadd.f32 %v1588_v21, %v1364_v0  ;;  %v2014_v26 = vpop.permute.xlu1 %2013 }
 0x1c9   : > { %v1366_v3 = vpop.f32.mrf.mxu1  ;;  %v1591_v58 = vpop.f32.mrf.mxu0 }
 0x1ca   : > { %v1367_v38 = vadd.f32 %v1366_v3, %v6242_v19  ;;  %v2148_v9 = vmul.f32 %v1999_v55, %v1589_v30 }
 0x1cb   : > { %v1368_v7 = vpop.f32.mrf.mxu1  ;;  %v1593_v2 = vpop.f32.mrf.mxu0 }
 0x1cc   : > { %v1592_v27 = vadd.f32 %v1591_v58, %v1367_v38  ;;  %v5579_v2 = vld [vmem:[%s6094_s15 + $0x70] sm:$0xff]  }
 0x1cd   : > { %v1371_v5 = vpop.f32.mrf.mxu1  ;;  %v1596_v1 = vpop.f32.mrf.mxu0  ;;  %2772 = vmatmul.mubr.bf16.gmra.mxu1 %v5571_v8  ;;  %3045 = vmatmul.mubr.bf16.gmra.mxu0 %v5571_v8 }
 0x1ce   : > { %v2149_v45 = vmul.f32 %v2004_v44, %v1592_v27  ;;  %v1372_v29 = vadd.f32 %v1371_v5, %v6120_v24  ;;  %2781 = vmatprep.mubr.bf16.mxu1 %v7498_v18  ;;  %3054 = vmatprep.mubr.bf16.mxu0 %v7498_v18  ;;  %v2019_v27 = vpop.permute.xlu0 %2018 }
 0x1cf   : > { %v1373_v54 = vpop.f32.mrf.mxu1  ;;  %v1598_v51 = vpop.f32.mrf.mxu0 }
 0x1d0   : > { %v6422_v19 = vpack.c.bf16 %v2149_v45, %v2148_v9  ;;  %v1597_v62 = vadd.f32 %v1596_v1, %v1372_v29  ;;  %v2024_v1 = vpop.permute.xlu1 %2023 }
 0x1d1   : > { %v1374_v46 = vpop.f32.mrf.mxu1  ;;  %v1599_v35 = vpop.f32.mrf.mxu0 }
 0x1d2   : > { %v1375_v21 = vadd.f32 %v1374_v46, %v6127_v31  ;;  %v2150_v30 = vmul.f32 %v2009_v42, %v1597_v62 }
 0x1d3   : > { %v1376_v41 = vpop.f32.mrf.mxu1  ;;  %v1601_v0 = vpop.f32.mrf.mxu0 }
 0x1d4   : > { %v1600_v23 = vadd.f32 %v1599_v35, %v1375_v21  ;;  %v5580_v41 = vld [vmem:[%s6094_s15 + $0x78] sm:$0xff]   ;;  %v2029_v0 = vpop.permute.xlu0 %2028 }
 0x1d5   : > { %v1379_v24 = vpop.f32.mrf.mxu1  ;;  %v1604_v53 = vpop.f32.mrf.mxu0  ;;  %2782 = vmatmul.mubr.bf16.gmra.mxu1 %v5578_v48  ;;  %3055 = vmatmul.mubr.bf16.gmra.mxu0 %v5578_v48 }
 0x1d6   : > { %v2151_v3 = vmul.f32 %v2014_v26, %v1600_v23  ;;  %v1380_v58 = vadd.f32 %v1379_v24, %v6132_v40  ;;  %2791 = vmatprep.mubr.bf16.mxu1 %v7498_v18  ;;  %3064 = vmatprep.mubr.bf16.mxu0 %v7498_v18  ;;  %v2034_v24 = vpop.permute.xlu1 %2033 }
 0x1d7   : > { %v1381_v8 = vpop.f32.mrf.mxu1  ;;  %v1606_v55 = vpop.f32.mrf.mxu0 }
 0x1d8   : > { %v6429_v31 = vpack.c.bf16 %v2151_v3, %v2150_v30  ;;  %v1605_v38 = vadd.f32 %v1604_v53, %v1380_v58 }
 0x1d9   : > { %v1382_v44 = vpop.f32.mrf.mxu1  ;;  %v1607_v7 = vpop.f32.mrf.mxu0 }
 0x1da   : > { %v1383_v5 = vadd.f32 %v1382_v44, %v6139_v47  ;;  %v2152_v51 = vmul.f32 %v2019_v27, %v1605_v38 }
 0x1db   : > { %v1384_v9 = vpop.f32.mrf.mxu1  ;;  %v1609_v45 = vpop.f32.mrf.mxu0 }
 0x1dc   : > { %v1608_v29 = vadd.f32 %v1607_v7, %v1383_v5  ;;  %v2039_v9 = vpop.permute.xlu0 %2038 }
 0x1dd   : > { %v1387_v40 = vpop.f32.mrf.mxu1  ;;  %v1612_v54 = vpop.f32.mrf.mxu0  ;;  %2792 = vmatmul.mubr.bf16.gmra.mxu1 %v5579_v2  ;;  %3065 = vmatmul.mubr.bf16.gmra.mxu0 %v5579_v2 }
 0x1de   : > { %v2153_v62 = vmul.f32 %v2024_v1, %v1608_v29  ;;  %v1388_v46 = vadd.f32 %v1387_v40, %v6144_v56  ;;  %2801 = vmatprep.mubr.bf16.mxu1 %v7498_v18  ;;  %3074 = vmatprep.mubr.bf16.mxu0 %v7498_v18  ;;  %v5587_v1 = vld [vmem:[%s6094_s15 + $0x80] sm:$0xff]   ;;  %v2044_v29 = vpop.permute.xlu1 %2043 }
 0x1df   : > { %v1389_v35 = vpop.f32.mrf.mxu1  ;;  %v1614_v48 = vpop.f32.mrf.mxu0 }
 0x1e0   : > { %v6436_v47 = vpack.c.bf16 %v2153_v62, %v2152_v51  ;;  %v1613_v42 = vadd.f32 %v1612_v54, %v1388_v46 }
 0x1e1   : > { %v1390_v21 = vpop.f32.mrf.mxu1  ;;  %v1615_v26 = vpop.f32.mrf.mxu0 }
 0x1e2   : > { %v1391_v23 = vadd.f32 %v1390_v21, %v6151_v63  ;;  %v2154_v8 = vmul.f32 %v2029_v0, %v1613_v42 }
 0x1e3   : > { %v1392_v53 = vpop.f32.mrf.mxu1  ;;  %v1617_v30 = vpop.f32.mrf.mxu0 }
 0x1e4   : > { %v1616_v3 = vadd.f32 %v1615_v26, %v1391_v23  ;;  %v5588_v23 = vld [vmem:[%s6094_s15 + $0x88] sm:$0xff]   ;;  %v2054_v30 = vpop.permute.xlu1 %2053 }
 0x1e5   : > { %v1395_v56 = vpop.f32.mrf.mxu1  ;;  %v1620_v58 = vpop.f32.mrf.mxu0  ;;  %2802 = vmatmul.mubr.bf16.gmra.mxu1 %v5580_v41  ;;  %3075 = vmatmul.mubr.bf16.gmra.mxu0 %v5580_v41 }
 0x1e6   : > { %v2155_v55 = vmul.f32 %v2034_v24, %v1616_v3  ;;  %v1396_v38 = vadd.f32 %v1395_v56, %v6157_v10  ;;  %2811 = vmatprep.mubr.bf16.mxu1 %v7498_v18  ;;  %3084 = vmatprep.mubr.bf16.mxu0 %v7498_v18  ;;  %v2049_v24 = vpop.permute.xlu0 %2048 }
 0x1e7   : > { %v1397_v44 = vpop.f32.mrf.mxu1  ;;  %v1622_v7 = vpop.f32.mrf.mxu0 }
 0x1e8   : > { %v6443_v63 = vpack.c.bf16 %v2155_v55, %v2154_v8  ;;  %v1621_v2 = vadd.f32 %v1620_v58, %v1396_v38 }
 0x1e9   : > { %v1398_v27 = vpop.f32.mrf.mxu1  ;;  %v1623_v5 = vpop.f32.mrf.mxu0 }
 0x1ea   : > { %v1399_v45 = vadd.f32 %v1398_v27, %v6164_v17  ;;  %v2156_v46 = vmul.f32 %v2039_v9, %v1621_v2  ;;  %v5589_v9 = vld [vmem:[%s6094_s15 + $0x90] sm:$0xff]  }
 0x1eb   : > { %v1400_v40 = vpop.f32.mrf.mxu1  ;;  %v1625_v54 = vpop.f32.mrf.mxu0 }
 0x1ec   : > { %v1624_v51 = vadd.f32 %v1623_v5, %v1399_v45  ;;  %v2059_v45 = vpop.permute.xlu0 %2058  ;;  %v2064_v40 = vpop.permute.xlu1 %2063 }
 0x1ed   : > { %v1403_v10 = vpop.f32.mrf.mxu1  ;;  %v1628_v62 = vpop.f32.mrf.mxu0  ;;  %2812 = vmatmul.mubr.bf16.gmra.mxu1 %v5587_v1  ;;  %3085 = vmatmul.mubr.bf16.gmra.mxu0 %v5587_v1 }
 0x1ee   : > { %v2157_v35 = vmul.f32 %v2044_v29, %v1624_v51  ;;  %v1404_v48 = vadd.f32 %v1403_v10, %v6169_v28  ;;  %2821 = vmatprep.mubr.bf16.mxu1 %v7498_v18  ;;  %3094 = vmatprep.mubr.bf16.mxu0 %v7498_v18 }
 0x1ef   : > { %v1405_v42 = vpop.f32.mrf.mxu1  ;;  %v1630_v21 = vpop.f32.mrf.mxu0 }
 0x1f0   : > { %v6450_v17 = vpack.c.bf16 %v2157_v35, %v2156_v46  ;;  %v1629_v26 = vadd.f32 %v1628_v62, %v1404_v48 }
 0x1f1   : > { %v1406_v41 = vpop.f32.mrf.mxu1  ;;  %v1631_v0 = vpop.f32.mrf.mxu0 }
 0x1f2   : > { %v1407_v53 = vadd.f32 %v1406_v41, %v6176_v37  ;;  %v2158_v55 = vmul.f32 %v2049_v24, %v1629_v26  ;;  %v2069_v24 = vpop.permute.xlu0 %2068 }
 0x1f3   : > { %v1408_v3 = vpop.f32.mrf.mxu1  ;;  %v1633_v56 = vpop.f32.mrf.mxu0 }
 0x1f4   : > { %v1632_v58 = vadd.f32 %v1631_v0, %v1407_v53 }
 0x1f5   : > { %v1411_v28 = vpop.f32.mrf.mxu1  ;;  %v1636_v8 = vpop.f32.mrf.mxu0  ;;  %2822 = vmatmul.mubr.bf16.gmra.mxu1 %v5588_v23  ;;  %3095 = vmatmul.mubr.bf16.gmra.mxu0 %v5588_v23  ;;  %v5596_v23 = vld [vmem:[%s6094_s15 + $0x98] sm:$0xff]  }
 0x1f6   : > { %v2159_v38 = vmul.f32 %v2054_v30, %v1632_v58  ;;  %v1412_v44 = vadd.f32 %v1411_v28, %v6180_v49  ;;  %2831 = vmatprep.mubr.bf16.mxu1 %v7498_v18  ;;  %3104 = vmatprep.mubr.bf16.mxu0 %v7498_v18  ;;  %v2074_v30 = vpop.permute.xlu1 %2073 }
 0x1f7   : > { %v1413_v7 = vpop.f32.mrf.mxu1  ;;  %v1638_v2 = vpop.f32.mrf.mxu0 }
 0x1f8   : > { %v6457_v37 = vpack.c.bf16 %v2159_v38, %v2158_v55  ;;  %v1637_v27 = vadd.f32 %v1636_v8, %v1412_v44 }
 0x1f9   : > { %v1414_v5 = vpop.f32.mrf.mxu1  ;;  %v1639_v1 = vpop.f32.mrf.mxu0 }
 0x1fa   : > { %v1415_v29 = vadd.f32 %v1414_v5, %v6186_v57  ;;  %v2160_v46 = vmul.f32 %v2059_v45, %v1637_v27 }
 0x1fb   : > { %v1416_v54 = vpop.f32.mrf.mxu1  ;;  %v1641_v51 = vpop.f32.mrf.mxu0 }
 0x1fc   : > { %v1640_v10 = vadd.f32 %v1639_v1, %v1415_v29  ;;  %v5597_v1 = vld [vmem:[%s6094_s15 + $0xa0] sm:$0xff]   ;;  %v2084_v29 = vpop.permute.xlu1 %2083 }
 0x1fd   : > { %v1419_v49 = vpop.f32.mrf.mxu1  ;;  %v1644_v62 = vpop.f32.mrf.mxu0  ;;  %2832 = vmatmul.mubr.bf16.gmra.mxu1 %v5589_v9  ;;  %3105 = vmatmul.mubr.bf16.gmra.mxu0 %v5589_v9 }
 0x1fe   : > { %v2161_v35 = vmul.f32 %v2064_v40, %v1640_v10  ;;  %v1420_v48 = vadd.f32 %v1419_v49, %v6190_v4  ;;  %2841 = vmatprep.mubr.bf16.mxu1 %v7498_v18  ;;  %3114 = vmatprep.mubr.bf16.mxu0 %v7498_v18  ;;  %v2079_v9 = vpop.permute.xlu0 %2078 }
 0x1ff   : > { %v1421_v42 = vpop.f32.mrf.mxu1  ;;  %v1646_v21 = vpop.f32.mrf.mxu0 }
 0x200   : > { %v6464_v57 = vpack.c.bf16 %v2161_v35, %v2160_v46  ;;  %v1645_v26 = vadd.f32 %v1644_v62, %v1420_v48 }
 0x201   : > { %v1422_v41 = vpop.f32.mrf.mxu1  ;;  %v1647_v0 = vpop.f32.mrf.mxu0 }
 0x202   : > { %v1423_v53 = vadd.f32 %v1422_v41, %v6196_v12  ;;  %v2162_v8 = vmul.f32 %v2069_v24, %v1645_v26  ;;  %v5598_v41 = vld [vmem:[%s6094_s15 + $0xa8] sm:$0xff]   ;;  %v2094_v24 = vpop.permute.xlu1 %2093 }
 0x203   : > { %v1424_v3 = vpop.f32.mrf.mxu1  ;;  %v1649_v56 = vpop.f32.mrf.mxu0 }
 0x204   : > { %v1648_v58 = vadd.f32 %v1647_v0, %v1423_v53  ;;  %v2089_v0 = vpop.permute.xlu0 %2088 }
 0x205   : > { %v1427_v4 = vpop.f32.mrf.mxu1  ;;  %v1652_v28 = vpop.f32.mrf.mxu0  ;;  %2842 = vmatmul.mubr.bf16.gmra.mxu1 %v5596_v23  ;;  %3115 = vmatmul.mubr.bf16.gmra.mxu0 %v5596_v23 }
 0x206   : > { %v2163_v55 = vmul.f32 %v2074_v30, %v1648_v58  ;;  %v1428_v38 = vadd.f32 %v1427_v4, %v6200_v22  ;;  %2851 = vmatprep.mubr.bf16.mxu1 %v7498_v18  ;;  %3124 = vmatprep.mubr.bf16.mxu0 %v7498_v18 }
 0x207   : > { %v1429_v44 = vpop.f32.mrf.mxu1  ;;  %v1654_v7 = vpop.f32.mrf.mxu0 }
 0x208   : > { %v6471_v12 = vpack.c.bf16 %v2163_v55, %v2162_v8  ;;  %v1653_v2 = vadd.f32 %v1652_v28, %v1428_v38 }
 0x209   : > { %v1430_v27 = vpop.f32.mrf.mxu1  ;;  %v1655_v5 = vpop.f32.mrf.mxu0 }
 0x20a   : > { %v1431_v45 = vadd.f32 %v1430_v27, %v6206_v34  ;;  %v2164_v49 = vmul.f32 %v2079_v9, %v1653_v2  ;;  %v5605_v2 = vld [vmem:[%s6094_s15 + $0xb0] sm:$0xff]   ;;  %v2099_v27 = vpop.permute.xlu0 %2098 }
 0x20b   : > { %v1432_v40 = vpop.f32.mrf.mxu1  ;;  %v1657_v54 = vpop.f32.mrf.mxu0 }
 0x20c   : > { %v1656_v51 = vadd.f32 %v1655_v5, %v1431_v45 }
 0x20d   : > { %v1435_v22 = vpop.f32.mrf.mxu1  ;;  %v1660_v10 = vpop.f32.mrf.mxu0  ;;  %2852 = vmatmul.mubr.bf16.gmra.mxu1 %v5597_v1  ;;  %3125 = vmatmul.mubr.bf16.gmra.mxu0 %v5597_v1 }
 0x20e   : > { %v2165_v62 = vmul.f32 %v2084_v29, %v1656_v51  ;;  %v1436_v46 = vadd.f32 %v1435_v22, %v6210_v50  ;;  %2861 = vmatprep.mubr.bf16.mxu1 %v7498_v18  ;;  %3134 = vmatprep.mubr.bf16.mxu0 %v7498_v18  ;;  %v2104_v1 = vpop.permute.xlu1 %2103 }
 0x20f   : > { %v1437_v35 = vpop.f32.mrf.mxu1  ;;  %v1662_v48 = vpop.f32.mrf.mxu0 }
 0x210   : > { %v6478_v34 = vpack.c.bf16 %v2165_v62, %v2164_v49  ;;  %v1661_v42 = vadd.f32 %v1660_v10, %v1436_v46  ;;  %v5606_v48 = vld [vmem:[%s6094_s15 + $0xb8] sm:$0xff]  }
 0x211   : > { %v1438_v21 = vpop.f32.mrf.mxu1  ;;  %v1663_v26 = vpop.f32.mrf.mxu0 }
 0x212   : > { %v1439_v23 = vadd.f32 %v1438_v21, %v6216_v60  ;;  %v2166_v58 = vmul.f32 %v2089_v0, %v1661_v42  ;;  %v2109_v42 = vpop.permute.xlu0 %2108 }
 0x213   : > { %v1440_v53 = vpop.f32.mrf.mxu1  ;;  %v1665_v30 = vpop.f32.mrf.mxu0 }
 0x214   : > { %v1664_v3 = vadd.f32 %v1663_v26, %v1439_v23  ;;  %v2114_v26 = vpop.permute.xlu1 %2113 }
 0x215   : > { %v1443_v50 = vpop.f32.mrf.mxu1  ;;  %v1668_v56 = vpop.f32.mrf.mxu0  ;;  %2862 = vmatmul.mubr.bf16.gmra.mxu1 %v5598_v41  ;;  %3135 = vmatmul.mubr.bf16.gmra.mxu0 %v5598_v41 }
 0x216   : > { %v2167_v4 = vmul.f32 %v2094_v24, %v1664_v3  ;;  %v1444_v28 = vadd.f32 %v1443_v50, %v6220_v13  ;;  %2871 = vmatprep.mubr.bf16.mxu1 %v7498_v18  ;;  %3144 = vmatprep.mubr.bf16.mxu0 %v7498_v18 }
 0x217   : > { %v1445_v8 = vpop.f32.mrf.mxu1  ;;  %v1670_v55 = vpop.f32.mrf.mxu0 }
 0x218   : > { %v6485_v60 = vpack.c.bf16 %v2167_v4, %v2166_v58  ;;  %v1669_v38 = vadd.f32 %v1668_v56, %v1444_v28  ;;  %v7499_v8 = vld [vmem:[#allocation3_spill] sm:$0xff] }
 0x219   : > { %v1446_v44 = vpop.f32.mrf.mxu1  ;;  %v1671_v7 = vpop.f32.mrf.mxu0 }
 0x21a   : > { %v1447_v5 = vadd.f32 %v1446_v44, %v6226_v25  ;;  %v2168_v54 = vmul.f32 %v2099_v27, %v1669_v38  ;;  %v2124_v38 = vpop.permute.xlu1 %2123 }
 0x21b   : > { %v1448_v9 = vpop.f32.mrf.mxu1  ;;  %v1673_v45 = vpop.f32.mrf.mxu0 }
 0x21c   : > { %v1672_v29 = vadd.f32 %v1671_v7, %v1447_v5 }
 0x21d   : > { %v1451_v13 = vpop.f32.mrf.mxu1  ;;  %v1676_v40 = vpop.f32.mrf.mxu0  ;;  %2872 = vmatmul.mubr.bf16.gmra.mxu1 %v5605_v2  ;;  %3145 = vmatmul.mubr.bf16.gmra.mxu0 %v5605_v2 }
 0x21e   : > { %v2169_v51 = vmul.f32 %v2104_v1, %v1672_v29  ;;  %v1452_v22 = vadd.f32 %v1451_v13, %v6230_v43  ;;  %2881 = vmatprep.mubr.bf16.mxu1 %v7498_v18  ;;  %3154 = vmatprep.mubr.bf16.mxu0 %v7498_v18  ;;  %v2119_v2 = vpop.permute.xlu0 %2118 }
 0x21f   : > { %v1453_v10 = vpop.f32.mrf.mxu1  ;;  %v1678_v49 = vpop.f32.mrf.mxu0 }
 0x220   : > { %v6492_v25 = vpack.c.bf16 %v2169_v51, %v2168_v54  ;;  %v1677_v62 = vadd.f32 %v1676_v40, %v1452_v22 }
 0x221   : > { %v1454_v46 = vpop.f32.mrf.mxu1  ;;  %v1679_v35 = vpop.f32.mrf.mxu0 }
 0x222   : > { %v1455_v21 = vadd.f32 %v1454_v46, %v6234_v61  ;;  %v2170_v53 = vmul.f32 %v2109_v42, %v1677_v62 }
 0x223   : > { %v1456_v41 = vpop.f32.mrf.mxu1  ;;  %v1681_v0 = vpop.f32.mrf.mxu0 }
 0x224   : > { %v1680_v23 = vadd.f32 %v1679_v35, %v1455_v21 }
 0x225   : > { %v1459_v43 = vpop.f32.mrf.mxu1  ;;  %v1684_v24 = vpop.f32.mrf.mxu0  ;;  %2882 = vmatmul.mubr.bf16.gmra.mxu1 %v5606_v48  ;;  %3155 = vmatmul.mubr.bf16.gmra.mxu0 %v5606_v48 }
 0x226   : > { %v2171_v30 = vmul.f32 %v2114_v26, %v1680_v23  ;;  %v1460_v3 = vadd.f32 %v1459_v43, %v6238_v6  ;;  %3357 = vmatprep.mubr.bf16.mxu1 %v7498_v18  ;;  %3630 = vmatprep.mubr.bf16.mxu0 %v7498_v18 }
 0x227   : > { %v1461_v50 = vpop.f32.mrf.mxu1  ;;  %v1686_v56 = vpop.f32.mrf.mxu0 }
 0x228   : > { %v6499_v58 = vpack.c.bf16 %v2171_v30, %v2170_v53  ;;  %v1685_v61 = vadd.f32 %v1684_v24, %v1460_v3 }
 0x229   : > { %v1462_v4 = vpop.f32.mrf.mxu1  ;;  %v1687_v28 = vpop.f32.mrf.mxu0 }
 0x22a   : > { %v1463_v55 = vadd.f32 %v1462_v4, %v7499_v8  ;;  %v2172_v1 = vmul.f32 %v2119_v2, %v1685_v61 }
 0x22b   : > { %v1464_v44 = vpop.f32.mrf.mxu1  ;;  %v1689_v7 = vpop.f32.mrf.mxu0 }
 0x22c   : > { %v1688_v27 = vadd.f32 %v1687_v28, %v1463_v55 }
 0x22d   : > { %v6502_v5 = vpop.f32.mrf.mxu1  ;;  %v6504_v6 = vpop.f32.mrf.mxu0  ;;  %3358 = vmatmul.mubr.bf16.vlgmr.msra.gmra.mxu1 %v6297_v15  ;;  %3631 = vmatmul.mubr.bf16.vlgmr.msra.gmra.mxu0 %v6297_v15 }
 0x22e   : > { %v2173_v9 = vmul.f32 %v2124_v38, %v1688_v27  ;;  %3367 = vmatprep.mubr.bf16.mxu1 %v7498_v18  ;;  %3640 = vmatprep.mubr.bf16.mxu0 %v7498_v18 }
 0x22f   : > { %v6510_v45 = vpop.f32.mrf.mxu1  ;;  %v6512_v29 = vpop.f32.mrf.mxu0 }
 0x230   : > { %v6514_v13 = vpack.c.bf16 %v2173_v9, %v2172_v1 }
 0x231   : > { %v6516_v40 = vpop.f32.mrf.mxu1  ;;  %v6518_v54 = vpop.f32.mrf.mxu0 }
 0x233   : > { %v6520_v51 = vpop.f32.mrf.mxu1  ;;  %v6522_v22 = vpop.f32.mrf.mxu0 }
 0x235   : > { %v6524_v15 = vpop.f32.mrf.mxu1  ;;  %v6526_v10 = vpop.f32.mrf.mxu0  ;;  %3368 = vmatmul.mubr.bf16.gmra.mxu1 %v6328_v39  ;;  %3641 = vmatmul.mubr.bf16.gmra.mxu0 %v6328_v39 }
 0x236   : > { %3377 = vmatprep.mubr.bf16.mxu1 %v7498_v18  ;;  %3650 = vmatprep.mubr.bf16.mxu0 %v7498_v18 }
 0x237   : > { %v6532_v49 = vpop.f32.mrf.mxu1  ;;  %v6534_v62 = vpop.f32.mrf.mxu0 }
 0x239   : > { %v6536_v46 = vpop.f32.mrf.mxu1  ;;  %v6538_v35 = vpop.f32.mrf.mxu0 }
 0x23b   : > { %v6540_v48 = vpop.f32.mrf.mxu1  ;;  %v6542_v42 = vpop.f32.mrf.mxu0 }
 0x23d   : > { %v6544_v21 = vpop.f32.mrf.mxu1  ;;  %v6546_v26 = vpop.f32.mrf.mxu0  ;;  %3378 = vmatmul.mubr.bf16.gmra.mxu1 %v6347_v14  ;;  %3651 = vmatmul.mubr.bf16.gmra.mxu0 %v6347_v14 }
 0x23e   : > { %3387 = vmatprep.mubr.bf16.mxu1 %v7498_v18  ;;  %3660 = vmatprep.mubr.bf16.mxu0 %v7498_v18 }
 0x23f   : > { %v6552_v39 = vpop.f32.mrf.mxu1  ;;  %v6554_v41 = vpop.f32.mrf.mxu0 }
 0x241   : > { %v6556_v0 = vpop.f32.mrf.mxu1  ;;  %v6558_v23 = vpop.f32.mrf.mxu0 }
 0x243   : > { %v6560_v43 = vpop.f32.mrf.mxu1  ;;  %v6562_v24 = vpop.f32.mrf.mxu0 }
 0x245   : > { %v6564_v53 = vpop.f32.mrf.mxu1  ;;  %v6566_v30 = vpop.f32.mrf.mxu0  ;;  %3388 = vmatmul.mubr.bf16.gmra.mxu1 %v6354_v16  ;;  %3661 = vmatmul.mubr.bf16.gmra.mxu0 %v6354_v16 }
 0x246   : > { %3397 = vmatprep.mubr.bf16.mxu1 %v7498_v18  ;;  %3670 = vmatprep.mubr.bf16.mxu0 %v7498_v18 }
 0x247   : > { %v6572_v14 = vpop.f32.mrf.mxu1  ;;  %v6574_v3 = vpop.f32.mrf.mxu0 }
 0x249   : > { %v6576_v50 = vpop.f32.mrf.mxu1  ;;  %v6578_v56 = vpop.f32.mrf.mxu0 }
 0x24b   : > { %v6580_v61 = vpop.f32.mrf.mxu1  ;;  %v6582_v4 = vpop.f32.mrf.mxu0 }
 0x24d   : > { %v6584_v28 = vpop.f32.mrf.mxu1  ;;  %v6586_v8 = vpop.f32.mrf.mxu0  ;;  %3398 = vmatmul.mubr.bf16.gmra.mxu1 %v6361_v36  ;;  %3671 = vmatmul.mubr.bf16.gmra.mxu0 %v6361_v36 }
 0x24e   : > { %3407 = vmatprep.mubr.bf16.mxu1 %v7498_v18  ;;  %3680 = vmatprep.mubr.bf16.mxu0 %v7498_v18 }
 0x24f   : > { %v6592_v16 = vpop.f32.mrf.mxu1  ;;  %v6594_v55 = vpop.f32.mrf.mxu0 }
 0x251   : > { %v6596_v38 = vpop.f32.mrf.mxu1  ;;  %v6598_v44 = vpop.f32.mrf.mxu0 }
 0x252   : > { %7500 = vst [vmem:[#allocation3_spill] sm:$0xff] %v6596_v38  ;;  %7501 = vst [vmem:[#allocation4_spill] sm:$0xff] %v6598_v44 }
 0x253   : > { %v6600_v7 = vpop.f32.mrf.mxu1  ;;  %v6602_v2 = vpop.f32.mrf.mxu0 }
 0x254   : > { %7502 = vst [vmem:[#allocation5_spill] sm:$0xff] %v6600_v7  ;;  %7503 = vst [vmem:[#allocation6_spill] sm:$0xff] %v6602_v2 }
 0x255   : > { %v6604_v27 = vpop.f32.mrf.mxu1  ;;  %v6606_v1 = vpop.f32.mrf.mxu0  ;;  %3408 = vmatmul.mubr.bf16.gmra.mxu1 %v6380_v32  ;;  %3681 = vmatmul.mubr.bf16.gmra.mxu0 %v6380_v32 }
 0x256   : > { %7504 = vst [vmem:[#allocation7_spill] sm:$0xff] %v6604_v27  ;;  %7505 = vst [vmem:[#allocation8_spill] sm:$0xff] %v6606_v1  ;;  %3417 = vmatprep.mubr.bf16.mxu1 %v7498_v18  ;;  %3690 = vmatprep.mubr.bf16.mxu0 %v7498_v18 }
 0x257   : > { %v6612_v36 = vpop.f32.mrf.mxu1  ;;  %v6614_v9 = vpop.f32.mrf.mxu0 }
 0x258   : > { %7506 = vst [vmem:[#allocation9_spill] sm:$0xff] %v6614_v9 }
 0x259   : > { %v6616_v44 = vpop.f32.mrf.mxu1  ;;  %v6618_v7 = vpop.f32.mrf.mxu0 }
 0x25a   : > { %7507 = vst [vmem:[#allocation10_spill] sm:$0xff] %v6616_v44  ;;  %7508 = vst [vmem:[#allocation11_spill] sm:$0xff] %v6618_v7 }
 0x25b   : > { %v6620_v2 = vpop.f32.mrf.mxu1  ;;  %v6622_v27 = vpop.f32.mrf.mxu0 }
 0x25c   : > { %7509 = vst [vmem:[#allocation12_spill] sm:$0xff] %v6620_v2  ;;  %7510 = vst [vmem:[#allocation13_spill] sm:$0xff] %v6622_v27 }
 0x25d   : > { %v6624_v1 = vpop.f32.mrf.mxu1  ;;  %v6626_v38 = vpop.f32.mrf.mxu0  ;;  %3418 = vmatmul.mubr.bf16.gmra.mxu1 %v6387_v11  ;;  %3691 = vmatmul.mubr.bf16.gmra.mxu0 %v6387_v11 }
 0x25e   : > { %7511 = vst [vmem:[#allocation14_spill] sm:$0xff] %v6624_v1  ;;  %7512 = vst [vmem:[#allocation15_spill] sm:$0xff] %v6626_v38  ;;  %3427 = vmatprep.mubr.bf16.mxu1 %v7498_v18  ;;  %3700 = vmatprep.mubr.bf16.mxu0 %v7498_v18 }
 0x25f   : > { %v6632_v32 = vpop.f32.mrf.mxu1  ;;  %v6634_v44 = vpop.f32.mrf.mxu0 }
 0x260   : > { %7513 = vst [vmem:[#allocation16_spill] sm:$0xff] %v6634_v44 }
 0x261   : > { %v6636_v7 = vpop.f32.mrf.mxu1  ;;  %v6638_v2 = vpop.f32.mrf.mxu0 }
 0x262   : > { %7514 = vst [vmem:[#allocation17_spill] sm:$0xff] %v6636_v7  ;;  %7515 = vst [vmem:[#allocation18_spill] sm:$0xff] %v6638_v2 }
 0x263   : > { %v6640_v27 = vpop.f32.mrf.mxu1  ;;  %v6642_v1 = vpop.f32.mrf.mxu0 }
 0x264   : > { %7516 = vst [vmem:[#allocation19_spill] sm:$0xff] %v6640_v27  ;;  %7517 = vst [vmem:[#allocation20_spill] sm:$0xff] %v6642_v1 }
 0x265   : > { %v6644_v38 = vpop.f32.mrf.mxu1  ;;  %v6646_v9 = vpop.f32.mrf.mxu0  ;;  %3428 = vmatmul.mubr.bf16.gmra.mxu1 %v6394_v33  ;;  %3701 = vmatmul.mubr.bf16.gmra.mxu0 %v6394_v33 }
 0x266   : > { %7518 = vst [vmem:[#allocation21_spill] sm:$0xff] %v6644_v38  ;;  %7519 = vst [vmem:[#allocation22_spill] sm:$0xff] %v6646_v9  ;;  %3437 = vmatprep.mubr.bf16.mxu1 %v7498_v18  ;;  %3710 = vmatprep.mubr.bf16.mxu0 %v7498_v18 }
 0x267   : > { %v6652_v11 = vpop.f32.mrf.mxu1  ;;  %v6654_v7 = vpop.f32.mrf.mxu0 }
 0x268   : > { %7520 = vst [vmem:[#allocation23_spill] sm:$0xff] %v6654_v7 }
 0x269   : > { %v6656_v2 = vpop.f32.mrf.mxu1  ;;  %v6658_v27 = vpop.f32.mrf.mxu0 }
 0x26a   : > { %7521 = vst [vmem:[#allocation24_spill] sm:$0xff] %v6656_v2  ;;  %7522 = vst [vmem:[#allocation25_spill] sm:$0xff] %v6658_v27 }
 0x26b   : > { %v6660_v1 = vpop.f32.mrf.mxu1  ;;  %v6662_v38 = vpop.f32.mrf.mxu0 }
 0x26c   : > { %7523 = vst [vmem:[#allocation26_spill] sm:$0xff] %v6660_v1  ;;  %7524 = vst [vmem:[#allocation27_spill] sm:$0xff] %v6662_v38 }
 0x26d   : > { %v6664_v9 = vpop.f32.mrf.mxu1  ;;  %v6666_v44 = vpop.f32.mrf.mxu0  ;;  %3438 = vmatmul.mubr.bf16.gmra.mxu1 %v6401_v59  ;;  %3711 = vmatmul.mubr.bf16.gmra.mxu0 %v6401_v59 }
 0x26e   : > { %7525 = vst [vmem:[#allocation28_spill] sm:$0xff] %v6664_v9  ;;  %7526 = vst [vmem:[#allocation29_spill] sm:$0xff] %v6666_v44  ;;  %3447 = vmatprep.mubr.bf16.mxu1 %v7498_v18  ;;  %3720 = vmatprep.mubr.bf16.mxu0 %v7498_v18 }
 0x26f   : > { %v6672_v33 = vpop.f32.mrf.mxu1  ;;  %v6674_v2 = vpop.f32.mrf.mxu0 }
 0x270   : > { %7527 = vst [vmem:[#allocation30_spill] sm:$0xff] %v6674_v2 }
 0x271   : > { %v6676_v27 = vpop.f32.mrf.mxu1  ;;  %v6678_v1 = vpop.f32.mrf.mxu0 }
 0x272   : > { %7528 = vst [vmem:[#allocation31_spill] sm:$0xff] %v6676_v27  ;;  %7529 = vst [vmem:[#allocation32_spill] sm:$0xff] %v6678_v1 }
 0x273   : > { %v6680_v38 = vpop.f32.mrf.mxu1  ;;  %v6682_v9 = vpop.f32.mrf.mxu0 }
 0x274   : > { %7530 = vst [vmem:[#allocation33_spill] sm:$0xff] %v6680_v38  ;;  %7531 = vst [vmem:[#allocation34_spill] sm:$0xff] %v6682_v9 }
 0x275   : > { %v6684_v44 = vpop.f32.mrf.mxu1  ;;  %v6686_v7 = vpop.f32.mrf.mxu0  ;;  %3448 = vmatmul.mubr.bf16.gmra.mxu1 %v6408_v20  ;;  %3721 = vmatmul.mubr.bf16.gmra.mxu0 %v6408_v20 }
 0x276   : > { %7532 = vst [vmem:[#allocation35_spill] sm:$0xff] %v6684_v44  ;;  %7533 = vst [vmem:[#allocation36_spill] sm:$0xff] %v6686_v7  ;;  %3457 = vmatprep.mubr.bf16.mxu1 %v7498_v18  ;;  %3730 = vmatprep.mubr.bf16.mxu0 %v7498_v18 }
 0x277   : > { %v6692_v59 = vpop.f32.mrf.mxu1  ;;  %v6694_v27 = vpop.f32.mrf.mxu0 }
 0x278   : > { %7534 = vst [vmem:[#allocation37_spill] sm:$0xff] %v6694_v27 }
 0x279   : > { %v6696_v1 = vpop.f32.mrf.mxu1  ;;  %v6698_v38 = vpop.f32.mrf.mxu0 }
 0x27a   : > { %7535 = vst [vmem:[#allocation38_spill] sm:$0xff] %v6696_v1  ;;  %7536 = vst [vmem:[#allocation39_spill] sm:$0xff] %v6698_v38 }
 0x27b   : > { %v6700_v9 = vpop.f32.mrf.mxu1  ;;  %v6702_v44 = vpop.f32.mrf.mxu0 }
 0x27c   : > { %7537 = vst [vmem:[#allocation40_spill] sm:$0xff] %v6700_v9  ;;  %7538 = vst [vmem:[#allocation41_spill] sm:$0xff] %v6702_v44 }
 0x27d   : > { %v6704_v7 = vpop.f32.mrf.mxu1  ;;  %v6706_v2 = vpop.f32.mrf.mxu0  ;;  %3458 = vmatmul.mubr.bf16.gmra.mxu1 %v6415_v52  ;;  %3731 = vmatmul.mubr.bf16.gmra.mxu0 %v6415_v52 }
 0x27e   : > { %7539 = vst [vmem:[#allocation42_spill] sm:$0xff] %v6704_v7  ;;  %7540 = vst [vmem:[#allocation43_spill] sm:$0xff] %v6706_v2  ;;  %3467 = vmatprep.mubr.bf16.mxu1 %v7498_v18  ;;  %3740 = vmatprep.mubr.bf16.mxu0 %v7498_v18 }
 0x27f   : > { %v6712_v20 = vpop.f32.mrf.mxu1  ;;  %v6714_v1 = vpop.f32.mrf.mxu0 }
 0x280   : > { %7541 = vst [vmem:[#allocation44_spill] sm:$0xff] %v6714_v1 }
 0x281   : > { %v6716_v38 = vpop.f32.mrf.mxu1  ;;  %v6718_v9 = vpop.f32.mrf.mxu0 }
 0x282   : > { %7542 = vst [vmem:[#allocation45_spill] sm:$0xff] %v6716_v38  ;;  %7543 = vst [vmem:[#allocation46_spill] sm:$0xff] %v6718_v9 }
 0x283   : > { %v6720_v44 = vpop.f32.mrf.mxu1  ;;  %v6722_v7 = vpop.f32.mrf.mxu0 }
 0x284   : > { %7544 = vst [vmem:[#allocation47_spill] sm:$0xff] %v6720_v44  ;;  %7545 = vst [vmem:[#allocation48_spill] sm:$0xff] %v6722_v7 }
 0x285   : > { %v6724_v2 = vpop.f32.mrf.mxu1  ;;  %v6726_v27 = vpop.f32.mrf.mxu0  ;;  %3468 = vmatmul.mubr.bf16.gmra.mxu1 %v6422_v19  ;;  %3741 = vmatmul.mubr.bf16.gmra.mxu0 %v6422_v19 }
 0x286   : > { %7546 = vst [vmem:[#allocation49_spill] sm:$0xff] %v6724_v2  ;;  %7547 = vst [vmem:[#allocation50_spill] sm:$0xff] %v6726_v27  ;;  %3477 = vmatprep.mubr.bf16.mxu1 %v7498_v18  ;;  %3750 = vmatprep.mubr.bf16.mxu0 %v7498_v18 }
 0x287   : > { %v6732_v52 = vpop.f32.mrf.mxu1  ;;  %v6734_v38 = vpop.f32.mrf.mxu0 }
 0x288   : > { %7548 = vst [vmem:[#allocation51_spill] sm:$0xff] %v6734_v38 }
 0x289   : > { %v6736_v9 = vpop.f32.mrf.mxu1  ;;  %v6738_v44 = vpop.f32.mrf.mxu0 }
 0x28a   : > { %7549 = vst [vmem:[#allocation52_spill] sm:$0xff] %v6736_v9  ;;  %7550 = vst [vmem:[#allocation53_spill] sm:$0xff] %v6738_v44 }
 0x28b   : > { %v6740_v7 = vpop.f32.mrf.mxu1  ;;  %v6742_v2 = vpop.f32.mrf.mxu0 }
 0x28c   : > { %7551 = vst [vmem:[#allocation54_spill] sm:$0xff] %v6740_v7  ;;  %7552 = vst [vmem:[#allocation55_spill] sm:$0xff] %v6742_v2 }
 0x28d   : > { %v6744_v27 = vpop.f32.mrf.mxu1  ;;  %v6746_v1 = vpop.f32.mrf.mxu0  ;;  %3478 = vmatmul.mubr.bf16.gmra.mxu1 %v6429_v31  ;;  %3751 = vmatmul.mubr.bf16.gmra.mxu0 %v6429_v31 }
 0x28e   : > { %7553 = vst [vmem:[#allocation56_spill] sm:$0xff] %v6744_v27  ;;  %7554 = vst [vmem:[#allocation57_spill] sm:$0xff] %v6746_v1  ;;  %3487 = vmatprep.mubr.bf16.mxu1 %v7498_v18  ;;  %3760 = vmatprep.mubr.bf16.mxu0 %v7498_v18 }
 0x28f   : > { %v6752_v19 = vpop.f32.mrf.mxu1  ;;  %v6754_v9 = vpop.f32.mrf.mxu0 }
 0x290   : > { %7555 = vst [vmem:[#allocation58_spill] sm:$0xff] %v6754_v9 }
 0x291   : > { %v6756_v44 = vpop.f32.mrf.mxu1  ;;  %v6758_v7 = vpop.f32.mrf.mxu0 }
 0x292   : > { %7556 = vst [vmem:[#allocation59_spill] sm:$0xff] %v6756_v44  ;;  %7557 = vst [vmem:[#allocation60_spill] sm:$0xff] %v6758_v7 }
 0x293   : > { %v6760_v2 = vpop.f32.mrf.mxu1  ;;  %v6762_v27 = vpop.f32.mrf.mxu0 }
 0x294   : > { %7558 = vst [vmem:[#allocation61_spill] sm:$0xff] %v6760_v2  ;;  %7559 = vst [vmem:[#allocation62_spill] sm:$0xff] %v6762_v27 }
 0x295   : > { %v6764_v1 = vpop.f32.mrf.mxu1  ;;  %v6766_v38 = vpop.f32.mrf.mxu0  ;;  %3488 = vmatmul.mubr.bf16.gmra.mxu1 %v6436_v47  ;;  %3761 = vmatmul.mubr.bf16.gmra.mxu0 %v6436_v47 }
 0x296   : > { %7560 = vst [vmem:[#allocation63_spill] sm:$0xff] %v6764_v1  ;;  %7561 = vst [vmem:[#allocation64_spill] sm:$0xff] %v6766_v38  ;;  %3497 = vmatprep.mubr.bf16.mxu1 %v7498_v18  ;;  %3770 = vmatprep.mubr.bf16.mxu0 %v7498_v18 }
 0x297   : > { %v6772_v31 = vpop.f32.mrf.mxu1  ;;  %v6774_v44 = vpop.f32.mrf.mxu0 }
 0x298   : > { %7562 = vst [vmem:[#allocation65_spill] sm:$0xff] %v6772_v31  ;;  %7563 = vst [vmem:[#allocation66_spill] sm:$0xff] %v6774_v44 }
 0x299   : > { %v6776_v7 = vpop.f32.mrf.mxu1  ;;  %v6778_v2 = vpop.f32.mrf.mxu0 }
 0x29a   : > { %7564 = vst [vmem:[#allocation67_spill] sm:$0xff] %v6776_v7  ;;  %7565 = vst [vmem:[#allocation68_spill] sm:$0xff] %v6778_v2 }
 0x29b   : > { %v6780_v27 = vpop.f32.mrf.mxu1  ;;  %v6782_v1 = vpop.f32.mrf.mxu0 }
 0x29c   : > { %7566 = vst [vmem:[#allocation69_spill] sm:$0xff] %v6780_v27  ;;  %7567 = vst [vmem:[#allocation70_spill] sm:$0xff] %v6782_v1 }
 0x29d   : > { %v6784_v38 = vpop.f32.mrf.mxu1  ;;  %v6786_v9 = vpop.f32.mrf.mxu0  ;;  %3498 = vmatmul.mubr.bf16.gmra.mxu1 %v6443_v63  ;;  %3771 = vmatmul.mubr.bf16.gmra.mxu0 %v6443_v63 }
 0x29e   : > { %7568 = vst [vmem:[#allocation71_spill] sm:$0xff] %v6784_v38  ;;  %7569 = vst [vmem:[#allocation72_spill] sm:$0xff] %v6786_v9  ;;  %3507 = vmatprep.mubr.bf16.mxu1 %v7498_v18  ;;  %3780 = vmatprep.mubr.bf16.mxu0 %v7498_v18 }
 0x29f   : > { %v6792_v47 = vpop.f32.mrf.mxu1  ;;  %v6794_v7 = vpop.f32.mrf.mxu0 }
 0x2a0   : > { %7570 = vst [vmem:[#allocation73_spill] sm:$0xff] %v6792_v47  ;;  %7571 = vst [vmem:[#allocation74_spill] sm:$0xff] %v6794_v7 }
 0x2a1   : > { %v6796_v2 = vpop.f32.mrf.mxu1  ;;  %v6798_v27 = vpop.f32.mrf.mxu0 }
 0x2a2   : > { %7572 = vst [vmem:[#allocation75_spill] sm:$0xff] %v6796_v2  ;;  %7573 = vst [vmem:[#allocation76_spill] sm:$0xff] %v6798_v27 }
 0x2a3   : > { %v6800_v1 = vpop.f32.mrf.mxu1  ;;  %v6802_v38 = vpop.f32.mrf.mxu0 }
 0x2a4   : > { %7574 = vst [vmem:[#allocation77_spill] sm:$0xff] %v6800_v1  ;;  %7575 = vst [vmem:[#allocation78_spill] sm:$0xff] %v6802_v38 }
 0x2a5   : > { %v6804_v9 = vpop.f32.mrf.mxu1  ;;  %v6806_v44 = vpop.f32.mrf.mxu0  ;;  %3508 = vmatmul.mubr.bf16.gmra.mxu1 %v6450_v17  ;;  %3781 = vmatmul.mubr.bf16.gmra.mxu0 %v6450_v17 }
 0x2a6   : > { %7576 = vst [vmem:[#allocation79_spill] sm:$0xff] %v6804_v9  ;;  %7577 = vst [vmem:[#allocation80_spill] sm:$0xff] %v6806_v44  ;;  %3517 = vmatprep.mubr.bf16.mxu1 %v7498_v18  ;;  %3790 = vmatprep.mubr.bf16.mxu0 %v7498_v18 }
 0x2a7   : > { %v6812_v63 = vpop.f32.mrf.mxu1  ;;  %v6814_v2 = vpop.f32.mrf.mxu0 }
 0x2a8   : > { %7578 = vst [vmem:[#allocation81_spill] sm:$0xff] %v6812_v63  ;;  %7579 = vst [vmem:[#allocation82_spill] sm:$0xff] %v6814_v2 }
 0x2a9   : > { %v6816_v27 = vpop.f32.mrf.mxu1  ;;  %v6818_v1 = vpop.f32.mrf.mxu0 }
 0x2aa   : > { %7580 = vst [vmem:[#allocation83_spill] sm:$0xff] %v6816_v27  ;;  %7581 = vst [vmem:[#allocation84_spill] sm:$0xff] %v6818_v1 }
 0x2ab   : > { %v6820_v38 = vpop.f32.mrf.mxu1  ;;  %v6822_v9 = vpop.f32.mrf.mxu0 }
 0x2ac   : > { %7582 = vst [vmem:[#allocation85_spill] sm:$0xff] %v6820_v38  ;;  %7583 = vst [vmem:[#allocation86_spill] sm:$0xff] %v6822_v9 }
 0x2ad   : > { %v6824_v44 = vpop.f32.mrf.mxu1  ;;  %v6826_v7 = vpop.f32.mrf.mxu0  ;;  %3518 = vmatmul.mubr.bf16.gmra.mxu1 %v6457_v37  ;;  %3791 = vmatmul.mubr.bf16.gmra.mxu0 %v6457_v37 }
 0x2ae   : > { %7584 = vst [vmem:[#allocation87_spill] sm:$0xff] %v6824_v44  ;;  %7585 = vst [vmem:[#allocation88_spill] sm:$0xff] %v6826_v7  ;;  %3527 = vmatprep.mubr.bf16.mxu1 %v7498_v18  ;;  %3800 = vmatprep.mubr.bf16.mxu0 %v7498_v18 }
 0x2af   : > { %v6832_v17 = vpop.f32.mrf.mxu1  ;;  %v6834_v27 = vpop.f32.mrf.mxu0 }
 0x2b0   : > { %7586 = vst [vmem:[#allocation89_spill] sm:$0xff] %v6832_v17  ;;  %7587 = vst [vmem:[#allocation90_spill] sm:$0xff] %v6834_v27 }
 0x2b1   : > { %v6836_v1 = vpop.f32.mrf.mxu1  ;;  %v6838_v38 = vpop.f32.mrf.mxu0 }
 0x2b2   : > { %7588 = vst [vmem:[#allocation91_spill] sm:$0xff] %v6836_v1  ;;  %7589 = vst [vmem:[#allocation92_spill] sm:$0xff] %v6838_v38 }
 0x2b3   : > { %v6840_v9 = vpop.f32.mrf.mxu1  ;;  %v6842_v44 = vpop.f32.mrf.mxu0 }
 0x2b4   : > { %7590 = vst [vmem:[#allocation93_spill] sm:$0xff] %v6840_v9  ;;  %7591 = vst [vmem:[#allocation94_spill] sm:$0xff] %v6842_v44 }
 0x2b5   : > { %v6844_v7 = vpop.f32.mrf.mxu1  ;;  %v6846_v2 = vpop.f32.mrf.mxu0  ;;  %3528 = vmatmul.mubr.bf16.gmra.mxu1 %v6464_v57  ;;  %3801 = vmatmul.mubr.bf16.gmra.mxu0 %v6464_v57 }
 0x2b6   : > { %7592 = vst [vmem:[#allocation95_spill] sm:$0xff] %v6844_v7  ;;  %7593 = vst [vmem:[#allocation96_spill] sm:$0xff] %v6846_v2  ;;  %3537 = vmatprep.mubr.bf16.mxu1 %v7498_v18  ;;  %3810 = vmatprep.mubr.bf16.mxu0 %v7498_v18 }
 0x2b7   : > { %v6852_v37 = vpop.f32.mrf.mxu1  ;;  %v6854_v1 = vpop.f32.mrf.mxu0 }
 0x2b8   : > { %7594 = vst [vmem:[#allocation97_spill] sm:$0xff] %v6852_v37  ;;  %7595 = vst [vmem:[#allocation98_spill] sm:$0xff] %v6854_v1 }
 0x2b9   : > { %v6856_v38 = vpop.f32.mrf.mxu1  ;;  %v6858_v9 = vpop.f32.mrf.mxu0 }
 0x2ba   : > { %7596 = vst [vmem:[#allocation99_spill] sm:$0xff] %v6856_v38  ;;  %7597 = vst [vmem:[#allocation100_spill] sm:$0xff] %v6858_v9 }
 0x2bb   : > { %v6860_v44 = vpop.f32.mrf.mxu1  ;;  %v6862_v7 = vpop.f32.mrf.mxu0 }
 0x2bc   : > { %7598 = vst [vmem:[#allocation101_spill] sm:$0xff] %v6860_v44  ;;  %7599 = vst [vmem:[#allocation102_spill] sm:$0xff] %v6862_v7 }
 0x2bd   : > { %v6864_v2 = vpop.f32.mrf.mxu1  ;;  %v6866_v27 = vpop.f32.mrf.mxu0  ;;  %3538 = vmatmul.mubr.bf16.gmra.mxu1 %v6471_v12  ;;  %3811 = vmatmul.mubr.bf16.gmra.mxu0 %v6471_v12 }
 0x2be   : > { %7600 = vst [vmem:[#allocation103_spill] sm:$0xff] %v6864_v2  ;;  %7601 = vst [vmem:[#allocation104_spill] sm:$0xff] %v6866_v27  ;;  %3547 = vmatprep.mubr.bf16.mxu1 %v7498_v18  ;;  %3820 = vmatprep.mubr.bf16.mxu0 %v7498_v18 }
 0x2bf   : > { %v6872_v57 = vpop.f32.mrf.mxu1  ;;  %v6874_v38 = vpop.f32.mrf.mxu0 }
 0x2c0   : > { %7602 = vst [vmem:[#allocation105_spill] sm:$0xff] %v6872_v57  ;;  %7603 = vst [vmem:[#allocation106_spill] sm:$0xff] %v6874_v38 }
 0x2c1   : > { %v6876_v9 = vpop.f32.mrf.mxu1  ;;  %v6878_v44 = vpop.f32.mrf.mxu0 }
 0x2c2   : > { %7604 = vst [vmem:[#allocation107_spill] sm:$0xff] %v6876_v9  ;;  %7605 = vst [vmem:[#allocation108_spill] sm:$0xff] %v6878_v44 }
 0x2c3   : > { %v6880_v7 = vpop.f32.mrf.mxu1  ;;  %v6882_v2 = vpop.f32.mrf.mxu0 }
 0x2c4   : > { %7606 = vst [vmem:[#allocation109_spill] sm:$0xff] %v6880_v7  ;;  %7607 = vst [vmem:[#allocation110_spill] sm:$0xff] %v6882_v2 }
 0x2c5   : > { %v6884_v27 = vpop.f32.mrf.mxu1  ;;  %v6886_v1 = vpop.f32.mrf.mxu0  ;;  %3548 = vmatmul.mubr.bf16.gmra.mxu1 %v6478_v34  ;;  %3821 = vmatmul.mubr.bf16.gmra.mxu0 %v6478_v34 }
 0x2c6   : > { %7608 = vst [vmem:[#allocation111_spill] sm:$0xff] %v6884_v27  ;;  %7609 = vst [vmem:[#allocation112_spill] sm:$0xff] %v6886_v1  ;;  %3557 = vmatprep.mubr.bf16.mxu1 %v7498_v18  ;;  %3830 = vmatprep.mubr.bf16.mxu0 %v7498_v18 }
 0x2c7   : > { %v6892_v12 = vpop.f32.mrf.mxu1  ;;  %v6894_v9 = vpop.f32.mrf.mxu0 }
 0x2c8   : > { %7610 = vst [vmem:[#allocation113_spill] sm:$0xff] %v6892_v12  ;;  %7611 = vst [vmem:[#allocation114_spill] sm:$0xff] %v6894_v9 }
 0x2c9   : > { %v6896_v44 = vpop.f32.mrf.mxu1  ;;  %v6898_v7 = vpop.f32.mrf.mxu0 }
 0x2ca   : > { %7612 = vst [vmem:[#allocation115_spill] sm:$0xff] %v6896_v44  ;;  %7613 = vst [vmem:[#allocation116_spill] sm:$0xff] %v6898_v7 }
 0x2cb   : > { %v6900_v2 = vpop.f32.mrf.mxu1  ;;  %v6902_v27 = vpop.f32.mrf.mxu0 }
 0x2cc   : > { %7614 = vst [vmem:[#allocation117_spill] sm:$0xff] %v6900_v2  ;;  %7615 = vst [vmem:[#allocation118_spill] sm:$0xff] %v6902_v27 }
 0x2cd   : > { %v6904_v1 = vpop.f32.mrf.mxu1  ;;  %v6906_v38 = vpop.f32.mrf.mxu0  ;;  %3558 = vmatmul.mubr.bf16.gmra.mxu1 %v6485_v60  ;;  %3831 = vmatmul.mubr.bf16.gmra.mxu0 %v6485_v60 }
 0x2ce   : > { %7616 = vst [vmem:[#allocation119_spill] sm:$0xff] %v6904_v1  ;;  %7617 = vst [vmem:[#allocation120_spill] sm:$0xff] %v6906_v38  ;;  %3567 = vmatprep.mubr.bf16.mxu1 %v7498_v18  ;;  %3840 = vmatprep.mubr.bf16.mxu0 %v7498_v18 }
 0x2cf   : > { %v6912_v34 = vpop.f32.mrf.mxu1  ;;  %v6914_v44 = vpop.f32.mrf.mxu0 }
 0x2d0   : > { %7618 = vst [vmem:[#allocation121_spill] sm:$0xff] %v6912_v34  ;;  %7619 = vst [vmem:[#allocation122_spill] sm:$0xff] %v6914_v44 }
 0x2d1   : > { %v6916_v7 = vpop.f32.mrf.mxu1  ;;  %v6918_v2 = vpop.f32.mrf.mxu0 }
 0x2d2   : > { %7620 = vst [vmem:[#allocation123_spill] sm:$0xff] %v6916_v7  ;;  %7621 = vst [vmem:[#allocation124_spill] sm:$0xff] %v6918_v2 }
 0x2d3   : > { %v6920_v27 = vpop.f32.mrf.mxu1  ;;  %v6922_v1 = vpop.f32.mrf.mxu0 }
 0x2d4   : > { %7622 = vst [vmem:[#allocation125_spill] sm:$0xff] %v6920_v27  ;;  %7623 = vst [vmem:[#allocation126_spill] sm:$0xff] %v6922_v1 }
 0x2d5   : > { %v6924_v38 = vpop.f32.mrf.mxu1  ;;  %v6926_v9 = vpop.f32.mrf.mxu0  ;;  %3568 = vmatmul.mubr.bf16.gmra.mxu1 %v6492_v25  ;;  %3841 = vmatmul.mubr.bf16.gmra.mxu0 %v6492_v25 }
 0x2d6   : > { %7624 = vst [vmem:[#allocation127_spill] sm:$0xff] %v6924_v38  ;;  %7625 = vst [vmem:[#allocation128_spill] sm:$0xff] %v6926_v9  ;;  %3577 = vmatprep.mubr.bf16.mxu1 %v7498_v18  ;;  %3850 = vmatprep.mubr.bf16.mxu0 %v7498_v18 }
 0x2d7   : > { %v6932_v60 = vpop.f32.mrf.mxu1  ;;  %v6934_v7 = vpop.f32.mrf.mxu0 }
 0x2d8   : > { %7626 = vst [vmem:[#allocation129_spill] sm:$0xff] %v6932_v60  ;;  %7627 = vst [vmem:[#allocation130_spill] sm:$0xff] %v6934_v7 }
 0x2d9   : > { %v6936_v2 = vpop.f32.mrf.mxu1  ;;  %v6938_v27 = vpop.f32.mrf.mxu0 }
 0x2da   : > { %7628 = vst [vmem:[#allocation131_spill] sm:$0xff] %v6936_v2  ;;  %7629 = vst [vmem:[#allocation132_spill] sm:$0xff] %v6938_v27  ;;  %v3873_v27 = vlaneseq }
 0x2db   : > { %v6940_v1 = vpop.f32.mrf.mxu1  ;;  %v6942_v38 = vpop.f32.mrf.mxu0 }
 0x2dc   : > { %7630 = vst [vmem:[#allocation133_spill] sm:$0xff] %v6940_v1  ;;  %7631 = vst [vmem:[#allocation134_spill] sm:$0xff] %v6942_v38  ;;  %v3874_v7 = vshrl.u32 %v3873_v27, 7  ;;  %v3871_v27 = vld [vmem:[%s7493_s5] sm:$0xf] }
 0x2dd   : > { %v6944_v9 = vpop.f32.mrf.mxu1  ;;  %v6946_v44 = vpop.f32.mrf.mxu0  ;;  %3578 = vmatmul.mubr.bf16.gmra.mxu1 %v6499_v58  ;;  %3851 = vmatmul.mubr.bf16.gmra.mxu0 %v6499_v58 }
 0x2de   : > { %7632 = vst [vmem:[#allocation135_spill] sm:$0xff] %v6944_v9  ;;  %7633 = vst [vmem:[#allocation136_spill] sm:$0xff] %v6946_v44  ;;  %3587 = vmatprep.mubr.bf16.mxu1 %v7498_v18  ;;  %3860 = vmatprep.mubr.bf16.mxu0 %v7498_v18 }
 0x2df   : > { %v6952_v25 = vpop.f32.mrf.mxu1  ;;  %v6954_v2 = vpop.f32.mrf.mxu0 }
 0x2e0   : > { %7634 = vst [vmem:[#allocation137_spill] sm:$0xff] %v6952_v25  ;;  %7635 = vst [vmem:[#allocation138_spill] sm:$0xff] %v6954_v2  ;;  %v3883_v25 = vsub.s32 2, %v3874_v7 }
 0x2e1   : > { %v6956_v1 = vpop.f32.mrf.mxu1  ;;  %v6958_v38 = vpop.f32.mrf.mxu0 }
 0x2e2   : > { %7636 = vst [vmem:[#allocation139_spill] sm:$0xff] %v6956_v1  ;;  %7637 = vst [vmem:[#allocation140_spill] sm:$0xff] %v6958_v38  ;;  %v3875_v1 = vsub.s32 0, %v3874_v7 }
 0x2e3   : > { %v6960_v9 = vpop.f32.mrf.mxu1  ;;  %v6962_v44 = vpop.f32.mrf.mxu0 }
 0x2e4   : > { %7638 = vst [vmem:[#allocation141_spill] sm:$0xff] %v6960_v9  ;;  %7639 = vst [vmem:[#allocation142_spill] sm:$0xff] %v6962_v44 }
 0x2e5   : > { %v6964_v60 = vpop.f32.mrf.mxu1  ;;  %v6966_v58 = vpop.f32.mrf.mxu0  ;;  %3588 = vmatmul.mubr.bf16.gmra.mxu1 %v6514_v13  ;;  %3861 = vmatmul.mubr.bf16.gmra.mxu0 %v6514_v13  ;;  %v6985_v13 = vrot.slane %v3871_v27, %v3875_v1 }
 0x2e6   : > { %7640 = vst [vmem:[#allocation143_spill] sm:$0xff] %v6964_v60  ;;  %7641 = vst [vmem:[#allocation144_spill] sm:$0xff] %v6966_v58  ;;  %v3879_v60 = vsub.s32 1, %v3874_v7  ;;  %v3887_v58 = vsub.s32 3, %v3874_v7 }
 0x2e7   : > { %v6970_v18 = vpop.f32.mrf.mxu1  ;;  %v6972_v2 = vpop.f32.mrf.mxu0 }
 0x2e8   : > { %7642 = vst [vmem:[#allocation145_spill] sm:$0xff] %v6970_v18  ;;  %7643 = vst [vmem:[#allocation146_spill] sm:$0xff] %v6972_v2  ;;  %v6987_v2 = vrot.slane %v3871_v27, %v3883_v25  ;;  %v6991_v57 = vrot.slane %v3871_v27, %v3879_v60  ;;  %v6993_v37 = vrot.slane %v3871_v27, %v3887_v58 }
 0x2e9   : > { %v6974_v38 = vpop.f32.mrf.mxu1  ;;  %v6976_v9 = vpop.f32.mrf.mxu0 }
 0x2ea   : > { %7644 = vst [vmem:[#allocation147_spill] sm:$0xff] %v6974_v38  ;;  %7645 = vst [vmem:[#allocation148_spill] sm:$0xff] %v6976_v9 }
 0x2eb   : > { %v6981_v44 = vpop.f32.mrf.mxu1  ;;  %v6983_v34 = vpop.f32.mrf.mxu0 }
 0x2ec   : > { %7646 = vst [vmem:[#allocation149_spill] sm:$0xff] %v6981_v44  ;;  %7647 = vst [vmem:[#allocation150_spill] sm:$0xff] %v6983_v34 }
 0x2ed   : > { %v3359_v18 = vpop.f32.mrf.mxu1  ;;  %v3632_v12 = vpop.f32.mrf.mxu0 }
 0x2ee   : > { %v3360_v38 = vadd.f32 %v3359_v18, %v6502_v5  ;;  %v3633_v9 = vadd.f32 %v3632_v12, %v6504_v6 }
 0x2ef   : > { %v3361_v7 = vpop.f32.mrf.mxu1  ;;  %v3634_v17 = vpop.f32.mrf.mxu0 }
 0x2f0   : > { %v3893_v44 = vadd.f32 %v6985_v13, %v3360_v38  ;;  %v3895_v1 = vadd.f32 %v6987_v2, %v3633_v9  ;;  %v3362_v34 = vadd.f32 %v3361_v7, %v6510_v45  ;;  %v3635_v25 = vadd.f32 %v3634_v17, %v6512_v29 }
 0x2f1   : > { %v3363_v63 = vpop.f32.mrf.mxu1  ;;  %v3636_v47 = vpop.f32.mrf.mxu0 }
 0x2f2   : > { %v3894_v5 = vadd.f32 %v6991_v57, %v3362_v34  ;;  %v3896_v6 = vadd.f32 %v6993_v37, %v3635_v25  ;;  %v4085_v12 = vmax.f32 %v3893_v44, 0.0  ;;  %v4087_v60 = vmax.f32 %v3895_v1, 0.0 }
 0x2f3   : > { %v3364_v58 = vadd.f32 %v3363_v63, %v6516_v40  ;;  %v3637_v18 = vadd.f32 %v3636_v47, %v6518_v54  ;;  %v3365_v38 = vpop.f32.mrf.mxu1  ;;  %v3638_v27 = vpop.f32.mrf.mxu0 }
 0x2f4   : > { %v4086_v9 = vmax.f32 %v3894_v5, 0.0  ;;  %v4088_v31 = vmax.f32 %v3896_v6, 0.0  ;;  %v3366_v45 = vadd.f32 %v3365_v38, %v6520_v51  ;;  %v3639_v29 = vadd.f32 %v3638_v27, %v6522_v22 }
 0x2f5   : > { %v3897_v44 = vadd.f32 %v6985_v13, %v3364_v58  ;;  %v3899_v40 = vadd.f32 %v6987_v2, %v3637_v18  ;;  %v3369_v54 = vpop.f32.mrf.mxu1  ;;  %v3642_v47 = vpop.f32.mrf.mxu0 }
 0x2f6   : > { %v5283_v63 = vpack.c.bf16 %v4086_v9, %v4085_v12  ;;  %v5284_v17 = vpack.c.bf16 %v4088_v31, %v4087_v60  ;;  %v3898_v34 = vadd.f32 %v6991_v57, %v3366_v45  ;;  %v3900_v51 = vadd.f32 %v6993_v37, %v3639_v29 }
 0x2f7   : > { %v4089_v22 = vmax.f32 %v3897_v44, 0.0  ;;  %v4091_v7 = vmax.f32 %v3899_v40, 0.0  ;;  %v3370_v1 = vadd.f32 %v3369_v54, %v6524_v15  ;;  %v3643_v25 = vadd.f32 %v3642_v47, %v6526_v10  ;;  %v3371_v5 = vpop.f32.mrf.mxu1  ;;  %v3644_v6 = vpop.f32.mrf.mxu0 }
 0x2f8   : > { %4853 = vst [vmem:[%s7009_s28] sm:$0xff] %v5283_v63  ;;  %4854 = vst [vmem:[%s7009_s28 + $0x8] sm:$0xff] %v5284_v17  ;;  %v4090_v58 = vmax.f32 %v3898_v34, 0.0  ;;  %v4092_v18 = vmax.f32 %v3900_v51, 0.0  ;;  %v3372_v38 = vadd.f32 %v3371_v5, %v6532_v49  ;;  %v3645_v31 = vadd.f32 %v3644_v6, %v6534_v62 }
 0x2f9   : > { %v3901_v12 = vadd.f32 %v6985_v13, %v3370_v1  ;;  %v3903_v60 = vadd.f32 %v6987_v2, %v3643_v25  ;;  %v3373_v27 = vpop.f32.mrf.mxu1  ;;  %v3646_v15 = vpop.f32.mrf.mxu0 }
 0x2fa   : > { %v5285_v9 = vpack.c.bf16 %v4090_v58, %v4089_v22  ;;  %v5286_v10 = vpack.c.bf16 %v4092_v18, %v4091_v7  ;;  %v3902_v45 = vadd.f32 %v6991_v57, %v3372_v38  ;;  %v3904_v29 = vadd.f32 %v6993_v37, %v3645_v31 }
 0x2fb   : > { %v4093_v44 = vmax.f32 %v3901_v12, 0.0  ;;  %v4095_v40 = vmax.f32 %v3903_v60, 0.0  ;;  %v3374_v49 = vadd.f32 %v3373_v27, %v6536_v46  ;;  %v3647_v54 = vadd.f32 %v3646_v15, %v6538_v35  ;;  %v3375_v62 = vpop.f32.mrf.mxu1  ;;  %v3648_v47 = vpop.f32.mrf.mxu0 }
 0x2fc   : > { %4855 = vst [vmem:[%s7009_s28 + $0x10] sm:$0xff] %v5285_v9  ;;  %4856 = vst [vmem:[%s7009_s28 + $0x18] sm:$0xff] %v5286_v10  ;;  %v4094_v63 = vmax.f32 %v3902_v45, 0.0  ;;  %v4096_v17 = vmax.f32 %v3904_v29, 0.0  ;;  %v3376_v34 = vadd.f32 %v3375_v62, %v6540_v48  ;;  %v3649_v51 = vadd.f32 %v3648_v47, %v6542_v42 }
 0x2fd   : > { %v3905_v22 = vadd.f32 %v6985_v13, %v3374_v49  ;;  %v3907_v7 = vadd.f32 %v6987_v2, %v3647_v54  ;;  %v3379_v1 = vpop.f32.mrf.mxu1  ;;  %v3652_v46 = vpop.f32.mrf.mxu0 }
 0x2fe   : > { %v5287_v25 = vpack.c.bf16 %v4094_v63, %v4093_v44  ;;  %v5288_v35 = vpack.c.bf16 %v4096_v17, %v4095_v40  ;;  %v3906_v5 = vadd.f32 %v6991_v57, %v3376_v34  ;;  %v3908_v6 = vadd.f32 %v6993_v37, %v3649_v51 }
 0x2ff   : > { %v4097_v58 = vmax.f32 %v3905_v22, 0.0  ;;  %v4099_v18 = vmax.f32 %v3907_v7, 0.0  ;;  %v3380_v48 = vadd.f32 %v3379_v1, %v6544_v21  ;;  %v3653_v38 = vadd.f32 %v3652_v46, %v6546_v26  ;;  %v3381_v42 = vpop.f32.mrf.mxu1  ;;  %v3654_v31 = vpop.f32.mrf.mxu0 }
 0x300   : > { %4857 = vst [vmem:[%s7009_s28 + $0x20] sm:$0xff] %v5287_v25  ;;  %4858 = vst [vmem:[%s7009_s28 + $0x28] sm:$0xff] %v5288_v35  ;;  %v4098_v12 = vmax.f32 %v3906_v5, 0.0  ;;  %v4100_v60 = vmax.f32 %v3908_v6, 0.0  ;;  %v3382_v27 = vadd.f32 %v3381_v42, %v6552_v39  ;;  %v3655_v15 = vadd.f32 %v3654_v31, %v6554_v41 }
 0x301   : > { %v3909_v9 = vadd.f32 %v6985_v13, %v3380_v48  ;;  %v3911_v10 = vadd.f32 %v6987_v2, %v3653_v38  ;;  %v3383_v45 = vpop.f32.mrf.mxu1  ;;  %v3656_v21 = vpop.f32.mrf.mxu0 }
 0x302   : > { %v5289_v29 = vpack.c.bf16 %v4098_v12, %v4097_v58  ;;  %v5290_v26 = vpack.c.bf16 %v4100_v60, %v4099_v18  ;;  %v3910_v44 = vadd.f32 %v6991_v57, %v3382_v27  ;;  %v3912_v40 = vadd.f32 %v6993_v37, %v3655_v15 }
 0x303   : > { %v4101_v49 = vmax.f32 %v3909_v9, 0.0  ;;  %v4103_v54 = vmax.f32 %v3911_v10, 0.0  ;;  %v3384_v39 = vadd.f32 %v3383_v45, %v6556_v0  ;;  %v3657_v62 = vadd.f32 %v3656_v21, %v6558_v23  ;;  %v3385_v41 = vpop.f32.mrf.mxu1  ;;  %v3658_v47 = vpop.f32.mrf.mxu0 }
 0x304   : > { %4859 = vst [vmem:[%s7009_s28 + $0x30] sm:$0xff] %v5289_v29  ;;  %4860 = vst [vmem:[%s7009_s28 + $0x38] sm:$0xff] %v5290_v26  ;;  %v4102_v63 = vmax.f32 %v3910_v44, 0.0  ;;  %v4104_v17 = vmax.f32 %v3912_v40, 0.0  ;;  %v3386_v34 = vadd.f32 %v3385_v41, %v6560_v43  ;;  %v3659_v51 = vadd.f32 %v3658_v47, %v6562_v24 }
 0x305   : > { %v3913_v22 = vadd.f32 %v6985_v13, %v3384_v39  ;;  %v3915_v7 = vadd.f32 %v6987_v2, %v3657_v62  ;;  %v3389_v1 = vpop.f32.mrf.mxu1  ;;  %v3662_v0 = vpop.f32.mrf.mxu0 }
 0x306   : > { %v5291_v46 = vpack.c.bf16 %v4102_v63, %v4101_v49  ;;  %v5292_v23 = vpack.c.bf16 %v4104_v17, %v4103_v54  ;;  %v3914_v25 = vadd.f32 %v6991_v57, %v3386_v34  ;;  %v3916_v35 = vadd.f32 %v6993_v37, %v3659_v51 }
 0x307   : > { %v4105_v5 = vmax.f32 %v3913_v22, 0.0  ;;  %v4107_v6 = vmax.f32 %v3915_v7, 0.0  ;;  %v3390_v43 = vadd.f32 %v3389_v1, %v6564_v53  ;;  %v3663_v58 = vadd.f32 %v3662_v0, %v6566_v30  ;;  %v3391_v24 = vpop.f32.mrf.mxu1  ;;  %v3664_v18 = vpop.f32.mrf.mxu0 }
 0x308   : > { %4861 = vst [vmem:[%s7009_s28 + $0x40] sm:$0xff] %v5291_v46  ;;  %4862 = vst [vmem:[%s7009_s28 + $0x48] sm:$0xff] %v5292_v23  ;;  %v4106_v48 = vmax.f32 %v3914_v25, 0.0  ;;  %v4108_v38 = vmax.f32 %v3916_v35, 0.0  ;;  %v3392_v42 = vadd.f32 %v3391_v24, %v6572_v14  ;;  %v3665_v31 = vadd.f32 %v3664_v18, %v6574_v3 }
 0x309   : > { %v3917_v12 = vadd.f32 %v6985_v13, %v3390_v43  ;;  %v3919_v60 = vadd.f32 %v6987_v2, %v3663_v58  ;;  %v3393_v27 = vpop.f32.mrf.mxu1  ;;  %v3666_v53 = vpop.f32.mrf.mxu0 }
 0x30a   : > { %v5293_v15 = vpack.c.bf16 %v4106_v48, %v4105_v5  ;;  %v5294_v30 = vpack.c.bf16 %v4108_v38, %v4107_v6  ;;  %v3918_v9 = vadd.f32 %v6991_v57, %v3392_v42  ;;  %v3920_v10 = vadd.f32 %v6993_v37, %v3665_v31  ;;  %v7648_v48 = vld [vmem:[#allocation3_spill] sm:$0xff]  ;;  %v7649_v38 = vld [vmem:[#allocation4_spill] sm:$0xff] }
 0x30b   : > { %v4109_v45 = vmax.f32 %v3917_v12, 0.0  ;;  %v4111_v21 = vmax.f32 %v3919_v60, 0.0  ;;  %v3394_v14 = vadd.f32 %v3393_v27, %v6576_v50  ;;  %v3667_v29 = vadd.f32 %v3666_v53, %v6578_v56  ;;  %v3395_v3 = vpop.f32.mrf.mxu1  ;;  %v3668_v26 = vpop.f32.mrf.mxu0  ;;  %v7650_v27 = vld [vmem:[#allocation5_spill] sm:$0xff] }
 0x30c   : > { %4863 = vst [vmem:[%s7009_s28 + $0x50] sm:$0xff] %v5293_v15  ;;  %4864 = vst [vmem:[%s7009_s28 + $0x58] sm:$0xff] %v5294_v30  ;;  %v4110_v44 = vmax.f32 %v3918_v9, 0.0  ;;  %v4112_v40 = vmax.f32 %v3920_v10, 0.0  ;;  %v3396_v49 = vadd.f32 %v3395_v3, %v6580_v61  ;;  %v3669_v54 = vadd.f32 %v3668_v26, %v6582_v4  ;;  %v7651_v15 = vld [vmem:[#allocation6_spill] sm:$0xff] }
 0x30d   : > { %v3921_v39 = vadd.f32 %v6985_v13, %v3394_v14  ;;  %v3923_v62 = vadd.f32 %v6987_v2, %v3667_v29  ;;  %v3399_v41 = vpop.f32.mrf.mxu1  ;;  %v3672_v50 = vpop.f32.mrf.mxu0 }
 0x30e   : > { %v5295_v47 = vpack.c.bf16 %v4110_v44, %v4109_v45  ;;  %v5296_v56 = vpack.c.bf16 %v4112_v40, %v4111_v21  ;;  %v3922_v63 = vadd.f32 %v6991_v57, %v3396_v49  ;;  %v3924_v17 = vadd.f32 %v6993_v37, %v3669_v54  ;;  %v7652_v49 = vld [vmem:[#allocation7_spill] sm:$0xff] }
 0x30f   : > { %v4113_v34 = vmax.f32 %v3921_v39, 0.0  ;;  %v4115_v51 = vmax.f32 %v3923_v62, 0.0  ;;  %v3400_v61 = vadd.f32 %v3399_v41, %v6584_v28  ;;  %v3673_v22 = vadd.f32 %v3672_v50, %v6586_v8  ;;  %v3401_v4 = vpop.f32.mrf.mxu1  ;;  %v3674_v7 = vpop.f32.mrf.mxu0  ;;  %v7653_v39 = vld [vmem:[#allocation8_spill] sm:$0xff] }
 0x310   : > { %4865 = vst [vmem:[%s7009_s28 + $0x60] sm:$0xff] %v5295_v47  ;;  %4866 = vst [vmem:[%s7009_s28 + $0x68] sm:$0xff] %v5296_v56  ;;  %v4114_v1 = vmax.f32 %v3922_v63, 0.0  ;;  %v4116_v0 = vmax.f32 %v3924_v17, 0.0  ;;  %v3402_v46 = vadd.f32 %v3401_v4, %v6592_v16  ;;  %v3675_v23 = vadd.f32 %v3674_v7, %v6594_v55  ;;  %v7654_v17 = vld [vmem:[#allocation9_spill] sm:$0xff] }
 0x311   : > { %v3925_v25 = vadd.f32 %v6985_v13, %v3400_v61  ;;  %v3927_v35 = vadd.f32 %v6987_v2, %v3673_v22  ;;  %v3403_v5 = vpop.f32.mrf.mxu1  ;;  %v3676_v28 = vpop.f32.mrf.mxu0 }
 0x312   : > { %v5297_v6 = vpack.c.bf16 %v4114_v1, %v4113_v34  ;;  %v5298_v8 = vpack.c.bf16 %v4116_v0, %v4115_v51  ;;  %v3926_v43 = vadd.f32 %v6991_v57, %v3402_v46  ;;  %v3928_v58 = vadd.f32 %v6993_v37, %v3675_v23 }
 0x313   : > { %v4117_v24 = vmax.f32 %v3925_v25, 0.0  ;;  %v4119_v18 = vmax.f32 %v3927_v35, 0.0  ;;  %v3404_v16 = vadd.f32 %v3403_v5, %v7648_v48  ;;  %v3677_v42 = vadd.f32 %v3676_v28, %v7649_v38  ;;  %v3405_v55 = vpop.f32.mrf.mxu1  ;;  %v3678_v31 = vpop.f32.mrf.mxu0  ;;  %v7655_v35 = vld [vmem:[#allocation10_spill] sm:$0xff]  ;;  %v7656_v5 = vld [vmem:[#allocation11_spill] sm:$0xff]  ;;  %v7658_v48 = vld [vmem:[#allocation13_spill] sm:$0xff] }
 0x314   : > { %4867 = vst [vmem:[%s7009_s28 + $0x70] sm:$0xff] %v5297_v6  ;;  %4868 = vst [vmem:[%s7009_s28 + $0x78] sm:$0xff] %v5298_v8  ;;  %v4118_v12 = vmax.f32 %v3926_v43, 0.0  ;;  %v4120_v60 = vmax.f32 %v3928_v58, 0.0  ;;  %v3406_v53 = vadd.f32 %v3405_v55, %v7650_v27  ;;  %v3679_v30 = vadd.f32 %v3678_v31, %v7651_v15 }
 0x315   : > { %v3929_v9 = vadd.f32 %v6985_v13, %v3404_v16  ;;  %v3931_v10 = vadd.f32 %v6987_v2, %v3677_v42  ;;  %v3409_v45 = vpop.f32.mrf.mxu1  ;;  %v3682_v21 = vpop.f32.mrf.mxu0 }
 0x316   : > { %v5299_v14 = vpack.c.bf16 %v4118_v12, %v4117_v24  ;;  %v5300_v29 = vpack.c.bf16 %v4120_v60, %v4119_v18  ;;  %v3930_v3 = vadd.f32 %v6991_v57, %v3406_v53  ;;  %v3932_v26 = vadd.f32 %v6993_v37, %v3679_v30  ;;  %v7657_v24 = vld [vmem:[#allocation12_spill] sm:$0xff] }
 0x317   : > { %v4121_v44 = vmax.f32 %v3929_v9, 0.0  ;;  %v4123_v40 = vmax.f32 %v3931_v10, 0.0  ;;  %v3410_v54 = vadd.f32 %v3409_v45, %v7652_v49  ;;  %v3683_v62 = vadd.f32 %v3682_v21, %v7653_v39  ;;  %v3411_v41 = vpop.f32.mrf.mxu1  ;;  %v3684_v50 = vpop.f32.mrf.mxu0  ;;  %v7659_v9 = vld [vmem:[#allocation14_spill] sm:$0xff]  ;;  %v7660_v45 = vld [vmem:[#allocation15_spill] sm:$0xff] }
 0x318   : > { %4869 = vst [vmem:[%s7009_s28 + $0x80] sm:$0xff] %v5299_v14  ;;  %4870 = vst [vmem:[%s7009_s28 + $0x88] sm:$0xff] %v5300_v29  ;;  %v4122_v47 = vmax.f32 %v3930_v3, 0.0  ;;  %v4124_v56 = vmax.f32 %v3932_v26, 0.0  ;;  %v3412_v63 = vadd.f32 %v3411_v41, %v6612_v36  ;;  %v3685_v34 = vadd.f32 %v3684_v50, %v7654_v17 }
 0x319   : > { %v3933_v51 = vadd.f32 %v6985_v13, %v3410_v54  ;;  %v3935_v61 = vadd.f32 %v6987_v2, %v3683_v62  ;;  %v3413_v22 = vpop.f32.mrf.mxu1  ;;  %v3686_v4 = vpop.f32.mrf.mxu0 }
 0x31a   : > { %v5301_v7 = vpack.c.bf16 %v4122_v47, %v4121_v44  ;;  %v5302_v1 = vpack.c.bf16 %v4124_v56, %v4123_v40  ;;  %v3934_v0 = vadd.f32 %v6991_v57, %v3412_v63  ;;  %v3936_v46 = vadd.f32 %v6993_v37, %v3685_v34  ;;  %v7661_v40 = vld [vmem:[#allocation16_spill] sm:$0xff] }
 0x31b   : > { %v4125_v23 = vmax.f32 %v3933_v51, 0.0  ;;  %v4127_v25 = vmax.f32 %v3935_v61, 0.0  ;;  %v3414_v36 = vadd.f32 %v3413_v22, %v7655_v35  ;;  %v3687_v28 = vadd.f32 %v3686_v4, %v7656_v5  ;;  %v3415_v6 = vpop.f32.mrf.mxu1  ;;  %v3688_v8 = vpop.f32.mrf.mxu0  ;;  %v7662_v51 = vld [vmem:[#allocation17_spill] sm:$0xff]  ;;  %v7663_v61 = vld [vmem:[#allocation18_spill] sm:$0xff] }
 0x31c   : > { %4871 = vst [vmem:[%s7009_s28 + $0x90] sm:$0xff] %v5301_v7  ;;  %4872 = vst [vmem:[%s7009_s28 + $0x98] sm:$0xff] %v5302_v1  ;;  %v4126_v43 = vmax.f32 %v3934_v0, 0.0  ;;  %v4128_v58 = vmax.f32 %v3936_v46, 0.0  ;;  %v3416_v18 = vadd.f32 %v3415_v6, %v7657_v24  ;;  %v3689_v16 = vadd.f32 %v3688_v8, %v7658_v48  ;;  %v7664_v46 = vld [vmem:[#allocation19_spill] sm:$0xff] }
 0x31d   : > { %v3937_v38 = vadd.f32 %v6985_v13, %v3414_v36  ;;  %v3939_v42 = vadd.f32 %v6987_v2, %v3687_v28  ;;  %v3419_v55 = vpop.f32.mrf.mxu1  ;;  %v3692_v31 = vpop.f32.mrf.mxu0 }
 0x31e   : > { %v5303_v12 = vpack.c.bf16 %v4126_v43, %v4125_v23  ;;  %v5304_v60 = vpack.c.bf16 %v4128_v58, %v4127_v25  ;;  %v3938_v27 = vadd.f32 %v6991_v57, %v3416_v18  ;;  %v3940_v53 = vadd.f32 %v6993_v37, %v3689_v16  ;;  %v7665_v25 = vld [vmem:[#allocation20_spill] sm:$0xff]  ;;  %v7666_v16 = vld [vmem:[#allocation21_spill] sm:$0xff] }
 0x31f   : > { %v4129_v15 = vmax.f32 %v3937_v38, 0.0  ;;  %v4131_v30 = vmax.f32 %v3939_v42, 0.0  ;;  %v3420_v10 = vadd.f32 %v3419_v55, %v7659_v9  ;;  %v3693_v21 = vadd.f32 %v3692_v31, %v7660_v45  ;;  %v3421_v14 = vpop.f32.mrf.mxu1  ;;  %v3694_v29 = vpop.f32.mrf.mxu0  ;;  %v7667_v42 = vld [vmem:[#allocation22_spill] sm:$0xff] }
 0x320   : > { %4873 = vst [vmem:[%s7009_s28 + $0xa0] sm:$0xff] %v5303_v12  ;;  %4874 = vst [vmem:[%s7009_s28 + $0xa8] sm:$0xff] %v5304_v60  ;;  %v4130_v3 = vmax.f32 %v3938_v27, 0.0  ;;  %v4132_v26 = vmax.f32 %v3940_v53, 0.0  ;;  %v3422_v44 = vadd.f32 %v3421_v14, %v6632_v32  ;;  %v3695_v49 = vadd.f32 %v3694_v29, %v7661_v40 }
 0x321   : > { %v3941_v54 = vadd.f32 %v6985_v13, %v3420_v10  ;;  %v3943_v39 = vadd.f32 %v6987_v2, %v3693_v21  ;;  %v3423_v62 = vpop.f32.mrf.mxu1  ;;  %v3696_v41 = vpop.f32.mrf.mxu0 }
 0x322   : > { %v5305_v50 = vpack.c.bf16 %v4130_v3, %v4129_v15  ;;  %v5306_v47 = vpack.c.bf16 %v4132_v26, %v4131_v30  ;;  %v3942_v56 = vadd.f32 %v6991_v57, %v3422_v44  ;;  %v3944_v63 = vadd.f32 %v6993_v37, %v3695_v49  ;;  %v7668_v15 = vld [vmem:[#allocation23_spill] sm:$0xff]  ;;  %v7669_v49 = vld [vmem:[#allocation24_spill] sm:$0xff] }
 0x323   : > { %v4133_v17 = vmax.f32 %v3941_v54, 0.0  ;;  %v4135_v34 = vmax.f32 %v3943_v39, 0.0  ;;  %v3424_v32 = vadd.f32 %v3423_v62, %v7662_v51  ;;  %v3697_v22 = vadd.f32 %v3696_v41, %v7663_v61  ;;  %v3425_v4 = vpop.f32.mrf.mxu1  ;;  %v3698_v7 = vpop.f32.mrf.mxu0  ;;  %v7670_v54 = vld [vmem:[#allocation25_spill] sm:$0xff] }
 0x324   : > { %4875 = vst [vmem:[%s7009_s28 + $0xb0] sm:$0xff] %v5305_v50  ;;  %4876 = vst [vmem:[%s7009_s28 + $0xb8] sm:$0xff] %v5306_v47  ;;  %v4134_v1 = vmax.f32 %v3942_v56, 0.0  ;;  %v4136_v0 = vmax.f32 %v3944_v63, 0.0  ;;  %v3426_v23 = vadd.f32 %v3425_v4, %v7664_v46  ;;  %v3699_v35 = vadd.f32 %v3698_v7, %v7665_v25  ;;  %v7671_v56 = vld [vmem:[#allocation26_spill] sm:$0xff]  ;;  %v7673_v25 = vld [vmem:[#allocation28_spill] sm:$0xff] }
 0x325   : > { %v3945_v36 = vadd.f32 %v6985_v13, %v3424_v32  ;;  %v3947_v5 = vadd.f32 %v6987_v2, %v3697_v22  ;;  %v3429_v28 = vpop.f32.mrf.mxu1  ;;  %v3702_v6 = vpop.f32.mrf.mxu0 }
 0x326   : > { %v5307_v8 = vpack.c.bf16 %v4134_v1, %v4133_v17  ;;  %v5308_v43 = vpack.c.bf16 %v4136_v0, %v4135_v34  ;;  %v3946_v58 = vadd.f32 %v6991_v57, %v3426_v23  ;;  %v3948_v24 = vadd.f32 %v6993_v37, %v3699_v35  ;;  %v7672_v17 = vld [vmem:[#allocation27_spill] sm:$0xff] }
 0x327   : > { %v4137_v18 = vmax.f32 %v3945_v36, 0.0  ;;  %v4139_v48 = vmax.f32 %v3947_v5, 0.0  ;;  %v3430_v38 = vadd.f32 %v3429_v28, %v7666_v16  ;;  %v3703_v55 = vadd.f32 %v3702_v6, %v7667_v42  ;;  %v3431_v31 = vpop.f32.mrf.mxu1  ;;  %v3704_v12 = vpop.f32.mrf.mxu0  ;;  %v7674_v36 = vld [vmem:[#allocation29_spill] sm:$0xff] }
 0x328   : > { %4877 = vst [vmem:[%s7009_s28 + $0xc0] sm:$0xff] %v5307_v8  ;;  %4878 = vst [vmem:[%s7009_s28 + $0xc8] sm:$0xff] %v5308_v43  ;;  %v4138_v60 = vmax.f32 %v3946_v58, 0.0  ;;  %v4140_v27 = vmax.f32 %v3948_v24, 0.0  ;;  %v3432_v53 = vadd.f32 %v3431_v31, %v6652_v11  ;;  %v3705_v30 = vadd.f32 %v3704_v12, %v7668_v15  ;;  %v7675_v24 = vld [vmem:[#allocation30_spill] sm:$0xff]  ;;  %v7676_v15 = vld [vmem:[#allocation31_spill] sm:$0xff] }
 0x329   : > { %v3949_v9 = vadd.f32 %v6985_v13, %v3430_v38  ;;  %v3951_v10 = vadd.f32 %v6987_v2, %v3703_v55  ;;  %v3433_v45 = vpop.f32.mrf.mxu1  ;;  %v3706_v21 = vpop.f32.mrf.mxu0 }
 0x32a   : > { %v5309_v14 = vpack.c.bf16 %v4138_v60, %v4137_v18  ;;  %v5310_v29 = vpack.c.bf16 %v4140_v27, %v4139_v48  ;;  %v3950_v3 = vadd.f32 %v6991_v57, %v3432_v53  ;;  %v3952_v26 = vadd.f32 %v6993_v37, %v3705_v30  ;;  %v7677_v30 = vld [vmem:[#allocation32_spill] sm:$0xff] }
 0x32b   : > { %v4141_v44 = vmax.f32 %v3949_v9, 0.0  ;;  %v4143_v40 = vmax.f32 %v3951_v10, 0.0  ;;  %v3434_v11 = vadd.f32 %v3433_v45, %v7669_v49  ;;  %v3707_v39 = vadd.f32 %v3706_v21, %v7670_v54  ;;  %v3435_v62 = vpop.f32.mrf.mxu1  ;;  %v3708_v41 = vpop.f32.mrf.mxu0 }
 0x32c   : > { %4879 = vst [vmem:[%s7009_s28 + $0xd0] sm:$0xff] %v5309_v14  ;;  %4880 = vst [vmem:[%s7009_s28 + $0xd8] sm:$0xff] %v5310_v29  ;;  %v4142_v50 = vmax.f32 %v3950_v3, 0.0  ;;  %v4144_v47 = vmax.f32 %v3952_v26, 0.0  ;;  %v3436_v63 = vadd.f32 %v3435_v62, %v7671_v56  ;;  %v3709_v34 = vadd.f32 %v3708_v41, %v7672_v17  ;;  %v7678_v29 = vld [vmem:[#allocation33_spill] sm:$0xff]  ;;  %v7679_v26 = vld [vmem:[#allocation34_spill] sm:$0xff] }
 0x32d   : > { %v3953_v51 = vadd.f32 %v6985_v13, %v3434_v11  ;;  %v3955_v32 = vadd.f32 %v6987_v2, %v3707_v39  ;;  %v3439_v61 = vpop.f32.mrf.mxu1  ;;  %v3712_v22 = vpop.f32.mrf.mxu0 }
 0x32e   : > { %v5311_v4 = vpack.c.bf16 %v4142_v50, %v4141_v44  ;;  %v5312_v7 = vpack.c.bf16 %v4144_v47, %v4143_v40  ;;  %v3954_v1 = vadd.f32 %v6991_v57, %v3436_v63  ;;  %v3956_v0 = vadd.f32 %v6993_v37, %v3709_v34  ;;  %v7680_v63 = vld [vmem:[#allocation35_spill] sm:$0xff]  ;;  %v7681_v34 = vld [vmem:[#allocation36_spill] sm:$0xff] }
 0x32f   : > { %v4145_v46 = vmax.f32 %v3953_v51, 0.0  ;;  %v4147_v23 = vmax.f32 %v3955_v32, 0.0  ;;  %v3440_v35 = vadd.f32 %v3439_v61, %v7673_v25  ;;  %v3713_v5 = vadd.f32 %v3712_v22, %v7674_v36  ;;  %v3441_v28 = vpop.f32.mrf.mxu1  ;;  %v3714_v6 = vpop.f32.mrf.mxu0 }
 0x330   : > { %4881 = vst [vmem:[%s7009_s28 + $0xe0] sm:$0xff] %v5311_v4  ;;  %4882 = vst [vmem:[%s7009_s28 + $0xe8] sm:$0xff] %v5312_v7  ;;  %v4146_v8 = vmax.f32 %v3954_v1, 0.0  ;;  %v4148_v43 = vmax.f32 %v3956_v0, 0.0  ;;  %v3442_v58 = vadd.f32 %v3441_v28, %v6672_v33  ;;  %v3715_v18 = vadd.f32 %v3714_v6, %v7675_v24  ;;  %v7682_v1 = vld [vmem:[#allocation37_spill] sm:$0xff]  ;;  %v7684_v24 = vld [vmem:[#allocation39_spill] sm:$0xff] }
 0x331   : > { %v3957_v48 = vadd.f32 %v6985_v13, %v3440_v35  ;;  %v3959_v16 = vadd.f32 %v6987_v2, %v3713_v5  ;;  %v3443_v38 = vpop.f32.mrf.mxu1  ;;  %v3716_v42 = vpop.f32.mrf.mxu0 }
 0x332   : > { %v5313_v55 = vpack.c.bf16 %v4146_v8, %v4145_v46  ;;  %v5314_v31 = vpack.c.bf16 %v4148_v43, %v4147_v23  ;;  %v3958_v12 = vadd.f32 %v6991_v57, %v3442_v58  ;;  %v3960_v60 = vadd.f32 %v6993_v37, %v3715_v18  ;;  %v7683_v58 = vld [vmem:[#allocation38_spill] sm:$0xff] }
 0x333   : > { %v4149_v27 = vmax.f32 %v3957_v48, 0.0  ;;  %v4151_v53 = vmax.f32 %v3959_v16, 0.0  ;;  %v3444_v33 = vadd.f32 %v3443_v38, %v7676_v15  ;;  %v3717_v9 = vadd.f32 %v3716_v42, %v7677_v30  ;;  %v3445_v10 = vpop.f32.mrf.mxu1  ;;  %v3718_v45 = vpop.f32.mrf.mxu0 }
 0x334   : > { %4883 = vst [vmem:[%s7009_s28 + $0xf0] sm:$0xff] %v5313_v55  ;;  %4884 = vst [vmem:[%s7009_s28 + $0xf8] sm:$0xff] %v5314_v31  ;;  %v4150_v21 = vmax.f32 %v3958_v12, 0.0  ;;  %v4152_v14 = vmax.f32 %v3960_v60, 0.0  ;;  %v3446_v3 = vadd.f32 %v3445_v10, %v7678_v29  ;;  %v3719_v44 = vadd.f32 %v3718_v45, %v7679_v26  ;;  %v7685_v55 = vld [vmem:[#allocation40_spill] sm:$0xff]  ;;  %v7686_v12 = vld [vmem:[#allocation41_spill] sm:$0xff] }
 0x335   : > { %v3961_v40 = vadd.f32 %v6985_v13, %v3444_v33  ;;  %v3963_v49 = vadd.f32 %v6987_v2, %v3717_v9  ;;  %v3449_v11 = vpop.f32.mrf.mxu1  ;;  %v3722_v54 = vpop.f32.mrf.mxu0  ;;  %v7687_v29 = vld [vmem:[#allocation42_spill] sm:$0xff]  ;;  %v7688_v26 = vld [vmem:[#allocation43_spill] sm:$0xff] }
 0x336   : > { %v5315_v39 = vpack.c.bf16 %v4150_v21, %v4149_v27  ;;  %v5316_v62 = vpack.c.bf16 %v4152_v14, %v4151_v53  ;;  %v3962_v41 = vadd.f32 %v6991_v57, %v3446_v3  ;;  %v3964_v50 = vadd.f32 %v6993_v37, %v3719_v44 }
 0x337   : > { %v4153_v47 = vmax.f32 %v3961_v40, 0.0  ;;  %v4155_v56 = vmax.f32 %v3963_v49, 0.0  ;;  %v3450_v17 = vadd.f32 %v3449_v11, %v7680_v63  ;;  %v3723_v51 = vadd.f32 %v3722_v54, %v7681_v34  ;;  %v3451_v32 = vpop.f32.mrf.mxu1  ;;  %v3724_v61 = vpop.f32.mrf.mxu0 }
 0x338   : > { %4885 = vst [vmem:[%s7009_s28 + $0x100] sm:$0xff] %v5315_v39  ;;  %4886 = vst [vmem:[%s7009_s28 + $0x108] sm:$0xff] %v5316_v62  ;;  %v4154_v22 = vmax.f32 %v3962_v41, 0.0  ;;  %v4156_v4 = vmax.f32 %v3964_v50, 0.0  ;;  %v3452_v7 = vadd.f32 %v3451_v32, %v6692_v59  ;;  %v3725_v0 = vadd.f32 %v3724_v61, %v7682_v1  ;;  %v7689_v62 = vld [vmem:[#allocation44_spill] sm:$0xff] }
 0x339   : > { %v3965_v46 = vadd.f32 %v6985_v13, %v3450_v17  ;;  %v3967_v23 = vadd.f32 %v6987_v2, %v3723_v51  ;;  %v3453_v25 = vpop.f32.mrf.mxu1  ;;  %v3726_v35 = vpop.f32.mrf.mxu0 }
 0x33a   : > { %v5317_v36 = vpack.c.bf16 %v4154_v22, %v4153_v47  ;;  %v5318_v5 = vpack.c.bf16 %v4156_v4, %v4155_v56  ;;  %v3966_v28 = vadd.f32 %v6991_v57, %v3452_v7  ;;  %v3968_v6 = vadd.f32 %v6993_v37, %v3725_v0  ;;  %v7690_v4 = vld [vmem:[#allocation45_spill] sm:$0xff]  ;;  %v7691_v7 = vld [vmem:[#allocation46_spill] sm:$0xff] }
 0x33b   : > { %v4157_v8 = vmax.f32 %v3965_v46, 0.0  ;;  %v4159_v43 = vmax.f32 %v3967_v23, 0.0  ;;  %v3454_v59 = vadd.f32 %v3453_v25, %v7683_v58  ;;  %v3727_v18 = vadd.f32 %v3726_v35, %v7684_v24  ;;  %v3455_v48 = vpop.f32.mrf.mxu1  ;;  %v3728_v16 = vpop.f32.mrf.mxu0  ;;  %v7692_v35 = vld [vmem:[#allocation47_spill] sm:$0xff] }
 0x33c   : > { %4887 = vst [vmem:[%s7009_s28 + $0x110] sm:$0xff] %v5317_v36  ;;  %4888 = vst [vmem:[%s7009_s28 + $0x118] sm:$0xff] %v5318_v5  ;;  %v4158_v38 = vmax.f32 %v3966_v28, 0.0  ;;  %v4160_v42 = vmax.f32 %v3968_v6, 0.0  ;;  %v3456_v31 = vadd.f32 %v3455_v48, %v7685_v55  ;;  %v3729_v60 = vadd.f32 %v3728_v16, %v7686_v12  ;;  %v7693_v5 = vld [vmem:[#allocation48_spill] sm:$0xff] }
 0x33d   : > { %v3969_v27 = vadd.f32 %v6985_v13, %v3454_v59  ;;  %v3971_v53 = vadd.f32 %v6987_v2, %v3727_v18  ;;  %v3459_v15 = vpop.f32.mrf.mxu1  ;;  %v3732_v33 = vpop.f32.mrf.mxu0 }
 0x33e   : > { %v5319_v30 = vpack.c.bf16 %v4158_v38, %v4157_v8  ;;  %v5320_v9 = vpack.c.bf16 %v4160_v42, %v4159_v43  ;;  %v3970_v10 = vadd.f32 %v6991_v57, %v3456_v31  ;;  %v3972_v45 = vadd.f32 %v6993_v37, %v3729_v60  ;;  %v7694_v42 = vld [vmem:[#allocation49_spill] sm:$0xff]  ;;  %v7695_v31 = vld [vmem:[#allocation50_spill] sm:$0xff] }
 0x33f   : > { %v4161_v21 = vmax.f32 %v3969_v27, 0.0  ;;  %v4163_v14 = vmax.f32 %v3971_v53, 0.0  ;;  %v3460_v3 = vadd.f32 %v3459_v15, %v7687_v29  ;;  %v3733_v44 = vadd.f32 %v3732_v33, %v7688_v26  ;;  %v3461_v40 = vpop.f32.mrf.mxu1  ;;  %v3734_v49 = vpop.f32.mrf.mxu0 }
 0x340   : > { %4889 = vst [vmem:[%s7009_s28 + $0x120] sm:$0xff] %v5319_v30  ;;  %4890 = vst [vmem:[%s7009_s28 + $0x128] sm:$0xff] %v5320_v9  ;;  %v4162_v11 = vmax.f32 %v3970_v10, 0.0  ;;  %v4164_v54 = vmax.f32 %v3972_v45, 0.0  ;;  %v3462_v39 = vadd.f32 %v3461_v40, %v6712_v20  ;;  %v3735_v41 = vadd.f32 %v3734_v49, %v7689_v62  ;;  %v7696_v30 = vld [vmem:[#allocation51_spill] sm:$0xff] }
 0x341   : > { %v3973_v50 = vadd.f32 %v6985_v13, %v3460_v3  ;;  %v3975_v47 = vadd.f32 %v6987_v2, %v3733_v44  ;;  %v3463_v56 = vpop.f32.mrf.mxu1  ;;  %v3736_v63 = vpop.f32.mrf.mxu0 }
 0x342   : > { %v5321_v17 = vpack.c.bf16 %v4162_v11, %v4161_v21  ;;  %v5322_v34 = vpack.c.bf16 %v4164_v54, %v4163_v14  ;;  %v3974_v51 = vadd.f32 %v6991_v57, %v3462_v39  ;;  %v3976_v32 = vadd.f32 %v6993_v37, %v3735_v41  ;;  %v7697_v11 = vld [vmem:[#allocation52_spill] sm:$0xff]  ;;  %v7698_v54 = vld [vmem:[#allocation53_spill] sm:$0xff] }
 0x343   : > { %v4165_v61 = vmax.f32 %v3973_v50, 0.0  ;;  %v4167_v22 = vmax.f32 %v3975_v47, 0.0  ;;  %v3464_v20 = vadd.f32 %v3463_v56, %v7690_v4  ;;  %v3737_v1 = vadd.f32 %v3736_v63, %v7691_v7  ;;  %v3465_v0 = vpop.f32.mrf.mxu1  ;;  %v3738_v46 = vpop.f32.mrf.mxu0  ;;  %v7699_v56 = vld [vmem:[#allocation54_spill] sm:$0xff] }
 0x344   : > { %4891 = vst [vmem:[%s7009_s28 + $0x130] sm:$0xff] %v5321_v17  ;;  %4892 = vst [vmem:[%s7009_s28 + $0x138] sm:$0xff] %v5322_v34  ;;  %v4166_v23 = vmax.f32 %v3974_v51, 0.0  ;;  %v4168_v25 = vmax.f32 %v3976_v32, 0.0  ;;  %v3466_v36 = vadd.f32 %v3465_v0, %v7692_v35  ;;  %v3739_v28 = vadd.f32 %v3738_v46, %v7693_v5  ;;  %v7700_v17 = vld [vmem:[#allocation55_spill] sm:$0xff]  ;;  %v7702_v35 = vld [vmem:[#allocation57_spill] sm:$0xff] }
 0x345   : > { %v3977_v6 = vadd.f32 %v6985_v13, %v3464_v20  ;;  %v3979_v8 = vadd.f32 %v6987_v2, %v3737_v1  ;;  %v3469_v43 = vpop.f32.mrf.mxu1  ;;  %v3742_v58 = vpop.f32.mrf.mxu0 }
 0x346   : > { %v5323_v59 = vpack.c.bf16 %v4166_v23, %v4165_v61  ;;  %v5324_v24 = vpack.c.bf16 %v4168_v25, %v4167_v22  ;;  %v3978_v18 = vadd.f32 %v6991_v57, %v3466_v36  ;;  %v3980_v48 = vadd.f32 %v6993_v37, %v3739_v28  ;;  %v7701_v23 = vld [vmem:[#allocation56_spill] sm:$0xff] }
 0x347   : > { %v4169_v16 = vmax.f32 %v3977_v6, 0.0  ;;  %v4171_v38 = vmax.f32 %v3979_v8, 0.0  ;;  %v3470_v55 = vadd.f32 %v3469_v43, %v7694_v42  ;;  %v3743_v12 = vadd.f32 %v3742_v58, %v7695_v31  ;;  %v3471_v60 = vpop.f32.mrf.mxu1  ;;  %v3744_v27 = vpop.f32.mrf.mxu0  ;;  %v7703_v58 = vld [vmem:[#allocation58_spill] sm:$0xff] }
 0x348   : > { %4893 = vst [vmem:[%s7009_s28 + $0x140] sm:$0xff] %v5323_v59  ;;  %4894 = vst [vmem:[%s7009_s28 + $0x148] sm:$0xff] %v5324_v24  ;;  %v4170_v53 = vmax.f32 %v3978_v18, 0.0  ;;  %v4172_v15 = vmax.f32 %v3980_v48, 0.0  ;;  %v3472_v33 = vadd.f32 %v3471_v60, %v6732_v52  ;;  %v3745_v9 = vadd.f32 %v3744_v27, %v7696_v30  ;;  %v7704_v27 = vld [vmem:[#allocation59_spill] sm:$0xff] }
 0x349   : > { %v3981_v10 = vadd.f32 %v6985_v13, %v3470_v55  ;;  %v3983_v45 = vadd.f32 %v6987_v2, %v3743_v12  ;;  %v3473_v21 = vpop.f32.mrf.mxu1  ;;  %v3746_v14 = vpop.f32.mrf.mxu0 }
 0x34a   : > { %v5325_v29 = vpack.c.bf16 %v4170_v53, %v4169_v16  ;;  %v5326_v3 = vpack.c.bf16 %v4172_v15, %v4171_v38  ;;  %v3982_v26 = vadd.f32 %v6991_v57, %v3472_v33  ;;  %v3984_v44 = vadd.f32 %v6993_v37, %v3745_v9  ;;  %v7705_v53 = vld [vmem:[#allocation60_spill] sm:$0xff] }
 0x34b   : > { %v4173_v40 = vmax.f32 %v3981_v10, 0.0  ;;  %v4175_v49 = vmax.f32 %v3983_v45, 0.0  ;;  %v3474_v52 = vadd.f32 %v3473_v21, %v7697_v11  ;;  %v3747_v39 = vadd.f32 %v3746_v14, %v7698_v54  ;;  %v3475_v62 = vpop.f32.mrf.mxu1  ;;  %v3748_v41 = vpop.f32.mrf.mxu0  ;;  %v7706_v45 = vld [vmem:[#allocation61_spill] sm:$0xff]  ;;  %v7707_v14 = vld [vmem:[#allocation62_spill] sm:$0xff] }
 0x34c   : > { %4895 = vst [vmem:[%s7009_s28 + $0x150] sm:$0xff] %v5325_v29  ;;  %4896 = vst [vmem:[%s7009_s28 + $0x158] sm:$0xff] %v5326_v3  ;;  %v4174_v50 = vmax.f32 %v3982_v26, 0.0  ;;  %v4176_v47 = vmax.f32 %v3984_v44, 0.0  ;;  %v3476_v63 = vadd.f32 %v3475_v62, %v7699_v56  ;;  %v3749_v34 = vadd.f32 %v3748_v41, %v7700_v17  ;;  %v7708_v41 = vld [vmem:[#allocation63_spill] sm:$0xff] }
 0x34d   : > { %v3985_v51 = vadd.f32 %v6985_v13, %v3474_v52  ;;  %v3987_v32 = vadd.f32 %v6987_v2, %v3747_v39  ;;  %v3479_v61 = vpop.f32.mrf.mxu1  ;;  %v3752_v22 = vpop.f32.mrf.mxu0 }
 0x34e   : > { %v5327_v4 = vpack.c.bf16 %v4174_v50, %v4173_v40  ;;  %v5328_v20 = vpack.c.bf16 %v4176_v47, %v4175_v49  ;;  %v3986_v7 = vadd.f32 %v6991_v57, %v3476_v63  ;;  %v3988_v1 = vadd.f32 %v6993_v37, %v3749_v34  ;;  %v7709_v47 = vld [vmem:[#allocation64_spill] sm:$0xff] }
 0x34f   : > { %v4177_v0 = vmax.f32 %v3985_v51, 0.0  ;;  %v4179_v46 = vmax.f32 %v3987_v32, 0.0  ;;  %v3480_v25 = vadd.f32 %v3479_v61, %v7701_v23  ;;  %v3753_v36 = vadd.f32 %v3752_v22, %v7702_v35  ;;  %v3481_v5 = vpop.f32.mrf.mxu1  ;;  %v3754_v28 = vpop.f32.mrf.mxu0  ;;  %v7710_v32 = vld [vmem:[#allocation65_spill] sm:$0xff]  ;;  %v7711_v22 = vld [vmem:[#allocation66_spill] sm:$0xff] }
 0x350   : > { %4897 = vst [vmem:[%s7009_s28 + $0x160] sm:$0xff] %v5327_v4  ;;  %4898 = vst [vmem:[%s7009_s28 + $0x168] sm:$0xff] %v5328_v20  ;;  %v4178_v6 = vmax.f32 %v3986_v7, 0.0  ;;  %v4180_v8 = vmax.f32 %v3988_v1, 0.0  ;;  %v3482_v43 = vadd.f32 %v3481_v5, %v6752_v19  ;;  %v3755_v59 = vadd.f32 %v3754_v28, %v7703_v58  ;;  %v7712_v28 = vld [vmem:[#allocation67_spill] sm:$0xff] }
 0x351   : > { %v3989_v24 = vadd.f32 %v6985_v13, %v3480_v25  ;;  %v3991_v18 = vadd.f32 %v6987_v2, %v3753_v36  ;;  %v3483_v48 = vpop.f32.mrf.mxu1  ;;  %v3756_v16 = vpop.f32.mrf.mxu0 }
 0x352   : > { %v5329_v38 = vpack.c.bf16 %v4178_v6, %v4177_v0  ;;  %v5330_v42 = vpack.c.bf16 %v4180_v8, %v4179_v46  ;;  %v3990_v55 = vadd.f32 %v6991_v57, %v3482_v43  ;;  %v3992_v31 = vadd.f32 %v6993_v37, %v3755_v59  ;;  %v7713_v8 = vld [vmem:[#allocation68_spill] sm:$0xff] }
 0x353   : > { %v4181_v12 = vmax.f32 %v3989_v24, 0.0  ;;  %v4183_v60 = vmax.f32 %v3991_v18, 0.0  ;;  %v3484_v19 = vadd.f32 %v3483_v48, %v7704_v27  ;;  %v3757_v15 = vadd.f32 %v3756_v16, %v7705_v53  ;;  %v3485_v33 = vpop.f32.mrf.mxu1  ;;  %v3758_v30 = vpop.f32.mrf.mxu0  ;;  %v7714_v48 = vld [vmem:[#allocation69_spill] sm:$0xff] }
 0x354   : > { %4899 = vst [vmem:[%s7009_s28 + $0x170] sm:$0xff] %v5329_v38  ;;  %4900 = vst [vmem:[%s7009_s28 + $0x178] sm:$0xff] %v5330_v42  ;;  %v4182_v9 = vmax.f32 %v3990_v55, 0.0  ;;  %v4184_v10 = vmax.f32 %v3992_v31, 0.0  ;;  %v3486_v21 = vadd.f32 %v3485_v33, %v7706_v45  ;;  %v3759_v29 = vadd.f32 %v3758_v30, %v7707_v14  ;;  %v7715_v38 = vld [vmem:[#allocation70_spill] sm:$0xff]  ;;  %v7717_v45 = vld [vmem:[#allocation72_spill] sm:$0xff] }
 0x355   : > { %v3993_v3 = vadd.f32 %v6985_v13, %v3484_v19  ;;  %v3995_v26 = vadd.f32 %v6987_v2, %v3757_v15  ;;  %v3489_v44 = vpop.f32.mrf.mxu1  ;;  %v3762_v40 = vpop.f32.mrf.mxu0 }
 0x356   : > { %v5331_v49 = vpack.c.bf16 %v4182_v9, %v4181_v12  ;;  %v5332_v11 = vpack.c.bf16 %v4184_v10, %v4183_v60  ;;  %v3994_v52 = vadd.f32 %v6991_v57, %v3486_v21  ;;  %v3996_v54 = vadd.f32 %v6993_v37, %v3759_v29  ;;  %v7716_v9 = vld [vmem:[#allocation71_spill] sm:$0xff] }
 0x357   : > { %v4185_v39 = vmax.f32 %v3993_v3, 0.0  ;;  %v4187_v62 = vmax.f32 %v3995_v26, 0.0  ;;  %v3490_v50 = vadd.f32 %v3489_v44, %v7708_v41  ;;  %v3763_v56 = vadd.f32 %v3762_v40, %v7709_v47  ;;  %v3491_v63 = vpop.f32.mrf.mxu1  ;;  %v3764_v17 = vpop.f32.mrf.mxu0  ;;  %v7718_v44 = vld [vmem:[#allocation73_spill] sm:$0xff] }
 0x358   : > { %4901 = vst [vmem:[%s7009_s28 + $0x180] sm:$0xff] %v5331_v49  ;;  %4902 = vst [vmem:[%s7009_s28 + $0x188] sm:$0xff] %v5332_v11  ;;  %v4186_v34 = vmax.f32 %v3994_v52, 0.0  ;;  %v4188_v51 = vmax.f32 %v3996_v54, 0.0  ;;  %v3492_v61 = vadd.f32 %v3491_v63, %v7710_v32  ;;  %v3765_v4 = vadd.f32 %v3764_v17, %v7711_v22  ;;  %v7719_v49 = vld [vmem:[#allocation74_spill] sm:$0xff]  ;;  %v7721_v32 = vld [vmem:[#allocation76_spill] sm:$0xff] }
 0x359   : > { %v3997_v20 = vadd.f32 %v6985_v13, %v3490_v50  ;;  %v3999_v7 = vadd.f32 %v6987_v2, %v3763_v56  ;;  %v3493_v1 = vpop.f32.mrf.mxu1  ;;  %v3766_v0 = vpop.f32.mrf.mxu0 }
 0x35a   : > { %v5333_v46 = vpack.c.bf16 %v4186_v34, %v4185_v39  ;;  %v5334_v23 = vpack.c.bf16 %v4188_v51, %v4187_v62  ;;  %v3998_v25 = vadd.f32 %v6991_v57, %v3492_v61  ;;  %v4000_v35 = vadd.f32 %v6993_v37, %v3765_v4  ;;  %v7720_v34 = vld [vmem:[#allocation75_spill] sm:$0xff] }
 0x35b   : > { %v4189_v36 = vmax.f32 %v3997_v20, 0.0  ;;  %v4191_v5 = vmax.f32 %v3999_v7, 0.0  ;;  %v3494_v6 = vadd.f32 %v3493_v1, %v7712_v28  ;;  %v3767_v43 = vadd.f32 %v3766_v0, %v7713_v8  ;;  %v3495_v58 = vpop.f32.mrf.mxu1  ;;  %v3768_v59 = vpop.f32.mrf.mxu0  ;;  %v7722_v1 = vld [vmem:[#allocation77_spill] sm:$0xff] }
 0x35c   : > { %4903 = vst [vmem:[%s7009_s28 + $0x190] sm:$0xff] %v5333_v46  ;;  %4904 = vst [vmem:[%s7009_s28 + $0x198] sm:$0xff] %v5334_v23  ;;  %v4190_v24 = vmax.f32 %v3998_v25, 0.0  ;;  %v4192_v18 = vmax.f32 %v4000_v35, 0.0  ;;  %v3496_v16 = vadd.f32 %v3495_v58, %v7714_v48  ;;  %v3769_v42 = vadd.f32 %v3768_v59, %v7715_v38  ;;  %v7723_v46 = vld [vmem:[#allocation78_spill] sm:$0xff]  ;;  %v7725_v48 = vld [vmem:[#allocation80_spill] sm:$0xff] }
 0x35d   : > { %v4001_v55 = vadd.f32 %v6985_v13, %v3494_v6  ;;  %v4003_v31 = vadd.f32 %v6987_v2, %v3767_v43  ;;  %v3499_v12 = vpop.f32.mrf.mxu1  ;;  %v3772_v60 = vpop.f32.mrf.mxu0 }
 0x35e   : > { %v5335_v27 = vpack.c.bf16 %v4190_v24, %v4189_v36  ;;  %v5336_v19 = vpack.c.bf16 %v4192_v18, %v4191_v5  ;;  %v4002_v53 = vadd.f32 %v6991_v57, %v3496_v16  ;;  %v4004_v15 = vadd.f32 %v6993_v37, %v3769_v42  ;;  %v7724_v24 = vld [vmem:[#allocation79_spill] sm:$0xff] }
 0x35f   : > { %v4193_v33 = vmax.f32 %v4001_v55, 0.0  ;;  %v4195_v30 = vmax.f32 %v4003_v31, 0.0  ;;  %v3500_v10 = vadd.f32 %v3499_v12, %v7716_v9  ;;  %v3773_v21 = vadd.f32 %v3772_v60, %v7717_v45  ;;  %v3501_v14 = vpop.f32.mrf.mxu1  ;;  %v3774_v29 = vpop.f32.mrf.mxu0  ;;  %v7726_v12 = vld [vmem:[#allocation81_spill] sm:$0xff] }
 0x360   : > { %4905 = vst [vmem:[%s7009_s28 + $0x1a0] sm:$0xff] %v5335_v27  ;;  %4906 = vst [vmem:[%s7009_s28 + $0x1a8] sm:$0xff] %v5336_v19  ;;  %v4194_v3 = vmax.f32 %v4002_v53, 0.0  ;;  %v4196_v26 = vmax.f32 %v4004_v15, 0.0  ;;  %v3502_v40 = vadd.f32 %v3501_v14, %v7718_v44  ;;  %v3775_v11 = vadd.f32 %v3774_v29, %v7719_v49  ;;  %v7727_v27 = vld [vmem:[#allocation82_spill] sm:$0xff]  ;;  %v7729_v44 = vld [vmem:[#allocation84_spill] sm:$0xff] }
 0x361   : > { %v4005_v52 = vadd.f32 %v6985_v13, %v3500_v10  ;;  %v4007_v54 = vadd.f32 %v6987_v2, %v3773_v21  ;;  %v3503_v39 = vpop.f32.mrf.mxu1  ;;  %v3776_v62 = vpop.f32.mrf.mxu0 }
 0x362   : > { %v5337_v41 = vpack.c.bf16 %v4194_v3, %v4193_v33  ;;  %v5338_v50 = vpack.c.bf16 %v4196_v26, %v4195_v30  ;;  %v4006_v47 = vadd.f32 %v6991_v57, %v3502_v40  ;;  %v4008_v56 = vadd.f32 %v6993_v37, %v3775_v11  ;;  %v7728_v3 = vld [vmem:[#allocation83_spill] sm:$0xff] }
 0x363   : > { %v4197_v63 = vmax.f32 %v4005_v52, 0.0  ;;  %v4199_v17 = vmax.f32 %v4007_v54, 0.0  ;;  %v3504_v51 = vadd.f32 %v3503_v39, %v7720_v34  ;;  %v3777_v61 = vadd.f32 %v3776_v62, %v7721_v32  ;;  %v3505_v22 = vpop.f32.mrf.mxu1  ;;  %v3778_v4 = vpop.f32.mrf.mxu0  ;;  %v7730_v39 = vld [vmem:[#allocation85_spill] sm:$0xff] }
 0x364   : > { %4907 = vst [vmem:[%s7009_s28 + $0x1b0] sm:$0xff] %v5337_v41  ;;  %4908 = vst [vmem:[%s7009_s28 + $0x1b8] sm:$0xff] %v5338_v50  ;;  %v4198_v20 = vmax.f32 %v4006_v47, 0.0  ;;  %v4200_v7 = vmax.f32 %v4008_v56, 0.0  ;;  %v3506_v0 = vadd.f32 %v3505_v22, %v7722_v1  ;;  %v3779_v23 = vadd.f32 %v3778_v4, %v7723_v46  ;;  %v7731_v41 = vld [vmem:[#allocation86_spill] sm:$0xff]  ;;  %v7733_v1 = vld [vmem:[#allocation88_spill] sm:$0xff] }
 0x365   : > { %v4009_v25 = vadd.f32 %v6985_v13, %v3504_v51  ;;  %v4011_v35 = vadd.f32 %v6987_v2, %v3777_v61  ;;  %v3509_v36 = vpop.f32.mrf.mxu1  ;;  %v3782_v5 = vpop.f32.mrf.mxu0 }
 0x366   : > { %v5339_v28 = vpack.c.bf16 %v4198_v20, %v4197_v63  ;;  %v5340_v6 = vpack.c.bf16 %v4200_v7, %v4199_v17  ;;  %v4010_v8 = vadd.f32 %v6991_v57, %v3506_v0  ;;  %v4012_v43 = vadd.f32 %v6993_v37, %v3779_v23  ;;  %v7732_v20 = vld [vmem:[#allocation87_spill] sm:$0xff] }
 0x367   : > { %v4201_v58 = vmax.f32 %v4009_v25, 0.0  ;;  %v4203_v59 = vmax.f32 %v4011_v35, 0.0  ;;  %v3510_v18 = vadd.f32 %v3509_v36, %v7724_v24  ;;  %v3783_v16 = vadd.f32 %v3782_v5, %v7725_v48  ;;  %v3511_v38 = vpop.f32.mrf.mxu1  ;;  %v3784_v42 = vpop.f32.mrf.mxu0  ;;  %v7734_v36 = vld [vmem:[#allocation89_spill] sm:$0xff] }
 0x368   : > { %4909 = vst [vmem:[%s7009_s28 + $0x1c0] sm:$0xff] %v5339_v28  ;;  %4910 = vst [vmem:[%s7009_s28 + $0x1c8] sm:$0xff] %v5340_v6  ;;  %v4202_v55 = vmax.f32 %v4010_v8, 0.0  ;;  %v4204_v31 = vmax.f32 %v4012_v43, 0.0  ;;  %v3512_v60 = vadd.f32 %v3511_v38, %v7726_v12  ;;  %v3785_v19 = vadd.f32 %v3784_v42, %v7727_v27  ;;  %v7735_v28 = vld [vmem:[#allocation90_spill] sm:$0xff]  ;;  %v7737_v12 = vld [vmem:[#allocation92_spill] sm:$0xff] }
 0x369   : > { %v4013_v53 = vadd.f32 %v6985_v13, %v3510_v18  ;;  %v4015_v15 = vadd.f32 %v6987_v2, %v3783_v16  ;;  %v3513_v33 = vpop.f32.mrf.mxu1  ;;  %v3786_v30 = vpop.f32.mrf.mxu0 }
 0x36a   : > { %v5341_v9 = vpack.c.bf16 %v4202_v55, %v4201_v58  ;;  %v5342_v10 = vpack.c.bf16 %v4204_v31, %v4203_v59  ;;  %v4014_v45 = vadd.f32 %v6991_v57, %v3512_v60  ;;  %v4016_v21 = vadd.f32 %v6993_v37, %v3785_v19  ;;  %v7736_v55 = vld [vmem:[#allocation91_spill] sm:$0xff] }
 0x36b   : > { %v4205_v14 = vmax.f32 %v4013_v53, 0.0  ;;  %v4207_v29 = vmax.f32 %v4015_v15, 0.0  ;;  %v3514_v26 = vadd.f32 %v3513_v33, %v7728_v3  ;;  %v3787_v40 = vadd.f32 %v3786_v30, %v7729_v44  ;;  %v3515_v49 = vpop.f32.mrf.mxu1  ;;  %v3788_v11 = vpop.f32.mrf.mxu0  ;;  %v7738_v33 = vld [vmem:[#allocation93_spill] sm:$0xff] }
 0x36c   : > { %4911 = vst [vmem:[%s7009_s28 + $0x1d0] sm:$0xff] %v5341_v9  ;;  %4912 = vst [vmem:[%s7009_s28 + $0x1d8] sm:$0xff] %v5342_v10  ;;  %v4206_v52 = vmax.f32 %v4014_v45, 0.0  ;;  %v4208_v54 = vmax.f32 %v4016_v21, 0.0  ;;  %v3516_v62 = vadd.f32 %v3515_v49, %v7730_v39  ;;  %v3789_v50 = vadd.f32 %v3788_v11, %v7731_v41  ;;  %v7739_v9 = vld [vmem:[#allocation94_spill] sm:$0xff]  ;;  %v7741_v39 = vld [vmem:[#allocation96_spill] sm:$0xff] }
 0x36d   : > { %v4017_v47 = vadd.f32 %v6985_v13, %v3514_v26  ;;  %v4019_v56 = vadd.f32 %v6987_v2, %v3787_v40  ;;  %v3519_v63 = vpop.f32.mrf.mxu1  ;;  %v3792_v17 = vpop.f32.mrf.mxu0 }
 0x36e   : > { %v5343_v34 = vpack.c.bf16 %v4206_v52, %v4205_v14  ;;  %v5344_v51 = vpack.c.bf16 %v4208_v54, %v4207_v29  ;;  %v4018_v32 = vadd.f32 %v6991_v57, %v3516_v62  ;;  %v4020_v61 = vadd.f32 %v6993_v37, %v3789_v50  ;;  %v7740_v52 = vld [vmem:[#allocation95_spill] sm:$0xff] }
 0x36f   : > { %v4209_v22 = vmax.f32 %v4017_v47, 0.0  ;;  %v4211_v4 = vmax.f32 %v4019_v56, 0.0  ;;  %v3520_v7 = vadd.f32 %v3519_v63, %v7732_v20  ;;  %v3793_v0 = vadd.f32 %v3792_v17, %v7733_v1  ;;  %v3521_v46 = vpop.f32.mrf.mxu1  ;;  %v3794_v23 = vpop.f32.mrf.mxu0  ;;  %v7742_v63 = vld [vmem:[#allocation97_spill] sm:$0xff] }
 0x370   : > { %4913 = vst [vmem:[%s7009_s28 + $0x1e0] sm:$0xff] %v5343_v34  ;;  %4914 = vst [vmem:[%s7009_s28 + $0x1e8] sm:$0xff] %v5344_v51  ;;  %v4210_v25 = vmax.f32 %v4018_v32, 0.0  ;;  %v4212_v35 = vmax.f32 %v4020_v61, 0.0  ;;  %v3522_v5 = vadd.f32 %v3521_v46, %v7734_v36  ;;  %v3795_v6 = vadd.f32 %v3794_v23, %v7735_v28  ;;  %v7743_v34 = vld [vmem:[#allocation98_spill] sm:$0xff]  ;;  %v7745_v36 = vld [vmem:[#allocation100_spill] sm:$0xff] }
 0x371   : > { %v4021_v8 = vadd.f32 %v6985_v13, %v3520_v7  ;;  %v4023_v43 = vadd.f32 %v6987_v2, %v3793_v0  ;;  %v3523_v58 = vpop.f32.mrf.mxu1  ;;  %v3796_v59 = vpop.f32.mrf.mxu0 }
 0x372   : > { %v5345_v24 = vpack.c.bf16 %v4210_v25, %v4209_v22  ;;  %v5346_v18 = vpack.c.bf16 %v4212_v35, %v4211_v4  ;;  %v4022_v48 = vadd.f32 %v6991_v57, %v3522_v5  ;;  %v4024_v16 = vadd.f32 %v6993_v37, %v3795_v6  ;;  %v7744_v25 = vld [vmem:[#allocation99_spill] sm:$0xff] }
 0x373   : > { %v4213_v38 = vmax.f32 %v4021_v8, 0.0  ;;  %v4215_v42 = vmax.f32 %v4023_v43, 0.0  ;;  %v3524_v31 = vadd.f32 %v3523_v58, %v7736_v55  ;;  %v3797_v60 = vadd.f32 %v3796_v59, %v7737_v12  ;;  %v3525_v27 = vpop.f32.mrf.mxu1  ;;  %v3798_v19 = vpop.f32.mrf.mxu0  ;;  %v7746_v58 = vld [vmem:[#allocation101_spill] sm:$0xff] }
 0x374   : > { %4915 = vst [vmem:[%s7009_s28 + $0x1f0] sm:$0xff] %v5345_v24  ;;  %4916 = vst [vmem:[%s7009_s28 + $0x1f8] sm:$0xff] %v5346_v18  ;;  %v4214_v53 = vmax.f32 %v4022_v48, 0.0  ;;  %v4216_v15 = vmax.f32 %v4024_v16, 0.0  ;;  %v3526_v30 = vadd.f32 %v3525_v27, %v7738_v33  ;;  %v3799_v10 = vadd.f32 %v3798_v19, %v7739_v9  ;;  %v7747_v24 = vld [vmem:[#allocation102_spill] sm:$0xff]  ;;  %v7749_v33 = vld [vmem:[#allocation104_spill] sm:$0xff] }
 0x375   : > { %v4025_v45 = vadd.f32 %v6985_v13, %v3524_v31  ;;  %v4027_v21 = vadd.f32 %v6987_v2, %v3797_v60  ;;  %v3529_v14 = vpop.f32.mrf.mxu1  ;;  %v3802_v29 = vpop.f32.mrf.mxu0 }
 0x376   : > { %v5347_v3 = vpack.c.bf16 %v4214_v53, %v4213_v38  ;;  %v5348_v26 = vpack.c.bf16 %v4216_v15, %v4215_v42  ;;  %v4026_v44 = vadd.f32 %v6991_v57, %v3526_v30  ;;  %v4028_v40 = vadd.f32 %v6993_v37, %v3799_v10  ;;  %v7748_v53 = vld [vmem:[#allocation103_spill] sm:$0xff] }
 0x377   : > { %v4217_v49 = vmax.f32 %v4025_v45, 0.0  ;;  %v4219_v11 = vmax.f32 %v4027_v21, 0.0  ;;  %v3530_v54 = vadd.f32 %v3529_v14, %v7740_v52  ;;  %v3803_v62 = vadd.f32 %v3802_v29, %v7741_v39  ;;  %v3531_v41 = vpop.f32.mrf.mxu1  ;;  %v3804_v50 = vpop.f32.mrf.mxu0  ;;  %v7750_v14 = vld [vmem:[#allocation105_spill] sm:$0xff] }
 0x378   : > { %4917 = vst [vmem:[%s7009_s28 + $0x200] sm:$0xff] %v5347_v3  ;;  %4918 = vst [vmem:[%s7009_s28 + $0x208] sm:$0xff] %v5348_v26  ;;  %v4218_v47 = vmax.f32 %v4026_v44, 0.0  ;;  %v4220_v56 = vmax.f32 %v4028_v40, 0.0  ;;  %v3532_v17 = vadd.f32 %v3531_v41, %v7742_v63  ;;  %v3805_v51 = vadd.f32 %v3804_v50, %v7743_v34  ;;  %v7751_v3 = vld [vmem:[#allocation106_spill] sm:$0xff]  ;;  %v7753_v63 = vld [vmem:[#allocation108_spill] sm:$0xff] }
 0x379   : > { %v4029_v32 = vadd.f32 %v6985_v13, %v3530_v54  ;;  %v4031_v61 = vadd.f32 %v6987_v2, %v3803_v62  ;;  %v3533_v22 = vpop.f32.mrf.mxu1  ;;  %v3806_v4 = vpop.f32.mrf.mxu0 }
 0x37a   : > { %v5349_v20 = vpack.c.bf16 %v4218_v47, %v4217_v49  ;;  %v5350_v7 = vpack.c.bf16 %v4220_v56, %v4219_v11  ;;  %v4030_v1 = vadd.f32 %v6991_v57, %v3532_v17  ;;  %v4032_v0 = vadd.f32 %v6993_v37, %v3805_v51  ;;  %v7752_v47 = vld [vmem:[#allocation107_spill] sm:$0xff] }
 0x37b   : > { %v4221_v46 = vmax.f32 %v4029_v32, 0.0  ;;  %v4223_v23 = vmax.f32 %v4031_v61, 0.0  ;;  %v3534_v35 = vadd.f32 %v3533_v22, %v7744_v25  ;;  %v3807_v5 = vadd.f32 %v3806_v4, %v7745_v36  ;;  %v3535_v28 = vpop.f32.mrf.mxu1  ;;  %v3808_v6 = vpop.f32.mrf.mxu0  ;;  %v7754_v22 = vld [vmem:[#allocation109_spill] sm:$0xff] }
 0x37c   : > { %4919 = vst [vmem:[%s7009_s28 + $0x210] sm:$0xff] %v5349_v20  ;;  %4920 = vst [vmem:[%s7009_s28 + $0x218] sm:$0xff] %v5350_v7  ;;  %v4222_v8 = vmax.f32 %v4030_v1, 0.0  ;;  %v4224_v43 = vmax.f32 %v4032_v0, 0.0  ;;  %v3536_v59 = vadd.f32 %v3535_v28, %v7746_v58  ;;  %v3809_v18 = vadd.f32 %v3808_v6, %v7747_v24  ;;  %v7755_v20 = vld [vmem:[#allocation110_spill] sm:$0xff]  ;;  %v7757_v58 = vld [vmem:[#allocation112_spill] sm:$0xff] }
 0x37d   : > { %v4033_v48 = vadd.f32 %v6985_v13, %v3534_v35  ;;  %v4035_v16 = vadd.f32 %v6987_v2, %v3807_v5  ;;  %v3539_v38 = vpop.f32.mrf.mxu1  ;;  %v3812_v42 = vpop.f32.mrf.mxu0 }
 0x37e   : > { %v5351_v55 = vpack.c.bf16 %v4222_v8, %v4221_v46  ;;  %v5352_v31 = vpack.c.bf16 %v4224_v43, %v4223_v23  ;;  %v4034_v12 = vadd.f32 %v6991_v57, %v3536_v59  ;;  %v4036_v60 = vadd.f32 %v6993_v37, %v3809_v18  ;;  %v7756_v8 = vld [vmem:[#allocation111_spill] sm:$0xff] }
 0x37f   : > { %v4225_v27 = vmax.f32 %v4033_v48, 0.0  ;;  %v4227_v19 = vmax.f32 %v4035_v16, 0.0  ;;  %v3540_v15 = vadd.f32 %v3539_v38, %v7748_v53  ;;  %v3813_v30 = vadd.f32 %v3812_v42, %v7749_v33  ;;  %v3541_v9 = vpop.f32.mrf.mxu1  ;;  %v3814_v10 = vpop.f32.mrf.mxu0  ;;  %v7758_v38 = vld [vmem:[#allocation113_spill] sm:$0xff] }
 0x380   : > { %4921 = vst [vmem:[%s7009_s28 + $0x220] sm:$0xff] %v5351_v55  ;;  %4922 = vst [vmem:[%s7009_s28 + $0x228] sm:$0xff] %v5352_v31  ;;  %v4226_v45 = vmax.f32 %v4034_v12, 0.0  ;;  %v4228_v21 = vmax.f32 %v4036_v60, 0.0  ;;  %v3542_v29 = vadd.f32 %v3541_v9, %v7750_v14  ;;  %v3815_v26 = vadd.f32 %v3814_v10, %v7751_v3  ;;  %v7759_v55 = vld [vmem:[#allocation114_spill] sm:$0xff]  ;;  %v7761_v14 = vld [vmem:[#allocation116_spill] sm:$0xff] }
 0x381   : > { %v4037_v44 = vadd.f32 %v6985_v13, %v3540_v15  ;;  %v4039_v40 = vadd.f32 %v6987_v2, %v3813_v30  ;;  %v3543_v49 = vpop.f32.mrf.mxu1  ;;  %v3816_v11 = vpop.f32.mrf.mxu0 }
 0x382   : > { %v5353_v52 = vpack.c.bf16 %v4226_v45, %v4225_v27  ;;  %v5354_v54 = vpack.c.bf16 %v4228_v21, %v4227_v19  ;;  %v4038_v39 = vadd.f32 %v6991_v57, %v3542_v29  ;;  %v4040_v62 = vadd.f32 %v6993_v37, %v3815_v26  ;;  %v7760_v45 = vld [vmem:[#allocation115_spill] sm:$0xff] }
 0x383   : > { %v4229_v41 = vmax.f32 %v4037_v44, 0.0  ;;  %v4231_v50 = vmax.f32 %v4039_v40, 0.0  ;;  %v3544_v56 = vadd.f32 %v3543_v49, %v7752_v47  ;;  %v3817_v17 = vadd.f32 %v3816_v11, %v7753_v63  ;;  %v3545_v34 = vpop.f32.mrf.mxu1  ;;  %v3818_v51 = vpop.f32.mrf.mxu0  ;;  %v7762_v49 = vld [vmem:[#allocation117_spill] sm:$0xff] }
 0x384   : > { %4923 = vst [vmem:[%s7009_s28 + $0x230] sm:$0xff] %v5353_v52  ;;  %4924 = vst [vmem:[%s7009_s28 + $0x238] sm:$0xff] %v5354_v54  ;;  %v4230_v32 = vmax.f32 %v4038_v39, 0.0  ;;  %v4232_v61 = vmax.f32 %v4040_v62, 0.0  ;;  %v3546_v4 = vadd.f32 %v3545_v34, %v7754_v22  ;;  %v3819_v7 = vadd.f32 %v3818_v51, %v7755_v20  ;;  %v7763_v52 = vld [vmem:[#allocation118_spill] sm:$0xff]  ;;  %v7765_v22 = vld [vmem:[#allocation120_spill] sm:$0xff] }
 0x385   : > { %v4041_v1 = vadd.f32 %v6985_v13, %v3544_v56  ;;  %v4043_v0 = vadd.f32 %v6987_v2, %v3817_v17  ;;  %v3549_v46 = vpop.f32.mrf.mxu1  ;;  %v3822_v23 = vpop.f32.mrf.mxu0 }
 0x386   : > { %v5355_v25 = vpack.c.bf16 %v4230_v32, %v4229_v41  ;;  %v5356_v35 = vpack.c.bf16 %v4232_v61, %v4231_v50  ;;  %v4042_v36 = vadd.f32 %v6991_v57, %v3546_v4  ;;  %v4044_v5 = vadd.f32 %v6993_v37, %v3819_v7  ;;  %v7764_v32 = vld [vmem:[#allocation119_spill] sm:$0xff] }
 0x387   : > { %v4233_v28 = vmax.f32 %v4041_v1, 0.0  ;;  %v4235_v6 = vmax.f32 %v4043_v0, 0.0  ;;  %v3550_v43 = vadd.f32 %v3549_v46, %v7756_v8  ;;  %v3823_v59 = vadd.f32 %v3822_v23, %v7757_v58  ;;  %v3551_v24 = vpop.f32.mrf.mxu1  ;;  %v3824_v18 = vpop.f32.mrf.mxu0  ;;  %v7766_v46 = vld [vmem:[#allocation121_spill] sm:$0xff] }
 0x388   : > { %4925 = vst [vmem:[%s7009_s28 + $0x240] sm:$0xff] %v5355_v25  ;;  %4926 = vst [vmem:[%s7009_s28 + $0x248] sm:$0xff] %v5356_v35  ;;  %v4234_v48 = vmax.f32 %v4042_v36, 0.0  ;;  %v4236_v16 = vmax.f32 %v4044_v5, 0.0  ;;  %v3552_v42 = vadd.f32 %v3551_v24, %v7758_v38  ;;  %v3825_v31 = vadd.f32 %v3824_v18, %v7759_v55  ;;  %v7767_v25 = vld [vmem:[#allocation122_spill] sm:$0xff]  ;;  %v7769_v38 = vld [vmem:[#allocation124_spill] sm:$0xff] }
 0x389   : > { %v4045_v12 = vadd.f32 %v6985_v13, %v3550_v43  ;;  %v4047_v60 = vadd.f32 %v6987_v2, %v3823_v59  ;;  %v3553_v27 = vpop.f32.mrf.mxu1  ;;  %v3826_v19 = vpop.f32.mrf.mxu0 }
 0x38a   : > { %v5357_v53 = vpack.c.bf16 %v4234_v48, %v4233_v28  ;;  %v5358_v15 = vpack.c.bf16 %v4236_v16, %v4235_v6  ;;  %v4046_v33 = vadd.f32 %v6991_v57, %v3552_v42  ;;  %v4048_v30 = vadd.f32 %v6993_v37, %v3825_v31  ;;  %v7768_v48 = vld [vmem:[#allocation123_spill] sm:$0xff] }
 0x38b   : > { %v4237_v9 = vmax.f32 %v4045_v12, 0.0  ;;  %v4239_v10 = vmax.f32 %v4047_v60, 0.0  ;;  %v3554_v21 = vadd.f32 %v3553_v27, %v7760_v45  ;;  %v3827_v29 = vadd.f32 %v3826_v19, %v7761_v14  ;;  %v3555_v3 = vpop.f32.mrf.mxu1  ;;  %v3828_v26 = vpop.f32.mrf.mxu0  ;;  %v7770_v27 = vld [vmem:[#allocation125_spill] sm:$0xff] }
 0x38c   : > { %4927 = vst [vmem:[%s7009_s28 + $0x250] sm:$0xff] %v5357_v53  ;;  %4928 = vst [vmem:[%s7009_s28 + $0x258] sm:$0xff] %v5358_v15  ;;  %v4238_v44 = vmax.f32 %v4046_v33, 0.0  ;;  %v4240_v40 = vmax.f32 %v4048_v30, 0.0  ;;  %v3556_v11 = vadd.f32 %v3555_v3, %v7762_v49  ;;  %v3829_v54 = vadd.f32 %v3828_v26, %v7763_v52  ;;  %v7771_v53 = vld [vmem:[#allocation126_spill] sm:$0xff]  ;;  %v7773_v49 = vld [vmem:[#allocation128_spill] sm:$0xff] }
 0x38d   : > { %v4049_v39 = vadd.f32 %v6985_v13, %v3554_v21  ;;  %v4051_v62 = vadd.f32 %v6987_v2, %v3827_v29  ;;  %v3559_v41 = vpop.f32.mrf.mxu1  ;;  %v3832_v50 = vpop.f32.mrf.mxu0 }
 0x38e   : > { %v5359_v47 = vpack.c.bf16 %v4238_v44, %v4237_v9  ;;  %v5360_v56 = vpack.c.bf16 %v4240_v40, %v4239_v10  ;;  %v4050_v63 = vadd.f32 %v6991_v57, %v3556_v11  ;;  %v4052_v17 = vadd.f32 %v6993_v37, %v3829_v54  ;;  %v7772_v44 = vld [vmem:[#allocation127_spill] sm:$0xff] }
 0x38f   : > { %v4241_v34 = vmax.f32 %v4049_v39, 0.0  ;;  %v4243_v51 = vmax.f32 %v4051_v62, 0.0  ;;  %v3560_v61 = vadd.f32 %v3559_v41, %v7764_v32  ;;  %v3833_v4 = vadd.f32 %v3832_v50, %v7765_v22  ;;  %v3561_v20 = vpop.f32.mrf.mxu1  ;;  %v3834_v7 = vpop.f32.mrf.mxu0  ;;  %v7774_v41 = vld [vmem:[#allocation129_spill] sm:$0xff] }
 0x390   : > { %4929 = vst [vmem:[%s7009_s28 + $0x260] sm:$0xff] %v5359_v47  ;;  %4930 = vst [vmem:[%s7009_s28 + $0x268] sm:$0xff] %v5360_v56  ;;  %v4242_v1 = vmax.f32 %v4050_v63, 0.0  ;;  %v4244_v0 = vmax.f32 %v4052_v17, 0.0  ;;  %v3562_v23 = vadd.f32 %v3561_v20, %v7766_v46  ;;  %v3835_v35 = vadd.f32 %v3834_v7, %v7767_v25  ;;  %v7775_v47 = vld [vmem:[#allocation130_spill] sm:$0xff]  ;;  %v7777_v46 = vld [vmem:[#allocation132_spill] sm:$0xff] }
 0x391   : > { %v4053_v36 = vadd.f32 %v6985_v13, %v3560_v61  ;;  %v4055_v5 = vadd.f32 %v6987_v2, %v3833_v4  ;;  %v3563_v28 = vpop.f32.mrf.mxu1  ;;  %v3836_v6 = vpop.f32.mrf.mxu0 }
 0x392   : > { %v5361_v8 = vpack.c.bf16 %v4242_v1, %v4241_v34  ;;  %v5362_v43 = vpack.c.bf16 %v4244_v0, %v4243_v51  ;;  %v4054_v58 = vadd.f32 %v6991_v57, %v3562_v23  ;;  %v4056_v59 = vadd.f32 %v6993_v37, %v3835_v35  ;;  %v7776_v1 = vld [vmem:[#allocation131_spill] sm:$0xff] }
 0x393   : > { %v4245_v24 = vmax.f32 %v4053_v36, 0.0  ;;  %v4247_v18 = vmax.f32 %v4055_v5, 0.0  ;;  %v3564_v16 = vadd.f32 %v3563_v28, %v7768_v48  ;;  %v3837_v42 = vadd.f32 %v3836_v6, %v7769_v38  ;;  %v3565_v55 = vpop.f32.mrf.mxu1  ;;  %v3838_v31 = vpop.f32.mrf.mxu0  ;;  %v7778_v28 = vld [vmem:[#allocation133_spill] sm:$0xff] }
 0x394   : > { %4931 = vst [vmem:[%s7009_s28 + $0x270] sm:$0xff] %v5361_v8  ;;  %4932 = vst [vmem:[%s7009_s28 + $0x278] sm:$0xff] %v5362_v43  ;;  %v4246_v12 = vmax.f32 %v4054_v58, 0.0  ;;  %v4248_v60 = vmax.f32 %v4056_v59, 0.0  ;;  %v3566_v19 = vadd.f32 %v3565_v55, %v7770_v27  ;;  %v3839_v15 = vadd.f32 %v3838_v31, %v7771_v53  ;;  %v7779_v8 = vld [vmem:[#allocation134_spill] sm:$0xff]  ;;  %v7781_v27 = vld [vmem:[#allocation136_spill] sm:$0xff] }
 0x395   : > { %v4057_v33 = vadd.f32 %v6985_v13, %v3564_v16  ;;  %v4059_v30 = vadd.f32 %v6987_v2, %v3837_v42  ;;  %v3569_v9 = vpop.f32.mrf.mxu1  ;;  %v3842_v10 = vpop.f32.mrf.mxu0 }
 0x396   : > { %v5363_v45 = vpack.c.bf16 %v4246_v12, %v4245_v24  ;;  %v5364_v21 = vpack.c.bf16 %v4248_v60, %v4247_v18  ;;  %v4058_v14 = vadd.f32 %v6991_v57, %v3566_v19  ;;  %v4060_v29 = vadd.f32 %v6993_v37, %v3839_v15  ;;  %v7780_v12 = vld [vmem:[#allocation135_spill] sm:$0xff] }
 0x397   : > { %v4249_v3 = vmax.f32 %v4057_v33, 0.0  ;;  %v4251_v26 = vmax.f32 %v4059_v30, 0.0  ;;  %v3570_v40 = vadd.f32 %v3569_v9, %v7772_v44  ;;  %v3843_v11 = vadd.f32 %v3842_v10, %v7773_v49  ;;  %v3571_v52 = vpop.f32.mrf.mxu1  ;;  %v3844_v54 = vpop.f32.mrf.mxu0  ;;  %v7782_v9 = vld [vmem:[#allocation137_spill] sm:$0xff] }
 0x398   : > { %4933 = vst [vmem:[%s7009_s28 + $0x280] sm:$0xff] %v5363_v45  ;;  %4934 = vst [vmem:[%s7009_s28 + $0x288] sm:$0xff] %v5364_v21  ;;  %v4250_v39 = vmax.f32 %v4058_v14, 0.0  ;;  %v4252_v62 = vmax.f32 %v4060_v29, 0.0  ;;  %v3572_v50 = vadd.f32 %v3571_v52, %v7774_v41  ;;  %v3845_v56 = vadd.f32 %v3844_v54, %v7775_v47  ;;  %v7783_v45 = vld [vmem:[#allocation138_spill] sm:$0xff]  ;;  %v7785_v41 = vld [vmem:[#allocation140_spill] sm:$0xff] }
 0x399   : > { %v4061_v63 = vadd.f32 %v6985_v13, %v3570_v40  ;;  %v4063_v17 = vadd.f32 %v6987_v2, %v3843_v11  ;;  %v3573_v34 = vpop.f32.mrf.mxu1  ;;  %v3846_v51 = vpop.f32.mrf.mxu0 }
 0x39a   : > { %v5365_v32 = vpack.c.bf16 %v4250_v39, %v4249_v3  ;;  %v5366_v61 = vpack.c.bf16 %v4252_v62, %v4251_v26  ;;  %v4062_v22 = vadd.f32 %v6991_v57, %v3572_v50  ;;  %v4064_v4 = vadd.f32 %v6993_v37, %v3845_v56  ;;  %v7784_v39 = vld [vmem:[#allocation139_spill] sm:$0xff] }
 0x39b   : > { %v4253_v20 = vmax.f32 %v4061_v63, 0.0  ;;  %v4255_v7 = vmax.f32 %v4063_v17, 0.0  ;;  %v3574_v0 = vadd.f32 %v3573_v34, %v7776_v1  ;;  %v3847_v23 = vadd.f32 %v3846_v51, %v7777_v46  ;;  %v3575_v25 = vpop.f32.mrf.mxu1  ;;  %v3848_v35 = vpop.f32.mrf.mxu0  ;;  %v7786_v34 = vld [vmem:[#allocation141_spill] sm:$0xff] }
 0x39c   : > { %4935 = vst [vmem:[%s7009_s28 + $0x290] sm:$0xff] %v5365_v32  ;;  %4936 = vst [vmem:[%s7009_s28 + $0x298] sm:$0xff] %v5366_v61  ;;  %v4254_v36 = vmax.f32 %v4062_v22, 0.0  ;;  %v4256_v5 = vmax.f32 %v4064_v4, 0.0  ;;  %v3576_v6 = vadd.f32 %v3575_v25, %v7778_v28  ;;  %v3849_v43 = vadd.f32 %v3848_v35, %v7779_v8  ;;  %v7787_v32 = vld [vmem:[#allocation142_spill] sm:$0xff]  ;;  %v7789_v28 = vld [vmem:[#allocation144_spill] sm:$0xff] }
 0x39d   : > { %v4065_v58 = vadd.f32 %v6985_v13, %v3574_v0  ;;  %v4067_v59 = vadd.f32 %v6987_v2, %v3847_v23  ;;  %v3579_v24 = vpop.f32.mrf.mxu1  ;;  %v3852_v18 = vpop.f32.mrf.mxu0 }
 0x39e   : > { %v5367_v48 = vpack.c.bf16 %v4254_v36, %v4253_v20  ;;  %v5368_v16 = vpack.c.bf16 %v4256_v5, %v4255_v7  ;;  %v4066_v38 = vadd.f32 %v6991_v57, %v3576_v6  ;;  %v4068_v42 = vadd.f32 %v6993_v37, %v3849_v43  ;;  %v7788_v36 = vld [vmem:[#allocation143_spill] sm:$0xff] }
 0x39f   : > { %v4257_v55 = vmax.f32 %v4065_v58, 0.0  ;;  %v4259_v31 = vmax.f32 %v4067_v59, 0.0  ;;  %v3580_v60 = vadd.f32 %v3579_v24, %v7780_v12  ;;  %v3853_v19 = vadd.f32 %v3852_v18, %v7781_v27  ;;  %v3581_v53 = vpop.f32.mrf.mxu1  ;;  %v3854_v15 = vpop.f32.mrf.mxu0  ;;  %v7790_v24 = vld [vmem:[#allocation145_spill] sm:$0xff] }
 0x3a0   : > { %4937 = vst [vmem:[%s7009_s28 + $0x2a0] sm:$0xff] %v5367_v48  ;;  %4938 = vst [vmem:[%s7009_s28 + $0x2a8] sm:$0xff] %v5368_v16  ;;  %v4258_v33 = vmax.f32 %v4066_v38, 0.0  ;;  %v4260_v30 = vmax.f32 %v4068_v42, 0.0  ;;  %v3582_v10 = vadd.f32 %v3581_v53, %v7782_v9  ;;  %v3855_v21 = vadd.f32 %v3854_v15, %v7783_v45  ;;  %v7791_v48 = vld [vmem:[#allocation146_spill] sm:$0xff]  ;;  %v7793_v9 = vld [vmem:[#allocation148_spill] sm:$0xff] }
 0x3a1   : > { %v4069_v14 = vadd.f32 %v6985_v13, %v3580_v60  ;;  %v4071_v29 = vadd.f32 %v6987_v2, %v3853_v19  ;;  %v3583_v3 = vpop.f32.mrf.mxu1  ;;  %v3856_v26 = vpop.f32.mrf.mxu0 }
 0x3a2   : > { %v5369_v44 = vpack.c.bf16 %v4258_v33, %v4257_v55  ;;  %v5370_v40 = vpack.c.bf16 %v4260_v30, %v4259_v31  ;;  %v4070_v49 = vadd.f32 %v6991_v57, %v3582_v10  ;;  %v4072_v11 = vadd.f32 %v6993_v37, %v3855_v21  ;;  %v7792_v33 = vld [vmem:[#allocation147_spill] sm:$0xff] }
 0x3a3   : > { %v4261_v52 = vmax.f32 %v4069_v14, 0.0  ;;  %v4263_v54 = vmax.f32 %v4071_v29, 0.0  ;;  %v3584_v62 = vadd.f32 %v3583_v3, %v7784_v39  ;;  %v3857_v50 = vadd.f32 %v3856_v26, %v7785_v41  ;;  %v3585_v47 = vpop.f32.mrf.mxu1  ;;  %v3858_v56 = vpop.f32.mrf.mxu0  ;;  %v7794_v3 = vld [vmem:[#allocation149_spill] sm:$0xff] }
 0x3a4   : > { %4939 = vst [vmem:[%s7009_s28 + $0x2b0] sm:$0xff] %v5369_v44  ;;  %4940 = vst [vmem:[%s7009_s28 + $0x2b8] sm:$0xff] %v5370_v40  ;;  %v4262_v63 = vmax.f32 %v4070_v49, 0.0  ;;  %v4264_v17 = vmax.f32 %v4072_v11, 0.0  ;;  %v3586_v51 = vadd.f32 %v3585_v47, %v7786_v34  ;;  %v3859_v61 = vadd.f32 %v3858_v56, %v7787_v32  ;;  %v7795_v44 = vld [vmem:[#allocation150_spill] sm:$0xff] }
 0x3a5   : > { %v4073_v22 = vadd.f32 %v6985_v13, %v3584_v62  ;;  %v4075_v4 = vadd.f32 %v6987_v2, %v3857_v50  ;;  %v3589_v20 = vpop.f32.mrf.mxu1  ;;  %v3862_v7 = vpop.f32.mrf.mxu0 }
 0x3a6   : > { %v5371_v1 = vpack.c.bf16 %v4262_v63, %v4261_v52  ;;  %v5372_v0 = vpack.c.bf16 %v4264_v17, %v4263_v54  ;;  %v4074_v46 = vadd.f32 %v6991_v57, %v3586_v51  ;;  %v4076_v23 = vadd.f32 %v6993_v37, %v3859_v61 }
 0x3a7   : > { %v4265_v25 = vmax.f32 %v4073_v22, 0.0  ;;  %v4267_v35 = vmax.f32 %v4075_v4, 0.0  ;;  %v3590_v5 = vadd.f32 %v3589_v20, %v7788_v36  ;;  %v3863_v6 = vadd.f32 %v3862_v7, %v7789_v28  ;;  %v3591_v8 = vpop.f32.mrf.mxu1  ;;  %v3864_v43 = vpop.f32.mrf.mxu0 }
 0x3a8   : > { %4941 = vst [vmem:[%s7009_s28 + $0x2c0] sm:$0xff] %v5371_v1  ;;  %4942 = vst [vmem:[%s7009_s28 + $0x2c8] sm:$0xff] %v5372_v0  ;;  %v4266_v58 = vmax.f32 %v4074_v46, 0.0  ;;  %v4268_v59 = vmax.f32 %v4076_v23, 0.0  ;;  %v3592_v18 = vadd.f32 %v3591_v8, %v7790_v24  ;;  %v3865_v16 = vadd.f32 %v3864_v43, %v7791_v48 }
 0x3a9   : > { %v4077_v38 = vadd.f32 %v6985_v13, %v3590_v5  ;;  %v4079_v42 = vadd.f32 %v6987_v2, %v3863_v6  ;;  %v3593_v55 = vpop.f32.mrf.mxu1  ;;  %v3866_v31 = vpop.f32.mrf.mxu0 }
 0x3aa   : > { %v5373_v12 = vpack.c.bf16 %v4266_v58, %v4265_v25  ;;  %v5374_v60 = vpack.c.bf16 %v4268_v59, %v4267_v35  ;;  %v4078_v27 = vadd.f32 %v6991_v57, %v3592_v18  ;;  %v4080_v19 = vadd.f32 %v6993_v37, %v3865_v16 }
 0x3ab   : > { %v4269_v53 = vmax.f32 %v4077_v38, 0.0  ;;  %v4271_v15 = vmax.f32 %v4079_v42, 0.0  ;;  %v3594_v30 = vadd.f32 %v3593_v55, %v7792_v33  ;;  %v3867_v10 = vadd.f32 %v3866_v31, %v7793_v9  ;;  %v3595_v45 = vpop.f32.mrf.mxu1  ;;  %v3868_v21 = vpop.f32.mrf.mxu0 }
 0x3ac   : > { %4943 = vst [vmem:[%s7009_s28 + $0x2d0] sm:$0xff] %v5373_v12  ;;  %4944 = vst [vmem:[%s7009_s28 + $0x2d8] sm:$0xff] %v5374_v60  ;;  %v4270_v14 = vmax.f32 %v4078_v27, 0.0  ;;  %v4272_v29 = vmax.f32 %v4080_v19, 0.0  ;;  %v3596_v26 = vadd.f32 %v3595_v45, %v7794_v3  ;;  %v3869_v40 = vadd.f32 %v3868_v21, %v7795_v44 }
 0x3ad   : > { %v4081_v49 = vadd.f32 %v6985_v13, %v3594_v30  ;;  %v4083_v11 = vadd.f32 %v6987_v2, %v3867_v10 }
 0x3ae   : > { %v5375_v52 = vpack.c.bf16 %v4270_v14, %v4269_v53  ;;  %v5376_v54 = vpack.c.bf16 %v4272_v29, %v4271_v15  ;;  %v4082_v39 = vadd.f32 %v6991_v57, %v3596_v26  ;;  %v4084_v62 = vadd.f32 %v6993_v37, %v3869_v40 }
 0x3af   : > { %v4273_v41 = vmax.f32 %v4081_v49, 0.0  ;;  %v4275_v50 = vmax.f32 %v4083_v11, 0.0 }
 0x3b0   : > { %4945 = vst [vmem:[%s7009_s28 + $0x2e0] sm:$0xff] %v5375_v52  ;;  %4946 = vst [vmem:[%s7009_s28 + $0x2e8] sm:$0xff] %v5376_v54  ;;  %v4274_v47 = vmax.f32 %v4082_v39, 0.0  ;;  %v4276_v56 = vmax.f32 %v4084_v62, 0.0 }
 0x3b2   : > { %v5377_v63 = vpack.c.bf16 %v4274_v47, %v4273_v41  ;;  %v5378_v17 = vpack.c.bf16 %v4276_v56, %v4275_v50 }
 0x3b4   : > { %4947 = vst [vmem:[%s7009_s28 + $0x2f0] sm:$0xff] %v5377_v63  ;;  %4948 = vst [vmem:[%s7009_s28 + $0x2f8] sm:$0xff] %v5378_v17 }
 0x3b5 PF: > { %s16_s23 = sadd.s32 1, %s5629_s23   ;;  %s7796_s21 = smov %s5625_s22 }
 0x3b6   : > { %p13_p6 = scmp.ge.s32.totalorder %s16_s23, 4   ;;  %s7797_s22 = smov %s7799_s24 }
 0x3b8   :  { %15 = sbr.rel (!%p13_p6) target bundleno = 2 (0x2), region = 87 }

// kernel: graphsage_forward.3
= control target key start
LH: loop header
LB: loop body
LE: loop exit
PB: predicated region body
PF: predicated region fallthrough
CT: control target
= control target key end

     0   :  { %s7998_s21 = smov 0   ;;  %s8000_s22 = smov 0   ;;  %s11944_s0 = inlined_call_operand.vmem [shape: s8[768,768], index: 0, kind: input, shape index: {}]   ;;  %s11945_s1 = inlined_call_operand.vmem [shape: f32[768,1], index: 1, kind: input, shape index: {}]   ;;  %s11946_s2 = inlined_call_operand.vmem [shape: bf16[768,512], index: 2, kind: input, shape index: {}]   ;;  %s11947_s3 = inlined_call_operand.vmem [shape: bf16[512,128], index: 3, kind: input, shape index: {}]   ;;  %s11948_s4 = inlined_call_operand.vmem [shape: bf16[512,128], index: 4, kind: input, shape index: {}]   ;;  %s11949_s5 = inlined_call_operand.vmem [shape: f32[1,128], index: 5, kind: input, shape index: {}]   ;;  %s11950_s6 = inlined_call_operand.vmem [shape: f32[768,128], index: 6, kind: output, shape index: {}]  }
   0x1   :  { %s8002_s23 = smov 0  }
   0x2 LB: > { %s28_s24 = sadd.s32 1, %s7956_s22  ;;  %p7052_p0 = scmp.ge.s32.totalorder %s7960_s23, 1  ;;  %s7960_s23 = sphi %s8002_s23, %s16_s23   ;;  %s7956_s22 = sphi %s8000_s22, %s13275_s22   ;;  %s7952_s21 = sphi %s7998_s21, %s13274_s21  }
   0x3   : > { %p30_p1 = scmp.ge.s32.totalorder %s28_s24, 2  ;;  %p244_p2 = scmp.lt.s32.totalorder %s7960_s23, 3 }
   0x5   : > { %s13277_s24 = smov (%p30_p1, %s28_s24), 0  ;;  %p245_p3 = pnand %p7052_p0, %p244_p2 }
   0x7   : > { %248 = sbr.rel (%p245_p3) target bundleno = 1236 (0x4d4), region = 44 }
   0xc   : > { %v7442_v0 = vld [vmem:[%s11946_s2 + $0xe4] ss:$16 sps:$4 sm:$0xff]   ;;  %v7446_v2 = vld [vmem:[%s11946_s2 + $0xe0] ss:$16 sps:$4 sm:$0xff]   ;;  %s284_s17 = smul.u32 12, %s7952_s21 }
   0xd   : > { %v7444_v1 = vld [vmem:[%s11946_s2 + $0x2e4] ss:$16 sps:$4 sm:$0xff]   ;;  %2071 = vmatprep.subr.bf16.mxu0 %v7442_v0  ;;  %v7447_v3 = vld [vmem:[%s11946_s2 + $0x2e0] ss:$16 sps:$4 sm:$0xff]   ;;  %s296_s15 = smul.u32 48, %s7952_s21 }
   0xe   : > { %2344 = vmatprep.subr.bf16.mxu1 %v7444_v1  ;;  %v7448_v4 = vld [vmem:[%s11946_s2 + $0xc4] ss:$16 sps:$4 sm:$0xff]   ;;  %2072 = vmatpush1.bf16.msra.mxu0 %v7446_v2  ;;  %v7452_v6 = vld [vmem:[%s11946_s2 + $0xc0] ss:$16 sps:$4 sm:$0xff]   ;;  %p286_p4 = scmp.lt.s32.totalorder %s284_s17, 23 }
   0xf   : > { %2345 = vmatpush1.bf16.msra.mxu1 %v7447_v3  ;;  %v7450_v5 = vld [vmem:[%s11946_s2 + $0x2c4] ss:$16 sps:$4 sm:$0xff]   ;;  %2073 = vmatprep.subr.bf16.mxu0 %v7448_v4  ;;  %v7453_v7 = vld [vmem:[%s11946_s2 + $0x2c0] ss:$16 sps:$4 sm:$0xff]   ;;  %p297_p5 = scmp.lt.s32.totalorder %s296_s15, 95 }
  0x10   : > { %2346 = vmatprep.subr.bf16.mxu1 %v7450_v5  ;;  %v7454_v8 = vld [vmem:[%s11946_s2 + $0xa4] ss:$16 sps:$4 sm:$0xff]   ;;  %v7458_v10 = vld [vmem:[%s11946_s2 + $0xa0] ss:$16 sps:$4 sm:$0xff]   ;;  %s13279_s17 = smov (!%p286_p4, %s284_s17), 23 }
  0x11   : > { %v7456_v9 = vld [vmem:[%s11946_s2 + $0x2a4] ss:$16 sps:$4 sm:$0xff]   ;;  %v7459_v11 = vld [vmem:[%s11946_s2 + $0x2a0] ss:$16 sps:$4 sm:$0xff]   ;;  %s7414_s25 = smul.u32 48, %s13279_s17  ;;  %s13281_s15 = smov (!%p297_p5, %s296_s15), 95 }
  0x12   : > { %2074 = vmatpush1.bf16.msra.mxu0 %v7452_v6  ;;  %v7460_v12 = vld [vmem:[%s11946_s2 + $0x84] ss:$16 sps:$4 sm:$0xff]   ;;  %v7464_v14 = vld [vmem:[%s11946_s2 + $0x80] ss:$16 sps:$4 sm:$0xff]   ;;  %s7054_s16 = sshll.u32 %s13281_s15, 3 }
  0x13   : > { %2347 = vmatpush1.bf16.msra.mxu1 %v7453_v7  ;;  %2075 = vmatprep.subr.bf16.mxu0 %v7454_v8  ;;  %v7462_v13 = vld [vmem:[%s11946_s2 + $0x284] ss:$16 sps:$4 sm:$0xff]   ;;  %v7465_v15 = vld [vmem:[%s11946_s2 + $0x280] ss:$16 sps:$4 sm:$0xff]   ;;  %s8154_s13 = scalar_lea.vmem %s11944_s0, %s7414_s25  ;;  %v7543_v7 = vld [vmem:[%s11946_s2 + $0xec] ss:$16 sps:$4 sm:$0xff]   ;;  %s8751_s20 = scalar_lea.vmem %s11945_s1, %s7054_s16 }
  0x14   : > { %2348 = vmatprep.subr.bf16.mxu1 %v7456_v9  ;;  %v7466_v16 = vld [vmem:[%s11946_s2 + $0x64] ss:$16 sps:$4 sm:$0xff]   ;;  %v7470_v18 = vld [vmem:[%s11946_s2 + $0x60] ss:$16 sps:$4 sm:$0xff]   ;;  %v8163_v46 = vld [vmem:[%s8154_s13 + $0x8] sm:$0xff]  ;;  %s4864_s25 = smul.u32 384, %s7952_s21  ;;  %s11790_s28 = scalar_lea.vmem %s11950_s6, %s7054_s16 }
  0x15   : > { %v7468_v17 = vld [vmem:[%s11946_s2 + $0x264] ss:$16 sps:$4 sm:$0xff]   ;;  %v7471_v19 = vld [vmem:[%s11946_s2 + $0x260] ss:$16 sps:$4 sm:$0xff]   ;;  %v578_v49 = vunpack.c.l.s8.bf16 %v8163_v46  ;;  %v8173_v50 = vld [vmem:[%s8154_s13 + $0x18] sm:$0xff] }
  0x16   : > { %2076 = vmatpush1.bf16.msra.mxu0 %v7458_v10  ;;  %v7472_v20 = vld [vmem:[%s11946_s2 + $0x44] ss:$16 sps:$4 sm:$0xff]   ;;  %v7476_v22 = vld [vmem:[%s11946_s2 + $0x40] ss:$16 sps:$4 sm:$0xff]   ;;  %v11977_v52 = vunpack.c.l.s8.bf16 %v8173_v50  ;;  %s4865_s29 = sshra.s32 %s4864_s25, 3 }
  0x17   : > { %2349 = vmatpush1.bf16.msra.mxu1 %v7459_v11  ;;  %2077 = vmatprep.subr.bf16.mxu0 %v7460_v12  ;;  %v7474_v21 = vld [vmem:[%s11946_s2 + $0x244] ss:$16 sps:$4 sm:$0xff]   ;;  %v7477_v23 = vld [vmem:[%s11946_s2 + $0x240] ss:$16 sps:$4 sm:$0xff]   ;;  %v7541_v11 = vld [vmem:[%s11946_s2 + $0xe8] ss:$16 sps:$4 sm:$0xff]   ;;  %v12047_v12 = vunpack.c.h.s8.bf16 %v8163_v46 }
  0x18   : > { %2350 = vmatprep.subr.bf16.mxu1 %v7462_v13  ;;  %v7478_v24 = vld [vmem:[%s11946_s2 + $0x24] ss:$16 sps:$4 sm:$0xff]   ;;  %v7482_v26 = vld [vmem:[%s11946_s2 + $0x20] ss:$16 sps:$4 sm:$0xff]   ;;  %2103 = vmatprep.mubr.bf16.mxu0 %v578_v49  ;;  %v11973_v13 = vunpack.c.h.s8.bf16 %v8173_v50  ;;  %s7413_s30 = sshll.u32 %s4865_s29, 4 }
  0x19   : > { %v7480_v25 = vld [vmem:[%s11946_s2 + $0x224] ss:$16 sps:$4 sm:$0xff]   ;;  %v7483_v27 = vld [vmem:[%s11946_s2 + $0x220] ss:$16 sps:$4 sm:$0xff]   ;;  %2376 = vmatprep.mubr.bf16.mxu1 %v11977_v52  ;;  %s10033_s9 = scalar_lea.vmem %s11946_s2, %s7413_s30 }
  0x1a   : > { %2078 = vmatpush1.bf16.msra.mxu0 %v7464_v14  ;;  %v7484_v28 = vld [vmem:[%s11946_s2 + $0x4] ss:$16 sps:$4 sm:$0xff]   ;;  %v7488_v30 = vld [vmem:[%s11946_s2] ss:$16 sps:$4 sm:$0xff]  }
  0x1b   : > { %2351 = vmatpush1.bf16.msra.mxu1 %v7465_v15  ;;  %2079 = vmatprep.subr.bf16.mxu0 %v7466_v16  ;;  %v7486_v29 = vld [vmem:[%s11946_s2 + $0x204] ss:$16 sps:$4 sm:$0xff]   ;;  %v7489_v31 = vld [vmem:[%s11946_s2 + $0x200] ss:$16 sps:$4 sm:$0xff]   ;;  %v7549_v15 = vld [vmem:[%s11946_s2 + $0xcc] ss:$16 sps:$4 sm:$0xff]  }
  0x1c   : > { %2352 = vmatprep.subr.bf16.mxu1 %v7468_v17  ;;  %v7490_v32 = vld [vmem:[%s11946_s2 + $0x1e4] ss:$16 sps:$4 sm:$0xff]   ;;  %v7494_v34 = vld [vmem:[%s11946_s2 + $0x1e0] ss:$16 sps:$4 sm:$0xff]   ;;  %v7547_v17 = vld [vmem:[%s11946_s2 + $0xc8] ss:$16 sps:$4 sm:$0xff]  }
  0x1d   : > { %v7492_v33 = vld [vmem:[%s11946_s2 + $0x3e4] ss:$16 sps:$4 sm:$0xff]   ;;  %v7495_v35 = vld [vmem:[%s11946_s2 + $0x3e0] ss:$16 sps:$4 sm:$0xff]  }
  0x1e   : > { %2080 = vmatpush1.bf16.msra.mxu0 %v7470_v18  ;;  %v7496_v36 = vld [vmem:[%s11946_s2 + $0x1c4] ss:$16 sps:$4 sm:$0xff]   ;;  %v7500_v38 = vld [vmem:[%s11946_s2 + $0x1c0] ss:$16 sps:$4 sm:$0xff]   ;;  %v8267_v18 = vld [vmem:[%s8154_s13 + $0x38] sm:$0xff] }
  0x1f   : > { %2353 = vmatpush1.bf16.msra.mxu1 %v7471_v19  ;;  %2081 = vmatprep.subr.bf16.mxu0 %v7472_v20  ;;  %v7498_v37 = vld [vmem:[%s11946_s2 + $0x3c4] ss:$16 sps:$4 sm:$0xff]   ;;  %v7501_v39 = vld [vmem:[%s11946_s2 + $0x3c0] ss:$16 sps:$4 sm:$0xff]   ;;  %v8270_v19 = vld [vmem:[%s8154_s13 + $0x48] sm:$0xff] }
  0x20   : > { %2354 = vmatprep.subr.bf16.mxu1 %v7474_v21  ;;  %v7502_v40 = vld [vmem:[%s11946_s2 + $0x1a4] ss:$16 sps:$4 sm:$0xff]   ;;  %v7506_v42 = vld [vmem:[%s11946_s2 + $0x1a0] ss:$16 sps:$4 sm:$0xff]   ;;  %v7555_v21 = vld [vmem:[%s11946_s2 + $0xac] ss:$16 sps:$4 sm:$0xff]  }
  0x21   : > { %v7504_v41 = vld [vmem:[%s11946_s2 + $0x3a4] ss:$16 sps:$4 sm:$0xff]   ;;  %v7507_v43 = vld [vmem:[%s11946_s2 + $0x3a0] ss:$16 sps:$4 sm:$0xff]  }
  0x22   : > { %2082 = vmatpush1.bf16.msra.mxu0 %v7476_v22  ;;  %v7508_v44 = vld [vmem:[%s11946_s2 + $0x184] ss:$16 sps:$4 sm:$0xff]   ;;  %v7512_v47 = vld [vmem:[%s11946_s2 + $0x180] ss:$16 sps:$4 sm:$0xff]  }
  0x23   : > { %2355 = vmatpush1.bf16.msra.mxu1 %v7477_v23  ;;  %2083 = vmatprep.subr.bf16.mxu0 %v7478_v24  ;;  %v7510_v45 = vld [vmem:[%s11946_s2 + $0x384] ss:$16 sps:$4 sm:$0xff]   ;;  %v7513_v48 = vld [vmem:[%s11946_s2 + $0x380] ss:$16 sps:$4 sm:$0xff]   ;;  %v12045_v24 = vunpack.c.l.s8.bf16 %v8267_v18 }
  0x24   : > { %2356 = vmatprep.subr.bf16.mxu1 %v7480_v25  ;;  %v7514_v51 = vld [vmem:[%s11946_s2 + $0x164] ss:$16 sps:$4 sm:$0xff]   ;;  %v7518_v54 = vld [vmem:[%s11946_s2 + $0x160] ss:$16 sps:$4 sm:$0xff]   ;;  %v11971_v25 = vunpack.c.l.s8.bf16 %v8270_v19 }
  0x25   : > { %v7516_v53 = vld [vmem:[%s11946_s2 + $0x364] ss:$16 sps:$4 sm:$0xff]   ;;  %v7519_v55 = vld [vmem:[%s11946_s2 + $0x360] ss:$16 sps:$4 sm:$0xff]  }
  0x26   : > { %2084 = vmatpush1.bf16.msra.mxu0 %v7482_v26  ;;  %v7520_v56 = vld [vmem:[%s11946_s2 + $0x144] ss:$16 sps:$4 sm:$0xff]   ;;  %v7524_v58 = vld [vmem:[%s11946_s2 + $0x140] ss:$16 sps:$4 sm:$0xff]  }
  0x27   : > { %2357 = vmatpush1.bf16.msra.mxu1 %v7483_v27  ;;  %2085 = vmatprep.subr.bf16.mxu0 %v7484_v28  ;;  %v7522_v57 = vld [vmem:[%s11946_s2 + $0x344] ss:$16 sps:$4 sm:$0xff]   ;;  %v7525_v59 = vld [vmem:[%s11946_s2 + $0x340] ss:$16 sps:$4 sm:$0xff]   ;;  %v7553_v27 = vld [vmem:[%s11946_s2 + $0xa8] ss:$16 sps:$4 sm:$0xff]  }
  0x28   : > { %2358 = vmatprep.subr.bf16.mxu1 %v7486_v29  ;;  %v7526_v60 = vld [vmem:[%s11946_s2 + $0x124] ss:$16 sps:$4 sm:$0xff]   ;;  %v7530_v62 = vld [vmem:[%s11946_s2 + $0x120] ss:$16 sps:$4 sm:$0xff]   ;;  %v7561_v29 = vld [vmem:[%s11946_s2 + $0x8c] ss:$16 sps:$4 sm:$0xff]  }
  0x29   : > { %v7528_v61 = vld [vmem:[%s11946_s2 + $0x324] ss:$16 sps:$4 sm:$0xff]   ;;  %v7531_v63 = vld [vmem:[%s11946_s2 + $0x320] ss:$16 sps:$4 sm:$0xff]  }
  0x2a   : > { %2086 = vmatpush1.bf16.msra.mxu0 %v7488_v30  ;;  %v7532_v0 = vld [vmem:[%s11946_s2 + $0x104] ss:$16 sps:$4 sm:$0xff]   ;;  %v7536_v2 = vld [vmem:[%s11946_s2 + $0x100] ss:$16 sps:$4 sm:$0xff]  }
  0x2b   : > { %2359 = vmatpush1.bf16.msra.mxu1 %v7489_v31  ;;  %2087 = vmatprep.subr.bf16.mxu0 %v7490_v32  ;;  %v7534_v1 = vld [vmem:[%s11946_s2 + $0x304] ss:$16 sps:$4 sm:$0xff]   ;;  %v7537_v3 = vld [vmem:[%s11946_s2 + $0x300] ss:$16 sps:$4 sm:$0xff]  }
  0x2c   : > { %2360 = vmatprep.subr.bf16.mxu1 %v7492_v33  ;;  %v8229_v4 = vld [vmem:[%s8154_s13] sm:$0xff]  ;;  %v8232_v5 = vld [vmem:[%s8154_s13 + $0x10] sm:$0xff]  ;;  %v7559_v33 = vld [vmem:[%s11946_s2 + $0x88] ss:$16 sps:$4 sm:$0xff]  }
  0x2d   : > { %v7540_v6 = vld [vmem:[%s11946_s2 + $0x4e4] ss:$16 sps:$4 sm:$0xff]   ;;  %v577_v8 = vunpack.c.l.s8.bf16 %v8229_v4  ;;  %v11974_v9 = vunpack.c.l.s8.bf16 %v8232_v5  ;;  %v7538_v10 = vld [vmem:[%s11946_s2 + $0x4e0] ss:$16 sps:$4 sm:$0xff]   ;;  %v12046_v22 = vunpack.c.h.s8.bf16 %v8229_v4  ;;  %v11972_v23 = vunpack.c.h.s8.bf16 %v8232_v5 }
  0x2e   : > { %2088 = vmatpush2.bf16.msra.mxu0 %v7494_v34  ;;  %v7546_v14 = vld [vmem:[%s11946_s2 + $0x4c4] ss:$16 sps:$4 sm:$0xff]   ;;  %v7544_v16 = vld [vmem:[%s11946_s2 + $0x4c0] ss:$16 sps:$4 sm:$0xff]  }
  0x2f   : > { %2361 = vmatpush2.bf16.msra.mxu1 %v7495_v35  ;;  %2089 = vmatprep.subr.bf16.mxu0 %v7496_v36  ;;  %v7552_v20 = vld [vmem:[%s11946_s2 + $0x4a4] ss:$16 sps:$4 sm:$0xff]   ;;  %v7550_v26 = vld [vmem:[%s11946_s2 + $0x4a0] ss:$16 sps:$4 sm:$0xff]   ;;  %v7567_v35 = vld [vmem:[%s11946_s2 + $0x6c] ss:$16 sps:$4 sm:$0xff]  }
  0x30   : > { %2362 = vmatprep.subr.bf16.mxu1 %v7498_v37  ;;  %v7558_v28 = vld [vmem:[%s11946_s2 + $0x484] ss:$16 sps:$4 sm:$0xff]   ;;  %v7556_v32 = vld [vmem:[%s11946_s2 + $0x480] ss:$16 sps:$4 sm:$0xff]  }
  0x31   : > { %v8303_v30 = vld [vmem:[%s8154_s13 + $0x30] sm:$0xff]  ;;  %v8306_v31 = vld [vmem:[%s8154_s13 + $0x40] sm:$0xff] }
  0x32   : > { %2090 = vmatpush2.bf16.msra.mxu0 %v7500_v38  ;;  %v7564_v34 = vld [vmem:[%s11946_s2 + $0x464] ss:$16 sps:$4 sm:$0xff]   ;;  %v12044_v36 = vunpack.c.l.s8.bf16 %v8303_v30  ;;  %v11968_v37 = vunpack.c.l.s8.bf16 %v8306_v31  ;;  %v12043_v38 = vunpack.c.h.s8.bf16 %v8267_v18 }
  0x33   : > { %2363 = vmatpush2.bf16.msra.mxu1 %v7501_v39  ;;  %2091 = vmatprep.subr.bf16.mxu0 %v7502_v40  ;;  %v11967_v39 = vunpack.c.h.s8.bf16 %v8270_v19  ;;  %v7562_v40 = vld [vmem:[%s11946_s2 + $0x460] ss:$16 sps:$4 sm:$0xff]  }
  0x34   : > { %2364 = vmatprep.subr.bf16.mxu1 %v7504_v41  ;;  %v7565_v41 = vld [vmem:[%s11946_s2 + $0x68] ss:$16 sps:$4 sm:$0xff]  }
  0x36   : > { %2092 = vmatpush2.bf16.msra.mxu0 %v7506_v42  ;;  %v7570_v42 = vld [vmem:[%s11946_s2 + $0x444] ss:$16 sps:$4 sm:$0xff]  }
  0x37   : > { %2365 = vmatpush2.bf16.msra.mxu1 %v7507_v43  ;;  %2093 = vmatprep.subr.bf16.mxu0 %v7508_v44  ;;  %v7573_v43 = vld [vmem:[%s11946_s2 + $0x4c] ss:$16 sps:$4 sm:$0xff]  }
  0x38   : > { %2366 = vmatprep.subr.bf16.mxu1 %v7510_v45  ;;  %v8345_v44 = vld [vmem:[%s8154_s13 + $0x68] sm:$0xff]  ;;  %v8348_v45 = vld [vmem:[%s8154_s13 + $0x78] sm:$0xff] }
  0x3a   : > { %2094 = vmatpush2.bf16.msra.mxu0 %v7512_v47  ;;  %v7568_v47 = vld [vmem:[%s11946_s2 + $0x440] ss:$16 sps:$4 sm:$0xff]  }
  0x3b   : > { %2367 = vmatpush2.bf16.msra.mxu1 %v7513_v48  ;;  %2095 = vmatprep.subr.bf16.mxu0 %v7514_v51  ;;  %v7571_v48 = vld [vmem:[%s11946_s2 + $0x48] ss:$16 sps:$4 sm:$0xff]   ;;  %v7576_v51 = vld [vmem:[%s11946_s2 + $0x424] ss:$16 sps:$4 sm:$0xff]  }
  0x3c   : > { %2368 = vmatprep.subr.bf16.mxu1 %v7516_v53  ;;  %v7579_v53 = vld [vmem:[%s11946_s2 + $0x2c] ss:$16 sps:$4 sm:$0xff]  }
  0x3e   : > { %2096 = vmatpush2.bf16.msra.mxu0 %v7518_v54  ;;  %v12036_v54 = vunpack.c.h.s8.bf16 %v8303_v30 }
  0x3f   : > { %2369 = vmatpush2.bf16.msra.mxu1 %v7519_v55  ;;  %2097 = vmatprep.subr.bf16.mxu0 %v7520_v56  ;;  %v11966_v55 = vunpack.c.h.s8.bf16 %v8306_v31  ;;  %v12035_v56 = vunpack.c.l.s8.bf16 %v8345_v44 }
  0x40   : > { %2370 = vmatprep.subr.bf16.mxu1 %v7522_v57  ;;  %v11965_v57 = vunpack.c.l.s8.bf16 %v8348_v45 }
  0x42   : > { %2098 = vmatpush2.bf16.msra.mxu0 %v7524_v58  ;;  %v7574_v58 = vld [vmem:[%s11946_s2 + $0x420] ss:$16 sps:$4 sm:$0xff]  }
  0x43   : > { %2371 = vmatpush2.bf16.msra.mxu1 %v7525_v59  ;;  %2099 = vmatprep.subr.bf16.mxu0 %v7526_v60  ;;  %v7577_v59 = vld [vmem:[%s11946_s2 + $0x28] ss:$16 sps:$4 sm:$0xff]   ;;  %v7582_v60 = vld [vmem:[%s11946_s2 + $0x404] ss:$16 sps:$4 sm:$0xff]  }
  0x44   : > { %2372 = vmatprep.subr.bf16.mxu1 %v7528_v61  ;;  %v7585_v61 = vld [vmem:[%s11946_s2 + $0xc] ss:$16 sps:$4 sm:$0xff]  }
  0x46   : > { %2100 = vmatpush2.bf16.msra.mxu0 %v7530_v62  ;;  %v8387_v62 = vld [vmem:[%s8154_s13 + $0x60] sm:$0xff] }
  0x47   : > { %2373 = vmatpush2.bf16.msra.mxu1 %v7531_v63  ;;  %2101 = vmatprep.subr.bf16.mxu0 %v7532_v0  ;;  %v8394_v63 = vld [vmem:[%s8154_s13 + $0x70] sm:$0xff] }
  0x48   : > { %2374 = vmatprep.subr.bf16.mxu1 %v7534_v1  ;;  %v7580_v0 = vld [vmem:[%s11946_s2 + $0x400] ss:$16 sps:$4 sm:$0xff]   ;;  %v7583_v1 = vld [vmem:[%s11946_s2 + $0x8] ss:$16 sps:$4 sm:$0xff]  }
  0x4a   : > { %2102 = vmatpush2.bf16.msra.mxu0 %v7536_v2  ;;  %v7588_v2 = vld [vmem:[%s11946_s2 + $0x5e4] ss:$16 sps:$4 sm:$0xff]  }
  0x4b   : > { %2375 = vmatpush2.bf16.msra.mxu1 %v7537_v3  ;;  %2617 = vmatprep.subr.bf16.mxu0 %v7540_v6  ;;  %v7591_v3 = vld [vmem:[%s11946_s2 + $0x1ec] ss:$16 sps:$4 sm:$0xff]   ;;  %v12032_v6 = vunpack.c.l.s8.bf16 %v8387_v62 }
  0x4c   : > { %2890 = vmatprep.subr.bf16.mxu1 %v7543_v7  ;;  %v11964_v7 = vunpack.c.l.s8.bf16 %v8394_v63 }
  0x4d   : > { %2104 = vmatmul.mubr.bf16.vlgmr.msra.gmra.mxu0 %v577_v8 }
  0x4e   : > { %2377 = vmatmul.mubr.bf16.vlgmr.msra.gmra.mxu1 %v11974_v9  ;;  %2618 = vmatpush1.bf16.msra.mxu0 %v7538_v10  ;;  %v7586_v10 = vld [vmem:[%s11946_s2 + $0x5e0] ss:$16 sps:$4 sm:$0xff]  }
  0x4f   : > { %2891 = vmatpush1.bf16.msra.mxu1 %v7541_v11  ;;  %2113 = vmatprep.mubr.bf16.mxu0 %v12047_v12  ;;  %v7589_v11 = vld [vmem:[%s11946_s2 + $0x1e8] ss:$16 sps:$4 sm:$0xff]  }
  0x50   : > { %2386 = vmatprep.mubr.bf16.mxu1 %v11973_v13  ;;  %2619 = vmatprep.subr.bf16.mxu0 %v7546_v14  ;;  %v12028_v14 = vunpack.c.h.s8.bf16 %v8345_v44 }
  0x51   : > { %2892 = vmatprep.subr.bf16.mxu1 %v7549_v15  ;;  %v11961_v15 = vunpack.c.h.s8.bf16 %v8348_v45 }
  0x52   : > { %2620 = vmatpush1.bf16.msra.mxu0 %v7544_v16  ;;  %v7594_v16 = vld [vmem:[%s11946_s2 + $0x5c4] ss:$16 sps:$4 sm:$0xff]  }
  0x53   : > { %2893 = vmatpush1.bf16.msra.mxu1 %v7547_v17  ;;  %2621 = vmatprep.subr.bf16.mxu0 %v7552_v20  ;;  %v7597_v17 = vld [vmem:[%s11946_s2 + $0x1cc] ss:$16 sps:$4 sm:$0xff]  }
  0x54   : > { %2894 = vmatprep.subr.bf16.mxu1 %v7555_v21  ;;  %v8429_v20 = vld [vmem:[%s8154_s13 + $0x98] sm:$0xff]  ;;  %v8432_v21 = vld [vmem:[%s8154_s13 + $0xa8] sm:$0xff] }
  0x55   : > { %2114 = vmatmul.mubr.bf16.gmra.mxu0 %v12046_v22  ;;  %12336 = vst [vmem:[#allocation3_spill] sm:$0xff] %v8432_v21  ;;  %v8912_v22 = vld [vmem:[%s8154_s13 + $0x58] sm:$0xff] }
  0x56   : > { %2387 = vmatmul.mubr.bf16.gmra.mxu1 %v11972_v23  ;;  %2123 = vmatprep.mubr.bf16.mxu0 %v12045_v24  ;;  %v7640_v24 = vld [vmem:[%s11946_s2 + $0x2c8] ss:$16 sps:$4 sm:$0xff]  }
  0x57   : > { %2396 = vmatprep.mubr.bf16.mxu1 %v11971_v25  ;;  %2622 = vmatpush1.bf16.msra.mxu0 %v7550_v26  ;;  %v7592_v26 = vld [vmem:[%s11946_s2 + $0x5c0] ss:$16 sps:$4 sm:$0xff]  }
  0x58   : > { %2895 = vmatpush1.bf16.msra.mxu1 %v7553_v27  ;;  %2623 = vmatprep.subr.bf16.mxu0 %v7558_v28  ;;  %v7595_v27 = vld [vmem:[%s11946_s2 + $0x1c8] ss:$16 sps:$4 sm:$0xff]   ;;  %v7600_v28 = vld [vmem:[%s11946_s2 + $0x5a4] ss:$16 sps:$4 sm:$0xff]  }
  0x59   : > { %2896 = vmatprep.subr.bf16.mxu1 %v7561_v29  ;;  %v7603_v29 = vld [vmem:[%s11946_s2 + $0x1ac] ss:$16 sps:$4 sm:$0xff]  }
  0x5b   : > { %2624 = vmatpush1.bf16.msra.mxu0 %v7556_v32  ;;  %v12026_v32 = vunpack.c.h.s8.bf16 %v8387_v62 }
  0x5c   : > { %2897 = vmatpush1.bf16.msra.mxu1 %v7559_v33  ;;  %2625 = vmatprep.subr.bf16.mxu0 %v7564_v34  ;;  %v11960_v33 = vunpack.c.h.s8.bf16 %v8394_v63  ;;  %v7598_v34 = vld [vmem:[%s11946_s2 + $0x5a0] ss:$16 sps:$4 sm:$0xff]  }
  0x5d   : > { %2898 = vmatprep.subr.bf16.mxu1 %v7567_v35  ;;  %2124 = vmatmul.mubr.bf16.gmra.mxu0 %v12044_v36  ;;  %v7601_v35 = vld [vmem:[%s11946_s2 + $0x1a8] ss:$16 sps:$4 sm:$0xff]  }
  0x5e   : > { %2397 = vmatmul.mubr.bf16.gmra.mxu1 %v11968_v37  ;;  %2133 = vmatprep.mubr.bf16.mxu0 %v12043_v38 }
  0x5f   : > { %2406 = vmatprep.mubr.bf16.mxu1 %v11967_v39  ;;  %2626 = vmatpush1.bf16.msra.mxu0 %v7562_v40  ;;  %v12023_v40 = vunpack.c.l.s8.bf16 %v8429_v20 }
  0x60   : > { %2899 = vmatpush1.bf16.msra.mxu1 %v7565_v41  ;;  %2627 = vmatprep.subr.bf16.mxu0 %v7570_v42  ;;  %v11958_v41 = vunpack.c.l.s8.bf16 %v8432_v21  ;;  %v7606_v42 = vld [vmem:[%s11946_s2 + $0x584] ss:$16 sps:$4 sm:$0xff]  }
  0x61   : > { %2900 = vmatprep.subr.bf16.mxu1 %v7573_v43  ;;  %v7609_v43 = vld [vmem:[%s11946_s2 + $0x18c] ss:$16 sps:$4 sm:$0xff]  }
  0x63   : > { %2628 = vmatpush1.bf16.msra.mxu0 %v7568_v47  ;;  %v8471_v47 = vld [vmem:[%s8154_s13 + $0x90] sm:$0xff] }
  0x64   : > { %2901 = vmatpush1.bf16.msra.mxu1 %v7571_v48  ;;  %2629 = vmatprep.subr.bf16.mxu0 %v7576_v51  ;;  %v8474_v48 = vld [vmem:[%s8154_s13 + $0xa0] sm:$0xff] }
  0x65   : > { %2902 = vmatprep.subr.bf16.mxu1 %v7579_v53  ;;  %2134 = vmatmul.mubr.bf16.gmra.mxu0 %v12036_v54  ;;  %12337 = vst [vmem:[#allocation4_spill] sm:$0xff] %v8474_v48  ;;  %v7604_v51 = vld [vmem:[%s11946_s2 + $0x580] ss:$16 sps:$4 sm:$0xff]   ;;  %v7607_v53 = vld [vmem:[%s11946_s2 + $0x188] ss:$16 sps:$4 sm:$0xff]  }
  0x66   : > { %2407 = vmatmul.mubr.bf16.gmra.mxu1 %v11966_v55  ;;  %2143 = vmatprep.mubr.bf16.mxu0 %v12035_v56  ;;  %v4300_v54 = vld [vmem:[%s8751_s20 + $0x60] sm:$0xff] }
  0x67   : > { %2416 = vmatprep.mubr.bf16.mxu1 %v11965_v57  ;;  %2630 = vmatpush1.bf16.msra.mxu0 %v7574_v58  ;;  %v7612_v58 = vld [vmem:[%s11946_s2 + $0x564] ss:$16 sps:$4 sm:$0xff]  }
  0x68   : > { %2903 = vmatpush1.bf16.msra.mxu1 %v7577_v59  ;;  %2631 = vmatprep.subr.bf16.mxu0 %v7582_v60  ;;  %v7615_v59 = vld [vmem:[%s11946_s2 + $0x16c] ss:$16 sps:$4 sm:$0xff]   ;;  %v12020_v60 = vunpack.c.l.s8.bf16 %v8471_v47 }
  0x69   : > { %2904 = vmatprep.subr.bf16.mxu1 %v7585_v61  ;;  %v11956_v61 = vunpack.c.l.s8.bf16 %v8474_v48 }
  0x6b   : > { %2632 = vmatpush1.bf16.msra.mxu0 %v7580_v0  ;;  %v7610_v0 = vld [vmem:[%s11946_s2 + $0x560] ss:$16 sps:$4 sm:$0xff]  }
  0x6c   : > { %2905 = vmatpush1.bf16.msra.mxu1 %v7583_v1  ;;  %2633 = vmatprep.subr.bf16.mxu0 %v7588_v2  ;;  %v7613_v1 = vld [vmem:[%s11946_s2 + $0x168] ss:$16 sps:$4 sm:$0xff]   ;;  %v12017_v2 = vunpack.c.h.s8.bf16 %v8429_v20 }
  0x6d   : > { %2906 = vmatprep.subr.bf16.mxu1 %v7591_v3  ;;  %2144 = vmatmul.mubr.bf16.gmra.mxu0 %v12032_v6  ;;  %v11955_v3 = vunpack.c.h.s8.bf16 %v8432_v21  ;;  %v4298_v6 = vld [vmem:[%s8751_s20 + $0x50] sm:$0xff] }
  0x6e   : > { %2417 = vmatmul.mubr.bf16.gmra.mxu1 %v11964_v7  ;;  %2153 = vmatprep.mubr.bf16.mxu0 %v12028_v14  ;;  %v8646_v7 = vld [vmem:[%s8154_s13 + $0x130] sm:$0xff]  ;;  %v4297_v14 = vld [vmem:[%s8751_s20 + $0x48] sm:$0xff] }
  0x6f   : > { %2426 = vmatprep.mubr.bf16.mxu1 %v11961_v15  ;;  %2634 = vmatpush2.bf16.msra.mxu0 %v7586_v10  ;;  %v7618_v10 = vld [vmem:[%s11946_s2 + $0x544] ss:$16 sps:$4 sm:$0xff]   ;;  %12343 = vst [vmem:[#allocation10_spill] sm:$0xff] %v8646_v7  ;;  %v11975_v55 = vunpack.c.l.s8.bf16 %v8646_v7  ;;  %v11982_v23 = vunpack.c.h.s8.bf16 %v8646_v7 }
  0x70   : > { %2907 = vmatpush2.bf16.msra.mxu1 %v7589_v11  ;;  %2635 = vmatprep.subr.bf16.mxu0 %v7594_v16  ;;  %v7621_v11 = vld [vmem:[%s11946_s2 + $0x14c] ss:$16 sps:$4 sm:$0xff]   ;;  %v4308_v7 = vld [vmem:[%s8751_s20 + $0xa0] sm:$0xff] }
  0x71   : > { %2908 = vmatprep.subr.bf16.mxu1 %v7597_v17  ;;  %v8513_v16 = vld [vmem:[%s8154_s13 + $0xc8] sm:$0xff]  ;;  %v8516_v17 = vld [vmem:[%s8154_s13 + $0xd8] sm:$0xff] }
  0x72   : > { %12338 = vst [vmem:[#allocation5_spill] sm:$0xff] %v8516_v17 }
  0x73   : > { %2636 = vmatpush2.bf16.msra.mxu0 %v7592_v26  ;;  %v7616_v26 = vld [vmem:[%s11946_s2 + $0x540] ss:$16 sps:$4 sm:$0xff]  }
  0x74   : > { %2909 = vmatpush2.bf16.msra.mxu1 %v7595_v27  ;;  %2637 = vmatprep.subr.bf16.mxu0 %v7600_v28  ;;  %v7619_v27 = vld [vmem:[%s11946_s2 + $0x148] ss:$16 sps:$4 sm:$0xff]   ;;  %v7624_v28 = vld [vmem:[%s11946_s2 + $0x524] ss:$16 sps:$4 sm:$0xff]  }
  0x75   : > { %2910 = vmatprep.subr.bf16.mxu1 %v7603_v29  ;;  %2154 = vmatmul.mubr.bf16.gmra.mxu0 %v12026_v32  ;;  %v7627_v29 = vld [vmem:[%s11946_s2 + $0x12c] ss:$16 sps:$4 sm:$0xff]   ;;  %v4296_v32 = vld [vmem:[%s8751_s20 + $0x40] sm:$0xff] }
  0x76   : > { %2427 = vmatmul.mubr.bf16.gmra.mxu1 %v11960_v33  ;;  %2163 = vmatprep.mubr.bf16.mxu0 %v12023_v40 }
  0x77   : > { %2436 = vmatprep.mubr.bf16.mxu1 %v11958_v41  ;;  %2638 = vmatpush2.bf16.msra.mxu0 %v7598_v34  ;;  %v12014_v34 = vunpack.c.h.s8.bf16 %v8471_v47  ;;  %v8624_v41 = vld [vmem:[%s8154_s13 + $0x138] sm:$0xff] }
  0x78   : > { %2911 = vmatpush2.bf16.msra.mxu1 %v7601_v35  ;;  %2639 = vmatprep.subr.bf16.mxu0 %v7606_v42  ;;  %v11954_v35 = vunpack.c.h.s8.bf16 %v8474_v48  ;;  %v7622_v42 = vld [vmem:[%s11946_s2 + $0x520] ss:$16 sps:$4 sm:$0xff]   ;;  %12342 = vst [vmem:[#allocation9_spill] sm:$0xff] %v8624_v41  ;;  %v11976_v37 = vunpack.c.h.s8.bf16 %v8624_v41 }
  0x79   : > { %2912 = vmatprep.subr.bf16.mxu1 %v7609_v43  ;;  %v7625_v43 = vld [vmem:[%s11946_s2 + $0x128] ss:$16 sps:$4 sm:$0xff]  }
  0x7b   : > { %2640 = vmatpush2.bf16.msra.mxu0 %v7604_v51  ;;  %v12011_v51 = vunpack.c.l.s8.bf16 %v8513_v16 }
  0x7c   : > { %2913 = vmatpush2.bf16.msra.mxu1 %v7607_v53  ;;  %2641 = vmatprep.subr.bf16.mxu0 %v7612_v58  ;;  %v11953_v53 = vunpack.c.l.s8.bf16 %v8516_v17  ;;  %v7630_v58 = vld [vmem:[%s11946_s2 + $0x504] ss:$16 sps:$4 sm:$0xff]  }
  0x7d   : > { %2914 = vmatprep.subr.bf16.mxu1 %v7615_v59  ;;  %2164 = vmatmul.mubr.bf16.gmra.mxu0 %v12020_v60  ;;  %v7633_v59 = vld [vmem:[%s11946_s2 + $0x10c] ss:$16 sps:$4 sm:$0xff]   ;;  %v4294_v60 = vld [vmem:[%s8751_s20 + $0x30] sm:$0xff] }
  0x7e   : > { %2437 = vmatmul.mubr.bf16.gmra.mxu1 %v11956_v61  ;;  %2173 = vmatprep.mubr.bf16.mxu0 %v12017_v2 }
  0x7f   : > { %2446 = vmatprep.mubr.bf16.mxu1 %v11955_v3  ;;  %2642 = vmatpush2.bf16.msra.mxu0 %v7610_v0  ;;  %v8551_v0 = vld [vmem:[%s8154_s13 + $0xc0] sm:$0xff] }
  0x80   : > { %2915 = vmatpush2.bf16.msra.mxu1 %v7613_v1  ;;  %2643 = vmatprep.subr.bf16.mxu0 %v7618_v10  ;;  %v8554_v1 = vld [vmem:[%s8154_s13 + $0xd0] sm:$0xff] }
  0x81   : > { %2916 = vmatprep.subr.bf16.mxu1 %v7621_v11  ;;  %12339 = vst [vmem:[#allocation6_spill] sm:$0xff] %v8554_v1  ;;  %v7628_v10 = vld [vmem:[%s11946_s2 + $0x500] ss:$16 sps:$4 sm:$0xff]   ;;  %v7631_v11 = vld [vmem:[%s11946_s2 + $0x108] ss:$16 sps:$4 sm:$0xff]  }
  0x83   : > { %2644 = vmatpush2.bf16.msra.mxu0 %v7616_v26  ;;  %v12004_v26 = vunpack.c.l.s8.bf16 %v8551_v0 }
  0x84   : > { %2917 = vmatpush2.bf16.msra.mxu1 %v7619_v27  ;;  %2645 = vmatprep.subr.bf16.mxu0 %v7624_v28  ;;  %v11951_v27 = vunpack.c.l.s8.bf16 %v8554_v1  ;;  %v12002_v28 = vunpack.c.h.s8.bf16 %v8513_v16 }
  0x85   : > { %2918 = vmatprep.subr.bf16.mxu1 %v7627_v29  ;;  %2174 = vmatmul.mubr.bf16.gmra.mxu0 %v12014_v34  ;;  %v11952_v29 = vunpack.c.h.s8.bf16 %v8516_v17  ;;  %v4292_v34 = vld [vmem:[%s8751_s20 + $0x20] sm:$0xff] }
  0x86   : > { %2447 = vmatmul.mubr.bf16.gmra.mxu1 %v11954_v35  ;;  %2183 = vmatprep.mubr.bf16.mxu0 %v12011_v51  ;;  %v8602_v35 = vld [vmem:[%s8154_s13 + $0x100] sm:$0xff] }
  0x87   : > { %2456 = vmatprep.mubr.bf16.mxu1 %v11953_v53  ;;  %2646 = vmatpush2.bf16.msra.mxu0 %v7622_v42  ;;  %v8579_v42 = vld [vmem:[%s8154_s13 + $0xf8] sm:$0xff]  ;;  %v8599_v53 = vld [vmem:[%s8154_s13 + $0xf0] sm:$0xff]  ;;  %12341 = vst [vmem:[#allocation8_spill] sm:$0xff] %v8602_v35  ;;  %v11970_v33 = vunpack.c.h.s8.bf16 %v8602_v35 }
  0x88   : > { %2919 = vmatpush2.bf16.msra.mxu1 %v7625_v43  ;;  %2647 = vmatprep.subr.bf16.mxu0 %v7630_v58  ;;  %v8586_v43 = vld [vmem:[%s8154_s13 + $0x108] sm:$0xff]  ;;  %v11990_v3 = vunpack.c.h.s8.bf16 %v8579_v42 }
  0x89   : > { %2920 = vmatprep.subr.bf16.mxu1 %v7633_v59  ;;  %12340 = vst [vmem:[#allocation7_spill] sm:$0xff] %v8586_v43  ;;  %v7636_v58 = vld [vmem:[%s11946_s2 + $0x2ec] ss:$16 sps:$4 sm:$0xff]   ;;  %v11963_v61 = vunpack.c.h.s8.bf16 %v8586_v43 }
  0x8a   : > { %v7639_v59 = vld [vmem:[%s11946_s2 + $0x4ec] ss:$16 sps:$4 sm:$0xff]  }
  0x8b   : > { %2648 = vmatpush2.bf16.msra.mxu0 %v7628_v10  ;;  %v12001_v10 = vunpack.c.h.s8.bf16 %v8551_v0 }
  0x8c   : > { %2921 = vmatpush2.bf16.msra.mxu1 %v7631_v11  ;;  %3163 = vmatprep.subr.bf16.mxu0 %v7636_v58  ;;  %v11957_v11 = vunpack.c.h.s8.bf16 %v8554_v1  ;;  %v11992_v58 = vunpack.c.l.s8.bf16 %v8599_v53  ;;  %v4310_v1 = vld [vmem:[%s8751_s20 + $0xb0] sm:$0xff] }
  0x8d   : > { %2184 = vmatmul.mubr.bf16.gmra.mxu0 %v12004_v26  ;;  %3436 = vmatprep.subr.bf16.mxu1 %v7639_v59  ;;  %v11962_v59 = vunpack.c.l.s8.bf16 %v8602_v35 }
  0x8e   : > { %2457 = vmatmul.mubr.bf16.gmra.mxu1 %v11951_v27  ;;  %2193 = vmatprep.mubr.bf16.mxu0 %v12002_v28  ;;  %v12000_v27 = vunpack.c.l.s8.bf16 %v8579_v42  ;;  %v8768_v28 = vld [vmem:[%s8154_s13 + $0x1c0] sm:$0xff] }
  0x8f   : > { %2466 = vmatprep.mubr.bf16.mxu1 %v11952_v29  ;;  %v11959_v29 = vunpack.c.l.s8.bf16 %v8586_v43  ;;  %12349 = vst [vmem:[#allocation16_spill] sm:$0xff] %v8768_v28  ;;  %v12012_v26 = vunpack.c.l.s8.bf16 %v8768_v28  ;;  %v12018_v51 = vunpack.c.h.s8.bf16 %v8768_v28 }
  0x95   : > { %2194 = vmatmul.mubr.bf16.gmra.mxu0 %v12001_v10  ;;  %v8765_v10 = vld [vmem:[%s8154_s13 + $0x1b0] sm:$0xff] }
  0x96   : > { %2467 = vmatmul.mubr.bf16.gmra.mxu1 %v11957_v11  ;;  %2203 = vmatprep.mubr.bf16.mxu0 %v12000_v27  ;;  %v8621_v11 = vld [vmem:[%s8154_s13 + $0x128] sm:$0xff]  ;;  %v4288_v27 = vld [vmem:[%s8751_s20] sm:$0xff] }
  0x97   : > { %2476 = vmatprep.mubr.bf16.mxu1 %v11959_v29  ;;  %v11986_v29 = vunpack.c.h.s8.bf16 %v8599_v53  ;;  %v11984_v15 = vunpack.c.l.s8.bf16 %v8621_v11  ;;  %v11978_v39 = vunpack.c.h.s8.bf16 %v8621_v11 }
  0x9d   : > { %2204 = vmatmul.mubr.bf16.gmra.mxu0 %v11992_v58 }
  0x9e   : > { %2477 = vmatmul.mubr.bf16.gmra.mxu1 %v11962_v59  ;;  %2213 = vmatprep.mubr.bf16.mxu0 %v11990_v3  ;;  %v11969_v59 = vunpack.c.l.s8.bf16 %v8624_v41 }
  0x9f   : > { %2486 = vmatprep.mubr.bf16.mxu1 %v11963_v61  ;;  %v8643_v61 = vld [vmem:[%s8154_s13 + $0x120] sm:$0xff] }
  0xa0   : > { %v11979_v57 = vunpack.c.l.s8.bf16 %v8643_v61  ;;  %v11980_v25 = vunpack.c.h.s8.bf16 %v8643_v61 }
  0xa5   : > { %2214 = vmatmul.mubr.bf16.gmra.mxu0 %v11986_v29 }
  0xa6   : > { %2487 = vmatmul.mubr.bf16.gmra.mxu1 %v11970_v33  ;;  %2223 = vmatprep.mubr.bf16.mxu0 %v11984_v15  ;;  %v8660_v33 = vld [vmem:[%s8154_s13 + $0x168] sm:$0xff] }
  0xa7   : > { %2496 = vmatprep.mubr.bf16.mxu1 %v11969_v59  ;;  %v8657_v59 = vld [vmem:[%s8154_s13 + $0x158] sm:$0xff]  ;;  %12344 = vst [vmem:[#allocation11_spill] sm:$0xff] %v8660_v33  ;;  %v11981_v9 = vunpack.c.l.s8.bf16 %v8660_v33 }
  0xa8   : > { %v11983_v13 = vunpack.c.l.s8.bf16 %v8657_v59 }
  0xad   : > { %2224 = vmatmul.mubr.bf16.gmra.mxu0 %v11979_v57  ;;  %v11989_v57 = vunpack.c.h.s8.bf16 %v8657_v59 }
  0xae   : > { %2497 = vmatmul.mubr.bf16.gmra.mxu1 %v11975_v55  ;;  %2233 = vmatprep.mubr.bf16.mxu0 %v11978_v39  ;;  %v8671_v55 = vld [vmem:[%s8154_s13 + $0x150] sm:$0xff] }
  0xaf   : > { %2506 = vmatprep.mubr.bf16.mxu1 %v11976_v37  ;;  %v8682_v37 = vld [vmem:[%s8154_s13 + $0x160] sm:$0xff]  ;;  %v11985_v52 = vunpack.c.l.s8.bf16 %v8671_v55 }
  0xb0   : > { %12345 = vst [vmem:[#allocation12_spill] sm:$0xff] %v8682_v37  ;;  %v11988_v39 = vunpack.c.l.s8.bf16 %v8682_v37  ;;  %v11994_v15 = vunpack.c.h.s8.bf16 %v8682_v37 }
  0xb5   : > { %2234 = vmatmul.mubr.bf16.gmra.mxu0 %v11980_v25  ;;  %v11987_v25 = vunpack.c.h.s8.bf16 %v8660_v33 }
  0xb6   : > { %2507 = vmatmul.mubr.bf16.gmra.mxu1 %v11982_v23  ;;  %2243 = vmatprep.mubr.bf16.mxu0 %v11983_v13  ;;  %v8700_v23 = vld [vmem:[%s8154_s13 + $0x198] sm:$0xff]  ;;  %v11991_v13 = vunpack.c.h.s8.bf16 %v8671_v55 }
  0xb7   : > { %2516 = vmatprep.mubr.bf16.mxu1 %v11981_v9  ;;  %v8697_v9 = vld [vmem:[%s8154_s13 + $0x188] sm:$0xff]  ;;  %12346 = vst [vmem:[#allocation13_spill] sm:$0xff] %v8700_v23  ;;  %v11993_v29 = vunpack.c.l.s8.bf16 %v8700_v23  ;;  %v11999_v58 = vunpack.c.h.s8.bf16 %v8700_v23 }
  0xbd   : > { %2244 = vmatmul.mubr.bf16.gmra.mxu0 %v11985_v52  ;;  %v11998_v52 = vunpack.c.l.s8.bf16 %v8697_v9 }
  0xbe   : > { %2517 = vmatmul.mubr.bf16.gmra.mxu1 %v11988_v39  ;;  %2253 = vmatprep.mubr.bf16.mxu0 %v11989_v57  ;;  %v8718_v39 = vld [vmem:[%s8154_s13 + $0x190] sm:$0xff] }
  0xbf   : > { %2526 = vmatprep.mubr.bf16.mxu1 %v11987_v25  ;;  %v8715_v25 = vld [vmem:[%s8154_s13 + $0x180] sm:$0xff]  ;;  %12347 = vst [vmem:[#allocation14_spill] sm:$0xff] %v8718_v39  ;;  %v11996_v3 = vunpack.c.l.s8.bf16 %v8718_v39 }
  0xc0   : > { %v11995_v57 = vunpack.c.l.s8.bf16 %v8715_v25 }
  0xc5   : > { %2254 = vmatmul.mubr.bf16.gmra.mxu0 %v11991_v13  ;;  %v11997_v13 = vunpack.c.h.s8.bf16 %v8697_v9 }
  0xc6   : > { %2527 = vmatmul.mubr.bf16.gmra.mxu1 %v11994_v15  ;;  %2263 = vmatprep.mubr.bf16.mxu0 %v11998_v52  ;;  %v8737_v15 = vld [vmem:[%s8154_s13 + $0x1c8] sm:$0xff] }
  0xc7   : > { %2536 = vmatprep.mubr.bf16.mxu1 %v11993_v29  ;;  %v8734_v29 = vld [vmem:[%s8154_s13 + $0x1b8] sm:$0xff]  ;;  %12348 = vst [vmem:[#allocation15_spill] sm:$0xff] %v8737_v15  ;;  %v12009_v52 = vunpack.c.l.s8.bf16 %v8737_v15 }
  0xcd   : > { %2264 = vmatmul.mubr.bf16.gmra.mxu0 %v11995_v57  ;;  %v12003_v57 = vunpack.c.h.s8.bf16 %v8715_v25 }
  0xce   : > { %2537 = vmatmul.mubr.bf16.gmra.mxu1 %v11996_v3  ;;  %2273 = vmatprep.mubr.bf16.mxu0 %v11997_v13  ;;  %v12005_v3 = vunpack.c.h.s8.bf16 %v8718_v39  ;;  %v12006_v13 = vunpack.c.l.s8.bf16 %v8734_v29  ;;  %v4306_v39 = vld [vmem:[%s8751_s20 + $0x90] sm:$0xff] }
  0xcf   : > { %2546 = vmatprep.mubr.bf16.mxu1 %v11999_v58  ;;  %v12007_v58 = vmov 0  }
  0xd0   : > { %7440 = vset.pattern.permute.xlu0 %v12007_v58  ;;  %7441 = vset.pattern.permute.xlu1 %v12007_v58  ;;  %v4290_v58 = vld [vmem:[%s8751_s20 + $0x10] sm:$0xff] }
  0xd1   : > { %4338 = vperm.xlu0 %7440, %v4288_v27   ;;  %v4289_v27 = vld [vmem:[%s8751_s20 + $0x8] sm:$0xff]  ;;  %4348 = vperm.xlu1 %7441, %v4290_v58   ;;  %v4291_v58 = vld [vmem:[%s8751_s20 + $0x18] sm:$0xff] }
  0xd5   : > { %2274 = vmatmul.mubr.bf16.gmra.mxu0 %v12003_v57  ;;  %4343 = vperm.xlu0 %7440, %v4289_v27   ;;  %v12010_v57 = vunpack.c.l.s8.bf16 %v8765_v10  ;;  %v8785_v27 = vld [vmem:[%s8154_s13 + $0x1e8] sm:$0xff] }
  0xd6   : > { %2547 = vmatmul.mubr.bf16.gmra.mxu1 %v12005_v3  ;;  %2283 = vmatprep.mubr.bf16.mxu0 %v12006_v13  ;;  %v12013_v3 = vunpack.c.h.s8.bf16 %v8734_v29  ;;  %v12015_v13 = vunpack.c.h.s8.bf16 %v8737_v15  ;;  %v7661_v15 = vld [vmem:[%s11946_s2 + $0x468] ss:$16 sps:$4 sm:$0xff]  }
  0xd7   : > { %2556 = vmatprep.mubr.bf16.mxu1 %v12009_v52  ;;  %v8788_v52 = vld [vmem:[%s8154_s13 + $0x1f8] sm:$0xff]  ;;  %4353 = vperm.xlu1 %7441, %v4291_v58   ;;  %v8805_v58 = vld [vmem:[%s8154_s13 + $0x1e0] sm:$0xff] }
  0xd8   : > { %12350 = vst [vmem:[#allocation17_spill] sm:$0xff] %v8788_v52 }
  0xd9   : > { %4358 = vperm.xlu0 %7440, %v4292_v34   ;;  %v4293_v34 = vld [vmem:[%s8751_s20 + $0x28] sm:$0xff] }
  0xdb   : > { %4363 = vperm.xlu1 %7441, %v4293_v34   ;;  %v8825_v34 = vld [vmem:[%s8154_s13 + $0x218] sm:$0xff] }
  0xdd   : > { %2284 = vmatmul.mubr.bf16.gmra.mxu0 %v12010_v57  ;;  %v12016_v57 = vunpack.c.h.s8.bf16 %v8765_v10  ;;  %4368 = vperm.xlu0 %7440, %v4294_v60   ;;  %v4295_v60 = vld [vmem:[%s8751_s20 + $0x38] sm:$0xff] }
  0xde   : > { %2557 = vmatmul.mubr.bf16.gmra.mxu1 %v12012_v26  ;;  %2293 = vmatprep.mubr.bf16.mxu0 %v12013_v3  ;;  %v12019_v26 = vunpack.c.l.s8.bf16 %v8785_v27  ;;  %v12021_v3 = vunpack.c.l.s8.bf16 %v8788_v52 }
  0xdf   : > { %2566 = vmatprep.mubr.bf16.mxu1 %v12015_v13  ;;  %v8808_v13 = vld [vmem:[%s8154_s13 + $0x1f0] sm:$0xff]  ;;  %4373 = vperm.xlu1 %7441, %v4295_v60  }
  0xe0   : > { %12351 = vst [vmem:[#allocation18_spill] sm:$0xff] %v8808_v13  ;;  %v12024_v2 = vunpack.c.l.s8.bf16 %v8808_v13  ;;  %v12030_v40 = vunpack.c.h.s8.bf16 %v8808_v13  ;;  %v8845_v60 = vld [vmem:[%s8154_s13 + $0x210] sm:$0xff] }
  0xe1   : > { %4378 = vperm.xlu0 %7440, %v4296_v32   ;;  %v12034_v32 = vunpack.c.l.s8.bf16 %v8845_v60 }
  0xe3   : > { %4383 = vperm.xlu1 %7441, %v4297_v14   ;;  %v8865_v14 = vld [vmem:[%s8154_s13 + $0x28] sm:$0xff] }
  0xe4   : > { %v12040_v56 = vunpack.c.l.s8.bf16 %v8865_v14 }
  0xe5   : > { %2294 = vmatmul.mubr.bf16.gmra.mxu0 %v12016_v57  ;;  %v12022_v57 = vunpack.c.l.s8.bf16 %v8805_v58  ;;  %4388 = vperm.xlu0 %7440, %v4298_v6   ;;  %v12041_v6 = vunpack.c.h.s8.bf16 %v8845_v60 }
  0xe6   : > { %2567 = vmatmul.mubr.bf16.gmra.mxu1 %v12018_v51  ;;  %2303 = vmatprep.mubr.bf16.mxu0 %v12019_v26  ;;  %v12025_v51 = vunpack.c.h.s8.bf16 %v8785_v27  ;;  %v12027_v26 = vunpack.c.h.s8.bf16 %v8788_v52 }
  0xe7   : > { %2576 = vmatprep.mubr.bf16.mxu1 %v12021_v3  ;;  %v8828_v3 = vld [vmem:[%s8154_s13 + $0x228] sm:$0xff] }
  0xe8   : > { %12352 = vst [vmem:[#allocation19_spill] sm:$0xff] %v8828_v3 }
  0xe9   : > { %4398 = vperm.xlu0 %7440, %v4300_v54   ;;  %v7634_v54 = vld [vmem:[%s11946_s2 + $0x2e8] ss:$16 sps:$4 sm:$0xff]  }
  0xed   : > { %2304 = vmatmul.mubr.bf16.gmra.mxu0 %v12022_v57  ;;  %v12029_v57 = vunpack.c.h.s8.bf16 %v8805_v58 }
  0xee   : > { %2577 = vmatmul.mubr.bf16.gmra.mxu1 %v12024_v2  ;;  %2313 = vmatprep.mubr.bf16.mxu0 %v12025_v51  ;;  %v12031_v2 = vunpack.c.l.s8.bf16 %v8825_v34  ;;  %v12033_v51 = vunpack.c.l.s8.bf16 %v8828_v3 }
  0xef   : > { %2586 = vmatprep.mubr.bf16.mxu1 %v12027_v26  ;;  %v8848_v26 = vld [vmem:[%s8154_s13 + $0x220] sm:$0xff] }
  0xf0   : > { %12353 = vst [vmem:[#allocation20_spill] sm:$0xff] %v8848_v26 }
  0xf5   : > { %2314 = vmatmul.mubr.bf16.gmra.mxu0 %v12029_v57  ;;  %v12038_v57 = vunpack.c.l.s8.bf16 %v8848_v26 }
  0xf6   : > { %2587 = vmatmul.mubr.bf16.gmra.mxu1 %v12030_v40  ;;  %2323 = vmatprep.mubr.bf16.mxu0 %v12031_v2  ;;  %v12042_v40 = vunpack.c.h.s8.bf16 %v8825_v34  ;;  %v12037_v2 = vunpack.c.h.s8.bf16 %v8828_v3 }
  0xf7   : > { %2596 = vmatprep.mubr.bf16.mxu1 %v12033_v51  ;;  %v4299_v51 = vld [vmem:[%s8751_s20 + $0x58] sm:$0xff] }
  0xf8   : > { %4393 = vperm.xlu1 %7441, %v4299_v51   ;;  %v8881_v51 = vld [vmem:[%s8154_s13 + $0x20] sm:$0xff] }
  0xfd   : > { %2324 = vmatmul.mubr.bf16.gmra.mxu0 %v12034_v32  ;;  %v12039_v32 = vunpack.c.h.s8.bf16 %v8848_v26 }
  0xfe   : > { %2597 = vmatmul.mubr.bf16.gmra.mxu1 %v12038_v57  ;;  %2333 = vmatprep.mubr.bf16.mxu0 %v12042_v40  ;;  %v12048_v57 = vunpack.c.l.s8.bf16 %v8881_v51 }
  0xff   : > { %2606 = vmatprep.mubr.bf16.mxu1 %v12037_v2  ;;  %v4301_v2 = vld [vmem:[%s8751_s20 + $0x68] sm:$0xff] }
 0x100   : > { %4403 = vperm.xlu1 %7441, %v4301_v2   ;;  %v7645_v2 = vld [vmem:[%s11946_s2 + $0x4cc] ss:$16 sps:$4 sm:$0xff]  }
 0x105   : > { %2334 = vmatmul.mubr.bf16.gmra.mxu0 %v12041_v6  ;;  %v4302_v6 = vld [vmem:[%s8751_s20 + $0x70] sm:$0xff] }
 0x106   : > { %2607 = vmatmul.mubr.bf16.gmra.mxu1 %v12039_v32  ;;  %2649 = vmatprep.mubr.bf16.mxu0 %v12040_v56  ;;  %v7637_v32 = vld [vmem:[%s11946_s2 + $0x4e8] ss:$16 sps:$4 sm:$0xff]  }
 0x107   : > { %2922 = vmatprep.mubr.bf16.mxu1 %v578_v49  ;;  %v7642_v49 = vld [vmem:[%s11946_s2 + $0x2cc] ss:$16 sps:$4 sm:$0xff]   ;;  %4408 = vperm.xlu0 %7440, %v4302_v6   ;;  %v7643_v6 = vld [vmem:[%s11946_s2 + $0x4c8] ss:$16 sps:$4 sm:$0xff]  }
 0x10d   : > { %v2105_v40 = vpop.f32.mrf.mxu0  ;;  %2650 = vmatmul.mubr.bf16.vlgmr.msra.gmra.mxu0 %v12048_v57  ;;  %v12354_v57 = vunpack.c.h.s8.bf16 %v8865_v14 }
 0x10e   : > { %v2378_v38 = vpop.f32.mrf.mxu1  ;;  %2923 = vmatmul.mubr.bf16.vlgmr.msra.gmra.mxu1 %v577_v8  ;;  %3164 = vmatpush1.bf16.msra.mxu0 %v7634_v54  ;;  %v12355_v8 = vunpack.c.h.s8.bf16 %v8163_v46 }
 0x10f   : > { %v8903_v36 = vadd.f32 %v2378_v38, %v2105_v40  ;;  %3437 = vmatpush1.bf16.msra.mxu1 %v7637_v32  ;;  %v2107_v12 = vpop.f32.mrf.mxu0  ;;  %2659 = vmatprep.mubr.bf16.mxu0 %v12354_v57  ;;  %v7648_v38 = vld [vmem:[%s11946_s2 + $0x2ac] ss:$16 sps:$4 sm:$0xff]   ;;  %v12057_v57 = vunpack.c.h.s8.bf16 %v8881_v51 }
 0x110   : > { %v2380_v56 = vpop.f32.mrf.mxu1  ;;  %2932 = vmatprep.mubr.bf16.mxu1 %v12355_v8  ;;  %v7651_v40 = vld [vmem:[%s11946_s2 + $0x4ac] ss:$16 sps:$4 sm:$0xff]   ;;  %3165 = vmatprep.subr.bf16.mxu0 %v7642_v49  ;;  %v12058_v8 = vunpack.c.l.s8.bf16 %v8912_v22  ;;  %v4304_v49 = vld [vmem:[%s8751_s20 + $0x80] sm:$0xff] }
 0x111   : > { %v4303_v32 = vld [vmem:[%s8751_s20 + $0x78] sm:$0xff]  ;;  %v8925_v54 = vadd.f32 %v2380_v56, %v2107_v12  ;;  %3438 = vmatprep.subr.bf16.mxu1 %v7645_v2  ;;  %v2109_v26 = vpop.f32.mrf.mxu0  ;;  %4418 = vperm.xlu0 %7440, %v4304_v49  }
 0x112   : > { %v2382_v3 = vpop.f32.mrf.mxu1  ;;  %4413 = vperm.xlu1 %7441, %v4303_v32   ;;  %3166 = vmatpush1.bf16.msra.mxu0 %v7640_v24  ;;  %v7646_v12 = vld [vmem:[%s11946_s2 + $0x2a8] ss:$16 sps:$4 sm:$0xff]   ;;  %v7654_v24 = vld [vmem:[%s11946_s2 + $0x28c] ss:$16 sps:$4 sm:$0xff]  }
 0x113   : > { %v8928_v46 = vadd.f32 %v2382_v3, %v2109_v26  ;;  %3439 = vmatpush1.bf16.msra.mxu1 %v7643_v6  ;;  %v2111_v13 = vpop.f32.mrf.mxu0  ;;  %3167 = vmatprep.subr.bf16.mxu0 %v7648_v38  ;;  %v7649_v56 = vld [vmem:[%s11946_s2 + $0x4a8] ss:$16 sps:$4 sm:$0xff]   ;;  %v7657_v26 = vld [vmem:[%s11946_s2 + $0x48c] ss:$16 sps:$4 sm:$0xff]   ;;  %v12356_v38 = vunpack.c.h.s8.bf16 %v8229_v4 }
 0x114   : > { %v2384_v52 = vpop.f32.mrf.mxu1  ;;  %3440 = vmatprep.subr.bf16.mxu1 %v7651_v40  ;;  %v8957_v40 = vld [vmem:[%s8154_s13 + $0x50] sm:$0xff]  ;;  %v7655_v4 = vld [vmem:[%s11946_s2 + $0x488] ss:$16 sps:$4 sm:$0xff]  }
 0x115   : > { %v8938_v3 = vadd.f32 %v2384_v52, %v2111_v13  ;;  %v2115_v2 = vpop.f32.mrf.mxu0  ;;  %2660 = vmatmul.mubr.bf16.gmra.mxu0 %v12057_v57  ;;  %v12357_v13 = vunpack.c.l.s8.bf16 %v8267_v18  ;;  %v7652_v57 = vld [vmem:[%s11946_s2 + $0x288] ss:$16 sps:$4 sm:$0xff]   ;;  %4428 = vperm.xlu0 %7440, %v4306_v39  }
 0x116   : > { %v2388_v6 = vpop.f32.mrf.mxu1  ;;  %2933 = vmatmul.mubr.bf16.gmra.mxu1 %v12356_v38  ;;  %2669 = vmatprep.mubr.bf16.mxu0 %v12058_v8  ;;  %v7660_v38 = vld [vmem:[%s11946_s2 + $0x26c] ss:$16 sps:$4 sm:$0xff]  }
 0x117   : > { %v8950_v52 = vadd.f32 %v2388_v6, %v2115_v2  ;;  %2942 = vmatprep.mubr.bf16.mxu1 %v12357_v13  ;;  %v2117_v32 = vpop.f32.mrf.mxu0  ;;  %3168 = vmatpush1.bf16.msra.mxu0 %v7646_v12  ;;  %v4305_v2 = vld [vmem:[%s8751_s20 + $0x88] sm:$0xff] }
 0x118   : > { %v2390_v49 = vpop.f32.mrf.mxu1  ;;  %3441 = vmatpush1.bf16.msra.mxu1 %v7649_v56  ;;  %3169 = vmatprep.subr.bf16.mxu0 %v7654_v24  ;;  %v7663_v12 = vld [vmem:[%s11946_s2 + $0x46c] ss:$16 sps:$4 sm:$0xff]  }
 0x119   : > { %v8966_v6 = vadd.f32 %v2390_v49, %v2117_v32  ;;  %3442 = vmatprep.subr.bf16.mxu1 %v7657_v26  ;;  %v2119_v56 = vpop.f32.mrf.mxu0  ;;  %4423 = vperm.xlu1 %7441, %v4305_v2   ;;  %v7658_v26 = vld [vmem:[%s11946_s2 + $0x268] ss:$16 sps:$4 sm:$0xff]   ;;  %v7666_v2 = vld [vmem:[%s11946_s2 + $0x24c] ss:$16 sps:$4 sm:$0xff]   ;;  %v12359_v32 = vunpack.c.l.s8.bf16 %v8303_v30 }
 0x11a   : > { %v2392_v13 = vpop.f32.mrf.mxu1  ;;  %4438 = vperm.xlu0 %7440, %v4308_v7  }
 0x11b   : > { %v8975_v28 = vadd.f32 %v2392_v13, %v2119_v56  ;;  %v2121_v49 = vpop.f32.mrf.mxu0  ;;  %3170 = vmatpush1.bf16.msra.mxu0 %v7652_v57  ;;  %v7669_v57 = vld [vmem:[%s11946_s2 + $0x44c] ss:$16 sps:$4 sm:$0xff]   ;;  %v12358_v13 = vunpack.c.l.s8.bf16 %v8957_v40 }
 0x11c   : > { %v2394_v24 = vpop.f32.mrf.mxu1  ;;  %3443 = vmatpush1.bf16.msra.mxu1 %v7655_v4  ;;  %3171 = vmatprep.subr.bf16.mxu0 %v7660_v38  ;;  %v12360_v38 = vunpack.c.h.s8.bf16 %v8912_v22 }
 0x11d   : > { %v8984_v8 = vadd.f32 %v2394_v24, %v2121_v49  ;;  %3444 = vmatprep.subr.bf16.mxu1 %v7663_v12  ;;  %v2125_v4 = vpop.f32.mrf.mxu0  ;;  %2670 = vmatmul.mubr.bf16.gmra.mxu0 %v12358_v13  ;;  %v12361_v12 = vunpack.c.h.s8.bf16 %v8267_v18  ;;  %v9003_v24 = vld [vmem:[%s8154_s13 + $0x88] sm:$0xff] }
 0x11e   : > { %v2398_v56 = vpop.f32.mrf.mxu1  ;;  %2943 = vmatmul.mubr.bf16.gmra.mxu1 %v12359_v32  ;;  %2679 = vmatprep.mubr.bf16.mxu0 %v12360_v38  ;;  %v7664_v13 = vld [vmem:[%s11946_s2 + $0x248] ss:$16 sps:$4 sm:$0xff]   ;;  %v7672_v18 = vld [vmem:[%s11946_s2 + $0x22c] ss:$16 sps:$4 sm:$0xff]  }
 0x11f   : > { %v8996_v49 = vadd.f32 %v2398_v56, %v2125_v4  ;;  %2952 = vmatprep.mubr.bf16.mxu1 %v12361_v12  ;;  %v2127_v23 = vpop.f32.mrf.mxu0  ;;  %3172 = vmatpush1.bf16.msra.mxu0 %v7658_v26  ;;  %v7667_v32 = vld [vmem:[%s11946_s2 + $0x448] ss:$16 sps:$4 sm:$0xff]  }
 0x120   : > { %v2400_v37 = vpop.f32.mrf.mxu1  ;;  %3445 = vmatpush1.bf16.msra.mxu1 %v7661_v15  ;;  %v4307_v4 = vld [vmem:[%s8751_s20 + $0x98] sm:$0xff]  ;;  %3173 = vmatprep.subr.bf16.mxu0 %v7666_v2 }
 0x121   : > { %v9013_v56 = vadd.f32 %v2400_v37, %v2127_v23  ;;  %3446 = vmatprep.subr.bf16.mxu1 %v7669_v57  ;;  %v7675_v15 = vld [vmem:[%s11946_s2 + $0x42c] ss:$16 sps:$4 sm:$0xff]   ;;  %v2129_v26 = vpop.f32.mrf.mxu0  ;;  %4433 = vperm.xlu1 %7441, %v4307_v4   ;;  %v7670_v57 = vld [vmem:[%s11946_s2 + $0x228] ss:$16 sps:$4 sm:$0xff]   ;;  %v12363_v23 = vunpack.c.h.s8.bf16 %v8303_v30 }
 0x122   : > { %v2402_v38 = vpop.f32.mrf.mxu1  ;;  %v7673_v12 = vld [vmem:[%s11946_s2 + $0x428] ss:$16 sps:$4 sm:$0xff]   ;;  %v7678_v4 = vld [vmem:[%s11946_s2 + $0x20c] ss:$16 sps:$4 sm:$0xff]   ;;  %4448 = vperm.xlu0 %7440, %v4310_v1  }
 0x123   : > { %v9022_v33 = vadd.f32 %v2402_v38, %v2129_v26  ;;  %v2131_v37 = vpop.f32.mrf.mxu0  ;;  %3174 = vmatpush1.bf16.msra.mxu0 %v7664_v13  ;;  %v7681_v13 = vld [vmem:[%s11946_s2 + $0x40c] ss:$16 sps:$4 sm:$0xff]   ;;  %v12362_v38 = vunpack.c.h.s8.bf16 %v8957_v40  ;;  %v7676_v30 = vld [vmem:[%s11946_s2 + $0x208] ss:$16 sps:$4 sm:$0xff]  }
 0x124   : > { %v2404_v2 = vpop.f32.mrf.mxu1  ;;  %3447 = vmatpush1.bf16.msra.mxu1 %v7667_v32  ;;  %3175 = vmatprep.subr.bf16.mxu0 %v7672_v18  ;;  %v12364_v18 = vunpack.c.l.s8.bf16 %v9003_v24 }
 0x125   : > { %v9031_v39 = vadd.f32 %v2404_v2, %v2131_v37  ;;  %3448 = vmatprep.subr.bf16.mxu1 %v7675_v15  ;;  %v2135_v32 = vpop.f32.mrf.mxu0  ;;  %2680 = vmatmul.mubr.bf16.gmra.mxu0 %v12362_v38  ;;  %v12365_v15 = vunpack.c.l.s8.bf16 %v8345_v44  ;;  %v9050_v2 = vld [vmem:[%s8154_s13 + $0x80] sm:$0xff]  ;;  %v7684_v38 = vld [vmem:[%s11946_s2 + $0x3ec] ss:$16 sps:$4 sm:$0xff]  }
 0x126   : > { %v2408_v26 = vpop.f32.mrf.mxu1  ;;  %2953 = vmatmul.mubr.bf16.gmra.mxu1 %v12363_v23  ;;  %2689 = vmatprep.mubr.bf16.mxu0 %v12364_v18  ;;  %v7679_v23 = vld [vmem:[%s11946_s2 + $0x408] ss:$16 sps:$4 sm:$0xff]  }
 0x127   : > { %v9043_v37 = vadd.f32 %v2408_v26, %v2135_v32  ;;  %2962 = vmatprep.mubr.bf16.mxu1 %v12365_v15  ;;  %v2137_v41 = vpop.f32.mrf.mxu0  ;;  %3176 = vmatpush1.bf16.msra.mxu0 %v7670_v57  ;;  %v4309_v32 = vld [vmem:[%s8751_s20 + $0xa8] sm:$0xff] }
 0x128   : > { %v2410_v35 = vpop.f32.mrf.mxu1  ;;  %3449 = vmatpush1.bf16.msra.mxu1 %v7673_v12  ;;  %3177 = vmatprep.subr.bf16.mxu0 %v7678_v4  ;;  %v7687_v12 = vld [vmem:[%s11946_s2 + $0x5ec] ss:$16 sps:$4 sm:$0xff]   ;;  %v7685_v15 = vld [vmem:[%s11946_s2 + $0x5e8] ss:$16 sps:$4 sm:$0xff]  }
 0x129   : > { %v9060_v26 = vadd.f32 %v2410_v35, %v2137_v41  ;;  %3450 = vmatprep.subr.bf16.mxu1 %v7681_v13  ;;  %v2139_v57 = vpop.f32.mrf.mxu0  ;;  %4443 = vperm.xlu1 %7441, %v4309_v32   ;;  %v7682_v13 = vld [vmem:[%s11946_s2 + $0x3e8] ss:$16 sps:$4 sm:$0xff]   ;;  %v7690_v32 = vld [vmem:[%s11946_s2 + $0x3cc] ss:$16 sps:$4 sm:$0xff]   ;;  %v12367_v41 = vunpack.c.l.s8.bf16 %v8387_v62 }
 0x12a   : > { %v2412_v18 = vpop.f32.mrf.mxu1 }
 0x12b   : > { %v9069_v43 = vadd.f32 %v2412_v18, %v2139_v57  ;;  %v2141_v35 = vpop.f32.mrf.mxu0  ;;  %3178 = vmatpush1.bf16.msra.mxu0 %v7676_v30  ;;  %v7693_v30 = vld [vmem:[%s11946_s2 + $0x5cc] ss:$16 sps:$4 sm:$0xff]   ;;  %v12366_v18 = vunpack.c.l.s8.bf16 %v9050_v2 }
 0x12c   : > { %v2414_v4 = vpop.f32.mrf.mxu1  ;;  %3451 = vmatpush1.bf16.msra.mxu1 %v7679_v23  ;;  %3179 = vmatprep.subr.bf16.mxu0 %v7684_v38  ;;  %v12368_v38 = vunpack.c.h.s8.bf16 %v9003_v24 }
 0x12d   : > { %v9078_v7 = vadd.f32 %v2414_v4, %v2141_v35  ;;  %3452 = vmatprep.subr.bf16.mxu1 %v7687_v12  ;;  %v2145_v23 = vpop.f32.mrf.mxu0  ;;  %2690 = vmatmul.mubr.bf16.gmra.mxu0 %v12366_v18  ;;  %v12369_v12 = vunpack.c.h.s8.bf16 %v8345_v44  ;;  %v9097_v4 = vld [vmem:[%s8154_s13 + $0xb8] sm:$0xff] }
 0x12e   : > { %v2418_v57 = vpop.f32.mrf.mxu1  ;;  %2963 = vmatmul.mubr.bf16.gmra.mxu1 %v12367_v41  ;;  %2699 = vmatprep.mubr.bf16.mxu0 %v12368_v38  ;;  %v7688_v18 = vld [vmem:[%s11946_s2 + $0x3c8] ss:$16 sps:$4 sm:$0xff]   ;;  %v7696_v44 = vld [vmem:[%s11946_s2 + $0x3ac] ss:$16 sps:$4 sm:$0xff]  }
 0x12f   : > { %v9090_v35 = vadd.f32 %v2418_v57, %v2145_v23  ;;  %2972 = vmatprep.mubr.bf16.mxu1 %v12369_v12  ;;  %v2147_v17 = vpop.f32.mrf.mxu0  ;;  %3180 = vmatpush2.bf16.msra.mxu0 %v7682_v13  ;;  %v7691_v41 = vld [vmem:[%s11946_s2 + $0x5c8] ss:$16 sps:$4 sm:$0xff]  }
 0x130   : > { %v2420_v48 = vpop.f32.mrf.mxu1  ;;  %3453 = vmatpush2.bf16.msra.mxu1 %v7685_v15  ;;  %v4311_v23 = vld [vmem:[%s8751_s20 + $0xb8] sm:$0xff]  ;;  %3181 = vmatprep.subr.bf16.mxu0 %v7690_v32 }
 0x131   : > { %v9107_v57 = vadd.f32 %v2420_v48, %v2147_v17  ;;  %3454 = vmatprep.subr.bf16.mxu1 %v7693_v30  ;;  %v7699_v15 = vld [vmem:[%s11946_s2 + $0x5ac] ss:$16 sps:$4 sm:$0xff]   ;;  %v2149_v13 = vpop.f32.mrf.mxu0  ;;  %4453 = vperm.xlu1 %7441, %v4311_v23   ;;  %v7694_v30 = vld [vmem:[%s11946_s2 + $0x3a8] ss:$16 sps:$4 sm:$0xff]   ;;  %v12374_v48 = vunpack.c.h.s8.bf16 %v8387_v62 }
 0x132   : > { %v2422_v38 = vpop.f32.mrf.mxu1  ;;  %v7697_v12 = vld [vmem:[%s11946_s2 + $0x5a8] ss:$16 sps:$4 sm:$0xff]   ;;  %v7702_v23 = vld [vmem:[%s11946_s2 + $0x38c] ss:$16 sps:$4 sm:$0xff]  }
 0x133   : > { %12370 = vst [vmem:[#allocation21_spill] sm:$0xff] %v9107_v57  ;;  %v9116_v21 = vadd.f32 %v2422_v38, %v2149_v13  ;;  %v2151_v17 = vpop.f32.mrf.mxu0  ;;  %3182 = vmatpush2.bf16.msra.mxu0 %v7688_v18  ;;  %v7705_v18 = vld [vmem:[%s11946_s2 + $0x58c] ss:$16 sps:$4 sm:$0xff]   ;;  %v12373_v38 = vunpack.c.h.s8.bf16 %v9050_v2  ;;  %v7700_v62 = vld [vmem:[%s11946_s2 + $0x388] ss:$16 sps:$4 sm:$0xff]  }
 0x134   : > { %v2424_v32 = vpop.f32.mrf.mxu1  ;;  %3455 = vmatpush2.bf16.msra.mxu1 %v7691_v41  ;;  %3183 = vmatprep.subr.bf16.mxu0 %v7696_v44  ;;  %v12376_v44 = vunpack.c.l.s8.bf16 %v9097_v4 }
 0x135   : > { %12371 = vst [vmem:[#allocation22_spill] sm:$0xff] %v9116_v21  ;;  %v9125_v1 = vadd.f32 %v2424_v32, %v2151_v17  ;;  %3456 = vmatprep.subr.bf16.mxu1 %v7699_v15  ;;  %v2155_v41 = vpop.f32.mrf.mxu0  ;;  %2700 = vmatmul.mubr.bf16.gmra.mxu0 %v12373_v38  ;;  %v12377_v15 = vunpack.c.l.s8.bf16 %v8429_v20  ;;  %v9144_v32 = vld [vmem:[%s8154_s13 + $0xb0] sm:$0xff]  ;;  %v7708_v38 = vld [vmem:[%s11946_s2 + $0x36c] ss:$16 sps:$4 sm:$0xff]  }
 0x136   : > { %v2428_v13 = vpop.f32.mrf.mxu1  ;;  %2973 = vmatmul.mubr.bf16.gmra.mxu1 %v12374_v48  ;;  %2709 = vmatprep.mubr.bf16.mxu0 %v12376_v44  ;;  %12378 = vst [vmem:[#allocation25_spill] sm:$0xff] %v9144_v32  ;;  %v7703_v48 = vld [vmem:[%s11946_s2 + $0x588] ss:$16 sps:$4 sm:$0xff]  }
 0x137   : > { %12372 = vst [vmem:[#allocation23_spill] sm:$0xff] %v9125_v1  ;;  %v9137_v17 = vadd.f32 %v2428_v13, %v2155_v41  ;;  %2982 = vmatprep.mubr.bf16.mxu1 %v12377_v15  ;;  %v4312_v1 = vld [vmem:[%s8751_s20 + $0xc0] sm:$0xff]  ;;  %v2157_v21 = vpop.f32.mrf.mxu0  ;;  %3184 = vmatpush2.bf16.msra.mxu0 %v7694_v30  ;;  %v4313_v41 = vld [vmem:[%s8751_s20 + $0xc8] sm:$0xff] }
 0x138   : > { %v2430_v57 = vpop.f32.mrf.mxu1  ;;  %3457 = vmatpush2.bf16.msra.mxu1 %v7697_v12  ;;  %3185 = vmatprep.subr.bf16.mxu0 %v7702_v23  ;;  %v7711_v12 = vld [vmem:[%s11946_s2 + $0x56c] ss:$16 sps:$4 sm:$0xff]   ;;  %v7709_v15 = vld [vmem:[%s11946_s2 + $0x568] ss:$16 sps:$4 sm:$0xff]  }
 0x139   : > { %12375 = vst [vmem:[#allocation24_spill] sm:$0xff] %v9137_v17  ;;  %v9154_v13 = vadd.f32 %v2430_v57, %v2157_v21  ;;  %3458 = vmatprep.subr.bf16.mxu1 %v7705_v18  ;;  %v2159_v30 = vpop.f32.mrf.mxu0  ;;  %4458 = vperm.xlu0 %7440, %v4312_v1   ;;  %v7706_v18 = vld [vmem:[%s11946_s2 + $0x368] ss:$16 sps:$4 sm:$0xff]   ;;  %v12383_v21 = vunpack.c.l.s8.bf16 %v8471_v47 }
 0x13a   : > { %v2432_v44 = vpop.f32.mrf.mxu1  ;;  %4463 = vperm.xlu1 %7441, %v4313_v41   ;;  %v7714_v41 = vld [vmem:[%s11946_s2 + $0x34c] ss:$16 sps:$4 sm:$0xff]  }
 0x13b   : > { %12379 = vst [vmem:[#allocation26_spill] sm:$0xff] %v9154_v13  ;;  %v9163_v17 = vadd.f32 %v2432_v44, %v2159_v30  ;;  %v2161_v57 = vpop.f32.mrf.mxu0  ;;  %3186 = vmatpush2.bf16.msra.mxu0 %v7700_v62  ;;  %v7717_v62 = vld [vmem:[%s11946_s2 + $0x54c] ss:$16 sps:$4 sm:$0xff]   ;;  %v12382_v44 = vunpack.c.l.s8.bf16 %v9144_v32 }
 0x13c   : > { %v2434_v23 = vpop.f32.mrf.mxu1  ;;  %3459 = vmatpush2.bf16.msra.mxu1 %v7703_v48  ;;  %3187 = vmatprep.subr.bf16.mxu0 %v7708_v38  ;;  %v12385_v38 = vunpack.c.h.s8.bf16 %v9097_v4 }
 0x13d   : > { %12380 = vst [vmem:[#allocation27_spill] sm:$0xff] %v9163_v17  ;;  %v9172_v1 = vadd.f32 %v2434_v23, %v2161_v57  ;;  %3460 = vmatprep.subr.bf16.mxu1 %v7711_v12  ;;  %v2165_v48 = vpop.f32.mrf.mxu0  ;;  %2710 = vmatmul.mubr.bf16.gmra.mxu0 %v12382_v44  ;;  %v12386_v12 = vunpack.c.h.s8.bf16 %v8429_v20  ;;  %v9191_v23 = vld [vmem:[%s8154_s13 + $0xe8] sm:$0xff] }
 0x13e   : > { %v2438_v30 = vpop.f32.mrf.mxu1  ;;  %2983 = vmatmul.mubr.bf16.gmra.mxu1 %v12383_v21  ;;  %2719 = vmatprep.mubr.bf16.mxu0 %v12385_v38  ;;  %v7712_v44 = vld [vmem:[%s11946_s2 + $0x348] ss:$16 sps:$4 sm:$0xff]   ;;  %v7720_v20 = vld [vmem:[%s11946_s2 + $0x32c] ss:$16 sps:$4 sm:$0xff]  }
 0x13f   : > { %12381 = vst [vmem:[#allocation28_spill] sm:$0xff] %v9172_v1  ;;  %v9184_v57 = vadd.f32 %v2438_v30, %v2165_v48  ;;  %2992 = vmatprep.mubr.bf16.mxu1 %v12386_v12  ;;  %v4314_v1 = vld [vmem:[%s8751_s20 + $0xd0] sm:$0xff]  ;;  %v2167_v17 = vpop.f32.mrf.mxu0  ;;  %3188 = vmatpush2.bf16.msra.mxu0 %v7706_v18  ;;  %v7715_v21 = vld [vmem:[%s11946_s2 + $0x548] ss:$16 sps:$4 sm:$0xff]  }
 0x140   : > { %v2440_v13 = vpop.f32.mrf.mxu1  ;;  %3461 = vmatpush2.bf16.msra.mxu1 %v7709_v15  ;;  %v4315_v48 = vld [vmem:[%s8751_s20 + $0xd8] sm:$0xff]  ;;  %3189 = vmatprep.subr.bf16.mxu0 %v7714_v41 }
 0x141   : > { %12384 = vst [vmem:[#allocation29_spill] sm:$0xff] %v9184_v57  ;;  %v9201_v30 = vadd.f32 %v2440_v13, %v2167_v17  ;;  %3462 = vmatprep.subr.bf16.mxu1 %v7717_v62  ;;  %v7723_v15 = vld [vmem:[%s11946_s2 + $0x52c] ss:$16 sps:$4 sm:$0xff]   ;;  %v2169_v18 = vpop.f32.mrf.mxu0  ;;  %4468 = vperm.xlu0 %7440, %v4314_v1   ;;  %v7718_v62 = vld [vmem:[%s11946_s2 + $0x328] ss:$16 sps:$4 sm:$0xff]   ;;  %v12391_v17 = vunpack.c.h.s8.bf16 %v8471_v47 }
 0x142   : > { %v2442_v38 = vpop.f32.mrf.mxu1  ;;  %4473 = vperm.xlu1 %7441, %v4315_v48   ;;  %v7721_v12 = vld [vmem:[%s11946_s2 + $0x528] ss:$16 sps:$4 sm:$0xff]   ;;  %v7726_v48 = vld [vmem:[%s11946_s2 + $0x30c] ss:$16 sps:$4 sm:$0xff]  }
 0x143   : > { %12387 = vst [vmem:[#allocation30_spill] sm:$0xff] %v9201_v30  ;;  %v9210_v57 = vadd.f32 %v2442_v38, %v2169_v18  ;;  %v2171_v13 = vpop.f32.mrf.mxu0  ;;  %3190 = vmatpush2.bf16.msra.mxu0 %v7712_v44  ;;  %v7729_v44 = vld [vmem:[%s11946_s2 + $0x50c] ss:$16 sps:$4 sm:$0xff]   ;;  %v12390_v38 = vunpack.c.h.s8.bf16 %v9144_v32  ;;  %v7724_v47 = vld [vmem:[%s11946_s2 + $0x308] ss:$16 sps:$4 sm:$0xff]  }
 0x144   : > { %v2444_v41 = vpop.f32.mrf.mxu1  ;;  %3463 = vmatpush2.bf16.msra.mxu1 %v7715_v21  ;;  %3191 = vmatprep.subr.bf16.mxu0 %v7720_v20  ;;  %v12393_v20 = vunpack.c.l.s8.bf16 %v9191_v23 }
 0x145   : > { %12388 = vst [vmem:[#allocation31_spill] sm:$0xff] %v9210_v57  ;;  %v9219_v1 = vadd.f32 %v2444_v41, %v2171_v13  ;;  %3464 = vmatprep.subr.bf16.mxu1 %v7723_v15  ;;  %v2175_v21 = vpop.f32.mrf.mxu0  ;;  %2720 = vmatmul.mubr.bf16.gmra.mxu0 %v12390_v38  ;;  %v12394_v15 = vunpack.c.l.s8.bf16 %v8513_v16  ;;  %v9238_v41 = vld [vmem:[%s8154_s13 + $0xe0] sm:$0xff] }
 0x146   : > { %v2448_v18 = vpop.f32.mrf.mxu1  ;;  %2993 = vmatmul.mubr.bf16.gmra.mxu1 %v12391_v17  ;;  %2729 = vmatprep.mubr.bf16.mxu0 %v12393_v20  ;;  %v7727_v17 = vld [vmem:[%s11946_s2 + $0x508] ss:$16 sps:$4 sm:$0xff]  }
 0x147   : > { %12389 = vst [vmem:[#allocation32_spill] sm:$0xff] %v9219_v1  ;;  %v9231_v13 = vadd.f32 %v2448_v18, %v2175_v21  ;;  %3002 = vmatprep.mubr.bf16.mxu1 %v12394_v15  ;;  %v4316_v1 = vld [vmem:[%s8751_s20 + $0xe0] sm:$0xff]  ;;  %v2177_v57 = vpop.f32.mrf.mxu0  ;;  %3192 = vmatpush2.bf16.msra.mxu0 %v7718_v62  ;;  %v4317_v21 = vld [vmem:[%s8751_s20 + $0xe8] sm:$0xff]  ;;  %v12089_v15 = vunpack.c.l.s8.bf16 %v9238_v41  ;;  %v12090_v62 = vunpack.c.h.s8.bf16 %v9191_v23 }
 0x148   : > { %v2450_v30 = vpop.f32.mrf.mxu1  ;;  %3465 = vmatpush2.bf16.msra.mxu1 %v7721_v12  ;;  %3193 = vmatprep.subr.bf16.mxu0 %v7726_v48  ;;  %v12397_v48 = vmov 0  }
 0x149   : > { %12392 = vst [vmem:[#allocation33_spill] sm:$0xff] %v9231_v13  ;;  %v9248_v18 = vadd.f32 %v2450_v30, %v2177_v57  ;;  %3466 = vmatprep.subr.bf16.mxu1 %v7729_v44  ;;  %v2179_v38 = vpop.f32.mrf.mxu0  ;;  %4478 = vperm.xlu0 %7440, %v4316_v1   ;;  %v4318_v30 = vld [vmem:[%s8751_s20 + $0xf0] sm:$0xff] }
 0x14a   : > { %v2452_v20 = vpop.f32.mrf.mxu1  ;;  %4483 = vperm.xlu1 %7441, %v4317_v21   ;;  %v12398_v21 = vunpack.c.l.s8.bf16 %v8551_v0 }
 0x14b   : > { %v9251_v12 = vadd.f32 %v2452_v20, %v2179_v38  ;;  %v2181_v13 = vpop.f32.mrf.mxu0  ;;  %3194 = vmatpush2.bf16.msra.mxu0 %v7724_v47  ;;  %v4319_v20 = vld [vmem:[%s8751_s20 + $0xf8] sm:$0xff] }
 0x14c   : > { %v2454_v32 = vpop.f32.mrf.mxu1  ;;  %3467 = vmatpush2.bf16.msra.mxu1 %v7727_v17  ;;  %5766 = vmatprep.subr.bf16.mxu0 %v12397_v48  ;;  %v9270_v17 = vld [vmem:[%s8154_s13 + $0x118] sm:$0xff] }
 0x14d   : > { %12395 = vst [vmem:[#allocation34_spill] sm:$0xff] %v9251_v12  ;;  %v9254_v57 = vadd.f32 %v2454_v32, %v2181_v13  ;;  %5991 = vmatprep.subr.bf16.mxu1 %v12397_v48  ;;  %v2185_v44 = vpop.f32.mrf.mxu0  ;;  %2730 = vmatmul.mubr.bf16.gmra.mxu0 %v12089_v15  ;;  %v12400_v32 = vunpack.c.h.s8.bf16 %v8513_v16  ;;  %v12092_v16 = vunpack.c.l.s8.bf16 %v9270_v17 }
 0x14e   : > { %v2458_v1 = vpop.f32.mrf.mxu1  ;;  %3003 = vmatmul.mubr.bf16.gmra.mxu1 %v12398_v21  ;;  %2739 = vmatprep.mubr.bf16.mxu0 %v12090_v62 }
 0x14f   : > { %12396 = vst [vmem:[#allocation35_spill] sm:$0xff] %v9254_v57  ;;  %v9263_v38 = vadd.f32 %v2458_v1, %v2185_v44  ;;  %3012 = vmatprep.mubr.bf16.mxu1 %v12400_v32  ;;  %v2187_v13 = vpop.f32.mrf.mxu0  ;;  %4488 = vperm.xlu0 %7440, %v4318_v30   ;;  %v12091_v44 = vunpack.c.h.s8.bf16 %v9238_v41 }
 0x150   : > { %v2460_v47 = vpop.f32.mrf.mxu1  ;;  %4493 = vperm.xlu1 %7441, %v4319_v20  }
 0x151   : > { %12399 = vst [vmem:[#allocation36_spill] sm:$0xff] %v9263_v38  ;;  %v9273_v57 = vadd.f32 %v2460_v47, %v2187_v13  ;;  %v2189_v15 = vpop.f32.mrf.mxu0  ;;  %v4320_v38 = vld [vmem:[%s8751_s20 + $0x100] sm:$0xff]  ;;  %v12404_v47 = vunpack.c.h.s8.bf16 %v8551_v0 }
 0x152   : > { %v2462_v21 = vpop.f32.mrf.mxu1 }
 0x153   : > { %12401 = vst [vmem:[#allocation37_spill] sm:$0xff] %v9273_v57  ;;  %v9276_v1 = vadd.f32 %v2462_v21, %v2189_v15  ;;  %v2191_v32 = vpop.f32.mrf.mxu0  ;;  %4498 = vperm.xlu0 %7440, %v4320_v38   ;;  %v12406_v15 = vunpack.c.l.s8.bf16 %v8579_v42 }
 0x154   : > { %v2464_v62 = vpop.f32.mrf.mxu1 }
 0x155   : > { %12402 = vst [vmem:[#allocation38_spill] sm:$0xff] %v9276_v1  ;;  %v9280_v12 = vadd.f32 %v2464_v62, %v2191_v32  ;;  %v2195_v30 = vpop.f32.mrf.mxu0  ;;  %2740 = vmatmul.mubr.bf16.gmra.mxu0 %v12091_v44  ;;  %v9293_v62 = vld [vmem:[%s8154_s13 + $0x110] sm:$0xff]  ;;  %v4321_v32 = vld [vmem:[%s8751_s20 + $0x108] sm:$0xff] }
 0x156   : > { %v2468_v13 = vpop.f32.mrf.mxu1  ;;  %3013 = vmatmul.mubr.bf16.gmra.mxu1 %v12404_v47  ;;  %2749 = vmatprep.mubr.bf16.mxu0 %v12092_v16  ;;  %v12094_v47 = vunpack.c.h.s8.bf16 %v9270_v17 }
 0x157   : > { %12403 = vst [vmem:[#allocation39_spill] sm:$0xff] %v9280_v12  ;;  %v9286_v20 = vadd.f32 %v2468_v13, %v2195_v30  ;;  %3022 = vmatprep.mubr.bf16.mxu1 %v12406_v15  ;;  %v2197_v38 = vpop.f32.mrf.mxu0  ;;  %4503 = vperm.xlu1 %7441, %v4321_v32   ;;  %v12093_v30 = vunpack.c.l.s8.bf16 %v9293_v62  ;;  %v12412_v32 = vunpack.c.h.s8.bf16 %v8579_v42 }
 0x158   : > { %v2470_v21 = vpop.f32.mrf.mxu1 }
 0x159   : > { %12405 = vst [vmem:[#allocation40_spill] sm:$0xff] %v9286_v20  ;;  %v9296_v12 = vadd.f32 %v2470_v21, %v2197_v38  ;;  %v2199_v44 = vpop.f32.mrf.mxu0  ;;  %v4322_v20 = vld [vmem:[%s8751_s20 + $0x110] sm:$0xff]  ;;  %v12410_v21 = vunpack.c.l.s8.bf16 %v8599_v53 }
 0x15a   : > { %v2472_v0 = vpop.f32.mrf.mxu1  ;;  %4508 = vperm.xlu0 %7440, %v4322_v20   ;;  %v9316_v20 = vld [vmem:[%s8154_s13 + $0x148] sm:$0xff] }
 0x15b   : > { %12407 = vst [vmem:[#allocation41_spill] sm:$0xff] %v9296_v12  ;;  %v9299_v13 = vadd.f32 %v2472_v0, %v2199_v44  ;;  %v2201_v16 = vpop.f32.mrf.mxu0 }
 0x15c   : > { %v2474_v15 = vpop.f32.mrf.mxu1 }
 0x15d   : > { %12408 = vst [vmem:[#allocation42_spill] sm:$0xff] %v9299_v13  ;;  %v9303_v1 = vadd.f32 %v2474_v15, %v2201_v16  ;;  %v2205_v57 = vpop.f32.mrf.mxu0  ;;  %2750 = vmatmul.mubr.bf16.gmra.mxu0 %v12093_v30  ;;  %v4323_v15 = vld [vmem:[%s8751_s20 + $0x118] sm:$0xff] }
 0x15e   : > { %v2478_v38 = vpop.f32.mrf.mxu1  ;;  %3023 = vmatmul.mubr.bf16.gmra.mxu1 %v12410_v21  ;;  %2759 = vmatprep.mubr.bf16.mxu0 %v12094_v47  ;;  %v12096_v21 = vunpack.c.l.s8.bf16 %v9316_v20  ;;  %v4324_v47 = vld [vmem:[%s8751_s20 + $0x120] sm:$0xff] }
 0x15f   : > { %12409 = vst [vmem:[#allocation43_spill] sm:$0xff] %v9303_v1  ;;  %v9309_v44 = vadd.f32 %v2478_v38, %v2205_v57  ;;  %3032 = vmatprep.mubr.bf16.mxu1 %v12412_v32  ;;  %v2207_v16 = vpop.f32.mrf.mxu0  ;;  %4513 = vperm.xlu1 %7441, %v4323_v15   ;;  %v12095_v57 = vunpack.c.h.s8.bf16 %v9293_v62 }
 0x160   : > { %v2480_v0 = vpop.f32.mrf.mxu1  ;;  %4518 = vperm.xlu0 %7440, %v4324_v47  }
 0x161   : > { %12411 = vst [vmem:[#allocation44_spill] sm:$0xff] %v9309_v44  ;;  %v9319_v1 = vadd.f32 %v2480_v0, %v2207_v16  ;;  %v2209_v30 = vpop.f32.mrf.mxu0  ;;  %v12416_v0 = vunpack.c.h.s8.bf16 %v8599_v53 }
 0x162   : > { %v2482_v13 = vpop.f32.mrf.mxu1 }
 0x163   : > { %12413 = vst [vmem:[#allocation45_spill] sm:$0xff] %v9319_v1  ;;  %v9322_v38 = vadd.f32 %v2482_v13, %v2209_v30  ;;  %v2211_v42 = vpop.f32.mrf.mxu0  ;;  %v12418_v30 = vunpack.c.l.s8.bf16 %v8621_v11  ;;  %v9339_v13 = vld [vmem:[%s8154_s13 + $0x140] sm:$0xff] }
 0x164   : > { %v2484_v32 = vpop.f32.mrf.mxu1 }
 0x165   : > { %12414 = vst [vmem:[#allocation46_spill] sm:$0xff] %v9322_v38  ;;  %v9326_v44 = vadd.f32 %v2484_v32, %v2211_v42  ;;  %v2215_v12 = vpop.f32.mrf.mxu0  ;;  %2760 = vmatmul.mubr.bf16.gmra.mxu0 %v12095_v57  ;;  %v4325_v32 = vld [vmem:[%s8751_s20 + $0x128] sm:$0xff] }
 0x166   : > { %v2488_v16 = vpop.f32.mrf.mxu1  ;;  %3033 = vmatmul.mubr.bf16.gmra.mxu1 %v12416_v0  ;;  %2769 = vmatprep.mubr.bf16.mxu0 %v12096_v21  ;;  %v12098_v0 = vunpack.c.h.s8.bf16 %v9316_v20 }
 0x167   : > { %12415 = vst [vmem:[#allocation47_spill] sm:$0xff] %v9326_v44  ;;  %v9332_v15 = vadd.f32 %v2488_v16, %v2215_v12  ;;  %3042 = vmatprep.mubr.bf16.mxu1 %v12418_v30  ;;  %v2217_v47 = vpop.f32.mrf.mxu0  ;;  %4523 = vperm.xlu1 %7441, %v4325_v32   ;;  %v12097_v12 = vunpack.c.l.s8.bf16 %v9339_v13  ;;  %v12424_v32 = vunpack.c.h.s8.bf16 %v8621_v11 }
 0x168   : > { %v2490_v42 = vpop.f32.mrf.mxu1 }
 0x169   : > { %12417 = vst [vmem:[#allocation48_spill] sm:$0xff] %v9332_v15  ;;  %v9342_v44 = vadd.f32 %v2490_v42, %v2217_v47  ;;  %v2219_v57 = vpop.f32.mrf.mxu0  ;;  %v4326_v15 = vld [vmem:[%s8751_s20 + $0x130] sm:$0xff]  ;;  %v12422_v42 = vunpack.c.l.s8.bf16 %v8643_v61 }
 0x16a   : > { %v2492_v53 = vpop.f32.mrf.mxu1  ;;  %4528 = vperm.xlu0 %7440, %v4326_v15   ;;  %v9362_v15 = vld [vmem:[%s8154_s13 + $0x178] sm:$0xff] }
 0x16b   : > { %12419 = vst [vmem:[#allocation49_spill] sm:$0xff] %v9342_v44  ;;  %v9345_v16 = vadd.f32 %v2492_v53, %v2219_v57  ;;  %v2221_v21 = vpop.f32.mrf.mxu0 }
 0x16c   : > { %v2494_v30 = vpop.f32.mrf.mxu1 }
 0x16d   : > { %12420 = vst [vmem:[#allocation50_spill] sm:$0xff] %v9345_v16  ;;  %v9349_v38 = vadd.f32 %v2494_v30, %v2221_v21  ;;  %v2225_v1 = vpop.f32.mrf.mxu0  ;;  %2770 = vmatmul.mubr.bf16.gmra.mxu0 %v12097_v12  ;;  %v4327_v30 = vld [vmem:[%s8751_s20 + $0x138] sm:$0xff] }
 0x16e   : > { %v2498_v47 = vpop.f32.mrf.mxu1  ;;  %3043 = vmatmul.mubr.bf16.gmra.mxu1 %v12422_v42  ;;  %2779 = vmatprep.mubr.bf16.mxu0 %v12098_v0  ;;  %v12100_v42 = vunpack.c.l.s8.bf16 %v9362_v15  ;;  %v4328_v0 = vld [vmem:[%s8751_s20 + $0x140] sm:$0xff] }
 0x16f   : > { %12421 = vst [vmem:[#allocation51_spill] sm:$0xff] %v9349_v38  ;;  %v9355_v57 = vadd.f32 %v2498_v47, %v2225_v1  ;;  %3052 = vmatprep.mubr.bf16.mxu1 %v12424_v32  ;;  %v2227_v21 = vpop.f32.mrf.mxu0  ;;  %4533 = vperm.xlu1 %7441, %v4327_v30   ;;  %v12099_v1 = vunpack.c.h.s8.bf16 %v9339_v13 }
 0x170   : > { %v2500_v53 = vpop.f32.mrf.mxu1  ;;  %4538 = vperm.xlu0 %7440, %v4328_v0  }
 0x171   : > { %12423 = vst [vmem:[#allocation52_spill] sm:$0xff] %v9355_v57  ;;  %v9365_v38 = vadd.f32 %v2500_v53, %v2227_v21  ;;  %v2229_v12 = vpop.f32.mrf.mxu0  ;;  %v12428_v53 = vunpack.c.h.s8.bf16 %v8643_v61 }
 0x172   : > { %v2502_v16 = vpop.f32.mrf.mxu1 }
 0x173   : > { %12425 = vst [vmem:[#allocation53_spill] sm:$0xff] %v9365_v38  ;;  %v9368_v47 = vadd.f32 %v2502_v16, %v2229_v12  ;;  %v2231_v11 = vpop.f32.mrf.mxu0  ;;  %v12430_v12 = vunpack.c.l.s8.bf16 %v8657_v59  ;;  %v9385_v16 = vld [vmem:[%s8154_s13 + $0x170] sm:$0xff] }
 0x174   : > { %v2504_v32 = vpop.f32.mrf.mxu1 }
 0x175   : > { %12426 = vst [vmem:[#allocation54_spill] sm:$0xff] %v9368_v47  ;;  %v9372_v57 = vadd.f32 %v2504_v32, %v2231_v11  ;;  %v2235_v44 = vpop.f32.mrf.mxu0  ;;  %2780 = vmatmul.mubr.bf16.gmra.mxu0 %v12099_v1  ;;  %v4329_v32 = vld [vmem:[%s8751_s20 + $0x148] sm:$0xff] }
 0x176   : > { %v2508_v21 = vpop.f32.mrf.mxu1  ;;  %3053 = vmatmul.mubr.bf16.gmra.mxu1 %v12428_v53  ;;  %2789 = vmatprep.mubr.bf16.mxu0 %v12100_v42  ;;  %v12102_v53 = vunpack.c.h.s8.bf16 %v9362_v15 }
 0x177   : > { %12427 = vst [vmem:[#allocation55_spill] sm:$0xff] %v9372_v57  ;;  %v9378_v30 = vadd.f32 %v2508_v21, %v2235_v44  ;;  %3062 = vmatprep.mubr.bf16.mxu1 %v12430_v12  ;;  %v2237_v0 = vpop.f32.mrf.mxu0  ;;  %4543 = vperm.xlu1 %7441, %v4329_v32   ;;  %v12101_v44 = vunpack.c.l.s8.bf16 %v9385_v16  ;;  %v12436_v32 = vunpack.c.h.s8.bf16 %v8657_v59 }
 0x178   : > { %v2510_v11 = vpop.f32.mrf.mxu1 }
 0x179   : > { %12429 = vst [vmem:[#allocation56_spill] sm:$0xff] %v9378_v30  ;;  %v9388_v57 = vadd.f32 %v2510_v11, %v2237_v0  ;;  %v2239_v1 = vpop.f32.mrf.mxu0  ;;  %v4330_v30 = vld [vmem:[%s8751_s20 + $0x150] sm:$0xff]  ;;  %v12434_v11 = vunpack.c.l.s8.bf16 %v8671_v55 }
 0x17a   : > { %v2512_v61 = vpop.f32.mrf.mxu1  ;;  %4548 = vperm.xlu0 %7440, %v4330_v30   ;;  %v9408_v30 = vld [vmem:[%s8154_s13 + $0x1a8] sm:$0xff] }
 0x17b   : > { %12431 = vst [vmem:[#allocation57_spill] sm:$0xff] %v9388_v57  ;;  %v9391_v21 = vadd.f32 %v2512_v61, %v2239_v1  ;;  %v2241_v42 = vpop.f32.mrf.mxu0 }
 0x17c   : > { %v2514_v12 = vpop.f32.mrf.mxu1 }
 0x17d   : > { %12432 = vst [vmem:[#allocation58_spill] sm:$0xff] %v9391_v21  ;;  %v9395_v47 = vadd.f32 %v2514_v12, %v2241_v42  ;;  %v2245_v38 = vpop.f32.mrf.mxu0  ;;  %2790 = vmatmul.mubr.bf16.gmra.mxu0 %v12101_v44  ;;  %v4331_v12 = vld [vmem:[%s8751_s20 + $0x158] sm:$0xff] }
 0x17e   : > { %v2518_v0 = vpop.f32.mrf.mxu1  ;;  %3063 = vmatmul.mubr.bf16.gmra.mxu1 %v12434_v11  ;;  %2799 = vmatprep.mubr.bf16.mxu0 %v12102_v53  ;;  %v12104_v11 = vunpack.c.l.s8.bf16 %v9408_v30  ;;  %v4332_v53 = vld [vmem:[%s8751_s20 + $0x160] sm:$0xff] }
 0x17f   : > { %12433 = vst [vmem:[#allocation59_spill] sm:$0xff] %v9395_v47  ;;  %v9401_v1 = vadd.f32 %v2518_v0, %v2245_v38  ;;  %3072 = vmatprep.mubr.bf16.mxu1 %v12436_v32  ;;  %v2247_v42 = vpop.f32.mrf.mxu0  ;;  %4553 = vperm.xlu1 %7441, %v4331_v12   ;;  %v12103_v38 = vunpack.c.h.s8.bf16 %v9385_v16 }
 0x180   : > { %v2520_v61 = vpop.f32.mrf.mxu1  ;;  %4558 = vperm.xlu0 %7440, %v4332_v53  }
 0x181   : > { %12435 = vst [vmem:[#allocation60_spill] sm:$0xff] %v9401_v1  ;;  %v9411_v47 = vadd.f32 %v2520_v61, %v2247_v42  ;;  %v2249_v44 = vpop.f32.mrf.mxu0  ;;  %v12440_v61 = vunpack.c.h.s8.bf16 %v8671_v55 }
 0x182   : > { %v2522_v21 = vpop.f32.mrf.mxu1 }
 0x183   : > { %12437 = vst [vmem:[#allocation61_spill] sm:$0xff] %v9411_v47  ;;  %v9414_v0 = vadd.f32 %v2522_v21, %v2249_v44  ;;  %v2251_v59 = vpop.f32.mrf.mxu0  ;;  %v12442_v44 = vunpack.c.l.s8.bf16 %v8697_v9  ;;  %v9431_v21 = vld [vmem:[%s8154_s13 + $0x1a0] sm:$0xff] }
 0x184   : > { %v2524_v32 = vpop.f32.mrf.mxu1 }
 0x185   : > { %12438 = vst [vmem:[#allocation62_spill] sm:$0xff] %v9414_v0  ;;  %v9418_v1 = vadd.f32 %v2524_v32, %v2251_v59  ;;  %v2255_v57 = vpop.f32.mrf.mxu0  ;;  %2800 = vmatmul.mubr.bf16.gmra.mxu0 %v12103_v38  ;;  %v4333_v32 = vld [vmem:[%s8751_s20 + $0x168] sm:$0xff] }
 0x186   : > { %v2528_v42 = vpop.f32.mrf.mxu1  ;;  %3073 = vmatmul.mubr.bf16.gmra.mxu1 %v12440_v61  ;;  %2809 = vmatprep.mubr.bf16.mxu0 %v12104_v11  ;;  %v12106_v61 = vunpack.c.h.s8.bf16 %v9408_v30 }
 0x187   : > { %12439 = vst [vmem:[#allocation63_spill] sm:$0xff] %v9418_v1  ;;  %v9424_v12 = vadd.f32 %v2528_v42, %v2255_v57  ;;  %3082 = vmatprep.mubr.bf16.mxu1 %v12442_v44  ;;  %v2257_v53 = vpop.f32.mrf.mxu0  ;;  %4563 = vperm.xlu1 %7441, %v4333_v32   ;;  %v12105_v57 = vunpack.c.l.s8.bf16 %v9431_v21  ;;  %v12448_v32 = vunpack.c.h.s8.bf16 %v8697_v9 }
 0x188   : > { %v2530_v59 = vpop.f32.mrf.mxu1 }
 0x189   : > { %12441 = vst [vmem:[#allocation64_spill] sm:$0xff] %v9424_v12  ;;  %v9434_v1 = vadd.f32 %v2530_v59, %v2257_v53  ;;  %v2259_v38 = vpop.f32.mrf.mxu0  ;;  %v4334_v12 = vld [vmem:[%s8751_s20 + $0x170] sm:$0xff]  ;;  %v12446_v59 = vunpack.c.l.s8.bf16 %v8715_v25 }
 0x18a   : > { %v2532_v55 = vpop.f32.mrf.mxu1  ;;  %4568 = vperm.xlu0 %7440, %v4334_v12   ;;  %v4335_v12 = vld [vmem:[%s8751_s20 + $0x178] sm:$0xff] }
 0x18b   : > { %12443 = vst [vmem:[#allocation65_spill] sm:$0xff] %v9434_v1  ;;  %v9437_v42 = vadd.f32 %v2532_v55, %v2259_v38  ;;  %v2261_v11 = vpop.f32.mrf.mxu0  ;;  %4573 = vperm.xlu1 %7441, %v4335_v12  }
 0x18c   : > { %v2534_v44 = vpop.f32.mrf.mxu1 }
 0x18d   : > { %12444 = vst [vmem:[#allocation66_spill] sm:$0xff] %v9437_v42  ;;  %v9441_v0 = vadd.f32 %v2534_v44, %v2261_v11  ;;  %v2265_v47 = vpop.f32.mrf.mxu0  ;;  %2810 = vmatmul.mubr.bf16.gmra.mxu0 %v12105_v57  ;;  %v9454_v44 = vld [vmem:[%s8154_s13 + $0x1d8] sm:$0xff] }
 0x18e   : > { %v2538_v53 = vpop.f32.mrf.mxu1  ;;  %3083 = vmatmul.mubr.bf16.gmra.mxu1 %v12446_v59  ;;  %2819 = vmatprep.mubr.bf16.mxu0 %v12106_v61  ;;  %v12107_v59 = vunpack.c.l.s8.bf16 %v9454_v44 }
 0x18f   : > { %12445 = vst [vmem:[#allocation67_spill] sm:$0xff] %v9441_v0  ;;  %v9447_v38 = vadd.f32 %v2538_v53, %v2265_v47  ;;  %3092 = vmatprep.mubr.bf16.mxu1 %v12448_v32  ;;  %v2267_v55 = vpop.f32.mrf.mxu0  ;;  %v12108_v47 = vunpack.c.h.s8.bf16 %v9431_v21 }
 0x190   : > { %v2540_v11 = vpop.f32.mrf.mxu1 }
 0x191   : > { %12447 = vst [vmem:[#allocation68_spill] sm:$0xff] %v9447_v38  ;;  %v9457_v0 = vadd.f32 %v2540_v11, %v2267_v55  ;;  %v2269_v57 = vpop.f32.mrf.mxu0  ;;  %v12451_v55 = vunpack.c.h.s8.bf16 %v8715_v25 }
 0x192   : > { %v2542_v42 = vpop.f32.mrf.mxu1 }
 0x193   : > { %v9460_v53 = vadd.f32 %v2542_v42, %v2269_v57  ;;  %v2271_v61 = vpop.f32.mrf.mxu0  ;;  %v12453_v57 = vunpack.c.l.s8.bf16 %v8734_v29  ;;  %v9476_v42 = vld [vmem:[%s8154_s13 + $0x1d0] sm:$0xff] }
 0x194   : > { %v2544_v9 = vpop.f32.mrf.mxu1  ;;  %v12109_v25 = vunpack.c.l.s8.bf16 %v9476_v42 }
 0x195   : > { %12449 = vst [vmem:[#allocation69_spill] sm:$0xff] %v9460_v53  ;;  %v9463_v32 = vadd.f32 %v2544_v9, %v2271_v61  ;;  %v2275_v38 = vpop.f32.mrf.mxu0  ;;  %2820 = vmatmul.mubr.bf16.gmra.mxu0 %v12108_v47 }
 0x196   : > { %v2548_v1 = vpop.f32.mrf.mxu1  ;;  %3093 = vmatmul.mubr.bf16.gmra.mxu1 %v12451_v55  ;;  %2829 = vmatprep.mubr.bf16.mxu0 %v12107_v59 }
 0x197   : > { %12450 = vst [vmem:[#allocation70_spill] sm:$0xff] %v9463_v32  ;;  %v9469_v11 = vadd.f32 %v2548_v1, %v2275_v38  ;;  %3102 = vmatprep.mubr.bf16.mxu1 %v12453_v57  ;;  %v2277_v61 = vpop.f32.mrf.mxu0  ;;  %v12110_v1 = vunpack.c.h.s8.bf16 %v9454_v44 }
 0x198   : > { %v2550_v12 = vpop.f32.mrf.mxu1 }
 0x199   : > { %12452 = vst [vmem:[#allocation71_spill] sm:$0xff] %v9469_v11  ;;  %v9478_v9 = vadd.f32 %v2550_v12, %v2277_v61  ;;  %v2279_v32 = vpop.f32.mrf.mxu0  ;;  %v12457_v61 = vunpack.c.l.s8.bf16 %v8765_v10 }
 0x19a   : > { %v2552_v53 = vpop.f32.mrf.mxu1 }
 0x19b   : > { %12454 = vst [vmem:[#allocation72_spill] sm:$0xff] %v9478_v9  ;;  %v9481_v55 = vadd.f32 %v2552_v53, %v2279_v32  ;;  %v2281_v38 = vpop.f32.mrf.mxu0  ;;  %v12459_v53 = vunpack.c.h.s8.bf16 %v8734_v29  ;;  %v12112_v9 = vunpack.c.h.s8.bf16 %v9476_v42 }
 0x19c   : > { %v2554_v59 = vpop.f32.mrf.mxu1 }
 0x19d   : > { %12455 = vst [vmem:[#allocation73_spill] sm:$0xff] %v9481_v55  ;;  %v9484_v47 = vadd.f32 %v2554_v59, %v2281_v38  ;;  %v2285_v57 = vpop.f32.mrf.mxu0  ;;  %2830 = vmatmul.mubr.bf16.gmra.mxu0 %v12109_v25  ;;  %v9497_v59 = vld [vmem:[%s8154_s13 + $0x208] sm:$0xff] }
 0x19e   : > { %v2558_v11 = vpop.f32.mrf.mxu1  ;;  %3103 = vmatmul.mubr.bf16.gmra.mxu1 %v12457_v61  ;;  %2839 = vmatprep.mubr.bf16.mxu0 %v12110_v1 }
 0x19f   : > { %12456 = vst [vmem:[#allocation74_spill] sm:$0xff] %v9484_v47  ;;  %v9490_v12 = vadd.f32 %v2558_v11, %v2285_v57  ;;  %3112 = vmatprep.mubr.bf16.mxu1 %v12459_v53  ;;  %v2287_v32 = vpop.f32.mrf.mxu0  ;;  %v12111_v11 = vunpack.c.l.s8.bf16 %v9497_v59 }
 0x1a0   : > { %v2560_v55 = vpop.f32.mrf.mxu1 }
 0x1a1   : > { %12458 = vst [vmem:[#allocation75_spill] sm:$0xff] %v9490_v12  ;;  %v9499_v38 = vadd.f32 %v2560_v55, %v2287_v32  ;;  %v2289_v47 = vpop.f32.mrf.mxu0  ;;  %v12463_v55 = vunpack.c.h.s8.bf16 %v8765_v10 }
 0x1a2   : > { %v2562_v25 = vpop.f32.mrf.mxu1 }
 0x1a3   : > { %12460 = vst [vmem:[#allocation76_spill] sm:$0xff] %v9499_v38  ;;  %v9502_v61 = vadd.f32 %v2562_v25, %v2289_v47  ;;  %v2291_v57 = vpop.f32.mrf.mxu0  ;;  %v12465_v47 = vunpack.c.l.s8.bf16 %v8785_v27  ;;  %v9518_v25 = vld [vmem:[%s8154_s13 + $0x200] sm:$0xff] }
 0x1a4   : > { %v2564_v1 = vpop.f32.mrf.mxu1  ;;  %12466 = vst [vmem:[#allocation80_spill] sm:$0xff] %v9518_v25  ;;  %v12113_v10 = vunpack.c.l.s8.bf16 %v9518_v25 }
 0x1a5   : > { %12461 = vst [vmem:[#allocation77_spill] sm:$0xff] %v9502_v61  ;;  %v9505_v12 = vadd.f32 %v2564_v1, %v2291_v57  ;;  %v2295_v29 = vpop.f32.mrf.mxu0  ;;  %2840 = vmatmul.mubr.bf16.gmra.mxu0 %v12112_v9 }
 0x1a6   : > { %v2568_v53 = vpop.f32.mrf.mxu1  ;;  %3113 = vmatmul.mubr.bf16.gmra.mxu1 %v12463_v55  ;;  %2849 = vmatprep.mubr.bf16.mxu0 %v12111_v11 }
 0x1a7   : > { %12462 = vst [vmem:[#allocation78_spill] sm:$0xff] %v9505_v12  ;;  %v9511_v32 = vadd.f32 %v2568_v53, %v2295_v29  ;;  %3122 = vmatprep.mubr.bf16.mxu1 %v12465_v47  ;;  %v2297_v1 = vpop.f32.mrf.mxu0  ;;  %v12114_v29 = vunpack.c.h.s8.bf16 %v9497_v59 }
 0x1a8   : > { %v2570_v57 = vpop.f32.mrf.mxu1 }
 0x1a9   : > { %12464 = vst [vmem:[#allocation79_spill] sm:$0xff] %v9511_v32  ;;  %v9520_v12 = vadd.f32 %v2570_v57, %v2297_v1  ;;  %v2299_v61 = vpop.f32.mrf.mxu0  ;;  %v12470_v1 = vunpack.c.l.s8.bf16 %v8805_v58 }
 0x1aa   : > { %v2572_v38 = vpop.f32.mrf.mxu1 }
 0x1ab   : > { %12467 = vst [vmem:[#allocation81_spill] sm:$0xff] %v9520_v12  ;;  %v9523_v55 = vadd.f32 %v2572_v38, %v2299_v61  ;;  %v2301_v53 = vpop.f32.mrf.mxu0  ;;  %v12472_v38 = vunpack.c.h.s8.bf16 %v8785_v27  ;;  %v12115_v12 = vunpack.c.h.s8.bf16 %v9518_v25 }
 0x1ac   : > { %v2574_v11 = vpop.f32.mrf.mxu1 }
 0x1ad   : > { %12468 = vst [vmem:[#allocation82_spill] sm:$0xff] %v9523_v55  ;;  %v9526_v9 = vadd.f32 %v2574_v11, %v2301_v53  ;;  %v2305_v47 = vpop.f32.mrf.mxu0  ;;  %2850 = vmatmul.mubr.bf16.gmra.mxu0 %v12113_v10  ;;  %v9539_v11 = vld [vmem:[%s8154_s13 + $0x238] sm:$0xff] }
 0x1ae   : > { %v2578_v32 = vpop.f32.mrf.mxu1  ;;  %3123 = vmatmul.mubr.bf16.gmra.mxu1 %v12470_v1  ;;  %2859 = vmatprep.mubr.bf16.mxu0 %v12114_v29 }
 0x1af   : > { %12469 = vst [vmem:[#allocation83_spill] sm:$0xff] %v9526_v9  ;;  %v9532_v57 = vadd.f32 %v2578_v32, %v2305_v47  ;;  %3132 = vmatprep.mubr.bf16.mxu1 %v12472_v38  ;;  %v2307_v61 = vpop.f32.mrf.mxu0  ;;  %v12116_v32 = vunpack.c.l.s8.bf16 %v9539_v11 }
 0x1b0   : > { %v2580_v55 = vpop.f32.mrf.mxu1 }
 0x1b1   : > { %12471 = vst [vmem:[#allocation84_spill] sm:$0xff] %v9532_v57  ;;  %v9541_v53 = vadd.f32 %v2580_v55, %v2307_v61  ;;  %v2309_v9 = vpop.f32.mrf.mxu0  ;;  %v12476_v55 = vunpack.c.h.s8.bf16 %v8805_v58 }
 0x1b2   : > { %v2582_v10 = vpop.f32.mrf.mxu1 }
 0x1b3   : > { %12473 = vst [vmem:[#allocation85_spill] sm:$0xff] %v9541_v53  ;;  %v9544_v1 = vadd.f32 %v2582_v10, %v2309_v9  ;;  %v2311_v47 = vpop.f32.mrf.mxu0  ;;  %v12478_v9 = vunpack.c.l.s8.bf16 %v8825_v34  ;;  %v9560_v10 = vld [vmem:[%s8154_s13 + $0x230] sm:$0xff] }
 0x1b4   : > { %v2584_v29 = vpop.f32.mrf.mxu1 }
 0x1b5   : > { %12474 = vst [vmem:[#allocation86_spill] sm:$0xff] %v9544_v1  ;;  %v9547_v57 = vadd.f32 %v2584_v29, %v2311_v47  ;;  %v2315_v27 = vpop.f32.mrf.mxu0  ;;  %2860 = vmatmul.mubr.bf16.gmra.mxu0 %v12115_v12  ;;  %v12117_v12 = vunpack.c.l.s8.bf16 %v9560_v10 }
 0x1b6   : > { %v2588_v38 = vpop.f32.mrf.mxu1  ;;  %3133 = vmatmul.mubr.bf16.gmra.mxu1 %v12476_v55  ;;  %2869 = vmatprep.mubr.bf16.mxu0 %v12116_v32 }
 0x1b7   : > { %12475 = vst [vmem:[#allocation87_spill] sm:$0xff] %v9547_v57  ;;  %v9553_v61 = vadd.f32 %v2588_v38, %v2315_v27  ;;  %3142 = vmatprep.mubr.bf16.mxu1 %v12478_v9  ;;  %v2317_v29 = vpop.f32.mrf.mxu0  ;;  %v12120_v27 = vunpack.c.h.s8.bf16 %v9539_v11 }
 0x1b8   : > { %v2590_v47 = vpop.f32.mrf.mxu1 }
 0x1b9   : > { %12477 = vst [vmem:[#allocation88_spill] sm:$0xff] %v9553_v61  ;;  %v9562_v57 = vadd.f32 %v2590_v47, %v2317_v29  ;;  %v2319_v1 = vpop.f32.mrf.mxu0  ;;  %v12482_v29 = vunpack.c.l.s8.bf16 %v8845_v60 }
 0x1ba   : > { %v2592_v53 = vpop.f32.mrf.mxu1 }
 0x1bb   : > { %12479 = vst [vmem:[#allocation89_spill] sm:$0xff] %v9562_v57  ;;  %v9565_v58 = vadd.f32 %v2592_v53, %v2319_v1  ;;  %v2321_v38 = vpop.f32.mrf.mxu0  ;;  %v12484_v53 = vunpack.c.h.s8.bf16 %v8825_v34  ;;  %v12121_v57 = vunpack.c.h.s8.bf16 %v9560_v10  ;;  %v12486_v34 = vunpack.c.h.s8.bf16 %v8845_v60  ;;  %v7730_v60 = vld [vmem:[%s11948_s4 + $0x38] sm:$0xff]  }
 0x1bc   : > { %v2594_v55 = vpop.f32.mrf.mxu1 }
 0x1bd   : > { %12480 = vst [vmem:[#allocation90_spill] sm:$0xff] %v9565_v58  ;;  %v9568_v32 = vadd.f32 %v2594_v55, %v2321_v38  ;;  %v2325_v61 = vpop.f32.mrf.mxu0  ;;  %2870 = vmatmul.mubr.bf16.gmra.mxu0 %v12117_v12 }
 0x1be   : > { %v2598_v9 = vpop.f32.mrf.mxu1  ;;  %3143 = vmatmul.mubr.bf16.gmra.mxu1 %v12482_v29  ;;  %2879 = vmatprep.mubr.bf16.mxu0 %v12120_v27 }
 0x1bf   : > { %12481 = vst [vmem:[#allocation91_spill] sm:$0xff] %v9568_v32  ;;  %v9574_v47 = vadd.f32 %v2598_v9, %v2325_v61  ;;  %3152 = vmatprep.mubr.bf16.mxu1 %v12484_v53  ;;  %v2327_v1 = vpop.f32.mrf.mxu0  ;;  %v12487_v53 = vunpack.c.l.s8.bf16 %v8173_v50 }
 0x1c0   : > { %v2600_v58 = vpop.f32.mrf.mxu1 }
 0x1c1   : > { %12483 = vst [vmem:[#allocation92_spill] sm:$0xff] %v9574_v47  ;;  %v9580_v38 = vadd.f32 %v2600_v58, %v2327_v1  ;;  %v2329_v55 = vpop.f32.mrf.mxu0 }
 0x1c2   : > { %v2602_v32 = vpop.f32.mrf.mxu1 }
 0x1c3   : > { %v9583_v12 = vadd.f32 %v2602_v32, %v2329_v55  ;;  %v2331_v25 = vpop.f32.mrf.mxu0  ;;  %v12488_v32 = vunpack.c.l.s8.bf16 %v8865_v14 }
 0x1c4   : > { %v2604_v29 = vpop.f32.mrf.mxu1 }
 0x1c5   : > { %v9585_v61 = vadd.f32 %v2604_v29, %v2331_v25  ;;  %v2335_v9 = vpop.f32.mrf.mxu0  ;;  %2880 = vmatmul.mubr.bf16.gmra.mxu0 %v12121_v57 }
 0x1c6   : > { %v2608_v47 = vpop.f32.mrf.mxu1  ;;  %3153 = vmatmul.mubr.bf16.gmra.mxu1 %v12486_v34  ;;  %3195 = vmatprep.mubr.bf16.mxu0 %v12487_v53 }
 0x1c7   : > { %12485 = vst [vmem:[#allocation93_spill] sm:$0xff] %v9585_v61  ;;  %v9591_v58 = vadd.f32 %v2608_v47, %v2335_v9  ;;  %3468 = vmatprep.mubr.bf16.mxu1 %v12488_v32  ;;  %v2337_v1 = vpop.f32.mrf.mxu0  ;;  %v9604_v47 = vpop.permute.xlu0 %4338  ;;  %v7731_v9 = vld [vmem:[%s11948_s4 + $0xb8] sm:$0xff]  }
 0x1c8   : > { %v2610_v55 = vpop.f32.mrf.mxu1 }
 0x1c9   : > { %v9597_v25 = vadd.f32 %v2610_v55, %v2337_v1  ;;  %v2339_v29 = vpop.f32.mrf.mxu0 }
 0x1ca   : > { %v2612_v27 = vpop.f32.mrf.mxu1 }
 0x1cb   : > { %v9599_v61 = vadd.f32 %v2612_v27, %v2339_v29  ;;  %v2341_v34 = vpop.f32.mrf.mxu0  ;;  %v12492_v27 = vunpack.c.l.s8.bf16 %v8232_v5  ;;  %v12493_v29 = vunpack.c.l.s8.bf16 %v8881_v51 }
 0x1cc   : > { %v2614_v53 = vpop.f32.mrf.mxu1 }
 0x1cd   : > { %12489 = vst [vmem:[#allocation94_spill] sm:$0xff] %v9599_v61  ;;  %v9609_v32 = vadd.f32 %v2614_v53, %v2341_v34  ;;  %v2651_v1 = vpop.f32.mrf.mxu0  ;;  %3196 = vmatmul.mubr.bf16.vlgmr.msra.gmra.mxu0 %v12492_v27  ;;  %v7732_v61 = vld [vmem:[%s11948_s4 + $0x30] sm:$0xff]   ;;  %v12495_v27 = vunpack.c.h.s8.bf16 %v8173_v50 }
 0x1ce   : > { %v9611_v55 = vpop.f32.mrf.mxu1  ;;  %3469 = vmatmul.mubr.bf16.vlgmr.msra.gmra.mxu1 %v12493_v29  ;;  %v2652_v57 = vadd.f32 %v2651_v1, %v8903_v36  ;;  %5767 = vmatpush1.bf16.msra.mxu0 %v7730_v60  ;;  %v7733_v34 = vld [vmem:[%s11948_s4 + $0xb0] sm:$0xff]   ;;  %v12496_v29 = vunpack.c.h.s8.bf16 %v8865_v14  ;;  %v9631_v60 = vpop.permute.xlu0 %4343 }
 0x1cf   : > { %12490 = vst [vmem:[#allocation95_spill] sm:$0xff] %v9609_v32  ;;  %12491 = vst [vmem:[#allocation96_spill] sm:$0xff] %v9611_v55  ;;  %5992 = vmatpush1.bf16.msra.mxu1 %v7731_v9  ;;  %v2653_v53 = vpop.f32.mrf.mxu0  ;;  %3205 = vmatprep.mubr.bf16.mxu0 %v12495_v27 }
 0x1d0   : > { %v9624_v55 = vpop.f32.mrf.mxu1  ;;  %3478 = vmatprep.mubr.bf16.mxu1 %v12496_v29  ;;  %v2654_v36 = vadd.f32 %v2653_v53, %v8925_v54  ;;  %5768 = vmatprep.subr.bf16.mxu0 %v12397_v48  ;;  %v7734_v54 = vld [vmem:[%s11948_s4 + $0x28] sm:$0xff]  }
 0x1d1   : > { %12494 = vst [vmem:[#allocation97_spill] sm:$0xff] %v9624_v55  ;;  %5993 = vmatprep.subr.bf16.mxu1 %v12397_v48  ;;  %v2655_v9 = vpop.f32.mrf.mxu0  ;;  %v9638_v55 = vpop.permute.xlu1 %4348  ;;  %v7735_v53 = vld [vmem:[%s11948_s4 + $0xa8] sm:$0xff]  }
 0x1d2   : > { %v9635_v1 = vpop.f32.mrf.mxu1  ;;  %v2656_v32 = vadd.f32 %v2655_v9, %v8928_v46  ;;  %5769 = vmatpush1.bf16.msra.mxu0 %v7732_v61  ;;  %v9651_v46 = vmul.f32 %v9604_v47, %v2652_v57  ;;  %v9658_v27 = vmul.f32 %v9604_v47, %v2654_v36  ;;  %v12506_v36 = vunpack.c.l.s8.bf16 %v8270_v19 }
 0x1d3   : > { %12497 = vst [vmem:[#allocation98_spill] sm:$0xff] %v9635_v1  ;;  %5994 = vmatpush1.bf16.msra.mxu1 %v7733_v34  ;;  %v2657_v50 = vpop.f32.mrf.mxu0  ;;  %5770 = vmatprep.subr.bf16.mxu0 %v12397_v48  ;;  %v12504_v1 = vunpack.c.h.s8.bf16 %v8881_v51  ;;  %v7736_v51 = vld [vmem:[%s11948_s4 + $0x20] sm:$0xff]  }
 0x1d4   : > { %v9640_v14 = vpop.f32.mrf.mxu1  ;;  %5995 = vmatprep.subr.bf16.mxu1 %v12397_v48  ;;  %12499 = vst [vmem:[#allocation100_spill] sm:$0xff] %v9651_v46  ;;  %v9654_v61 = vmul.f32 %v9631_v60, %v2656_v32  ;;  %v2658_v34 = vadd.f32 %v2657_v50, %v8938_v3  ;;  %12501 = vst [vmem:[#allocation102_spill] sm:$0xff] %v9658_v27  ;;  %v12507_v50 = vunpack.c.l.s8.bf16 %v8912_v22  ;;  %v12511_v46 = vunpack.c.l.s8.bf16 %v8306_v31 }
 0x1d5   : > { %12498 = vst [vmem:[#allocation99_spill] sm:$0xff] %v9640_v14  ;;  %v2661_v29 = vpop.f32.mrf.mxu0  ;;  %v12503_v14 = vunpack.c.h.s8.bf16 %v8232_v5 }
 0x1d6   : > { %12500 = vst [vmem:[#allocation101_spill] sm:$0xff] %v9654_v61  ;;  %v9660_v9 = vpop.f32.mrf.mxu1  ;;  %3479 = vmatmul.mubr.bf16.gmra.mxu1 %v12504_v1  ;;  %v9669_v32 = vmul.f32 %v9631_v60, %v2658_v34  ;;  %v2662_v3 = vadd.f32 %v2661_v29, %v8950_v52  ;;  %5771 = vmatpush1.bf16.msra.mxu0 %v7734_v54  ;;  %v7737_v1 = vld [vmem:[%s11948_s4 + $0xa0] sm:$0xff]  }
 0x1d7   : > { %12502 = vst [vmem:[#allocation103_spill] sm:$0xff] %v9660_v9  ;;  %3206 = vmatmul.mubr.bf16.gmra.mxu0 %v12503_v14  ;;  %3488 = vmatprep.mubr.bf16.mxu1 %v12507_v50  ;;  %v2663_v9 = vpop.f32.mrf.mxu0  ;;  %v9685_v14 = vpop.permute.xlu1 %4353 }
 0x1d8   : > { %12505 = vst [vmem:[#allocation104_spill] sm:$0xff] %v9669_v32  ;;  %3215 = vmatprep.mubr.bf16.mxu0 %v12506_v36  ;;  %v9676_v5 = vpop.f32.mrf.mxu1  ;;  %5996 = vmatpush1.bf16.msra.mxu1 %v7735_v53  ;;  %v2664_v52 = vadd.f32 %v2663_v9, %v8966_v6  ;;  %v7738_v6 = vld [vmem:[%s11948_s4 + $0x18] sm:$0xff]   ;;  %v9703_v57 = vmul.f32 %v9638_v55, %v2662_v3  ;;  %v12512_v3 = vunpack.c.l.s8.bf16 %v8957_v40 }
 0x1d9   : > { %5772 = vmatprep.subr.bf16.mxu0 %v12397_v48  ;;  %5997 = vmatprep.subr.bf16.mxu1 %v12397_v48  ;;  %v2665_v53 = vpop.f32.mrf.mxu0  ;;  %v7739_v9 = vld [vmem:[%s11948_s4 + $0x98] sm:$0xff]  }
 0x1da   : > { %v9691_v34 = vpop.f32.mrf.mxu1  ;;  %v2666_v29 = vadd.f32 %v2665_v53, %v8975_v28  ;;  %5773 = vmatpush1.bf16.msra.mxu0 %v7736_v51  ;;  %12508 = vst [vmem:[#allocation105_spill] sm:$0xff] %v9703_v57  ;;  %v9712_v51 = vmul.f32 %v9638_v55, %v2664_v52  ;;  %v12515_v52 = vunpack.c.h.s8.bf16 %v8912_v22  ;;  %v12519_v57 = vunpack.c.h.s8.bf16 %v8306_v31 }
 0x1db   : > { %v2667_v36 = vpop.f32.mrf.mxu0  ;;  %5774 = vmatprep.subr.bf16.mxu0 %v12397_v48 }
 0x1dc   : > { %v9694_v50 = vpop.f32.mrf.mxu1  ;;  %5998 = vmatpush1.bf16.msra.mxu1 %v7737_v1  ;;  %v9706_v54 = vmul.f32 %v9685_v14, %v2666_v29  ;;  %v2668_v28 = vadd.f32 %v2667_v36, %v8984_v8  ;;  %12510 = vst [vmem:[#allocation107_spill] sm:$0xff] %v9712_v51  ;;  %v12514_v36 = vunpack.c.h.s8.bf16 %v8270_v19  ;;  %v7741_v19 = vld [vmem:[%s11948_s4 + $0x90] sm:$0xff]  }
 0x1dd   : > { %5999 = vmatprep.subr.bf16.mxu1 %v12397_v48  ;;  %v2671_v1 = vpop.f32.mrf.mxu0 }
 0x1de   : > { %12509 = vst [vmem:[#allocation106_spill] sm:$0xff] %v9706_v54  ;;  %v9714_v53 = vpop.f32.mrf.mxu1  ;;  %3489 = vmatmul.mubr.bf16.gmra.mxu1 %v12512_v3  ;;  %v9721_v29 = vmul.f32 %v9685_v14, %v2668_v28  ;;  %v2672_v8 = vadd.f32 %v2671_v1, %v8996_v49  ;;  %5775 = vmatpush1.bf16.msra.mxu0 %v7738_v6  ;;  %v9738_v49 = vpop.permute.xlu0 %4358 }
 0x1df   : > { %3216 = vmatmul.mubr.bf16.gmra.mxu0 %v12511_v46  ;;  %3498 = vmatprep.mubr.bf16.mxu1 %v12515_v52  ;;  %v2673_v27 = vpop.f32.mrf.mxu0  ;;  %v7740_v46 = vld [vmem:[%s11948_s4 + $0x10] sm:$0xff]   ;;  %v9741_v28 = vpop.permute.xlu1 %4363 }
 0x1e0   : > { %12513 = vst [vmem:[#allocation108_spill] sm:$0xff] %v9721_v29  ;;  %3225 = vmatprep.mubr.bf16.mxu0 %v12514_v36  ;;  %v9730_v32 = vpop.f32.mrf.mxu1  ;;  %6000 = vmatpush1.bf16.msra.mxu1 %v7739_v9  ;;  %v2674_v22 = vadd.f32 %v2673_v27, %v9013_v56  ;;  %v7742_v56 = vld [vmem:[%s11948_s4 + $0x8] sm:$0xff]   ;;  %v9759_v61 = vmul.f32 %v9738_v49, %v2672_v8  ;;  %v12520_v8 = vunpack.c.h.s8.bf16 %v8957_v40  ;;  %v7744_v40 = vld [vmem:[%s11948_s4] sm:$0xff]  }
 0x1e1   : > { %5776 = vmatprep.subr.bf16.mxu0 %v12397_v48  ;;  %6001 = vmatprep.subr.bf16.mxu1 %v12397_v48  ;;  %v2675_v9 = vpop.f32.mrf.mxu0  ;;  %v7743_v27 = vld [vmem:[%s11948_s4 + $0x88] sm:$0xff]  }
 0x1e2   : > { %v9747_v1 = vpop.f32.mrf.mxu1  ;;  %v2676_v3 = vadd.f32 %v2675_v9, %v9022_v33  ;;  %5777 = vmatpush1.bf16.msra.mxu0 %v7740_v46  ;;  %12516 = vst [vmem:[#allocation109_spill] sm:$0xff] %v9759_v61  ;;  %v9768_v46 = vmul.f32 %v9738_v49, %v2674_v22  ;;  %v12523_v22 = vunpack.c.l.s8.bf16 %v9003_v24 }
 0x1e3   : > { %v2677_v36 = vpop.f32.mrf.mxu0  ;;  %5778 = vmatprep.subr.bf16.mxu0 %v12397_v48 }
 0x1e4   : > { %v9750_v52 = vpop.f32.mrf.mxu1  ;;  %6002 = vmatpush1.bf16.msra.mxu1 %v7741_v19  ;;  %v9762_v6 = vmul.f32 %v9741_v28, %v2676_v3  ;;  %v2678_v33 = vadd.f32 %v2677_v36, %v9031_v39  ;;  %12518 = vst [vmem:[#allocation111_spill] sm:$0xff] %v9768_v46  ;;  %v12522_v36 = vunpack.c.l.s8.bf16 %v8348_v45 }
 0x1e5   : > { %6003 = vmatprep.subr.bf16.mxu1 %v12397_v48  ;;  %v2681_v19 = vpop.f32.mrf.mxu0 }
 0x1e6   : > { %12517 = vst [vmem:[#allocation110_spill] sm:$0xff] %v9762_v6  ;;  %v9770_v9 = vpop.f32.mrf.mxu1  ;;  %3499 = vmatmul.mubr.bf16.gmra.mxu1 %v12520_v8  ;;  %v9777_v3 = vmul.f32 %v9741_v28, %v2678_v33  ;;  %v2682_v39 = vadd.f32 %v2681_v19, %v9043_v37  ;;  %5779 = vmatpush1.bf16.msra.mxu0 %v7742_v56  ;;  %v7745_v37 = vld [vmem:[%s11948_s4 + $0x80] sm:$0xff]   ;;  %v9797_v19 = vpop.permute.xlu1 %4373  ;;  %v12527_v6 = vunpack.c.l.s8.bf16 %v8394_v63 }
 0x1e7   : > { %3226 = vmatmul.mubr.bf16.gmra.mxu0 %v12519_v57  ;;  %3508 = vmatprep.mubr.bf16.mxu1 %v12523_v22  ;;  %v2683_v51 = vpop.f32.mrf.mxu0  ;;  %v9794_v57 = vpop.permute.xlu0 %4368 }
 0x1e8   : > { %12521 = vst [vmem:[#allocation112_spill] sm:$0xff] %v9777_v3  ;;  %3235 = vmatprep.mubr.bf16.mxu0 %v12522_v36  ;;  %v9786_v31 = vpop.f32.mrf.mxu1  ;;  %6004 = vmatpush1.bf16.msra.mxu1 %v7743_v27  ;;  %v2684_v33 = vadd.f32 %v2683_v51, %v9060_v26  ;;  %v7746_v26 = vld [vmem:[%s11948_s4 + $0x78] sm:$0xff]   ;;  %v9815_v56 = vmul.f32 %v9794_v57, %v2682_v39  ;;  %v12528_v39 = vunpack.c.l.s8.bf16 %v9050_v2 }
 0x1e9   : > { %5780 = vmatprep.subr.bf16.mxu0 %v12397_v48  ;;  %6005 = vmatprep.subr.bf16.mxu1 %v12397_v48  ;;  %v2685_v27 = vpop.f32.mrf.mxu0  ;;  %v7747_v51 = vld [vmem:[%s11948_s4 + $0xf8] sm:$0xff]  }
 0x1ea   : > { %v9803_v8 = vpop.f32.mrf.mxu1  ;;  %v2686_v36 = vadd.f32 %v2685_v27, %v9069_v43  ;;  %5781 = vmatpush1.bf16.msra.mxu0 %v7744_v40  ;;  %12524 = vst [vmem:[#allocation113_spill] sm:$0xff] %v9815_v56  ;;  %v9824_v40 = vmul.f32 %v9794_v57, %v2684_v33  ;;  %v12531_v33 = vunpack.c.h.s8.bf16 %v9003_v24  ;;  %v12534_v24 = vld [vmem:[#allocation21_spill] sm:$0xff] }
 0x1eb   : > { %v2687_v22 = vpop.f32.mrf.mxu0  ;;  %5782 = vmatprep.subr.bf16.mxu0 %v12397_v48 }
 0x1ec   : > { %v9806_v54 = vpop.f32.mrf.mxu1  ;;  %6006 = vmatpush1.bf16.msra.mxu1 %v7745_v37  ;;  %v9818_v61 = vmul.f32 %v9797_v19, %v2686_v36  ;;  %v2688_v43 = vadd.f32 %v2687_v22, %v9078_v7  ;;  %12526 = vst [vmem:[#allocation115_spill] sm:$0xff] %v9824_v40  ;;  %v12530_v22 = vunpack.c.h.s8.bf16 %v8348_v45  ;;  %v7749_v45 = vld [vmem:[%s11948_s4 + $0xf0] sm:$0xff]  }
 0x1ed   : > { %6007 = vmatprep.subr.bf16.mxu1 %v12397_v48  ;;  %v2691_v37 = vpop.f32.mrf.mxu0 }
 0x1ee   : > { %12525 = vst [vmem:[#allocation114_spill] sm:$0xff] %v9818_v61  ;;  %v9826_v27 = vpop.f32.mrf.mxu1  ;;  %3509 = vmatmul.mubr.bf16.gmra.mxu1 %v12528_v39  ;;  %v9833_v36 = vmul.f32 %v9797_v19, %v2688_v43  ;;  %v2692_v7 = vadd.f32 %v2691_v37, %v9090_v35  ;;  %5783 = vmatpush2.bf16.msra.mxu0 %v7746_v26  ;;  %v9850_v35 = vpop.permute.xlu0 %4378 }
 0x1ef   : > { %3236 = vmatmul.mubr.bf16.gmra.mxu0 %v12527_v6  ;;  %3518 = vmatprep.mubr.bf16.mxu1 %v12531_v33  ;;  %v2693_v3 = vpop.f32.mrf.mxu0  ;;  %v7748_v6 = vld [vmem:[%s11948_s4 + $0x70] sm:$0xff]   ;;  %12533 = vst [vmem:[#allocation118_spill] sm:$0xff] %v9850_v35  ;;  %v9853_v37 = vpop.permute.xlu1 %4383 }
 0x1f0   : > { %12529 = vst [vmem:[#allocation116_spill] sm:$0xff] %v9833_v36  ;;  %3245 = vmatprep.mubr.bf16.mxu0 %v12530_v22  ;;  %v9842_v29 = vpop.f32.mrf.mxu1  ;;  %6008 = vmatpush2.bf16.msra.mxu1 %v7747_v51  ;;  %v2694_v43 = vadd.f32 %v2693_v3, %v12534_v24  ;;  %12535 = vst [vmem:[#allocation21_spill] sm:$0xff] %v9853_v37  ;;  %v12537_v22 = vld [vmem:[#allocation22_spill] sm:$0xff]  ;;  %v7750_v3 = vld [vmem:[%s11948_s4 + $0x68] sm:$0xff]   ;;  %v9871_v26 = vmul.f32 %v9850_v35, %v2692_v7  ;;  %v12544_v36 = vunpack.c.h.s8.bf16 %v8394_v63 }
 0x1f1   : > { %12532 = vst [vmem:[#allocation117_spill] sm:$0xff] %v9842_v29  ;;  %5784 = vmatprep.subr.bf16.mxu0 %v12397_v48  ;;  %6009 = vmatprep.subr.bf16.mxu1 %v12397_v48  ;;  %v2695_v51 = vpop.f32.mrf.mxu0  ;;  %v7751_v24 = vld [vmem:[%s11948_s4 + $0xe8] sm:$0xff]   ;;  %v12545_v7 = vunpack.c.h.s8.bf16 %v9050_v2  ;;  %v7752_v2 = vld [vmem:[%s11948_s4 + $0x60] sm:$0xff]  }
 0x1f2   : > { %v9859_v39 = vpop.f32.mrf.mxu1  ;;  %v2696_v33 = vadd.f32 %v2695_v51, %v12537_v22  ;;  %5785 = vmatpush2.bf16.msra.mxu0 %v7748_v6  ;;  %12539 = vst [vmem:[#allocation120_spill] sm:$0xff] %v9871_v26  ;;  %v12541_v51 = vld [vmem:[#allocation23_spill] sm:$0xff]  ;;  %v9880_v6 = vmul.f32 %v9850_v35, %v2694_v43  ;;  %v12550_v43 = vunpack.c.l.s8.bf16 %v9097_v4 }
 0x1f3   : > { %12536 = vst [vmem:[#allocation119_spill] sm:$0xff] %v9859_v39  ;;  %v2697_v46 = vpop.f32.mrf.mxu0  ;;  %5786 = vmatprep.subr.bf16.mxu0 %v12397_v48 }
 0x1f4   : > { %v9862_v56 = vpop.f32.mrf.mxu1  ;;  %6010 = vmatpush2.bf16.msra.mxu1 %v7749_v45  ;;  %v9874_v61 = vmul.f32 %v9853_v37, %v2696_v33  ;;  %v2698_v22 = vadd.f32 %v2697_v46, %v12541_v51  ;;  %12542 = vst [vmem:[#allocation23_spill] sm:$0xff] %v9880_v6  ;;  %v12547_v46 = vld [vmem:[#allocation24_spill] sm:$0xff] }
 0x1f5   : > { %12538 = vst [vmem:[#allocation22_spill] sm:$0xff] %v9862_v56  ;;  %6011 = vmatprep.subr.bf16.mxu1 %v12397_v48  ;;  %v2701_v45 = vpop.f32.mrf.mxu0  ;;  %v12548_v56 = vld [vmem:[#allocation3_spill] sm:$0xff] }
 0x1f6   : > { %12540 = vst [vmem:[#allocation121_spill] sm:$0xff] %v9874_v61  ;;  %v9882_v40 = vpop.f32.mrf.mxu1  ;;  %3519 = vmatmul.mubr.bf16.gmra.mxu1 %v12545_v7  ;;  %v9889_v33 = vmul.f32 %v9853_v37, %v2698_v22  ;;  %v2702_v51 = vadd.f32 %v2701_v45, %v12547_v46  ;;  %v12549_v39 = vunpack.c.l.s8.bf16 %v12548_v56  ;;  %5787 = vmatpush2.bf16.msra.mxu0 %v7750_v3  ;;  %v12553_v22 = vld [vmem:[#allocation26_spill] sm:$0xff]  ;;  %v9909_v7 = vpop.permute.xlu1 %4393  ;;  %v12568_v37 = vunpack.c.h.s8.bf16 %v12548_v56  ;;  %v7757_v56 = vld [vmem:[%s11948_s4 + $0xd0] sm:$0xff]  }
 0x1f7   : > { %12543 = vst [vmem:[#allocation122_spill] sm:$0xff] %v9882_v40  ;;  %3246 = vmatmul.mubr.bf16.gmra.mxu0 %v12544_v36  ;;  %3528 = vmatprep.mubr.bf16.mxu1 %v12550_v43  ;;  %v2703_v35 = vpop.f32.mrf.mxu0  ;;  %v7753_v36 = vld [vmem:[%s11948_s4 + $0xe0] sm:$0xff]  }
 0x1f8   : > { %12546 = vst [vmem:[#allocation123_spill] sm:$0xff] %v9889_v33  ;;  %3255 = vmatprep.mubr.bf16.mxu0 %v12549_v39  ;;  %v9898_v63 = vpop.f32.mrf.mxu1  ;;  %6012 = vmatpush2.bf16.msra.mxu1 %v7751_v24  ;;  %v9906_v39 = vpop.permute.xlu0 %4388  ;;  %v2704_v45 = vadd.f32 %v2703_v35, %v12553_v22  ;;  %v12555_v43 = vld [vmem:[#allocation27_spill] sm:$0xff]  ;;  %v7754_v35 = vld [vmem:[%s11948_s4 + $0x58] sm:$0xff]  }
 0x1f9   : > { %12551 = vst [vmem:[#allocation24_spill] sm:$0xff] %v9898_v63  ;;  %12552 = vst [vmem:[#allocation3_spill] sm:$0xff] %v9906_v39  ;;  %5788 = vmatprep.subr.bf16.mxu0 %v12397_v48  ;;  %6013 = vmatprep.subr.bf16.mxu1 %v12397_v48  ;;  %v2705_v24 = vpop.f32.mrf.mxu0  ;;  %v7755_v22 = vld [vmem:[%s11948_s4 + $0xd8] sm:$0xff]   ;;  %v9927_v3 = vmul.f32 %v9906_v39, %v2702_v51  ;;  %v12564_v51 = vld [vmem:[#allocation25_spill] sm:$0xff] }
 0x1fa   : > { %v9915_v46 = vpop.f32.mrf.mxu1  ;;  %v2706_v40 = vadd.f32 %v2705_v24, %v12555_v43  ;;  %5789 = vmatpush2.bf16.msra.mxu0 %v7752_v2  ;;  %v12559_v24 = vld [vmem:[#allocation28_spill] sm:$0xff]  ;;  %v9936_v2 = vmul.f32 %v9906_v39, %v2704_v45  ;;  %v12565_v63 = vunpack.c.l.s8.bf16 %v12564_v51  ;;  %v12569_v45 = vunpack.c.h.s8.bf16 %v9097_v4  ;;  %v12570_v4 = vld [vmem:[#allocation30_spill] sm:$0xff] }
 0x1fb   : > { %12554 = vst [vmem:[#allocation26_spill] sm:$0xff] %v9915_v46  ;;  %v2707_v26 = vpop.f32.mrf.mxu0  ;;  %12557 = vst [vmem:[#allocation124_spill] sm:$0xff] %v9927_v3  ;;  %5790 = vmatprep.subr.bf16.mxu0 %v12397_v48 }
 0x1fc   : > { %v9918_v61 = vpop.f32.mrf.mxu1  ;;  %6014 = vmatpush2.bf16.msra.mxu1 %v7753_v36  ;;  %v9930_v6 = vmul.f32 %v9909_v7, %v2706_v40  ;;  %v2708_v43 = vadd.f32 %v2707_v26, %v12559_v24  ;;  %12560 = vst [vmem:[#allocation28_spill] sm:$0xff] %v9936_v2  ;;  %v12567_v26 = vld [vmem:[#allocation29_spill] sm:$0xff] }
 0x1fd   : > { %12556 = vst [vmem:[#allocation27_spill] sm:$0xff] %v9918_v61  ;;  %6015 = vmatprep.subr.bf16.mxu1 %v12397_v48  ;;  %v2711_v36 = vpop.f32.mrf.mxu0  ;;  %v12562_v61 = vld [vmem:[#allocation4_spill] sm:$0xff] }
 0x1fe   : > { %12558 = vst [vmem:[#allocation125_spill] sm:$0xff] %v9930_v6  ;;  %v9938_v33 = vpop.f32.mrf.mxu1  ;;  %v12563_v46 = vunpack.c.l.s8.bf16 %v12562_v61  ;;  %3529 = vmatmul.mubr.bf16.gmra.mxu1 %v12565_v63  ;;  %v9945_v40 = vmul.f32 %v9909_v7, %v2708_v43  ;;  %v2712_v24 = vadd.f32 %v2711_v36, %v12567_v26  ;;  %5791 = vmatpush2.bf16.msra.mxu0 %v7754_v35  ;;  %v7756_v63 = vld [vmem:[%s11948_s4 + $0x50] sm:$0xff]   ;;  %v9965_v43 = vpop.permute.xlu1 %4403  ;;  %v12572_v26 = vld [vmem:[#allocation31_spill] sm:$0xff] }
 0x1ff   : > { %12561 = vst [vmem:[#allocation126_spill] sm:$0xff] %v9938_v33  ;;  %3538 = vmatprep.mubr.bf16.mxu1 %v12569_v45  ;;  %v2713_v39 = vpop.f32.mrf.mxu0  ;;  %5792 = vmatprep.subr.bf16.mxu0 %v12397_v48 }
 0x200   : > { %3256 = vmatmul.mubr.bf16.gmra.mxu0 %v12563_v46  ;;  %12566 = vst [vmem:[#allocation4_spill] sm:$0xff] %v9945_v40  ;;  %v9954_v29 = vpop.f32.mrf.mxu1  ;;  %6016 = vmatpush2.bf16.msra.mxu1 %v7755_v22  ;;  %v2714_v46 = vadd.f32 %v2713_v39, %v12570_v4  ;;  %v7758_v39 = vld [vmem:[%s11948_s4 + $0x48] sm:$0xff]   ;;  %v12579_v40 = vunpack.c.h.s8.bf16 %v12562_v61 }
 0x201   : > { %3265 = vmatprep.mubr.bf16.mxu0 %v12568_v37  ;;  %v9962_v37 = vpop.permute.xlu0 %4398  ;;  %6017 = vmatprep.subr.bf16.mxu1 %v12397_v48  ;;  %v2715_v22 = vpop.f32.mrf.mxu0  ;;  %v7759_v4 = vld [vmem:[%s11948_s4 + $0xc8] sm:$0xff]  }
 0x202   : > { %v9971_v36 = vpop.f32.mrf.mxu1  ;;  %v2716_v45 = vadd.f32 %v2715_v22, %v12572_v26  ;;  %5793 = vmatpush2.bf16.msra.mxu0 %v7756_v63  ;;  %v9983_v35 = vmul.f32 %v9962_v37, %v2712_v24  ;;  %v12576_v22 = vld [vmem:[#allocation32_spill] sm:$0xff]  ;;  %v9992_v63 = vmul.f32 %v9962_v37, %v2714_v46  ;;  %v12580_v24 = vunpack.c.h.s8.bf16 %v12564_v51  ;;  %v7760_v51 = vld [vmem:[%s11948_s4 + $0x40] sm:$0xff]  }
 0x203   : > { %12571 = vst [vmem:[#allocation25_spill] sm:$0xff] %v9971_v36  ;;  %v2717_v33 = vpop.f32.mrf.mxu0  ;;  %5794 = vmatprep.subr.bf16.mxu0 %v12397_v48  ;;  %v12585_v46 = vunpack.c.l.s8.bf16 %v9191_v23 }
 0x204   : > { %v9974_v3 = vpop.f32.mrf.mxu1  ;;  %6018 = vmatpush2.bf16.msra.mxu1 %v7757_v56  ;;  %12574 = vst [vmem:[#allocation30_spill] sm:$0xff] %v9983_v35  ;;  %v9986_v6 = vmul.f32 %v9965_v43, %v2716_v45  ;;  %v2718_v26 = vadd.f32 %v2717_v33, %v12576_v22  ;;  %12577 = vst [vmem:[#allocation32_spill] sm:$0xff] %v9992_v63  ;;  %v12582_v33 = vld [vmem:[#allocation33_spill] sm:$0xff] }
 0x205   : > { %12573 = vst [vmem:[#allocation29_spill] sm:$0xff] %v9974_v3  ;;  %6019 = vmatprep.subr.bf16.mxu1 %v12397_v48  ;;  %v2721_v56 = vpop.f32.mrf.mxu0  ;;  %v12583_v3 = vld [vmem:[#allocation5_spill] sm:$0xff] }
 0x206   : > { %12575 = vst [vmem:[#allocation31_spill] sm:$0xff] %v9986_v6  ;;  %v9994_v2 = vpop.f32.mrf.mxu1  ;;  %3539 = vmatmul.mubr.bf16.gmra.mxu1 %v12580_v24  ;;  %v10002_v45 = vmul.f32 %v9965_v43, %v2718_v26  ;;  %v2722_v22 = vadd.f32 %v2721_v56, %v12582_v33  ;;  %v12584_v36 = vunpack.c.l.s8.bf16 %v12583_v3  ;;  %5795 = vmatpush2.bf16.msra.mxu0 %v7758_v39  ;;  %v7761_v26 = vld [vmem:[%s11948_s4 + $0xc0] sm:$0xff]   ;;  %v10022_v24 = vpop.permute.xlu1 %4413 }
 0x207   : > { %12578 = vst [vmem:[#allocation127_spill] sm:$0xff] %v9994_v2  ;;  %3548 = vmatprep.mubr.bf16.mxu1 %v12585_v46  ;;  %v2723_v61 = vpop.f32.mrf.mxu0  ;;  %12588 = vst [vmem:[#allocation129_spill] sm:$0xff] %v10022_v24  ;;  %5796 = vmatprep.subr.bf16.mxu0 %v12397_v48  ;;  %v12590_v46 = vld [vmem:[#allocation34_spill] sm:$0xff]  ;;  %v12594_v6 = vld [vmem:[#allocation35_spill] sm:$0xff] }
 0x208   : > { %3266 = vmatmul.mubr.bf16.gmra.mxu0 %v12579_v40  ;;  %12581 = vst [vmem:[#allocation128_spill] sm:$0xff] %v10002_v45  ;;  %v10011_v40 = vpop.f32.mrf.mxu1  ;;  %6020 = vmatpush2.bf16.msra.mxu1 %v7759_v4  ;;  %v2724_v56 = vadd.f32 %v2723_v61, %v9248_v18 }
 0x209   : > { %3275 = vmatprep.mubr.bf16.mxu0 %v12584_v36  ;;  %12586 = vst [vmem:[#allocation33_spill] sm:$0xff] %v10011_v40  ;;  %v10019_v36 = vpop.permute.xlu0 %4408  ;;  %6021 = vmatprep.subr.bf16.mxu1 %v12397_v48  ;;  %v2725_v4 = vpop.f32.mrf.mxu0 }
 0x20a   : > { %12587 = vst [vmem:[#allocation5_spill] sm:$0xff] %v10019_v36  ;;  %v10028_v33 = vpop.f32.mrf.mxu1  ;;  %v2726_v18 = vadd.f32 %v2725_v4, %v12590_v46  ;;  %5797 = vmatpush2.bf16.msra.mxu0 %v7760_v51  ;;  %v10039_v35 = vmul.f32 %v10019_v36, %v2722_v22  ;;  %v10048_v45 = vmul.f32 %v10019_v36, %v2724_v56  ;;  %v12597_v51 = vld [vmem:[#allocation6_spill] sm:$0xff]  ;;  %v12599_v22 = vunpack.c.l.s8.bf16 %v9238_v41 }
 0x20b   : > { %12589 = vst [vmem:[#allocation130_spill] sm:$0xff] %v10028_v33  ;;  %v2727_v61 = vpop.f32.mrf.mxu0  ;;  %6408 = vmatprep.subr.bf16.mxu0 %v12397_v48  ;;  %v12603_v56 = vunpack.c.h.s8.bf16 %v9191_v23  ;;  %v12608_v23 = vld [vmem:[#allocation38_spill] sm:$0xff] }
 0x20c   : > { %v10036_v2 = vpop.f32.mrf.mxu1  ;;  %6022 = vmatpush2.bf16.msra.mxu1 %v7761_v26  ;;  %12592 = vst [vmem:[#allocation131_spill] sm:$0xff] %v10039_v35  ;;  %v10042_v39 = vmul.f32 %v10022_v24, %v2726_v18  ;;  %v2728_v63 = vadd.f32 %v2727_v61, %v12594_v6  ;;  %12595 = vst [vmem:[#allocation35_spill] sm:$0xff] %v10048_v45  ;;  %v12598_v26 = vunpack.c.l.s8.bf16 %v12597_v51  ;;  %v12601_v6 = vld [vmem:[#allocation36_spill] sm:$0xff] }
 0x20d   : > { %12591 = vst [vmem:[#allocation34_spill] sm:$0xff] %v10036_v2  ;;  %6633 = vmatprep.subr.bf16.mxu1 %v12397_v48  ;;  %v2731_v4 = vpop.f32.mrf.mxu0  ;;  %v12602_v2 = vunpack.c.h.s8.bf16 %v12583_v3 }
 0x20e   : > { %12593 = vst [vmem:[#allocation132_spill] sm:$0xff] %v10042_v39  ;;  %v10050_v46 = vpop.f32.mrf.mxu1  ;;  %3549 = vmatmul.mubr.bf16.gmra.mxu1 %v12599_v22  ;;  %v10057_v18 = vmul.f32 %v10022_v24, %v2728_v63  ;;  %v2732_v61 = vadd.f32 %v2731_v4, %v12601_v6  ;;  %v12605_v22 = vld [vmem:[#allocation37_spill] sm:$0xff]  ;;  %v10071_v63 = vpop.permute.xlu1 %4423 }
 0x20f   : > { %12596 = vst [vmem:[#allocation133_spill] sm:$0xff] %v10050_v46  ;;  %3558 = vmatprep.mubr.bf16.mxu1 %v12603_v56  ;;  %v2733_v36 = vpop.f32.mrf.mxu0  ;;  %12606 = vst [vmem:[#allocation37_spill] sm:$0xff] %v10071_v63 }
 0x210   : > { %3276 = vmatmul.mubr.bf16.gmra.mxu0 %v12598_v26  ;;  %12600 = vst [vmem:[#allocation6_spill] sm:$0xff] %v10057_v18  ;;  %v10066_v33 = vpop.f32.mrf.mxu1  ;;  %v10068_v26 = vpop.permute.xlu0 %4418  ;;  %v2734_v40 = vadd.f32 %v2733_v36, %v12605_v22  ;;  %v12612_v36 = vld [vmem:[#allocation39_spill] sm:$0xff]  ;;  %v12615_v18 = vunpack.c.h.s8.bf16 %v12597_v51 }
 0x211   : > { %3285 = vmatprep.mubr.bf16.mxu0 %v12602_v2  ;;  %12604 = vst [vmem:[#allocation36_spill] sm:$0xff] %v10068_v26  ;;  %v2735_v3 = vpop.f32.mrf.mxu0  ;;  %v10081_v46 = vmul.f32 %v10068_v26, %v2732_v61 }
 0x212   : > { %v10075_v2 = vpop.f32.mrf.mxu1  ;;  %v2736_v6 = vadd.f32 %v2735_v3, %v12608_v23  ;;  %v10088_v39 = vmul.f32 %v10068_v26, %v2734_v40  ;;  %v12616_v3 = vunpack.c.h.s8.bf16 %v9238_v41  ;;  %v12618_v23 = vld [vmem:[#allocation40_spill] sm:$0xff]  ;;  %v12621_v40 = vunpack.c.l.s8.bf16 %v9270_v17  ;;  %v12623_v41 = vld [vmem:[#allocation41_spill] sm:$0xff] }
 0x213   : > { %12607 = vst [vmem:[#allocation134_spill] sm:$0xff] %v10075_v2  ;;  %v2737_v56 = vpop.f32.mrf.mxu0  ;;  %12610 = vst [vmem:[#allocation135_spill] sm:$0xff] %v10081_v46 }
 0x214   : > { %v10078_v24 = vpop.f32.mrf.mxu1  ;;  %v10084_v35 = vmul.f32 %v10071_v63, %v2736_v6  ;;  %v2738_v22 = vadd.f32 %v2737_v56, %v12612_v36  ;;  %12613 = vst [vmem:[#allocation39_spill] sm:$0xff] %v10088_v39 }
 0x215   : > { %12609 = vst [vmem:[#allocation38_spill] sm:$0xff] %v10078_v24  ;;  %v2741_v4 = vpop.f32.mrf.mxu0  ;;  %v12619_v24 = vld [vmem:[#allocation7_spill] sm:$0xff] }
 0x216   : > { %12611 = vst [vmem:[#allocation136_spill] sm:$0xff] %v10084_v35  ;;  %v10090_v45 = vpop.f32.mrf.mxu1  ;;  %3559 = vmatmul.mubr.bf16.gmra.mxu1 %v12616_v3  ;;  %v10097_v61 = vmul.f32 %v10071_v63, %v2738_v22  ;;  %v2742_v6 = vadd.f32 %v2741_v4, %v12618_v23  ;;  %v12620_v2 = vunpack.c.l.s8.bf16 %v12619_v24  ;;  %v10111_v22 = vpop.permute.xlu1 %4433 }
 0x217   : > { %12614 = vst [vmem:[#allocation137_spill] sm:$0xff] %v10090_v45  ;;  %3568 = vmatprep.mubr.bf16.mxu1 %v12621_v40  ;;  %v2743_v36 = vpop.f32.mrf.mxu0  ;;  %12624 = vst [vmem:[#allocation7_spill] sm:$0xff] %v10111_v22  ;;  %v12626_v45 = vld [vmem:[#allocation42_spill] sm:$0xff] }
 0x218   : > { %3286 = vmatmul.mubr.bf16.gmra.mxu0 %v12615_v18  ;;  %12617 = vst [vmem:[#allocation138_spill] sm:$0xff] %v10097_v61  ;;  %v10106_v51 = vpop.f32.mrf.mxu1  ;;  %v10108_v18 = vpop.permute.xlu0 %4428  ;;  %v2744_v3 = vadd.f32 %v2743_v36, %v12623_v41  ;;  %v12630_v36 = vld [vmem:[#allocation43_spill] sm:$0xff]  ;;  %v12633_v61 = vld [vmem:[#allocation8_spill] sm:$0xff] }
 0x219   : > { %3295 = vmatprep.mubr.bf16.mxu0 %v12620_v2  ;;  %12622 = vst [vmem:[#allocation40_spill] sm:$0xff] %v10108_v18  ;;  %v2745_v23 = vpop.f32.mrf.mxu0  ;;  %v10121_v56 = vmul.f32 %v10108_v18, %v2742_v6 }
 0x21a   : > { %v10115_v2 = vpop.f32.mrf.mxu1  ;;  %v2746_v40 = vadd.f32 %v2745_v23, %v12626_v45  ;;  %v10128_v35 = vmul.f32 %v10108_v18, %v2744_v3  ;;  %v12635_v45 = vunpack.c.l.s8.bf16 %v9293_v62  ;;  %v12637_v23 = vld [vmem:[#allocation44_spill] sm:$0xff] }
 0x21b   : > { %12625 = vst [vmem:[#allocation41_spill] sm:$0xff] %v10115_v2  ;;  %v2747_v63 = vpop.f32.mrf.mxu0  ;;  %12628 = vst [vmem:[#allocation139_spill] sm:$0xff] %v10121_v56  ;;  %v12634_v2 = vunpack.c.l.s8.bf16 %v12633_v61 }
 0x21c   : > { %v10118_v26 = vpop.f32.mrf.mxu1  ;;  %v10124_v46 = vmul.f32 %v10111_v22, %v2746_v40  ;;  %v2748_v41 = vadd.f32 %v2747_v63, %v12630_v36  ;;  %12631 = vst [vmem:[#allocation43_spill] sm:$0xff] %v10128_v35  ;;  %v12639_v63 = vunpack.c.h.s8.bf16 %v9270_v17  ;;  %v12644_v17 = vld [vmem:[#allocation46_spill] sm:$0xff] }
 0x21d   : > { %12627 = vst [vmem:[#allocation42_spill] sm:$0xff] %v10118_v26  ;;  %v2751_v4 = vpop.f32.mrf.mxu0  ;;  %v12638_v26 = vunpack.c.h.s8.bf16 %v12619_v24 }
 0x21e   : > { %12629 = vst [vmem:[#allocation140_spill] sm:$0xff] %v10124_v46  ;;  %v10130_v39 = vpop.f32.mrf.mxu1  ;;  %3569 = vmatmul.mubr.bf16.gmra.mxu1 %v12635_v45  ;;  %v10137_v6 = vmul.f32 %v10111_v22, %v2748_v41  ;;  %v2752_v40 = vadd.f32 %v2751_v4, %v12637_v23  ;;  %v12641_v45 = vld [vmem:[#allocation45_spill] sm:$0xff]  ;;  %v10151_v41 = vpop.permute.xlu1 %4443 }
 0x21f   : > { %12632 = vst [vmem:[#allocation141_spill] sm:$0xff] %v10130_v39  ;;  %3578 = vmatprep.mubr.bf16.mxu1 %v12639_v63  ;;  %v2753_v36 = vpop.f32.mrf.mxu0  ;;  %12642 = vst [vmem:[#allocation45_spill] sm:$0xff] %v10151_v41 }
 0x220   : > { %3296 = vmatmul.mubr.bf16.gmra.mxu0 %v12634_v2  ;;  %12636 = vst [vmem:[#allocation8_spill] sm:$0xff] %v10137_v6  ;;  %v10146_v39 = vpop.f32.mrf.mxu1  ;;  %v10148_v2 = vpop.permute.xlu0 %4438  ;;  %v2754_v18 = vadd.f32 %v2753_v36, %v12641_v45  ;;  %v12648_v36 = vld [vmem:[#allocation47_spill] sm:$0xff]  ;;  %v12651_v6 = vunpack.c.h.s8.bf16 %v12633_v61 }
 0x221   : > { %3305 = vmatprep.mubr.bf16.mxu0 %v12638_v26  ;;  %12640 = vst [vmem:[#allocation44_spill] sm:$0xff] %v10148_v2  ;;  %v2755_v24 = vpop.f32.mrf.mxu0  ;;  %v10161_v3 = vmul.f32 %v10148_v2, %v2752_v40 }
 0x222   : > { %v10155_v26 = vpop.f32.mrf.mxu1  ;;  %v2756_v23 = vadd.f32 %v2755_v24, %v12644_v17  ;;  %v10168_v46 = vmul.f32 %v10148_v2, %v2754_v18  ;;  %v12652_v24 = vunpack.c.h.s8.bf16 %v9293_v62  ;;  %v12654_v17 = vld [vmem:[#allocation48_spill] sm:$0xff]  ;;  %v12657_v18 = vunpack.c.l.s8.bf16 %v9316_v20  ;;  %v12659_v62 = vld [vmem:[#allocation49_spill] sm:$0xff] }
 0x223   : > { %12643 = vst [vmem:[#allocation142_spill] sm:$0xff] %v10155_v26  ;;  %v2757_v63 = vpop.f32.mrf.mxu0  ;;  %12646 = vst [vmem:[#allocation143_spill] sm:$0xff] %v10161_v3 }
 0x224   : > { %v10158_v22 = vpop.f32.mrf.mxu1  ;;  %v10164_v56 = vmul.f32 %v10151_v41, %v2756_v23  ;;  %v2758_v45 = vadd.f32 %v2757_v63, %v12648_v36  ;;  %12649 = vst [vmem:[#allocation47_spill] sm:$0xff] %v10168_v46 }
 0x225   : > { %12645 = vst [vmem:[#allocation46_spill] sm:$0xff] %v10158_v22  ;;  %v2761_v4 = vpop.f32.mrf.mxu0  ;;  %v12655_v22 = vld [vmem:[#allocation9_spill] sm:$0xff] }
 0x226   : > { %12647 = vst [vmem:[#allocation144_spill] sm:$0xff] %v10164_v56  ;;  %v10170_v35 = vpop.f32.mrf.mxu1  ;;  %3579 = vmatmul.mubr.bf16.gmra.mxu1 %v12652_v24  ;;  %v10177_v40 = vmul.f32 %v10151_v41, %v2758_v45  ;;  %v2762_v23 = vadd.f32 %v2761_v4, %v12654_v17  ;;  %v12656_v26 = vunpack.c.l.s8.bf16 %v12655_v22  ;;  %v10191_v45 = vpop.permute.xlu1 %4453 }
 0x227   : > { %12650 = vst [vmem:[#allocation145_spill] sm:$0xff] %v10170_v35  ;;  %3588 = vmatprep.mubr.bf16.mxu1 %v12657_v18  ;;  %v2763_v36 = vpop.f32.mrf.mxu0  ;;  %12660 = vst [vmem:[#allocation9_spill] sm:$0xff] %v10191_v45  ;;  %v12662_v35 = vld [vmem:[#allocation50_spill] sm:$0xff] }
 0x228   : > { %3306 = vmatmul.mubr.bf16.gmra.mxu0 %v12651_v6  ;;  %12653 = vst [vmem:[#allocation146_spill] sm:$0xff] %v10177_v40  ;;  %v10186_v61 = vpop.f32.mrf.mxu1  ;;  %v10188_v6 = vpop.permute.xlu0 %4448  ;;  %v2764_v24 = vadd.f32 %v2763_v36, %v12659_v62  ;;  %v12666_v36 = vld [vmem:[#allocation51_spill] sm:$0xff]  ;;  %v12669_v40 = vld [vmem:[#allocation10_spill] sm:$0xff] }
 0x229   : > { %3315 = vmatprep.mubr.bf16.mxu0 %v12656_v26  ;;  %12658 = vst [vmem:[#allocation48_spill] sm:$0xff] %v10188_v6  ;;  %v2765_v17 = vpop.f32.mrf.mxu0  ;;  %v10201_v63 = vmul.f32 %v10188_v6, %v2762_v23 }
 0x22a   : > { %v10195_v26 = vpop.f32.mrf.mxu1  ;;  %v2766_v18 = vadd.f32 %v2765_v17, %v12662_v35  ;;  %v10208_v56 = vmul.f32 %v10188_v6, %v2764_v24  ;;  %v12671_v35 = vunpack.c.l.s8.bf16 %v9339_v13  ;;  %v12673_v17 = vld [vmem:[#allocation52_spill] sm:$0xff] }
 0x22b   : > { %12661 = vst [vmem:[#allocation49_spill] sm:$0xff] %v10195_v26  ;;  %v2767_v41 = vpop.f32.mrf.mxu0  ;;  %12664 = vst [vmem:[#allocation147_spill] sm:$0xff] %v10201_v63  ;;  %v12670_v26 = vunpack.c.l.s8.bf16 %v12669_v40 }
 0x22c   : > { %v10198_v2 = vpop.f32.mrf.mxu1  ;;  %v10204_v3 = vmul.f32 %v10191_v45, %v2766_v18  ;;  %v2768_v62 = vadd.f32 %v2767_v41, %v12666_v36  ;;  %12667 = vst [vmem:[#allocation51_spill] sm:$0xff] %v10208_v56  ;;  %v12675_v41 = vunpack.c.h.s8.bf16 %v9316_v20  ;;  %v12680_v20 = vld [vmem:[#allocation54_spill] sm:$0xff] }
 0x22d   : > { %12663 = vst [vmem:[#allocation50_spill] sm:$0xff] %v10198_v2  ;;  %v2771_v4 = vpop.f32.mrf.mxu0  ;;  %v12674_v2 = vunpack.c.h.s8.bf16 %v12655_v22 }
 0x22e   : > { %12665 = vst [vmem:[#allocation148_spill] sm:$0xff] %v10204_v3  ;;  %v10210_v46 = vpop.f32.mrf.mxu1  ;;  %3589 = vmatmul.mubr.bf16.gmra.mxu1 %v12671_v35  ;;  %v10217_v23 = vmul.f32 %v10191_v45, %v2768_v62  ;;  %v2772_v18 = vadd.f32 %v2771_v4, %v12673_v17  ;;  %v12677_v35 = vld [vmem:[#allocation53_spill] sm:$0xff]  ;;  %v10231_v62 = vpop.permute.xlu1 %4463 }
 0x22f   : > { %12668 = vst [vmem:[#allocation149_spill] sm:$0xff] %v10210_v46  ;;  %3598 = vmatprep.mubr.bf16.mxu1 %v12675_v41  ;;  %v2773_v36 = vpop.f32.mrf.mxu0  ;;  %12678 = vst [vmem:[#allocation53_spill] sm:$0xff] %v10231_v62 }
 0x230   : > { %3316 = vmatmul.mubr.bf16.gmra.mxu0 %v12670_v26  ;;  %12672 = vst [vmem:[#allocation10_spill] sm:$0xff] %v10217_v23  ;;  %v10226_v46 = vpop.f32.mrf.mxu1  ;;  %v10228_v26 = vpop.permute.xlu0 %4458  ;;  %v2774_v6 = vadd.f32 %v2773_v36, %v12677_v35  ;;  %v12684_v36 = vld [vmem:[#allocation55_spill] sm:$0xff]  ;;  %v12687_v23 = vunpack.c.h.s8.bf16 %v12669_v40 }
 0x231   : > { %3325 = vmatprep.mubr.bf16.mxu0 %v12674_v2  ;;  %12676 = vst [vmem:[#allocation52_spill] sm:$0xff] %v10228_v26  ;;  %v2775_v22 = vpop.f32.mrf.mxu0  ;;  %v10241_v24 = vmul.f32 %v10228_v26, %v2772_v18 }
 0x232   : > { %v10235_v2 = vpop.f32.mrf.mxu1  ;;  %v2776_v17 = vadd.f32 %v2775_v22, %v12680_v20  ;;  %v10248_v3 = vmul.f32 %v10228_v26, %v2774_v6  ;;  %v12688_v22 = vunpack.c.h.s8.bf16 %v9339_v13  ;;  %v12690_v20 = vld [vmem:[#allocation56_spill] sm:$0xff]  ;;  %v12693_v6 = vunpack.c.l.s8.bf16 %v9362_v15  ;;  %v12695_v13 = vld [vmem:[#allocation57_spill] sm:$0xff] }
 0x233   : > { %12679 = vst [vmem:[#allocation150_spill] sm:$0xff] %v10235_v2  ;;  %v2777_v41 = vpop.f32.mrf.mxu0  ;;  %12682 = vst [vmem:[#allocation151_spill] sm:$0xff] %v10241_v24 }
 0x234   : > { %v10238_v45 = vpop.f32.mrf.mxu1  ;;  %v10244_v63 = vmul.f32 %v10231_v62, %v2776_v17  ;;  %v2778_v35 = vadd.f32 %v2777_v41, %v12684_v36  ;;  %12685 = vst [vmem:[#allocation55_spill] sm:$0xff] %v10248_v3 }
 0x235   : > { %12681 = vst [vmem:[#allocation54_spill] sm:$0xff] %v10238_v45  ;;  %v2781_v4 = vpop.f32.mrf.mxu0  ;;  %v12691_v45 = vld [vmem:[#allocation11_spill] sm:$0xff] }
 0x236   : > { %12683 = vst [vmem:[#allocation152_spill] sm:$0xff] %v10244_v63  ;;  %v10250_v56 = vpop.f32.mrf.mxu1  ;;  %3599 = vmatmul.mubr.bf16.gmra.mxu1 %v12688_v22  ;;  %v10257_v18 = vmul.f32 %v10231_v62, %v2778_v35  ;;  %v2782_v17 = vadd.f32 %v2781_v4, %v12690_v20  ;;  %v12692_v2 = vunpack.c.l.s8.bf16 %v12691_v45  ;;  %v10271_v35 = vpop.permute.xlu1 %4473 }
 0x237   : > { %12686 = vst [vmem:[#allocation153_spill] sm:$0xff] %v10250_v56  ;;  %3608 = vmatprep.mubr.bf16.mxu1 %v12693_v6  ;;  %v2783_v36 = vpop.f32.mrf.mxu0  ;;  %12696 = vst [vmem:[#allocation11_spill] sm:$0xff] %v10271_v35  ;;  %v12698_v56 = vld [vmem:[#allocation58_spill] sm:$0xff] }
 0x238   : > { %3326 = vmatmul.mubr.bf16.gmra.mxu0 %v12687_v23  ;;  %12689 = vst [vmem:[#allocation154_spill] sm:$0xff] %v10257_v18  ;;  %v10266_v40 = vpop.f32.mrf.mxu1  ;;  %v10268_v23 = vpop.permute.xlu0 %4468  ;;  %v2784_v22 = vadd.f32 %v2783_v36, %v12695_v13  ;;  %v12702_v36 = vld [vmem:[#allocation59_spill] sm:$0xff]  ;;  %v12705_v18 = vld [vmem:[#allocation12_spill] sm:$0xff] }
 0x239   : > { %3335 = vmatprep.mubr.bf16.mxu0 %v12692_v2  ;;  %12694 = vst [vmem:[#allocation56_spill] sm:$0xff] %v10268_v23  ;;  %v2785_v20 = vpop.f32.mrf.mxu0  ;;  %v10281_v41 = vmul.f32 %v10268_v23, %v2782_v17 }
 0x23a   : > { %v10275_v2 = vpop.f32.mrf.mxu1  ;;  %v2786_v6 = vadd.f32 %v2785_v20, %v12698_v56  ;;  %v10288_v63 = vmul.f32 %v10268_v23, %v2784_v22  ;;  %v12707_v56 = vunpack.c.l.s8.bf16 %v9385_v16  ;;  %v12709_v20 = vld [vmem:[#allocation60_spill] sm:$0xff] }
 0x23b   : > { %12697 = vst [vmem:[#allocation57_spill] sm:$0xff] %v10275_v2  ;;  %v2787_v62 = vpop.f32.mrf.mxu0  ;;  %12700 = vst [vmem:[#allocation155_spill] sm:$0xff] %v10281_v41  ;;  %v12706_v2 = vunpack.c.l.s8.bf16 %v12705_v18 }
 0x23c   : > { %v10278_v26 = vpop.f32.mrf.mxu1  ;;  %v10284_v24 = vmul.f32 %v10271_v35, %v2786_v6  ;;  %v2788_v13 = vadd.f32 %v2787_v62, %v12702_v36  ;;  %12703 = vst [vmem:[#allocation59_spill] sm:$0xff] %v10288_v63  ;;  %v12711_v62 = vunpack.c.h.s8.bf16 %v9362_v15  ;;  %v12716_v15 = vld [vmem:[#allocation62_spill] sm:$0xff] }
 0x23d   : > { %12699 = vst [vmem:[#allocation58_spill] sm:$0xff] %v10278_v26  ;;  %v2791_v4 = vpop.f32.mrf.mxu0  ;;  %v12710_v26 = vunpack.c.h.s8.bf16 %v12691_v45 }
 0x23e   : > { %12701 = vst [vmem:[#allocation156_spill] sm:$0xff] %v10284_v24  ;;  %v10290_v3 = vpop.f32.mrf.mxu1  ;;  %3609 = vmatmul.mubr.bf16.gmra.mxu1 %v12707_v56  ;;  %v10297_v17 = vmul.f32 %v10271_v35, %v2788_v13  ;;  %v2792_v6 = vadd.f32 %v2791_v4, %v12709_v20  ;;  %v12713_v56 = vld [vmem:[#allocation61_spill] sm:$0xff]  ;;  %v10311_v13 = vpop.permute.xlu1 %4483 }
 0x23f   : > { %12704 = vst [vmem:[#allocation157_spill] sm:$0xff] %v10290_v3  ;;  %3618 = vmatprep.mubr.bf16.mxu1 %v12711_v62  ;;  %v2793_v36 = vpop.f32.mrf.mxu0  ;;  %12714 = vst [vmem:[#allocation61_spill] sm:$0xff] %v10311_v13 }
 0x240   : > { %3336 = vmatmul.mubr.bf16.gmra.mxu0 %v12706_v2  ;;  %12708 = vst [vmem:[#allocation12_spill] sm:$0xff] %v10297_v17  ;;  %v10306_v3 = vpop.f32.mrf.mxu1  ;;  %v10308_v2 = vpop.permute.xlu0 %4478  ;;  %v2794_v23 = vadd.f32 %v2793_v36, %v12713_v56  ;;  %v12720_v36 = vld [vmem:[#allocation63_spill] sm:$0xff]  ;;  %v12723_v17 = vunpack.c.h.s8.bf16 %v12705_v18 }
 0x241   : > { %3345 = vmatprep.mubr.bf16.mxu0 %v12710_v26  ;;  %12712 = vst [vmem:[#allocation60_spill] sm:$0xff] %v10308_v2  ;;  %v2795_v45 = vpop.f32.mrf.mxu0  ;;  %v10321_v22 = vmul.f32 %v10308_v2, %v2792_v6 }
 0x242   : > { %v10315_v26 = vpop.f32.mrf.mxu1  ;;  %v2796_v20 = vadd.f32 %v2795_v45, %v12716_v15  ;;  %v10328_v24 = vmul.f32 %v10308_v2, %v2794_v23  ;;  %v12724_v45 = vunpack.c.h.s8.bf16 %v9385_v16  ;;  %v12726_v15 = vld [vmem:[#allocation64_spill] sm:$0xff]  ;;  %v12729_v23 = vunpack.c.l.s8.bf16 %v9408_v30  ;;  %v12730_v16 = vld [vmem:[#allocation65_spill] sm:$0xff] }
 0x243   : > { %12715 = vst [vmem:[#allocation158_spill] sm:$0xff] %v10315_v26  ;;  %v2797_v62 = vpop.f32.mrf.mxu0  ;;  %12718 = vst [vmem:[#allocation159_spill] sm:$0xff] %v10321_v22 }
 0x244   : > { %v10318_v35 = vpop.f32.mrf.mxu1  ;;  %v10324_v41 = vmul.f32 %v10311_v13, %v2796_v20  ;;  %v2798_v56 = vadd.f32 %v2797_v62, %v12720_v36  ;;  %12721 = vst [vmem:[#allocation63_spill] sm:$0xff] %v10328_v24 }
 0x245   : > { %12717 = vst [vmem:[#allocation62_spill] sm:$0xff] %v10318_v35  ;;  %v2801_v4 = vpop.f32.mrf.mxu0  ;;  %v12727_v35 = vld [vmem:[#allocation13_spill] sm:$0xff] }
 0x246   : > { %12719 = vst [vmem:[#allocation160_spill] sm:$0xff] %v10324_v41  ;;  %v10330_v63 = vpop.f32.mrf.mxu1  ;;  %3619 = vmatmul.mubr.bf16.gmra.mxu1 %v12724_v45  ;;  %v10337_v6 = vmul.f32 %v10311_v13, %v2798_v56  ;;  %v2802_v20 = vadd.f32 %v2801_v4, %v12726_v15  ;;  %v12728_v26 = vunpack.c.l.s8.bf16 %v12727_v35  ;;  %v10351_v56 = vpop.permute.xlu1 %4493 }
 0x247   : > { %12722 = vst [vmem:[#allocation161_spill] sm:$0xff] %v10330_v63  ;;  %3628 = vmatprep.mubr.bf16.mxu1 %v12729_v23  ;;  %v2803_v36 = vpop.f32.mrf.mxu0  ;;  %12731 = vst [vmem:[#allocation64_spill] sm:$0xff] %v10351_v56  ;;  %v12733_v63 = vld [vmem:[#allocation66_spill] sm:$0xff] }
 0x248   : > { %3346 = vmatmul.mubr.bf16.gmra.mxu0 %v12723_v17  ;;  %12725 = vst [vmem:[#allocation162_spill] sm:$0xff] %v10337_v6  ;;  %v10346_v18 = vpop.f32.mrf.mxu1  ;;  %v10348_v17 = vpop.permute.xlu0 %4488  ;;  %v2804_v45 = vadd.f32 %v2803_v36, %v12730_v16  ;;  %v12737_v36 = vld [vmem:[#allocation67_spill] sm:$0xff]  ;;  %v12740_v6 = vld [vmem:[#allocation14_spill] sm:$0xff] }
 0x249   : > { %3355 = vmatprep.mubr.bf16.mxu0 %v12728_v26  ;;  %v2805_v15 = vpop.f32.mrf.mxu0  ;;  %v10361_v62 = vmul.f32 %v10348_v17, %v2802_v20 }
 0x24a   : > { %v10355_v26 = vpop.f32.mrf.mxu1  ;;  %v2806_v23 = vadd.f32 %v2805_v15, %v12733_v63  ;;  %v10368_v41 = vmul.f32 %v10348_v17, %v2804_v45  ;;  %v12742_v63 = vunpack.c.l.s8.bf16 %v9431_v21  ;;  %v12744_v15 = vld [vmem:[#allocation68_spill] sm:$0xff] }
 0x24b   : > { %12732 = vst [vmem:[#allocation13_spill] sm:$0xff] %v10355_v26  ;;  %v2807_v13 = vpop.f32.mrf.mxu0  ;;  %12735 = vst [vmem:[#allocation66_spill] sm:$0xff] %v10361_v62  ;;  %v12741_v26 = vunpack.c.l.s8.bf16 %v12740_v6 }
 0x24c   : > { %v10358_v2 = vpop.f32.mrf.mxu1  ;;  %v10364_v22 = vmul.f32 %v10351_v56, %v2806_v23  ;;  %v2808_v16 = vadd.f32 %v2807_v13, %v12737_v36  ;;  %12738 = vst [vmem:[#allocation67_spill] sm:$0xff] %v10368_v41  ;;  %v12746_v13 = vunpack.c.h.s8.bf16 %v9408_v30  ;;  %v12750_v30 = vld [vmem:[#allocation69_spill] sm:$0xff] }
 0x24d   : > { %12734 = vst [vmem:[#allocation65_spill] sm:$0xff] %v10358_v2  ;;  %v2811_v4 = vpop.f32.mrf.mxu0  ;;  %v12745_v2 = vunpack.c.h.s8.bf16 %v12727_v35 }
 0x24e   : > { %12736 = vst [vmem:[#allocation163_spill] sm:$0xff] %v10364_v22  ;;  %v10370_v24 = vpop.f32.mrf.mxu1  ;;  %3629 = vmatmul.mubr.bf16.gmra.mxu1 %v12742_v63  ;;  %v10377_v20 = vmul.f32 %v10351_v56, %v2808_v16  ;;  %v2812_v23 = vadd.f32 %v2811_v4, %v12744_v15  ;;  %v10391_v16 = vpop.permute.xlu1 %4503 }
 0x24f   : > { %12739 = vst [vmem:[#allocation164_spill] sm:$0xff] %v10370_v24  ;;  %3638 = vmatprep.mubr.bf16.mxu1 %v12746_v13  ;;  %v2813_v36 = vpop.f32.mrf.mxu0  ;;  %12748 = vst [vmem:[#allocation165_spill] sm:$0xff] %v10391_v16 }
 0x250   : > { %3356 = vmatmul.mubr.bf16.gmra.mxu0 %v12741_v26  ;;  %12743 = vst [vmem:[#allocation14_spill] sm:$0xff] %v10377_v20  ;;  %v10386_v24 = vpop.f32.mrf.mxu1  ;;  %v10388_v26 = vpop.permute.xlu0 %4498  ;;  %v2814_v63 = vadd.f32 %v2813_v36, %v9457_v0  ;;  %v12754_v0 = vld [vmem:[#allocation70_spill] sm:$0xff]  ;;  %v12757_v20 = vunpack.c.h.s8.bf16 %v12740_v6 }
 0x251   : > { %3365 = vmatprep.mubr.bf16.mxu0 %v12745_v2  ;;  %12747 = vst [vmem:[#allocation68_spill] sm:$0xff] %v10388_v26  ;;  %v2815_v35 = vpop.f32.mrf.mxu0  ;;  %v10401_v45 = vmul.f32 %v10388_v26, %v2812_v23 }
 0x252   : > { %v10395_v2 = vpop.f32.mrf.mxu1  ;;  %v2816_v15 = vadd.f32 %v2815_v35, %v12750_v30  ;;  %v10408_v22 = vmul.f32 %v10388_v26, %v2814_v63  ;;  %v12758_v35 = vunpack.c.h.s8.bf16 %v9431_v21  ;;  %v12760_v30 = vld [vmem:[#allocation71_spill] sm:$0xff]  ;;  %v12763_v63 = vunpack.c.l.s8.bf16 %v9454_v44  ;;  %v12765_v21 = vld [vmem:[#allocation72_spill] sm:$0xff] }
 0x253   : > { %12749 = vst [vmem:[#allocation166_spill] sm:$0xff] %v10395_v2  ;;  %v2817_v13 = vpop.f32.mrf.mxu0  ;;  %12752 = vst [vmem:[#allocation167_spill] sm:$0xff] %v10401_v45 }
 0x254   : > { %v10398_v56 = vpop.f32.mrf.mxu1  ;;  %v10404_v62 = vmul.f32 %v10391_v16, %v2816_v15  ;;  %v2818_v36 = vadd.f32 %v2817_v13, %v12754_v0  ;;  %12755 = vst [vmem:[#allocation70_spill] sm:$0xff] %v10408_v22 }
 0x255   : > { %12751 = vst [vmem:[#allocation69_spill] sm:$0xff] %v10398_v56  ;;  %v2821_v4 = vpop.f32.mrf.mxu0  ;;  %v12761_v56 = vld [vmem:[#allocation15_spill] sm:$0xff] }
 0x256   : > { %12753 = vst [vmem:[#allocation168_spill] sm:$0xff] %v10404_v62  ;;  %v10410_v41 = vpop.f32.mrf.mxu1  ;;  %3639 = vmatmul.mubr.bf16.gmra.mxu1 %v12758_v35  ;;  %v10417_v23 = vmul.f32 %v10391_v16, %v2818_v36  ;;  %v2822_v15 = vadd.f32 %v2821_v4, %v12760_v30  ;;  %v12762_v2 = vunpack.c.l.s8.bf16 %v12761_v56  ;;  %v10431_v36 = vpop.permute.xlu1 %4513 }
 0x257   : > { %12756 = vst [vmem:[#allocation169_spill] sm:$0xff] %v10410_v41  ;;  %3648 = vmatprep.mubr.bf16.mxu1 %v12763_v63  ;;  %v2823_v0 = vpop.f32.mrf.mxu0  ;;  %12766 = vst [vmem:[#allocation15_spill] sm:$0xff] %v10431_v36  ;;  %v12768_v41 = vld [vmem:[#allocation73_spill] sm:$0xff] }
 0x258   : > { %3366 = vmatmul.mubr.bf16.gmra.mxu0 %v12757_v20  ;;  %12759 = vst [vmem:[#allocation170_spill] sm:$0xff] %v10417_v23  ;;  %v10426_v6 = vpop.f32.mrf.mxu1  ;;  %v10428_v20 = vpop.permute.xlu0 %4508  ;;  %v2824_v35 = vadd.f32 %v2823_v0, %v12765_v21  ;;  %v12772_v0 = vld [vmem:[#allocation74_spill] sm:$0xff]  ;;  %v12775_v23 = vld [vmem:[#allocation16_spill] sm:$0xff] }
 0x259   : > { %3375 = vmatprep.mubr.bf16.mxu0 %v12762_v2  ;;  %12764 = vst [vmem:[#allocation71_spill] sm:$0xff] %v10428_v20  ;;  %v2825_v30 = vpop.f32.mrf.mxu0  ;;  %v10441_v13 = vmul.f32 %v10428_v20, %v2822_v15 }
 0x25a   : > { %v10435_v2 = vpop.f32.mrf.mxu1  ;;  %v2826_v63 = vadd.f32 %v2825_v30, %v12768_v41  ;;  %v10448_v62 = vmul.f32 %v10428_v20, %v2824_v35  ;;  %v12777_v41 = vunpack.c.l.s8.bf16 %v9476_v42  ;;  %v12779_v30 = vld [vmem:[#allocation75_spill] sm:$0xff] }
 0x25b   : > { %12767 = vst [vmem:[#allocation72_spill] sm:$0xff] %v10435_v2  ;;  %v2827_v16 = vpop.f32.mrf.mxu0  ;;  %12770 = vst [vmem:[#allocation171_spill] sm:$0xff] %v10441_v13  ;;  %v12776_v2 = vunpack.c.l.s8.bf16 %v12775_v23 }
 0x25c   : > { %v10438_v26 = vpop.f32.mrf.mxu1  ;;  %v10444_v45 = vmul.f32 %v10431_v36, %v2826_v63  ;;  %v2828_v21 = vadd.f32 %v2827_v16, %v12772_v0  ;;  %12773 = vst [vmem:[#allocation74_spill] sm:$0xff] %v10448_v62  ;;  %v12781_v16 = vunpack.c.h.s8.bf16 %v9454_v44  ;;  %v12786_v44 = vld [vmem:[#allocation77_spill] sm:$0xff] }
 0x25d   : > { %12769 = vst [vmem:[#allocation73_spill] sm:$0xff] %v10438_v26  ;;  %v2831_v4 = vpop.f32.mrf.mxu0  ;;  %v12780_v26 = vunpack.c.h.s8.bf16 %v12761_v56 }
 0x25e   : > { %12771 = vst [vmem:[#allocation172_spill] sm:$0xff] %v10444_v45  ;;  %v10450_v22 = vpop.f32.mrf.mxu1  ;;  %3649 = vmatmul.mubr.bf16.gmra.mxu1 %v12777_v41  ;;  %v10457_v15 = vmul.f32 %v10431_v36, %v2828_v21  ;;  %v2832_v63 = vadd.f32 %v2831_v4, %v12779_v30  ;;  %v12783_v41 = vld [vmem:[#allocation76_spill] sm:$0xff]  ;;  %v10471_v21 = vpop.permute.xlu1 %4523 }
 0x25f   : > { %12774 = vst [vmem:[#allocation173_spill] sm:$0xff] %v10450_v22  ;;  %3658 = vmatprep.mubr.bf16.mxu1 %v12781_v16  ;;  %v2833_v0 = vpop.f32.mrf.mxu0  ;;  %12784 = vst [vmem:[#allocation76_spill] sm:$0xff] %v10471_v21 }
 0x260   : > { %3376 = vmatmul.mubr.bf16.gmra.mxu0 %v12776_v2  ;;  %12778 = vst [vmem:[#allocation16_spill] sm:$0xff] %v10457_v15  ;;  %v10466_v22 = vpop.f32.mrf.mxu1  ;;  %v10468_v2 = vpop.permute.xlu0 %4518  ;;  %v2834_v20 = vadd.f32 %v2833_v0, %v12783_v41  ;;  %v12790_v0 = vld [vmem:[#allocation78_spill] sm:$0xff]  ;;  %v12793_v15 = vunpack.c.h.s8.bf16 %v12775_v23 }
 0x261   : > { %3385 = vmatprep.mubr.bf16.mxu0 %v12780_v26  ;;  %12782 = vst [vmem:[#allocation75_spill] sm:$0xff] %v10468_v2  ;;  %v2835_v56 = vpop.f32.mrf.mxu0  ;;  %v10481_v35 = vmul.f32 %v10468_v2, %v2832_v63 }
 0x262   : > { %v10475_v26 = vpop.f32.mrf.mxu1  ;;  %v2836_v30 = vadd.f32 %v2835_v56, %v12786_v44  ;;  %v10488_v45 = vmul.f32 %v10468_v2, %v2834_v20  ;;  %v12794_v56 = vunpack.c.h.s8.bf16 %v9476_v42  ;;  %v12796_v44 = vld [vmem:[#allocation79_spill] sm:$0xff]  ;;  %v12799_v20 = vunpack.c.l.s8.bf16 %v9497_v59  ;;  %v12802_v42 = vld [vmem:[#allocation81_spill] sm:$0xff] }
 0x263   : > { %12785 = vst [vmem:[#allocation174_spill] sm:$0xff] %v10475_v26  ;;  %v2837_v16 = vpop.f32.mrf.mxu0  ;;  %12788 = vst [vmem:[#allocation175_spill] sm:$0xff] %v10481_v35 }
 0x264   : > { %v10478_v36 = vpop.f32.mrf.mxu1  ;;  %v10484_v13 = vmul.f32 %v10471_v21, %v2836_v30  ;;  %v2838_v41 = vadd.f32 %v2837_v16, %v12790_v0  ;;  %12791 = vst [vmem:[#allocation78_spill] sm:$0xff] %v10488_v45 }
 0x265   : > { %12787 = vst [vmem:[#allocation77_spill] sm:$0xff] %v10478_v36  ;;  %v2841_v4 = vpop.f32.mrf.mxu0  ;;  %v12797_v36 = vld [vmem:[#allocation17_spill] sm:$0xff] }
 0x266   : > { %12789 = vst [vmem:[#allocation176_spill] sm:$0xff] %v10484_v13  ;;  %v10490_v62 = vpop.f32.mrf.mxu1  ;;  %3659 = vmatmul.mubr.bf16.gmra.mxu1 %v12794_v56  ;;  %v10497_v63 = vmul.f32 %v10471_v21, %v2838_v41  ;;  %v2842_v30 = vadd.f32 %v2841_v4, %v12796_v44  ;;  %v12798_v26 = vunpack.c.l.s8.bf16 %v12797_v36  ;;  %v10511_v41 = vpop.permute.xlu1 %4533 }
 0x267   : > { %12792 = vst [vmem:[#allocation177_spill] sm:$0xff] %v10490_v62  ;;  %3668 = vmatprep.mubr.bf16.mxu1 %v12799_v20  ;;  %v2843_v0 = vpop.f32.mrf.mxu0  ;;  %12803 = vst [vmem:[#allocation81_spill] sm:$0xff] %v10511_v41  ;;  %v12805_v62 = vld [vmem:[#allocation82_spill] sm:$0xff] }
 0x268   : > { %3386 = vmatmul.mubr.bf16.gmra.mxu0 %v12793_v15  ;;  %12795 = vst [vmem:[#allocation178_spill] sm:$0xff] %v10497_v63  ;;  %v10506_v23 = vpop.f32.mrf.mxu1  ;;  %v10508_v15 = vpop.permute.xlu0 %4528  ;;  %v2844_v56 = vadd.f32 %v2843_v0, %v12802_v42  ;;  %v12809_v0 = vld [vmem:[#allocation83_spill] sm:$0xff]  ;;  %v12812_v63 = vld [vmem:[#allocation18_spill] sm:$0xff] }
 0x269   : > { %3395 = vmatprep.mubr.bf16.mxu0 %v12798_v26  ;;  %12800 = vst [vmem:[#allocation79_spill] sm:$0xff] %v10506_v23  ;;  %12801 = vst [vmem:[#allocation17_spill] sm:$0xff] %v10508_v15  ;;  %v2845_v44 = vpop.f32.mrf.mxu0  ;;  %v10521_v16 = vmul.f32 %v10508_v15, %v2842_v30  ;;  %v12818_v23 = vunpack.c.h.s8.bf16 %v12797_v36 }
 0x26a   : > { %v10515_v26 = vpop.f32.mrf.mxu1  ;;  %v2846_v20 = vadd.f32 %v2845_v44, %v12805_v62  ;;  %v10528_v13 = vmul.f32 %v10508_v15, %v2844_v56  ;;  %v12814_v62 = vld [vmem:[#allocation80_spill] sm:$0xff] }
 0x26b   : > { %12804 = vst [vmem:[#allocation179_spill] sm:$0xff] %v10515_v26  ;;  %v2847_v21 = vpop.f32.mrf.mxu0  ;;  %12807 = vst [vmem:[#allocation180_spill] sm:$0xff] %v10521_v16  ;;  %v12813_v26 = vunpack.c.l.s8.bf16 %v12812_v63  ;;  %v12815_v44 = vunpack.c.l.s8.bf16 %v12814_v62 }
 0x26c   : > { %v10518_v2 = vpop.f32.mrf.mxu1  ;;  %v10524_v35 = vmul.f32 %v10511_v41, %v2846_v20  ;;  %v2848_v42 = vadd.f32 %v2847_v21, %v12809_v0  ;;  %12810 = vst [vmem:[#allocation83_spill] sm:$0xff] %v10528_v13  ;;  %v12819_v21 = vunpack.c.h.s8.bf16 %v9497_v59  ;;  %v12824_v59 = vld [vmem:[#allocation86_spill] sm:$0xff] }
 0x26d   : > { %12806 = vst [vmem:[#allocation82_spill] sm:$0xff] %v10518_v2  ;;  %v2851_v4 = vpop.f32.mrf.mxu0  ;;  %v12817_v2 = vld [vmem:[#allocation84_spill] sm:$0xff] }
 0x26e   : > { %12808 = vst [vmem:[#allocation181_spill] sm:$0xff] %v10524_v35  ;;  %v10530_v45 = vpop.f32.mrf.mxu1  ;;  %3669 = vmatmul.mubr.bf16.gmra.mxu1 %v12815_v44  ;;  %v10537_v30 = vmul.f32 %v10511_v41, %v2848_v42  ;;  %v2852_v20 = vadd.f32 %v2851_v4, %v12817_v2  ;;  %v12821_v44 = vld [vmem:[#allocation85_spill] sm:$0xff]  ;;  %v10551_v42 = vpop.permute.xlu1 %4543 }
 0x26f   : > { %12811 = vst [vmem:[#allocation182_spill] sm:$0xff] %v10530_v45  ;;  %3678 = vmatprep.mubr.bf16.mxu1 %v12819_v21  ;;  %v2853_v0 = vpop.f32.mrf.mxu0  ;;  %12822 = vst [vmem:[#allocation84_spill] sm:$0xff] %v10551_v42 }
 0x270   : > { %3396 = vmatmul.mubr.bf16.gmra.mxu0 %v12813_v26  ;;  %12816 = vst [vmem:[#allocation18_spill] sm:$0xff] %v10537_v30  ;;  %v10546_v45 = vpop.f32.mrf.mxu1  ;;  %v10548_v26 = vpop.permute.xlu0 %4538  ;;  %v2854_v15 = vadd.f32 %v2853_v0, %v12821_v44  ;;  %v12828_v0 = vld [vmem:[#allocation87_spill] sm:$0xff]  ;;  %v12831_v30 = vunpack.c.h.s8.bf16 %v12812_v63 }
 0x271   : > { %3405 = vmatprep.mubr.bf16.mxu0 %v12818_v23  ;;  %12820 = vst [vmem:[#allocation80_spill] sm:$0xff] %v10548_v26  ;;  %v2855_v36 = vpop.f32.mrf.mxu0  ;;  %v10561_v56 = vmul.f32 %v10548_v26, %v2852_v20 }
 0x272   : > { %v10555_v23 = vpop.f32.mrf.mxu1  ;;  %v2856_v4 = vadd.f32 %v2855_v36, %v12824_v59  ;;  %v10568_v35 = vmul.f32 %v10548_v26, %v2854_v15  ;;  %v12832_v36 = vunpack.c.h.s8.bf16 %v12814_v62  ;;  %v12834_v59 = vld [vmem:[#allocation88_spill] sm:$0xff]  ;;  %v12837_v15 = vunpack.c.l.s8.bf16 %v9539_v11  ;;  %v12839_v62 = vld [vmem:[#allocation89_spill] sm:$0xff] }
 0x273   : > { %12823 = vst [vmem:[#allocation85_spill] sm:$0xff] %v10555_v23  ;;  %v2857_v21 = vpop.f32.mrf.mxu0  ;;  %12826 = vst [vmem:[#allocation183_spill] sm:$0xff] %v10561_v56 }
 0x274   : > { %v10558_v41 = vpop.f32.mrf.mxu1  ;;  %v10564_v16 = vmul.f32 %v10551_v42, %v2856_v4  ;;  %v2858_v44 = vadd.f32 %v2857_v21, %v12828_v0  ;;  %12829 = vst [vmem:[#allocation87_spill] sm:$0xff] %v10568_v35 }
 0x275   : > { %12825 = vst [vmem:[#allocation86_spill] sm:$0xff] %v10558_v41  ;;  %v2861_v2 = vpop.f32.mrf.mxu0  ;;  %v12835_v41 = vld [vmem:[#allocation19_spill] sm:$0xff] }
 0x276   : > { %12827 = vst [vmem:[#allocation184_spill] sm:$0xff] %v10564_v16  ;;  %v10570_v13 = vpop.f32.mrf.mxu1  ;;  %3679 = vmatmul.mubr.bf16.gmra.mxu1 %v12832_v36  ;;  %v10577_v20 = vmul.f32 %v10551_v42, %v2858_v44  ;;  %v2862_v4 = vadd.f32 %v2861_v2, %v12834_v59  ;;  %v12836_v23 = vunpack.c.l.s8.bf16 %v12835_v41  ;;  %v10591_v44 = vpop.permute.xlu1 %4553 }
 0x277   : > { %12830 = vst [vmem:[#allocation185_spill] sm:$0xff] %v10570_v13  ;;  %3688 = vmatprep.mubr.bf16.mxu1 %v12837_v15  ;;  %v2863_v0 = vpop.f32.mrf.mxu0  ;;  %v12841_v13 = vld [vmem:[#allocation90_spill] sm:$0xff] }
 0x278   : > { %3406 = vmatmul.mubr.bf16.gmra.mxu0 %v12831_v30  ;;  %12833 = vst [vmem:[#allocation186_spill] sm:$0xff] %v10577_v20  ;;  %v10586_v63 = vpop.f32.mrf.mxu1  ;;  %v10588_v30 = vpop.permute.xlu0 %4548  ;;  %v2864_v36 = vadd.f32 %v2863_v0, %v12839_v62  ;;  %v12844_v0 = vld [vmem:[#allocation91_spill] sm:$0xff]  ;;  %v12847_v20 = vld [vmem:[#allocation20_spill] sm:$0xff] }
 0x279   : > { %3415 = vmatprep.mubr.bf16.mxu0 %v12836_v23  ;;  %12838 = vst [vmem:[#allocation88_spill] sm:$0xff] %v10588_v30  ;;  %v2865_v59 = vpop.f32.mrf.mxu0  ;;  %v10601_v21 = vmul.f32 %v10588_v30, %v2862_v4 }
 0x27a   : > { %v10595_v23 = vpop.f32.mrf.mxu1  ;;  %v2866_v15 = vadd.f32 %v2865_v59, %v12841_v13  ;;  %v10608_v16 = vmul.f32 %v10588_v30, %v2864_v36  ;;  %v12849_v13 = vunpack.c.l.s8.bf16 %v9560_v10  ;;  %v12851_v59 = vld [vmem:[#allocation92_spill] sm:$0xff]  ;;  %v12853_v36 = vunpack.c.h.s8.bf16 %v9539_v11 }
 0x27b   : > { %12840 = vst [vmem:[#allocation19_spill] sm:$0xff] %v10595_v23  ;;  %v2867_v42 = vpop.f32.mrf.mxu0  ;;  %12842 = vst [vmem:[#allocation89_spill] sm:$0xff] %v10601_v21  ;;  %v12848_v23 = vunpack.c.l.s8.bf16 %v12847_v20 }
 0x27c   : > { %v10598_v26 = vpop.f32.mrf.mxu1  ;;  %v10604_v56 = vmul.f32 %v10591_v44, %v2866_v15  ;;  %v2868_v62 = vadd.f32 %v2867_v42, %v12844_v0  ;;  %12845 = vst [vmem:[#allocation91_spill] sm:$0xff] %v10608_v16  ;;  %v12852_v42 = vunpack.c.h.s8.bf16 %v12835_v41  ;;  %v10628_v30 = vpop.permute.xlu0 %4558 }
 0x27d   : > { %v2871_v2 = vpop.f32.mrf.mxu0  ;;  %12855 = vst [vmem:[#allocation188_spill] sm:$0xff] %v10628_v30 }
 0x27e   : > { %12843 = vst [vmem:[#allocation90_spill] sm:$0xff] %v10604_v56  ;;  %v10610_v35 = vpop.f32.mrf.mxu1  ;;  %3689 = vmatmul.mubr.bf16.gmra.mxu1 %v12849_v13  ;;  %v10617_v4 = vmul.f32 %v10591_v44, %v2868_v62  ;;  %v2872_v15 = vadd.f32 %v2871_v2, %v12851_v59  ;;  %v10631_v62 = vpop.permute.xlu1 %4563 }
 0x27f   : > { %12846 = vst [vmem:[#allocation187_spill] sm:$0xff] %v10610_v35  ;;  %3698 = vmatprep.mubr.bf16.mxu1 %v12853_v36  ;;  %12856 = vst [vmem:[#allocation189_spill] sm:$0xff] %v10631_v62  ;;  %v7767_v36 = vld [vmem:[%s10033_s9 + $0xc] ss:$16 sps:$4 sm:$0xff]  }
 0x280   : > { %3416 = vmatmul.mubr.bf16.gmra.mxu0 %v12848_v23  ;;  %12850 = vst [vmem:[#allocation20_spill] sm:$0xff] %v10617_v4  ;;  %v2873_v23 = vpop.f32.mrf.mxu0  ;;  %v10626_v35 = vpop.f32.mrf.mxu1  ;;  %v10643_v56 = vmul.f32 %v10628_v30, %v2872_v15 }
 0x281   : > { %3425 = vmatprep.mubr.bf16.mxu0 %v12852_v42  ;;  %12854 = vst [vmem:[#allocation92_spill] sm:$0xff] %v10626_v35  ;;  %v2874_v13 = vadd.f32 %v2873_v23, %v9580_v38  ;;  %v7764_v42 = vld [vmem:[%s10033_s9 + $0x4] ss:$16 sps:$4 sm:$0xff]  }
 0x282   : > { %v2875_v41 = vpop.f32.mrf.mxu0  ;;  %v10635_v59 = vpop.f32.mrf.mxu1  ;;  %12858 = vst [vmem:[#allocation191_spill] sm:$0xff] %v10643_v56  ;;  %v12860_v23 = vld [vmem:[#allocation93_spill] sm:$0xff]  ;;  %v7768_v56 = vld [vmem:[%s11947_s3 + $0x38] sm:$0xff]  }
 0x283   : > { %v2876_v11 = vadd.f32 %v2875_v41, %v9583_v12  ;;  %v10650_v2 = vmul.f32 %v10628_v30, %v2874_v13  ;;  %v12863_v12 = vunpack.c.h.s8.bf16 %v12847_v20  ;;  %v12864_v41 = vunpack.c.h.s8.bf16 %v9560_v10 }
 0x284   : > { %v2877_v0 = vpop.f32.mrf.mxu0  ;;  %v10640_v21 = vpop.f32.mrf.mxu1 }
 0x285   : > { %12857 = vst [vmem:[#allocation190_spill] sm:$0xff] %v10640_v21  ;;  %v10646_v38 = vmul.f32 %v10631_v62, %v2876_v11  ;;  %v2878_v35 = vadd.f32 %v2877_v0, %v12860_v23  ;;  %12861 = vst [vmem:[#allocation93_spill] sm:$0xff] %v10650_v2  ;;  %v10666_v23 = vpop.permute.xlu0 %4568 }
 0x286   : > { %v2881_v16 = vpop.f32.mrf.mxu0  ;;  %v10652_v4 = vpop.f32.mrf.mxu1  ;;  %3699 = vmatmul.mubr.bf16.gmra.mxu1 %v12864_v41  ;;  %12867 = vst [vmem:[#allocation196_spill] sm:$0xff] %v10666_v23  ;;  %v12870_v41 = vld [vmem:[#allocation94_spill] sm:$0xff] }
 0x287   : > { %12859 = vst [vmem:[#allocation192_spill] sm:$0xff] %v10646_v38  ;;  %12862 = vst [vmem:[#allocation193_spill] sm:$0xff] %v10652_v4  ;;  %v10659_v15 = vmul.f32 %v10631_v62, %v2878_v35  ;;  %v2882_v11 = vadd.f32 %v2881_v16, %v9591_v58  ;;  %6023 = vmatprep.mubr.bf16.mxu1 %v7767_v36  ;;  %v7765_v36 = vld [vmem:[%s10033_s9 + $0x8] ss:$16 sps:$4 sm:$0xff]   ;;  %v7775_v35 = vld [vmem:[%s10033_s9 + $0x2c] ss:$16 sps:$4 sm:$0xff]  }
 0x288   : > { %3426 = vmatmul.mubr.bf16.gmra.mxu0 %v12863_v12  ;;  %v2883_v13 = vpop.f32.mrf.mxu0  ;;  %v10664_v20 = vpop.f32.mrf.mxu1 }
 0x289   : > { %12865 = vst [vmem:[#allocation194_spill] sm:$0xff] %v10659_v15  ;;  %5798 = vmatprep.mubr.bf16.mxu0 %v7764_v42  ;;  %12866 = vst [vmem:[#allocation195_spill] sm:$0xff] %v10664_v20  ;;  %v2884_v10 = vadd.f32 %v2883_v13, %v9597_v25  ;;  %v10669_v12 = vpop.permute.xlu1 %4573  ;;  %v7762_v42 = vld [vmem:[%s10033_s9] ss:$16 sps:$4 sm:$0xff]   ;;  %v7769_v25 = vld [vmem:[%s11947_s3 + $0xb8] sm:$0xff]   ;;  %v10689_v2 = vmul.f32 %v10666_v23, %v2882_v11 }
 0x28a   : > { %12868 = vst [vmem:[#allocation197_spill] sm:$0xff] %v10669_v12  ;;  %v2885_v58 = vpop.f32.mrf.mxu0  ;;  %v10673_v16 = vpop.f32.mrf.mxu1  ;;  %v7772_v20 = vld [vmem:[%s10033_s9 + $0x24] ss:$16 sps:$4 sm:$0xff]   ;;  %v12877_v11 = vld [vmem:[#allocation96_spill] sm:$0xff] }
 0x28b   : > { %12869 = vst [vmem:[#allocation198_spill] sm:$0xff] %v10673_v16  ;;  %v2886_v0 = vadd.f32 %v2885_v58, %v12870_v41  ;;  %12872 = vst [vmem:[#allocation199_spill] sm:$0xff] %v10689_v2  ;;  %v12874_v58 = vld [vmem:[#allocation95_spill] sm:$0xff]  ;;  %v10696_v16 = vmul.f32 %v10666_v23, %v2884_v10  ;;  %v7783_v10 = vld [vmem:[%s11947_s3 + $0xb0] sm:$0xff]  }
 0x28c   : > { %v2887_v13 = vpop.f32.mrf.mxu0  ;;  %v10684_v38 = vpop.f32.mrf.mxu1 }
 0x28d   : > { %12871 = vst [vmem:[#allocation94_spill] sm:$0xff] %v10684_v38  ;;  %v10692_v15 = vmul.f32 %v10669_v12, %v2886_v0  ;;  %v2888_v41 = vadd.f32 %v2887_v13, %v12874_v58  ;;  %12875 = vst [vmem:[#allocation95_spill] sm:$0xff] %v10696_v16  ;;  %v7776_v0 = vld [vmem:[%s11947_s3 + $0x30] sm:$0xff]   ;;  %v7773_v38 = vld [vmem:[%s10033_s9 + $0x28] ss:$16 sps:$4 sm:$0xff]  }
 0x28e   : > { %v3197_v4 = vpop.f32.mrf.mxu0  ;;  %v3470_v62 = vpop.f32.mrf.mxu1  ;;  %6024 = vmatmul.mubr.bf16.vlgmr.msra.gmra.mxu1 %v7765_v36 }
 0x28f   : > { %12873 = vst [vmem:[#allocation200_spill] sm:$0xff] %v10692_v15  ;;  %v10701_v30 = vmul.f32 %v10669_v12, %v2888_v41  ;;  %v3198_v21 = vadd.f32 %v3197_v4, %v12877_v11  ;;  %6634 = vmatpush1.bf16.msra.mxu1 %v7769_v25  ;;  %6031 = vmatprep.mubr.bf16.mxu1 %v7775_v35  ;;  %v12878_v4 = vld [vmem:[#allocation97_spill] sm:$0xff]  ;;  %v12879_v15 = vld [vmem:[#allocation98_spill] sm:$0xff] }
 0x290   : > { %5799 = vmatmul.mubr.bf16.vlgmr.msra.gmra.mxu0 %v7762_v42  ;;  %v3199_v42 = vpop.f32.mrf.mxu0  ;;  %v3472_v36 = vpop.f32.mrf.mxu1  ;;  %6635 = vmatprep.subr.bf16.mxu1 %v12397_v48  ;;  %v7770_v11 = vld [vmem:[%s10033_s9 + $0x20] ss:$16 sps:$4 sm:$0xff]   ;;  %v7782_v35 = vld [vmem:[%s10033_s9 + $0x4c] ss:$16 sps:$4 sm:$0xff]  }
 0x291   : > { %12876 = vst [vmem:[#allocation201_spill] sm:$0xff] %v10701_v30  ;;  %6409 = vmatpush1.bf16.msra.mxu0 %v7768_v56  ;;  %5806 = vmatprep.mubr.bf16.mxu0 %v7772_v20  ;;  %v3471_v13 = vadd.f32 %v3470_v62, %v3198_v21  ;;  %v3200_v58 = vadd.f32 %v3199_v42, %v12878_v4  ;;  %v7779_v20 = vld [vmem:[%s10033_s9 + $0x44] ss:$16 sps:$4 sm:$0xff]   ;;  %v7790_v42 = vld [vmem:[%s11947_s3 + $0x28] sm:$0xff]  }
 0x292   : > { %6410 = vmatprep.subr.bf16.mxu0 %v12397_v48  ;;  %v3201_v25 = vpop.f32.mrf.mxu0  ;;  %v3474_v41 = vpop.f32.mrf.mxu1  ;;  %v12881_v30 = vld [vmem:[#allocation103_spill] sm:$0xff] }
 0x293   : > { %v3473_v2 = vadd.f32 %v3472_v36, %v3200_v58  ;;  %v3202_v12 = vadd.f32 %v3201_v25, %v12879_v15  ;;  %6636 = vmatpush1.bf16.msra.mxu1 %v7783_v10  ;;  %v7791_v36 = vld [vmem:[%s11947_s3 + $0xa8] sm:$0xff]   ;;  %v12880_v15 = vld [vmem:[#allocation99_spill] sm:$0xff]  ;;  %v10730_v58 = vmul.f32 %v9604_v47, %v3471_v13 }
 0x294   : > { %v3203_v21 = vpop.f32.mrf.mxu0  ;;  %v3476_v62 = vpop.f32.mrf.mxu1  ;;  %6637 = vmatprep.subr.bf16.mxu1 %v12397_v48 }
 0x295   : > { %6411 = vmatpush1.bf16.msra.mxu0 %v7776_v0  ;;  %v3475_v4 = vadd.f32 %v3474_v41, %v3202_v12  ;;  %v3204_v0 = vadd.f32 %v3203_v21, %v12880_v15  ;;  %v10737_v12 = vmul.f32 %v9604_v47, %v3473_v2  ;;  %v7786_v15 = vld [vmem:[%s10033_s9 + $0x64] ss:$16 sps:$4 sm:$0xff]  }
 0x296   : > { %6412 = vmatprep.subr.bf16.mxu0 %v12397_v48  ;;  %v3480_v25 = vpop.f32.mrf.mxu1  ;;  %6032 = vmatmul.mubr.bf16.gmra.mxu1 %v7773_v38  ;;  %v7798_v38 = vld [vmem:[%s11947_s3 + $0x20] sm:$0xff]  }
 0x297   : > { %v3207_v10 = vpop.f32.mrf.mxu0  ;;  %v10733_v56 = vmul.f32 %v9631_v60, %v3475_v4  ;;  %v3477_v16 = vadd.f32 %v3476_v62, %v3204_v0  ;;  %6039 = vmatprep.mubr.bf16.mxu1 %v7782_v35  ;;  %6638 = vmatpush1.bf16.msra.mxu1 %v7791_v36  ;;  %v7777_v62 = vld [vmem:[%s10033_s9 + $0x40] ss:$16 sps:$4 sm:$0xff]   ;;  %v7789_v0 = vld [vmem:[%s10033_s9 + $0x6c] ss:$16 sps:$4 sm:$0xff]  }
 0x298   : > { %5807 = vmatmul.mubr.bf16.gmra.mxu0 %v7770_v11  ;;  %v3208_v23 = vadd.f32 %v3207_v10, %v12881_v30  ;;  %v3482_v13 = vpop.f32.mrf.mxu1  ;;  %v7805_v30 = vld [vmem:[%s11947_s3 + $0xa0] sm:$0xff]   ;;  %6639 = vmatprep.subr.bf16.mxu1 %v12397_v48  ;;  %v7813_v10 = vld [vmem:[%s11947_s3 + $0x98] sm:$0xff]  }
 0x299   : > { %5814 = vmatprep.mubr.bf16.mxu0 %v7779_v20  ;;  %v3209_v41 = vpop.f32.mrf.mxu0  ;;  %6413 = vmatpush1.bf16.msra.mxu0 %v7790_v42  ;;  %v10748_v47 = vmul.f32 %v9631_v60, %v3477_v16  ;;  %v7780_v42 = vld [vmem:[%s10033_s9 + $0x48] ss:$16 sps:$4 sm:$0xff]   ;;  %v7819_v11 = vld [vmem:[%s10033_s9 + $0xec] ss:$16 sps:$4 sm:$0xff]  }
 0x29a   : > { %v3481_v2 = vadd.f32 %v3480_v25, %v3208_v23  ;;  %v3210_v20 = vadd.f32 %v3209_v41, %v9676_v5  ;;  %6414 = vmatprep.subr.bf16.mxu0 %v12397_v48  ;;  %v3484_v21 = vpop.f32.mrf.mxu1  ;;  %v7812_v5 = vld [vmem:[%s11947_s3 + $0x18] sm:$0xff]  }
 0x29b   : > { %v3211_v35 = vpop.f32.mrf.mxu0  ;;  %6640 = vmatpush1.bf16.msra.mxu1 %v7805_v30  ;;  %v12895_v60 = vld [vmem:[#allocation126_spill] sm:$0xff] }
 0x29c   : > { %v3483_v36 = vadd.f32 %v3482_v13, %v3210_v20  ;;  %v3212_v4 = vadd.f32 %v3211_v35, %v9691_v34  ;;  %v3486_v23 = vpop.f32.mrf.mxu1  ;;  %6641 = vmatprep.subr.bf16.mxu1 %v12397_v48  ;;  %v10770_v41 = vmul.f32 %v9638_v55, %v3481_v2 }
 0x29d   : > { %v3213_v16 = vpop.f32.mrf.mxu0  ;;  %6415 = vmatpush1.bf16.msra.mxu0 %v7798_v38 }
 0x29e   : > { %v3485_v25 = vadd.f32 %v3484_v21, %v3212_v4  ;;  %v3214_v34 = vadd.f32 %v3213_v16, %v9694_v50  ;;  %6416 = vmatprep.subr.bf16.mxu0 %v12397_v48  ;;  %v3490_v38 = vpop.f32.mrf.mxu1  ;;  %6040 = vmatmul.mubr.bf16.gmra.mxu1 %v7780_v42  ;;  %v10777_v50 = vmul.f32 %v9638_v55, %v3483_v36  ;;  %v7784_v16 = vld [vmem:[%s10033_s9 + $0x60] ss:$16 sps:$4 sm:$0xff]   ;;  %v12888_v42 = vld [vmem:[#allocation122_spill] sm:$0xff] }
 0x29f   : > { %v3217_v13 = vpop.f32.mrf.mxu0  ;;  %6047 = vmatprep.mubr.bf16.mxu1 %v7789_v0  ;;  %6642 = vmatpush1.bf16.msra.mxu1 %v7813_v10 }
 0x2a0   : > { %5815 = vmatmul.mubr.bf16.gmra.mxu0 %v7777_v62  ;;  %v10773_v30 = vmul.f32 %v9685_v14, %v3485_v25  ;;  %v3487_v20 = vadd.f32 %v3486_v23, %v3214_v34  ;;  %v3218_v35 = vadd.f32 %v3217_v13, %v9714_v53  ;;  %v3492_v2 = vpop.f32.mrf.mxu1  ;;  %v7820_v62 = vld [vmem:[%s11947_s3 + $0x10] sm:$0xff]   ;;  %v7787_v23 = vld [vmem:[%s10033_s9 + $0x68] ss:$16 sps:$4 sm:$0xff]   ;;  %6643 = vmatprep.subr.bf16.mxu1 %v12397_v48  ;;  %v7797_v34 = vld [vmem:[%s10033_s9 + $0x8c] ss:$16 sps:$4 sm:$0xff]  }
 0x2a1   : > { %5822 = vmatprep.mubr.bf16.mxu0 %v7786_v15  ;;  %v3219_v21 = vpop.f32.mrf.mxu0  ;;  %6417 = vmatpush1.bf16.msra.mxu0 %v7812_v5  ;;  %v7827_v53 = vld [vmem:[%s11947_s3 + $0x90] sm:$0xff]  }
 0x2a2   : > { %v10788_v55 = vmul.f32 %v9685_v14, %v3487_v20  ;;  %v3491_v36 = vadd.f32 %v3490_v38, %v3218_v35  ;;  %v3220_v4 = vadd.f32 %v3219_v21, %v9730_v32  ;;  %6418 = vmatprep.subr.bf16.mxu0 %v12397_v48  ;;  %v3494_v0 = vpop.f32.mrf.mxu1  ;;  %v7794_v25 = vld [vmem:[%s10033_s9 + $0x84] ss:$16 sps:$4 sm:$0xff]   ;;  %v7834_v32 = vld [vmem:[%s11947_s3 + $0x8] sm:$0xff]  }
 0x2a3   : > { %v3221_v15 = vpop.f32.mrf.mxu0  ;;  %6644 = vmatpush1.bf16.msra.mxu1 %v7827_v53  ;;  %v7835_v20 = vld [vmem:[%s11947_s3 + $0x88] sm:$0xff]  }
 0x2a4   : > { %v3493_v5 = vadd.f32 %v3492_v2, %v3220_v4  ;;  %v3222_v10 = vadd.f32 %v3221_v15, %v9747_v1  ;;  %v3496_v38 = vpop.f32.mrf.mxu1  ;;  %6645 = vmatprep.subr.bf16.mxu1 %v12397_v48  ;;  %v10810_v21 = vmul.f32 %v9738_v49, %v3491_v36 }
 0x2a5   : > { %v3223_v13 = vpop.f32.mrf.mxu0  ;;  %6419 = vmatpush1.bf16.msra.mxu0 %v7820_v62 }
 0x2a6   : > { %v3495_v35 = vadd.f32 %v3494_v0, %v3222_v10  ;;  %v3224_v1 = vadd.f32 %v3223_v13, %v9750_v52  ;;  %6420 = vmatprep.subr.bf16.mxu0 %v12397_v48  ;;  %v3500_v62 = vpop.f32.mrf.mxu1  ;;  %6048 = vmatmul.mubr.bf16.gmra.mxu1 %v7787_v23  ;;  %v10817_v52 = vmul.f32 %v9738_v49, %v3493_v5  ;;  %v7792_v13 = vld [vmem:[%s10033_s9 + $0x80] ss:$16 sps:$4 sm:$0xff]   ;;  %v7811_v23 = vld [vmem:[%s10033_s9 + $0xcc] ss:$16 sps:$4 sm:$0xff]  }
 0x2a7   : > { %v3227_v2 = vpop.f32.mrf.mxu0  ;;  %6055 = vmatprep.mubr.bf16.mxu1 %v7797_v34  ;;  %6646 = vmatpush1.bf16.msra.mxu1 %v7835_v20 }
 0x2a8   : > { %5823 = vmatmul.mubr.bf16.gmra.mxu0 %v7784_v16  ;;  %v10813_v53 = vmul.f32 %v9741_v28, %v3495_v35  ;;  %v3497_v4 = vadd.f32 %v3496_v38, %v3224_v1  ;;  %v3228_v15 = vadd.f32 %v3227_v2, %v9770_v9  ;;  %v3502_v36 = vpop.f32.mrf.mxu1  ;;  %v7842_v16 = vld [vmem:[%s11947_s3] sm:$0xff]   ;;  %v7795_v38 = vld [vmem:[%s10033_s9 + $0x88] ss:$16 sps:$4 sm:$0xff]   ;;  %6647 = vmatprep.subr.bf16.mxu1 %v12397_v48  ;;  %v7804_v1 = vld [vmem:[%s10033_s9 + $0xac] ss:$16 sps:$4 sm:$0xff]  }
 0x2a9   : > { %5830 = vmatprep.mubr.bf16.mxu0 %v7794_v25  ;;  %v3229_v0 = vpop.f32.mrf.mxu0  ;;  %6421 = vmatpush1.bf16.msra.mxu0 %v7834_v32  ;;  %v7849_v9 = vld [vmem:[%s11947_s3 + $0x80] sm:$0xff]  }
 0x2aa   : > { %v10828_v49 = vmul.f32 %v9741_v28, %v3497_v4  ;;  %v3501_v5 = vadd.f32 %v3500_v62, %v3228_v15  ;;  %v3230_v10 = vadd.f32 %v3229_v0, %v9786_v31  ;;  %6422 = vmatprep.subr.bf16.mxu0 %v12397_v48  ;;  %v3504_v34 = vpop.f32.mrf.mxu1  ;;  %v7801_v35 = vld [vmem:[%s10033_s9 + $0xa4] ss:$16 sps:$4 sm:$0xff]   ;;  %v7856_v31 = vld [vmem:[%s11947_s3 + $0x78] sm:$0xff]  }
 0x2ab   : > { %v3231_v25 = vpop.f32.mrf.mxu0  ;;  %6648 = vmatpush1.bf16.msra.mxu1 %v7849_v9  ;;  %v7857_v4 = vld [vmem:[%s11947_s3 + $0xf8] sm:$0xff]  }
 0x2ac   : > { %v3503_v32 = vadd.f32 %v3502_v36, %v3230_v10  ;;  %v3232_v20 = vadd.f32 %v3231_v25, %v9803_v8  ;;  %v3506_v62 = vpop.f32.mrf.mxu1  ;;  %6649 = vmatprep.subr.bf16.mxu1 %v12397_v48  ;;  %v10850_v0 = vmul.f32 %v9794_v57, %v3501_v5 }
 0x2ad   : > { %v3233_v2 = vpop.f32.mrf.mxu0  ;;  %6423 = vmatpush1.bf16.msra.mxu0 %v7842_v16 }
 0x2ae   : > { %v3505_v15 = vadd.f32 %v3504_v34, %v3232_v20  ;;  %v3234_v8 = vadd.f32 %v3233_v2, %v9806_v54  ;;  %6424 = vmatprep.subr.bf16.mxu0 %v12397_v48  ;;  %v3510_v16 = vpop.f32.mrf.mxu1  ;;  %6056 = vmatmul.mubr.bf16.gmra.mxu1 %v7795_v38  ;;  %v10857_v54 = vmul.f32 %v9794_v57, %v3503_v32  ;;  %v12882_v20 = vld [vmem:[#allocation117_spill] sm:$0xff] }
 0x2af   : > { %v3237_v36 = vpop.f32.mrf.mxu0  ;;  %6063 = vmatprep.mubr.bf16.mxu1 %v7804_v1  ;;  %6650 = vmatpush2.bf16.msra.mxu1 %v7857_v4  ;;  %v12887_v38 = vld [vmem:[#allocation21_spill] sm:$0xff] }
 0x2b0   : > { %5831 = vmatmul.mubr.bf16.gmra.mxu0 %v7792_v13  ;;  %v10853_v9 = vmul.f32 %v9797_v19, %v3505_v15  ;;  %v3507_v10 = vadd.f32 %v3506_v62, %v3234_v8  ;;  %v3238_v25 = vadd.f32 %v3237_v36, %v9826_v27  ;;  %v3512_v5 = vpop.f32.mrf.mxu1  ;;  %v7864_v13 = vld [vmem:[%s11947_s3 + $0x70] sm:$0xff]   ;;  %6651 = vmatprep.subr.bf16.mxu1 %v12397_v48  ;;  %v12883_v15 = vld [vmem:[#allocation119_spill] sm:$0xff] }
 0x2b1   : > { %5838 = vmatprep.mubr.bf16.mxu0 %v7801_v35  ;;  %v3239_v34 = vpop.f32.mrf.mxu0  ;;  %6425 = vmatpush2.bf16.msra.mxu0 %v7856_v31  ;;  %v7871_v27 = vld [vmem:[%s11947_s3 + $0xf0] sm:$0xff]   ;;  %v7802_v31 = vld [vmem:[%s10033_s9 + $0xa8] ss:$16 sps:$4 sm:$0xff]  }
 0x2b2   : > { %v10868_v57 = vmul.f32 %v9797_v19, %v3507_v10  ;;  %v3511_v32 = vadd.f32 %v3510_v16, %v3238_v25  ;;  %v3240_v35 = vadd.f32 %v3239_v34, %v12882_v20  ;;  %6426 = vmatprep.subr.bf16.mxu0 %v12397_v48  ;;  %v3514_v2 = vpop.f32.mrf.mxu1  ;;  %v7799_v62 = vld [vmem:[%s10033_s9 + $0xa0] ss:$16 sps:$4 sm:$0xff]   ;;  %v7808_v36 = vld [vmem:[%s10033_s9 + $0xc4] ss:$16 sps:$4 sm:$0xff]   ;;  %v7878_v25 = vld [vmem:[%s11947_s3 + $0x68] sm:$0xff]  }
 0x2b3   : > { %v3241_v1 = vpop.f32.mrf.mxu0  ;;  %6652 = vmatpush2.bf16.msra.mxu1 %v7871_v27  ;;  %v7879_v34 = vld [vmem:[%s11947_s3 + $0xe8] sm:$0xff]   ;;  %v12884_v20 = vld [vmem:[#allocation22_spill] sm:$0xff] }
 0x2b4   : > { %v3513_v4 = vadd.f32 %v3512_v5, %v3240_v35  ;;  %v3242_v8 = vadd.f32 %v3241_v1, %v12883_v15  ;;  %v3516_v16 = vpop.f32.mrf.mxu1  ;;  %6653 = vmatprep.subr.bf16.mxu1 %v12397_v48  ;;  %v12885_v1 = vld [vmem:[#allocation118_spill] sm:$0xff] }
 0x2b5   : > { %v3243_v10 = vpop.f32.mrf.mxu0  ;;  %6427 = vmatpush2.bf16.msra.mxu0 %v7864_v13  ;;  %v10890_v15 = vmul.f32 %v12885_v1, %v3511_v32 }
 0x2b6   : > { %v3515_v5 = vadd.f32 %v3514_v2, %v3242_v8  ;;  %v3244_v35 = vadd.f32 %v3243_v10, %v12884_v20  ;;  %6428 = vmatprep.subr.bf16.mxu0 %v12397_v48  ;;  %v3520_v27 = vpop.f32.mrf.mxu1  ;;  %6064 = vmatmul.mubr.bf16.gmra.mxu1 %v7802_v31  ;;  %v10897_v2 = vmul.f32 %v12885_v1, %v3513_v4 }
 0x2b7   : > { %12886 = vst [vmem:[#allocation96_spill] sm:$0xff] %v10890_v15  ;;  %v3247_v13 = vpop.f32.mrf.mxu0  ;;  %6071 = vmatprep.mubr.bf16.mxu1 %v7811_v23  ;;  %6654 = vmatpush2.bf16.msra.mxu1 %v7879_v34  ;;  %v7806_v34 = vld [vmem:[%s10033_s9 + $0xc0] ss:$16 sps:$4 sm:$0xff]  }
 0x2b8   : > { %5839 = vmatmul.mubr.bf16.gmra.mxu0 %v7799_v62  ;;  %v10893_v19 = vmul.f32 %v12887_v38, %v3515_v5  ;;  %v3517_v28 = vadd.f32 %v3516_v16, %v3244_v35  ;;  %v3248_v14 = vadd.f32 %v3247_v13, %v12888_v42  ;;  %v3522_v32 = vpop.f32.mrf.mxu1  ;;  %v7886_v62 = vld [vmem:[%s11947_s3 + $0x60] sm:$0xff]   ;;  %v7809_v5 = vld [vmem:[%s10033_s9 + $0xc8] ss:$16 sps:$4 sm:$0xff]   ;;  %6655 = vmatprep.subr.bf16.mxu1 %v12397_v48 }
 0x2b9   : > { %5846 = vmatprep.mubr.bf16.mxu0 %v7808_v36  ;;  %v3249_v8 = vpop.f32.mrf.mxu0  ;;  %6429 = vmatpush2.bf16.msra.mxu0 %v7878_v25  ;;  %v7893_v42 = vld [vmem:[%s11947_s3 + $0xe0] sm:$0xff]   ;;  %v12889_v36 = vld [vmem:[#allocation24_spill] sm:$0xff]  ;;  %v12890_v35 = vld [vmem:[#allocation26_spill] sm:$0xff] }
 0x2ba   : > { %v10908_v31 = vmul.f32 %v12887_v38, %v3517_v28  ;;  %v3521_v4 = vadd.f32 %v3520_v27, %v3248_v14  ;;  %v3250_v10 = vadd.f32 %v3249_v8, %v12889_v36  ;;  %6430 = vmatprep.subr.bf16.mxu0 %v12397_v48  ;;  %v3524_v25 = vpop.f32.mrf.mxu1  ;;  %v7816_v13 = vld [vmem:[%s10033_s9 + $0xe4] ss:$16 sps:$4 sm:$0xff]   ;;  %v7900_v27 = vld [vmem:[%s11947_s3 + $0x58] sm:$0xff]  }
 0x2bb   : > { %v3251_v16 = vpop.f32.mrf.mxu0  ;;  %6656 = vmatpush2.bf16.msra.mxu1 %v7893_v42  ;;  %v7901_v8 = vld [vmem:[%s11947_s3 + $0xd8] sm:$0xff]   ;;  %v12891_v36 = vld [vmem:[#allocation27_spill] sm:$0xff] }
 0x2bc   : > { %v3523_v20 = vadd.f32 %v3522_v32, %v3250_v10  ;;  %v3252_v1 = vadd.f32 %v3251_v16, %v12890_v35  ;;  %v3526_v14 = vpop.f32.mrf.mxu1  ;;  %6657 = vmatprep.subr.bf16.mxu1 %v12397_v48  ;;  %v12892_v16 = vld [vmem:[#allocation3_spill] sm:$0xff] }
 0x2bd   : > { %v3253_v38 = vpop.f32.mrf.mxu0  ;;  %6431 = vmatpush2.bf16.msra.mxu0 %v7886_v62  ;;  %v10930_v35 = vmul.f32 %v12892_v16, %v3521_v4 }
 0x2be   : > { %v3525_v32 = vadd.f32 %v3524_v25, %v3252_v1  ;;  %v3254_v10 = vadd.f32 %v3253_v38, %v12891_v36  ;;  %6432 = vmatprep.subr.bf16.mxu0 %v12397_v48  ;;  %v3530_v42 = vpop.f32.mrf.mxu1  ;;  %6072 = vmatmul.mubr.bf16.gmra.mxu1 %v7809_v5  ;;  %v10937_v25 = vmul.f32 %v12892_v16, %v3523_v20  ;;  %v12896_v36 = vld [vmem:[#allocation25_spill] sm:$0xff] }
 0x2bf   : > { %12893 = vst [vmem:[#allocation97_spill] sm:$0xff] %v10930_v35  ;;  %6079 = vmatprep.mubr.bf16.mxu1 %v7819_v11  ;;  %6658 = vmatpush2.bf16.msra.mxu1 %v7901_v8  ;;  %v7817_v8 = vld [vmem:[%s10033_s9 + $0xe8] ss:$16 sps:$4 sm:$0xff]   ;;  %v7823_v16 = vld [vmem:[%s10033_s9 + $0x104] ss:$16 sps:$4 sm:$0xff]  }
 0x2c0   : > { %v3257_v62 = vpop.f32.mrf.mxu0  ;;  %5847 = vmatmul.mubr.bf16.gmra.mxu0 %v7806_v34  ;;  %v10933_v23 = vmul.f32 %v9909_v7, %v3525_v32  ;;  %v3527_v28 = vadd.f32 %v3526_v14, %v3254_v10  ;;  %v3532_v4 = vpop.f32.mrf.mxu1  ;;  %v7908_v34 = vld [vmem:[%s11947_s3 + $0x50] sm:$0xff]   ;;  %6659 = vmatprep.subr.bf16.mxu1 %v12397_v48 }
 0x2c1   : > { %v3258_v15 = vadd.f32 %v3257_v62, %v12895_v60  ;;  %5854 = vmatprep.mubr.bf16.mxu0 %v7816_v13  ;;  %6433 = vmatpush2.bf16.msra.mxu0 %v7900_v27  ;;  %v7915_v60 = vld [vmem:[%s11947_s3 + $0xd0] sm:$0xff]   ;;  %v7826_v62 = vld [vmem:[%s10033_s9 + $0x10c] ss:$16 sps:$4 sm:$0xff]  }
 0x2c2   : > { %12894 = vst [vmem:[#allocation98_spill] sm:$0xff] %v10933_v23  ;;  %v3259_v1 = vpop.f32.mrf.mxu0  ;;  %v10948_v5 = vmul.f32 %v9909_v7, %v3527_v28  ;;  %6434 = vmatprep.subr.bf16.mxu0 %v12397_v48  ;;  %v3534_v14 = vpop.f32.mrf.mxu1  ;;  %v7814_v27 = vld [vmem:[%s10033_s9 + $0xe0] ss:$16 sps:$4 sm:$0xff]  }
 0x2c3   : > { %v3531_v20 = vadd.f32 %v3530_v42, %v3258_v15  ;;  %v3260_v13 = vadd.f32 %v3259_v1, %v9954_v29  ;;  %6660 = vmatpush2.bf16.msra.mxu1 %v7915_v60  ;;  %v7922_v29 = vld [vmem:[%s11947_s3 + $0x48] sm:$0xff]   ;;  %v12900_v7 = vld [vmem:[#allocation127_spill] sm:$0xff] }
 0x2c4   : > { %v3261_v38 = vpop.f32.mrf.mxu0  ;;  %v3536_v15 = vpop.f32.mrf.mxu1  ;;  %v7923_v42 = vld [vmem:[%s11947_s3 + $0xc8] sm:$0xff]   ;;  %6661 = vmatprep.subr.bf16.mxu1 %v12397_v48 }
 0x2c5   : > { %v3533_v32 = vadd.f32 %v3532_v4, %v3260_v13  ;;  %v3262_v10 = vadd.f32 %v3261_v38, %v12896_v36  ;;  %6435 = vmatpush2.bf16.msra.mxu0 %v7908_v34  ;;  %v12897_v4 = vld [vmem:[#allocation29_spill] sm:$0xff]  ;;  %v10970_v38 = vmul.f32 %v9962_v37, %v3531_v20 }
 0x2c6   : > { %v3263_v28 = vpop.f32.mrf.mxu0  ;;  %6436 = vmatprep.subr.bf16.mxu0 %v12397_v48  ;;  %v3540_v60 = vpop.f32.mrf.mxu1  ;;  %6080 = vmatmul.mubr.bf16.gmra.mxu1 %v7817_v8 }
 0x2c7   : > { %v3535_v1 = vadd.f32 %v3534_v14, %v3262_v10  ;;  %v3264_v13 = vadd.f32 %v3263_v28, %v12897_v4  ;;  %12898 = vst [vmem:[#allocation99_spill] sm:$0xff] %v10970_v38  ;;  %6087 = vmatprep.mubr.bf16.mxu1 %v7826_v62  ;;  %v10977_v14 = vmul.f32 %v9962_v37, %v3533_v32  ;;  %v7930_v37 = vld [vmem:[%s11947_s3 + $0x40] sm:$0xff]   ;;  %v7833_v4 = vld [vmem:[%s10033_s9 + $0x12c] ss:$16 sps:$4 sm:$0xff]   ;;  %v12904_v38 = vld [vmem:[#allocation5_spill] sm:$0xff] }
 0x2c8   : > { %v3267_v34 = vpop.f32.mrf.mxu0  ;;  %5855 = vmatmul.mubr.bf16.gmra.mxu0 %v7814_v27  ;;  %v3542_v20 = vpop.f32.mrf.mxu1  ;;  %6662 = vmatpush2.bf16.msra.mxu1 %v7923_v42  ;;  %v7937_v32 = vld [vmem:[%s11947_s3 + $0xc0] sm:$0xff]   ;;  %v7824_v42 = vld [vmem:[%s10033_s9 + $0x108] ss:$16 sps:$4 sm:$0xff]  }
 0x2c9   : > { %v10973_v36 = vmul.f32 %v9965_v43, %v3535_v1  ;;  %v3537_v11 = vadd.f32 %v3536_v15, %v3264_v13  ;;  %v3268_v35 = vadd.f32 %v3267_v34, %v12900_v7  ;;  %5862 = vmatprep.mubr.bf16.mxu0 %v7823_v16  ;;  %6437 = vmatpush2.bf16.msra.mxu0 %v7922_v29  ;;  %v12901_v16 = vld [vmem:[#allocation33_spill] sm:$0xff] }
 0x2ca   : > { %v3269_v10 = vpop.f32.mrf.mxu0  ;;  %6438 = vmatprep.subr.bf16.mxu0 %v12397_v48  ;;  %v3544_v15 = vpop.f32.mrf.mxu1  ;;  %v7821_v29 = vld [vmem:[%s10033_s9 + $0x100] ss:$16 sps:$4 sm:$0xff]   ;;  %6663 = vmatprep.subr.bf16.mxu1 %v12397_v48  ;;  %v7830_v1 = vld [vmem:[%s10033_s9 + $0x124] ss:$16 sps:$4 sm:$0xff]  }
 0x2cb   : > { %12899 = vst [vmem:[#allocation103_spill] sm:$0xff] %v10973_v36  ;;  %v10982_v8 = vmul.f32 %v9965_v43, %v3537_v11  ;;  %v3541_v7 = vadd.f32 %v3540_v60, %v3268_v35  ;;  %v3270_v28 = vadd.f32 %v3269_v10, %v12901_v16  ;;  %v12902_v35 = vld [vmem:[#allocation130_spill] sm:$0xff] }
 0x2cc   : > { %v3271_v62 = vpop.f32.mrf.mxu0  ;;  %v3546_v60 = vpop.f32.mrf.mxu1  ;;  %6664 = vmatpush2.bf16.msra.mxu1 %v7937_v32  ;;  %v12903_v16 = vld [vmem:[#allocation34_spill] sm:$0xff] }
 0x2cd   : > { %v3543_v43 = vadd.f32 %v3542_v20, %v3270_v28  ;;  %v3272_v11 = vadd.f32 %v3271_v62, %v12902_v35  ;;  %6439 = vmatpush2.bf16.msra.mxu0 %v7930_v37  ;;  %v11002_v36 = vmul.f32 %v12904_v38, %v3541_v7  ;;  %v12906_v20 = vld [vmem:[#allocation129_spill] sm:$0xff] }
 0x2ce   : > { %v3273_v34 = vpop.f32.mrf.mxu0  ;;  %v3550_v48 = vpop.f32.mrf.mxu1  ;;  %6088 = vmatmul.mubr.bf16.gmra.mxu1 %v7824_v42  ;;  %v12908_v35 = vld [vmem:[#allocation133_spill] sm:$0xff] }
 0x2cf   : > { %v3545_v10 = vadd.f32 %v3544_v15, %v3272_v11  ;;  %v3274_v27 = vadd.f32 %v3273_v34, %v12903_v16  ;;  %12905 = vst [vmem:[#allocation117_spill] sm:$0xff] %v11002_v36  ;;  %6095 = vmatprep.mubr.bf16.mxu1 %v7833_v4  ;;  %v11009_v37 = vmul.f32 %v12904_v38, %v3543_v43  ;;  %v7828_v34 = vld [vmem:[%s10033_s9 + $0x120] ss:$16 sps:$4 sm:$0xff]   ;;  %v12910_v4 = vld [vmem:[#allocation134_spill] sm:$0xff]  ;;  %v7838_v38 = vld [vmem:[%s10033_s9 + $0x144] ss:$16 sps:$4 sm:$0xff]  }
 0x2d0   : > { %v3277_v23 = vpop.f32.mrf.mxu0  ;;  %5863 = vmatmul.mubr.bf16.gmra.mxu0 %v7821_v29  ;;  %v3552_v32 = vpop.f32.mrf.mxu1  ;;  %v7841_v43 = vld [vmem:[%s10033_s9 + $0x14c] ss:$16 sps:$4 sm:$0xff]  }
 0x2d1   : > { %v11005_v28 = vmul.f32 %v12906_v20, %v3545_v10  ;;  %v3547_v62 = vadd.f32 %v3546_v60, %v3274_v27  ;;  %v3278_v13 = vadd.f32 %v3277_v23, %v12908_v35  ;;  %5870 = vmatprep.mubr.bf16.mxu0 %v7830_v1  ;;  %12909 = vst [vmem:[#allocation22_spill] sm:$0xff] %v11009_v37  ;;  %v7831_v1 = vld [vmem:[%s10033_s9 + $0x128] ss:$16 sps:$4 sm:$0xff]  }
 0x2d2   : > { %v3279_v7 = vpop.f32.mrf.mxu0  ;;  %v3554_v23 = vpop.f32.mrf.mxu1 }
 0x2d3   : > { %12907 = vst [vmem:[#allocation119_spill] sm:$0xff] %v11005_v28  ;;  %v11014_v29 = vmul.f32 %v12906_v20, %v3547_v62  ;;  %v3551_v42 = vadd.f32 %v3550_v48, %v3278_v13  ;;  %v3280_v27 = vadd.f32 %v3279_v7, %v10066_v33  ;;  %v12911_v20 = vld [vmem:[#allocation38_spill] sm:$0xff]  ;;  %v12912_v13 = vld [vmem:[#allocation36_spill] sm:$0xff] }
 0x2d4   : > { %v3281_v11 = vpop.f32.mrf.mxu0  ;;  %v3556_v15 = vpop.f32.mrf.mxu1 }
 0x2d5   : > { %v3553_v60 = vadd.f32 %v3552_v32, %v3280_v27  ;;  %v3282_v10 = vadd.f32 %v3281_v11, %v12910_v4  ;;  %v11026_v48 = vmul.f32 %v12912_v13, %v3551_v42  ;;  %v12914_v32 = vld [vmem:[#allocation37_spill] sm:$0xff] }
 0x2d6   : > { %v3283_v35 = vpop.f32.mrf.mxu0  ;;  %v3560_v7 = vpop.f32.mrf.mxu1  ;;  %6096 = vmatmul.mubr.bf16.gmra.mxu1 %v7831_v1  ;;  %v12916_v4 = vld [vmem:[#allocation137_spill] sm:$0xff] }
 0x2d7   : > { %v3555_v36 = vadd.f32 %v3554_v23, %v3282_v10  ;;  %v3284_v62 = vadd.f32 %v3283_v35, %v12911_v20  ;;  %12913 = vst [vmem:[#allocation118_spill] sm:$0xff] %v11026_v48  ;;  %6103 = vmatprep.mubr.bf16.mxu1 %v7841_v43  ;;  %v11033_v23 = vmul.f32 %v12912_v13, %v3553_v60  ;;  %v12918_v43 = vld [vmem:[#allocation41_spill] sm:$0xff]  ;;  %v7848_v13 = vld [vmem:[%s10033_s9 + $0x16c] ss:$16 sps:$4 sm:$0xff]  }
 0x2d8   : > { %v3287_v33 = vpop.f32.mrf.mxu0  ;;  %5871 = vmatmul.mubr.bf16.gmra.mxu0 %v7828_v34  ;;  %v3562_v10 = vpop.f32.mrf.mxu1  ;;  %v7845_v60 = vld [vmem:[%s10033_s9 + $0x164] ss:$16 sps:$4 sm:$0xff]  }
 0x2d9   : > { %v11029_v27 = vmul.f32 %v12914_v32, %v3555_v36  ;;  %v3557_v11 = vadd.f32 %v3556_v15, %v3284_v62  ;;  %v3288_v16 = vadd.f32 %v3287_v33, %v12916_v4  ;;  %5878 = vmatprep.mubr.bf16.mxu0 %v7838_v38  ;;  %12917 = vst [vmem:[#allocation122_spill] sm:$0xff] %v11033_v23  ;;  %v7836_v62 = vld [vmem:[%s10033_s9 + $0x140] ss:$16 sps:$4 sm:$0xff]   ;;  %v7839_v38 = vld [vmem:[%s10033_s9 + $0x148] ss:$16 sps:$4 sm:$0xff]  }
 0x2da   : > { %v3289_v42 = vpop.f32.mrf.mxu0  ;;  %v3564_v20 = vpop.f32.mrf.mxu1 }
 0x2db   : > { %12915 = vst [vmem:[#allocation21_spill] sm:$0xff] %v11029_v27  ;;  %v11038_v1 = vmul.f32 %v12914_v32, %v3557_v11  ;;  %v3561_v36 = vadd.f32 %v3560_v7, %v3288_v16  ;;  %v3290_v15 = vadd.f32 %v3289_v42, %v10106_v51  ;;  %v12919_v32 = vld [vmem:[#allocation42_spill] sm:$0xff]  ;;  %v12920_v16 = vld [vmem:[#allocation40_spill] sm:$0xff] }
 0x2dc   : > { %v3291_v35 = vpop.f32.mrf.mxu0  ;;  %v3566_v34 = vpop.f32.mrf.mxu1 }
 0x2dd   : > { %v3563_v33 = vadd.f32 %v3562_v10, %v3290_v15  ;;  %v3292_v4 = vadd.f32 %v3291_v35, %v12918_v43  ;;  %v11050_v7 = vmul.f32 %v12920_v16, %v3561_v36  ;;  %v12922_v10 = vld [vmem:[#allocation7_spill] sm:$0xff]  ;;  %v12924_v43 = vld [vmem:[#allocation141_spill] sm:$0xff] }
 0x2de   : > { %v3293_v37 = vpop.f32.mrf.mxu0  ;;  %v3570_v42 = vpop.f32.mrf.mxu1  ;;  %6104 = vmatmul.mubr.bf16.gmra.mxu1 %v7839_v38 }
 0x2df   : > { %v3565_v48 = vadd.f32 %v3564_v20, %v3292_v4  ;;  %v3294_v11 = vadd.f32 %v3293_v37, %v12919_v32  ;;  %12921 = vst [vmem:[#allocation24_spill] sm:$0xff] %v11050_v7  ;;  %6111 = vmatprep.mubr.bf16.mxu1 %v7848_v13  ;;  %v11057_v37 = vmul.f32 %v12920_v16, %v3563_v33  ;;  %v12926_v13 = vld [vmem:[#allocation142_spill] sm:$0xff]  ;;  %v7852_v33 = vld [vmem:[%s10033_s9 + $0x184] ss:$16 sps:$4 sm:$0xff]  }
 0x2e0   : > { %v3297_v51 = vpop.f32.mrf.mxu0  ;;  %5879 = vmatmul.mubr.bf16.gmra.mxu0 %v7836_v62  ;;  %v3572_v20 = vpop.f32.mrf.mxu1  ;;  %v7855_v16 = vld [vmem:[%s10033_s9 + $0x18c] ss:$16 sps:$4 sm:$0xff]  }
 0x2e1   : > { %v11053_v15 = vmul.f32 %v12922_v10, %v3565_v48  ;;  %v3567_v35 = vadd.f32 %v3566_v34, %v3294_v11  ;;  %v3298_v28 = vadd.f32 %v3297_v51, %v12924_v43  ;;  %5886 = vmatprep.mubr.bf16.mxu0 %v7845_v60  ;;  %12925 = vst [vmem:[#allocation27_spill] sm:$0xff] %v11057_v37  ;;  %v7843_v11 = vld [vmem:[%s10033_s9 + $0x160] ss:$16 sps:$4 sm:$0xff]   ;;  %v7846_v60 = vld [vmem:[%s10033_s9 + $0x168] ss:$16 sps:$4 sm:$0xff]  }
 0x2e2   : > { %v3299_v36 = vpop.f32.mrf.mxu0  ;;  %v3574_v32 = vpop.f32.mrf.mxu1 }
 0x2e3   : > { %12923 = vst [vmem:[#allocation26_spill] sm:$0xff] %v11053_v15  ;;  %v11062_v38 = vmul.f32 %v12922_v10, %v3567_v35  ;;  %v3571_v48 = vadd.f32 %v3570_v42, %v3298_v28  ;;  %v3300_v34 = vadd.f32 %v3299_v36, %v10146_v39  ;;  %v12927_v10 = vld [vmem:[#allocation46_spill] sm:$0xff]  ;;  %v12928_v28 = vld [vmem:[#allocation44_spill] sm:$0xff] }
 0x2e4   : > { %v3301_v4 = vpop.f32.mrf.mxu0  ;;  %v3576_v62 = vpop.f32.mrf.mxu1 }
 0x2e5   : > { %v3573_v51 = vadd.f32 %v3572_v20, %v3300_v34  ;;  %v3302_v43 = vadd.f32 %v3301_v4, %v12926_v13  ;;  %v11074_v42 = vmul.f32 %v12928_v28, %v3571_v48  ;;  %v12930_v20 = vld [vmem:[#allocation45_spill] sm:$0xff] }
 0x2e6   : > { %v3303_v23 = vpop.f32.mrf.mxu0  ;;  %v3580_v36 = vpop.f32.mrf.mxu1  ;;  %6112 = vmatmul.mubr.bf16.gmra.mxu1 %v7846_v60  ;;  %v12932_v13 = vld [vmem:[#allocation145_spill] sm:$0xff] }
 0x2e7   : > { %v3575_v7 = vadd.f32 %v3574_v32, %v3302_v43  ;;  %v3304_v35 = vadd.f32 %v3303_v23, %v12927_v10  ;;  %12929 = vst [vmem:[#allocation3_spill] sm:$0xff] %v11074_v42  ;;  %6119 = vmatprep.mubr.bf16.mxu1 %v7855_v16  ;;  %v11081_v23 = vmul.f32 %v12928_v28, %v3573_v51  ;;  %v12934_v16 = vld [vmem:[#allocation49_spill] sm:$0xff]  ;;  %v7863_v28 = vld [vmem:[%s10033_s9 + $0x1ac] ss:$16 sps:$4 sm:$0xff]  }
 0x2e8   : > { %v3307_v39 = vpop.f32.mrf.mxu0  ;;  %5887 = vmatmul.mubr.bf16.gmra.mxu0 %v7843_v11  ;;  %v3582_v32 = vpop.f32.mrf.mxu1  ;;  %v7860_v51 = vld [vmem:[%s10033_s9 + $0x1a4] ss:$16 sps:$4 sm:$0xff]  }
 0x2e9   : > { %v11077_v34 = vmul.f32 %v12930_v20, %v3575_v7  ;;  %v3577_v4 = vadd.f32 %v3576_v62, %v3304_v35  ;;  %v3308_v27 = vadd.f32 %v3307_v39, %v12932_v13  ;;  %5894 = vmatprep.mubr.bf16.mxu0 %v7852_v33  ;;  %12933 = vst [vmem:[#allocation25_spill] sm:$0xff] %v11081_v23  ;;  %v7850_v35 = vld [vmem:[%s10033_s9 + $0x180] ss:$16 sps:$4 sm:$0xff]   ;;  %v7853_v33 = vld [vmem:[%s10033_s9 + $0x188] ss:$16 sps:$4 sm:$0xff]  }
 0x2ea   : > { %v3309_v48 = vpop.f32.mrf.mxu0  ;;  %v3584_v10 = vpop.f32.mrf.mxu1 }
 0x2eb   : > { %12931 = vst [vmem:[#allocation126_spill] sm:$0xff] %v11077_v34  ;;  %v11086_v60 = vmul.f32 %v12930_v20, %v3577_v4  ;;  %v3581_v7 = vadd.f32 %v3580_v36, %v3308_v27  ;;  %v3310_v62 = vadd.f32 %v3309_v48, %v10186_v61  ;;  %v12935_v20 = vld [vmem:[#allocation50_spill] sm:$0xff]  ;;  %v12936_v27 = vld [vmem:[#allocation48_spill] sm:$0xff] }
 0x2ec   : > { %v3311_v43 = vpop.f32.mrf.mxu0  ;;  %v3586_v11 = vpop.f32.mrf.mxu1 }
 0x2ed   : > { %v3583_v39 = vadd.f32 %v3582_v32, %v3310_v62  ;;  %v3312_v13 = vadd.f32 %v3311_v43, %v12934_v16  ;;  %v11098_v36 = vmul.f32 %v12936_v27, %v3581_v7  ;;  %v12938_v32 = vld [vmem:[#allocation9_spill] sm:$0xff] }
 0x2ee   : > { %v3313_v37 = vpop.f32.mrf.mxu0  ;;  %v3590_v48 = vpop.f32.mrf.mxu1  ;;  %6120 = vmatmul.mubr.bf16.gmra.mxu1 %v7853_v33  ;;  %v12940_v16 = vld [vmem:[#allocation149_spill] sm:$0xff] }
 0x2ef   : > { %v3585_v42 = vadd.f32 %v3584_v10, %v3312_v13  ;;  %v3314_v4 = vadd.f32 %v3313_v37, %v12935_v20  ;;  %12937 = vst [vmem:[#allocation29_spill] sm:$0xff] %v11098_v36  ;;  %6127 = vmatprep.mubr.bf16.mxu1 %v7863_v28  ;;  %v11105_v37 = vmul.f32 %v12936_v27, %v3583_v39  ;;  %v12942_v28 = vld [vmem:[#allocation150_spill] sm:$0xff]  ;;  %v7867_v39 = vld [vmem:[%s10033_s9 + $0x1c4] ss:$16 sps:$4 sm:$0xff]  }
 0x2f0   : > { %v3317_v61 = vpop.f32.mrf.mxu0  ;;  %5895 = vmatmul.mubr.bf16.gmra.mxu0 %v7850_v35  ;;  %v3592_v10 = vpop.f32.mrf.mxu1  ;;  %v7870_v27 = vld [vmem:[%s10033_s9 + $0x1cc] ss:$16 sps:$4 sm:$0xff]  }
 0x2f1   : > { %v11101_v62 = vmul.f32 %v12938_v32, %v3585_v42  ;;  %v3587_v43 = vadd.f32 %v3586_v11, %v3314_v4  ;;  %v3318_v15 = vadd.f32 %v3317_v61, %v12940_v16  ;;  %5902 = vmatprep.mubr.bf16.mxu0 %v7860_v51  ;;  %12941 = vst [vmem:[#allocation33_spill] sm:$0xff] %v11105_v37  ;;  %v7858_v4 = vld [vmem:[%s10033_s9 + $0x1a0] ss:$16 sps:$4 sm:$0xff]   ;;  %v7861_v51 = vld [vmem:[%s10033_s9 + $0x1a8] ss:$16 sps:$4 sm:$0xff]  }
 0x2f2   : > { %v3319_v7 = vpop.f32.mrf.mxu0  ;;  %v3594_v20 = vpop.f32.mrf.mxu1 }
 0x2f3   : > { %12939 = vst [vmem:[#allocation127_spill] sm:$0xff] %v11101_v62  ;;  %v11110_v33 = vmul.f32 %v12938_v32, %v3587_v43  ;;  %v3591_v42 = vadd.f32 %v3590_v48, %v3318_v15  ;;  %v3320_v11 = vadd.f32 %v3319_v7, %v10226_v46  ;;  %v12943_v32 = vld [vmem:[#allocation54_spill] sm:$0xff]  ;;  %v12944_v15 = vld [vmem:[#allocation52_spill] sm:$0xff] }
 0x2f4   : > { %v3321_v13 = vpop.f32.mrf.mxu0  ;;  %v3596_v35 = vpop.f32.mrf.mxu1 }
 0x2f5   : > { %v3593_v61 = vadd.f32 %v3592_v10, %v3320_v11  ;;  %v3322_v16 = vadd.f32 %v3321_v13, %v12942_v28  ;;  %v11122_v48 = vmul.f32 %v12944_v15, %v3591_v42  ;;  %v12946_v10 = vld [vmem:[#allocation53_spill] sm:$0xff] }
 0x2f6   : > { %v3323_v23 = vpop.f32.mrf.mxu0  ;;  %v3600_v7 = vpop.f32.mrf.mxu1  ;;  %6128 = vmatmul.mubr.bf16.gmra.mxu1 %v7861_v51  ;;  %v12948_v28 = vld [vmem:[#allocation153_spill] sm:$0xff] }
 0x2f7   : > { %v3595_v36 = vadd.f32 %v3594_v20, %v3322_v16  ;;  %v3324_v43 = vadd.f32 %v3323_v23, %v12943_v32  ;;  %12945 = vst [vmem:[#allocation130_spill] sm:$0xff] %v11122_v48  ;;  %6135 = vmatprep.mubr.bf16.mxu1 %v7870_v27  ;;  %v11129_v23 = vmul.f32 %v12944_v15, %v3593_v61  ;;  %v12950_v27 = vld [vmem:[#allocation57_spill] sm:$0xff]  ;;  %v7877_v15 = vld [vmem:[%s10033_s9 + $0x1ec] ss:$16 sps:$4 sm:$0xff]  }
 0x2f8   : > { %v3327_v46 = vpop.f32.mrf.mxu0  ;;  %5903 = vmatmul.mubr.bf16.gmra.mxu0 %v7858_v4  ;;  %v3602_v20 = vpop.f32.mrf.mxu1  ;;  %v7874_v61 = vld [vmem:[%s10033_s9 + $0x1e4] ss:$16 sps:$4 sm:$0xff]  }
 0x2f9   : > { %v11125_v11 = vmul.f32 %v12946_v10, %v3595_v36  ;;  %v3597_v13 = vadd.f32 %v3596_v35, %v3324_v43  ;;  %v3328_v34 = vadd.f32 %v3327_v46, %v12948_v28  ;;  %5910 = vmatprep.mubr.bf16.mxu0 %v7867_v39  ;;  %12949 = vst [vmem:[#allocation5_spill] sm:$0xff] %v11129_v23  ;;  %v7865_v43 = vld [vmem:[%s10033_s9 + $0x1c0] ss:$16 sps:$4 sm:$0xff]   ;;  %v7868_v39 = vld [vmem:[%s10033_s9 + $0x1c8] ss:$16 sps:$4 sm:$0xff]  }
 0x2fa   : > { %v3329_v42 = vpop.f32.mrf.mxu0  ;;  %v3604_v32 = vpop.f32.mrf.mxu1 }
 0x2fb   : > { %12947 = vst [vmem:[#allocation34_spill] sm:$0xff] %v11125_v11  ;;  %v11134_v51 = vmul.f32 %v12946_v10, %v3597_v13  ;;  %v3601_v36 = vadd.f32 %v3600_v7, %v3328_v34  ;;  %v3330_v35 = vadd.f32 %v3329_v42, %v10266_v40  ;;  %v12951_v10 = vld [vmem:[#allocation58_spill] sm:$0xff]  ;;  %v12952_v34 = vld [vmem:[#allocation56_spill] sm:$0xff] }
 0x2fc   : > { %v3331_v16 = vpop.f32.mrf.mxu0  ;;  %v3606_v4 = vpop.f32.mrf.mxu1 }
 0x2fd   : > { %v3603_v46 = vadd.f32 %v3602_v20, %v3330_v35  ;;  %v3332_v28 = vadd.f32 %v3331_v16, %v12950_v27  ;;  %v11146_v7 = vmul.f32 %v12952_v34, %v3601_v36  ;;  %v12954_v20 = vld [vmem:[#allocation11_spill] sm:$0xff]  ;;  %v12956_v27 = vld [vmem:[#allocation157_spill] sm:$0xff] }
 0x2fe   : > { %v3333_v37 = vpop.f32.mrf.mxu0  ;;  %v3610_v42 = vpop.f32.mrf.mxu1  ;;  %6136 = vmatmul.mubr.bf16.gmra.mxu1 %v7868_v39 }
 0x2ff   : > { %v3605_v48 = vadd.f32 %v3604_v32, %v3332_v28  ;;  %v3334_v13 = vadd.f32 %v3333_v37, %v12951_v10  ;;  %12953 = vst [vmem:[#allocation129_spill] sm:$0xff] %v11146_v7  ;;  %6143 = vmatprep.mubr.bf16.mxu1 %v7877_v15  ;;  %v11153_v37 = vmul.f32 %v12952_v34, %v3603_v46  ;;  %v12958_v15 = vld [vmem:[#allocation158_spill] sm:$0xff]  ;;  %v7882_v46 = vld [vmem:[%s10033_s9 + $0x204] ss:$16 sps:$4 sm:$0xff]  }
 0x300   : > { %v3337_v40 = vpop.f32.mrf.mxu0  ;;  %5911 = vmatmul.mubr.bf16.gmra.mxu0 %v7865_v43  ;;  %v3612_v32 = vpop.f32.mrf.mxu1  ;;  %v7885_v34 = vld [vmem:[%s10033_s9 + $0x20c] ss:$16 sps:$4 sm:$0xff]  }
 0x301   : > { %v11149_v35 = vmul.f32 %v12954_v20, %v3605_v48  ;;  %v3607_v16 = vadd.f32 %v3606_v4, %v3334_v13  ;;  %v3338_v62 = vadd.f32 %v3337_v40, %v12956_v27  ;;  %5918 = vmatprep.mubr.bf16.mxu0 %v7874_v61  ;;  %12957 = vst [vmem:[#allocation134_spill] sm:$0xff] %v11153_v37  ;;  %v7872_v13 = vld [vmem:[%s10033_s9 + $0x1e0] ss:$16 sps:$4 sm:$0xff]   ;;  %v7875_v61 = vld [vmem:[%s10033_s9 + $0x1e8] ss:$16 sps:$4 sm:$0xff]  }
 0x302   : > { %v3339_v36 = vpop.f32.mrf.mxu0  ;;  %v3614_v10 = vpop.f32.mrf.mxu1 }
 0x303   : > { %12955 = vst [vmem:[#allocation133_spill] sm:$0xff] %v11149_v35  ;;  %v11158_v39 = vmul.f32 %v12954_v20, %v3607_v16  ;;  %v3611_v48 = vadd.f32 %v3610_v42, %v3338_v62  ;;  %v3340_v4 = vadd.f32 %v3339_v36, %v10306_v3  ;;  %v12959_v20 = vld [vmem:[#allocation62_spill] sm:$0xff]  ;;  %v12960_v62 = vld [vmem:[#allocation60_spill] sm:$0xff] }
 0x304   : > { %v3341_v28 = vpop.f32.mrf.mxu0  ;;  %v3616_v43 = vpop.f32.mrf.mxu1 }
 0x305   : > { %v3613_v40 = vadd.f32 %v3612_v32, %v3340_v4  ;;  %v3342_v27 = vadd.f32 %v3341_v28, %v12958_v15  ;;  %v11170_v42 = vmul.f32 %v12960_v62, %v3611_v48  ;;  %v12962_v32 = vld [vmem:[#allocation61_spill] sm:$0xff] }
 0x306   : > { %v3343_v23 = vpop.f32.mrf.mxu0  ;;  %v3620_v36 = vpop.f32.mrf.mxu1  ;;  %6144 = vmatmul.mubr.bf16.gmra.mxu1 %v7875_v61  ;;  %v12964_v15 = vld [vmem:[#allocation161_spill] sm:$0xff] }
 0x307   : > { %v3615_v7 = vadd.f32 %v3614_v10, %v3342_v27  ;;  %v3344_v16 = vadd.f32 %v3343_v23, %v12959_v20  ;;  %12961 = vst [vmem:[#allocation38_spill] sm:$0xff] %v11170_v42  ;;  %6151 = vmatprep.mubr.bf16.mxu1 %v7885_v34  ;;  %v11177_v23 = vmul.f32 %v12960_v62, %v3613_v40  ;;  %v12965_v34 = vld [vmem:[#allocation13_spill] sm:$0xff]  ;;  %v7892_v62 = vld [vmem:[%s10033_s9 + $0x22c] ss:$16 sps:$4 sm:$0xff]  }
 0x308   : > { %v3347_v3 = vpop.f32.mrf.mxu0  ;;  %5919 = vmatmul.mubr.bf16.gmra.mxu0 %v7872_v13  ;;  %v3622_v10 = vpop.f32.mrf.mxu1  ;;  %v7889_v40 = vld [vmem:[%s10033_s9 + $0x224] ss:$16 sps:$4 sm:$0xff]  }
 0x309   : > { %v11173_v4 = vmul.f32 %v12962_v32, %v3615_v7  ;;  %v3617_v28 = vadd.f32 %v3616_v43, %v3344_v16  ;;  %v3348_v11 = vadd.f32 %v3347_v3, %v12964_v15  ;;  %5926 = vmatprep.mubr.bf16.mxu0 %v7882_v46  ;;  %v7880_v16 = vld [vmem:[%s10033_s9 + $0x200] ss:$16 sps:$4 sm:$0xff]   ;;  %v7883_v46 = vld [vmem:[%s10033_s9 + $0x208] ss:$16 sps:$4 sm:$0xff]  }
 0x30a   : > { %v3349_v48 = vpop.f32.mrf.mxu0  ;;  %v3624_v20 = vpop.f32.mrf.mxu1 }
 0x30b   : > { %12963 = vst [vmem:[#allocation36_spill] sm:$0xff] %v11173_v4  ;;  %v11182_v61 = vmul.f32 %v12962_v32, %v3617_v28  ;;  %v3621_v7 = vadd.f32 %v3620_v36, %v3348_v11  ;;  %v3350_v43 = vadd.f32 %v3349_v48, %v10346_v18  ;;  %v12966_v32 = vld [vmem:[#allocation65_spill] sm:$0xff]  ;;  %v12968_v48 = vld [vmem:[#allocation64_spill] sm:$0xff] }
 0x30c   : > { %v3351_v27 = vpop.f32.mrf.mxu0  ;;  %v3626_v13 = vpop.f32.mrf.mxu1 }
 0x30d   : > { %v3623_v3 = vadd.f32 %v3622_v10, %v3350_v43  ;;  %v3352_v15 = vadd.f32 %v3351_v27, %v12965_v34  ;;  %v11194_v11 = vmul.f32 %v10348_v17, %v3621_v7  ;;  %v12970_v27 = vld [vmem:[#allocation164_spill] sm:$0xff] }
 0x30e   : > { %v3353_v37 = vpop.f32.mrf.mxu0  ;;  %v3630_v36 = vpop.f32.mrf.mxu1  ;;  %6152 = vmatmul.mubr.bf16.gmra.mxu1 %v7883_v46 }
 0x30f   : > { %v3625_v42 = vadd.f32 %v3624_v20, %v3352_v15  ;;  %v3354_v28 = vadd.f32 %v3353_v37, %v12966_v32  ;;  %12967 = vst [vmem:[#allocation37_spill] sm:$0xff] %v11194_v11  ;;  %6159 = vmatprep.mubr.bf16.mxu1 %v7892_v62  ;;  %v11201_v37 = vmul.f32 %v10348_v17, %v3623_v3  ;;  %v12972_v62 = vld [vmem:[#allocation166_spill] sm:$0xff]  ;;  %v7896_v17 = vld [vmem:[%s10033_s9 + $0x244] ss:$16 sps:$4 sm:$0xff]  }
 0x310   : > { %v3357_v18 = vpop.f32.mrf.mxu0  ;;  %5927 = vmatmul.mubr.bf16.gmra.mxu0 %v7880_v16  ;;  %v3632_v20 = vpop.f32.mrf.mxu1  ;;  %v7899_v3 = vld [vmem:[%s10033_s9 + $0x24c] ss:$16 sps:$4 sm:$0xff]  }
 0x311   : > { %v11197_v10 = vmul.f32 %v12968_v48, %v3625_v42  ;;  %v3627_v43 = vadd.f32 %v3626_v13, %v3354_v28  ;;  %v3358_v34 = vadd.f32 %v3357_v18, %v12970_v27  ;;  %5934 = vmatprep.mubr.bf16.mxu0 %v7889_v40  ;;  %12971 = vst [vmem:[#allocation41_spill] sm:$0xff] %v11201_v37  ;;  %v7887_v28 = vld [vmem:[%s10033_s9 + $0x220] ss:$16 sps:$4 sm:$0xff]   ;;  %v7890_v40 = vld [vmem:[%s10033_s9 + $0x228] ss:$16 sps:$4 sm:$0xff]  }
 0x312   : > { %v3359_v7 = vpop.f32.mrf.mxu0  ;;  %v3634_v32 = vpop.f32.mrf.mxu1 }
 0x313   : > { %12969 = vst [vmem:[#allocation137_spill] sm:$0xff] %v11197_v10  ;;  %v11206_v46 = vmul.f32 %v12968_v48, %v3627_v43  ;;  %v3631_v42 = vadd.f32 %v3630_v36, %v3358_v34  ;;  %v3360_v13 = vadd.f32 %v3359_v7, %v10386_v24  ;;  %v12973_v48 = vld [vmem:[#allocation69_spill] sm:$0xff]  ;;  %v12974_v36 = vld [vmem:[#allocation68_spill] sm:$0xff] }
 0x314   : > { %v3361_v15 = vpop.f32.mrf.mxu0  ;;  %v3636_v16 = vpop.f32.mrf.mxu1 }
 0x315   : > { %v3633_v18 = vadd.f32 %v3632_v20, %v3360_v13  ;;  %v3362_v27 = vadd.f32 %v3361_v15, %v12972_v62  ;;  %v11218_v34 = vmul.f32 %v12974_v36, %v3631_v42  ;;  %v12976_v20 = vld [vmem:[#allocation165_spill] sm:$0xff] }
 0x316   : > { %v3363_v4 = vpop.f32.mrf.mxu0  ;;  %v3640_v7 = vpop.f32.mrf.mxu1  ;;  %6160 = vmatmul.mubr.bf16.gmra.mxu1 %v7890_v40  ;;  %v12978_v62 = vld [vmem:[#allocation169_spill] sm:$0xff] }
 0x317   : > { %v3635_v11 = vadd.f32 %v3634_v32, %v3362_v27  ;;  %v3364_v43 = vadd.f32 %v3363_v4, %v12973_v48  ;;  %12975 = vst [vmem:[#allocation42_spill] sm:$0xff] %v11218_v34  ;;  %6167 = vmatprep.mubr.bf16.mxu1 %v7899_v3  ;;  %v11225_v4 = vmul.f32 %v12974_v36, %v3633_v18  ;;  %v12980_v3 = vld [vmem:[#allocation72_spill] sm:$0xff]  ;;  %v7904_v18 = vld [vmem:[%s10033_s9 + $0x264] ss:$16 sps:$4 sm:$0xff]  }
 0x318   : > { %v3367_v24 = vpop.f32.mrf.mxu0  ;;  %5935 = vmatmul.mubr.bf16.gmra.mxu0 %v7887_v28  ;;  %v3642_v32 = vpop.f32.mrf.mxu1  ;;  %v7907_v36 = vld [vmem:[%s10033_s9 + $0x26c] ss:$16 sps:$4 sm:$0xff]  }
 0x319   : > { %v11221_v13 = vmul.f32 %v12976_v20, %v3635_v11  ;;  %v3637_v15 = vadd.f32 %v3636_v16, %v3364_v43  ;;  %v3368_v35 = vadd.f32 %v3367_v24, %v12978_v62  ;;  %5942 = vmatprep.mubr.bf16.mxu0 %v7896_v17  ;;  %12979 = vst [vmem:[#allocation7_spill] sm:$0xff] %v11225_v4  ;;  %v7894_v43 = vld [vmem:[%s10033_s9 + $0x240] ss:$16 sps:$4 sm:$0xff]   ;;  %v7897_v17 = vld [vmem:[%s10033_s9 + $0x248] ss:$16 sps:$4 sm:$0xff]  }
 0x31a   : > { %v3369_v42 = vpop.f32.mrf.mxu0  ;;  %v3644_v48 = vpop.f32.mrf.mxu1 }
 0x31b   : > { %12977 = vst [vmem:[#allocation40_spill] sm:$0xff] %v11221_v13  ;;  %v11230_v40 = vmul.f32 %v12976_v20, %v3637_v15  ;;  %v3641_v11 = vadd.f32 %v3640_v7, %v3368_v35  ;;  %v3370_v16 = vadd.f32 %v3369_v42, %v10426_v6  ;;  %v12981_v20 = vld [vmem:[#allocation73_spill] sm:$0xff]  ;;  %v12982_v35 = vld [vmem:[#allocation71_spill] sm:$0xff] }
 0x31c   : > { %v3371_v27 = vpop.f32.mrf.mxu0  ;;  %v3646_v28 = vpop.f32.mrf.mxu1 }
 0x31d   : > { %v3643_v24 = vadd.f32 %v3642_v32, %v3370_v16  ;;  %v3372_v62 = vadd.f32 %v3371_v27, %v12980_v3  ;;  %v11242_v7 = vmul.f32 %v12982_v35, %v3641_v11  ;;  %v12984_v32 = vld [vmem:[#allocation15_spill] sm:$0xff]  ;;  %v12986_v3 = vld [vmem:[#allocation173_spill] sm:$0xff] }
 0x31e   : > { %v3373_v37 = vpop.f32.mrf.mxu0  ;;  %v3650_v42 = vpop.f32.mrf.mxu1  ;;  %6168 = vmatmul.mubr.bf16.gmra.mxu1 %v7897_v17 }
 0x31f   : > { %v3645_v34 = vadd.f32 %v3644_v48, %v3372_v62  ;;  %v3374_v15 = vadd.f32 %v3373_v37, %v12981_v20  ;;  %12983 = vst [vmem:[#allocation141_spill] sm:$0xff] %v11242_v7  ;;  %6175 = vmatprep.mubr.bf16.mxu1 %v7907_v36  ;;  %v11249_v37 = vmul.f32 %v12982_v35, %v3643_v24  ;;  %v12989_v36 = vld [vmem:[#allocation174_spill] sm:$0xff]  ;;  %v7911_v24 = vld [vmem:[%s10033_s9 + $0x284] ss:$16 sps:$4 sm:$0xff]  }
 0x320   : > { %v3377_v6 = vpop.f32.mrf.mxu0  ;;  %5943 = vmatmul.mubr.bf16.gmra.mxu0 %v7894_v43  ;;  %v3652_v48 = vpop.f32.mrf.mxu1  ;;  %v7914_v35 = vld [vmem:[%s10033_s9 + $0x28c] ss:$16 sps:$4 sm:$0xff]  }
 0x321   : > { %v11245_v16 = vmul.f32 %v12984_v32, %v3645_v34  ;;  %v3647_v27 = vadd.f32 %v3646_v28, %v3374_v15  ;;  %v3378_v10 = vadd.f32 %v3377_v6, %v12986_v3  ;;  %5950 = vmatprep.mubr.bf16.mxu0 %v7904_v18  ;;  %12987 = vst [vmem:[#allocation46_spill] sm:$0xff] %v11249_v37  ;;  %v7902_v15 = vld [vmem:[%s10033_s9 + $0x260] ss:$16 sps:$4 sm:$0xff]   ;;  %v7905_v18 = vld [vmem:[%s10033_s9 + $0x268] ss:$16 sps:$4 sm:$0xff]  }
 0x322   : > { %v3379_v11 = vpop.f32.mrf.mxu0  ;;  %v3654_v20 = vpop.f32.mrf.mxu1 }
 0x323   : > { %12985 = vst [vmem:[#allocation142_spill] sm:$0xff] %v11245_v16  ;;  %v11254_v17 = vmul.f32 %v12984_v32, %v3647_v27  ;;  %v3651_v34 = vadd.f32 %v3650_v42, %v3378_v10  ;;  %v3380_v28 = vadd.f32 %v3379_v11, %v10466_v22  ;;  %v12990_v32 = vld [vmem:[#allocation77_spill] sm:$0xff]  ;;  %v12991_v10 = vld [vmem:[#allocation75_spill] sm:$0xff] }
 0x324   : > { %v3381_v62 = vpop.f32.mrf.mxu0  ;;  %v3656_v43 = vpop.f32.mrf.mxu1 }
 0x325   : > { %12988 = vst [vmem:[#allocation44_spill] sm:$0xff] %v11254_v17  ;;  %v3653_v6 = vadd.f32 %v3652_v48, %v3380_v28  ;;  %v3382_v3 = vadd.f32 %v3381_v62, %v12989_v36  ;;  %v11266_v42 = vmul.f32 %v12991_v10, %v3651_v34  ;;  %v12993_v48 = vld [vmem:[#allocation76_spill] sm:$0xff]  ;;  %v12995_v36 = vld [vmem:[#allocation177_spill] sm:$0xff] }
 0x326   : > { %v3383_v4 = vpop.f32.mrf.mxu0  ;;  %v3660_v11 = vpop.f32.mrf.mxu1  ;;  %6176 = vmatmul.mubr.bf16.gmra.mxu1 %v7905_v18 }
 0x327   : > { %v3655_v7 = vadd.f32 %v3654_v20, %v3382_v3  ;;  %v3384_v27 = vadd.f32 %v3383_v4, %v12990_v32  ;;  %12992 = vst [vmem:[#allocation45_spill] sm:$0xff] %v11266_v42  ;;  %6183 = vmatprep.mubr.bf16.mxu1 %v7914_v35  ;;  %v11273_v4 = vmul.f32 %v12991_v10, %v3653_v6  ;;  %v12997_v3 = vld [vmem:[#allocation79_spill] sm:$0xff]  ;;  %v7921_v10 = vld [vmem:[%s10033_s9 + $0x2ac] ss:$16 sps:$4 sm:$0xff]  }
 0x328   : > { %v3387_v22 = vpop.f32.mrf.mxu0  ;;  %5951 = vmatmul.mubr.bf16.gmra.mxu0 %v7902_v15  ;;  %v3662_v20 = vpop.f32.mrf.mxu1  ;;  %v12998_v35 = vld [vmem:[#allocation179_spill] sm:$0xff] }
 0x329   : > { %v11269_v28 = vmul.f32 %v12993_v48, %v3655_v7  ;;  %v3657_v62 = vadd.f32 %v3656_v43, %v3384_v27  ;;  %v3388_v13 = vadd.f32 %v3387_v22, %v12995_v36  ;;  %5958 = vmatprep.mubr.bf16.mxu0 %v7911_v24  ;;  %12996 = vst [vmem:[#allocation49_spill] sm:$0xff] %v11273_v4  ;;  %v7909_v22 = vld [vmem:[%s10033_s9 + $0x280] ss:$16 sps:$4 sm:$0xff]   ;;  %v7912_v24 = vld [vmem:[%s10033_s9 + $0x288] ss:$16 sps:$4 sm:$0xff]  }
 0x32a   : > { %v3389_v34 = vpop.f32.mrf.mxu0  ;;  %v3664_v27 = vpop.f32.mrf.mxu1  ;;  %v7918_v6 = vld [vmem:[%s10033_s9 + $0x2a4] ss:$16 sps:$4 sm:$0xff]  }
 0x32b   : > { %12994 = vst [vmem:[#allocation145_spill] sm:$0xff] %v11269_v28  ;;  %v11278_v18 = vmul.f32 %v12993_v48, %v3657_v62  ;;  %v3661_v7 = vadd.f32 %v3660_v11, %v3388_v13  ;;  %v3390_v43 = vadd.f32 %v3389_v34, %v12997_v3  ;;  %v12999_v48 = vld [vmem:[#allocation82_spill] sm:$0xff]  ;;  %v13000_v13 = vld [vmem:[#allocation17_spill] sm:$0xff] }
 0x32c   : > { %v3391_v32 = vpop.f32.mrf.mxu0  ;;  %v3666_v15 = vpop.f32.mrf.mxu1 }
 0x32d   : > { %v3663_v36 = vadd.f32 %v3662_v20, %v3390_v43  ;;  %v3392_v16 = vadd.f32 %v3391_v32, %v12998_v35  ;;  %v11290_v11 = vmul.f32 %v13000_v13, %v3661_v7  ;;  %v13002_v20 = vld [vmem:[#allocation81_spill] sm:$0xff]  ;;  %v13004_v35 = vld [vmem:[#allocation182_spill] sm:$0xff] }
 0x32e   : > { %v3393_v17 = vpop.f32.mrf.mxu0  ;;  %v3670_v3 = vpop.f32.mrf.mxu1  ;;  %6184 = vmatmul.mubr.bf16.gmra.mxu1 %v7912_v24 }
 0x32f   : > { %v3665_v42 = vadd.f32 %v3664_v27, %v3392_v16  ;;  %v3394_v62 = vadd.f32 %v3393_v17, %v12999_v48  ;;  %13001 = vst [vmem:[#allocation50_spill] sm:$0xff] %v11290_v11  ;;  %6191 = vmatprep.mubr.bf16.mxu1 %v7921_v10  ;;  %v11297_v16 = vmul.f32 %v13000_v13, %v3663_v36  ;;  %v13006_v10 = vld [vmem:[#allocation85_spill] sm:$0xff]  ;;  %v7929_v13 = vld [vmem:[%s10033_s9 + $0x2cc] ss:$16 sps:$4 sm:$0xff]  }
 0x330   : > { %v3397_v34 = vpop.f32.mrf.mxu0  ;;  %5959 = vmatmul.mubr.bf16.gmra.mxu0 %v7909_v22  ;;  %v3672_v7 = vpop.f32.mrf.mxu1  ;;  %v7926_v36 = vld [vmem:[%s10033_s9 + $0x2c4] ss:$16 sps:$4 sm:$0xff]  }
 0x331   : > { %v11293_v43 = vmul.f32 %v13002_v20, %v3665_v42  ;;  %v3667_v32 = vadd.f32 %v3666_v15, %v3394_v62  ;;  %v3398_v37 = vadd.f32 %v3397_v34, %v13004_v35  ;;  %5966 = vmatprep.mubr.bf16.mxu0 %v7918_v6  ;;  %13005 = vst [vmem:[#allocation9_spill] sm:$0xff] %v11297_v16  ;;  %v7916_v62 = vld [vmem:[%s10033_s9 + $0x2a0] ss:$16 sps:$4 sm:$0xff]   ;;  %v7919_v6 = vld [vmem:[%s10033_s9 + $0x2a8] ss:$16 sps:$4 sm:$0xff]  }
 0x332   : > { %v3399_v17 = vpop.f32.mrf.mxu0  ;;  %v3674_v48 = vpop.f32.mrf.mxu1 }
 0x333   : > { %13003 = vst [vmem:[#allocation48_spill] sm:$0xff] %v11293_v43  ;;  %v11302_v22 = vmul.f32 %v13002_v20, %v3667_v32  ;;  %v3671_v42 = vadd.f32 %v3670_v3, %v3398_v37  ;;  %v3400_v15 = vadd.f32 %v3399_v17, %v10546_v45  ;;  %v13007_v20 = vld [vmem:[#allocation86_spill] sm:$0xff]  ;;  %v13008_v37 = vld [vmem:[#allocation80_spill] sm:$0xff] }
 0x334   : > { %v3401_v24 = vpop.f32.mrf.mxu0  ;;  %v3676_v27 = vpop.f32.mrf.mxu1 }
 0x335   : > { %v3673_v34 = vadd.f32 %v3672_v7, %v3400_v15  ;;  %v3402_v35 = vadd.f32 %v3401_v24, %v13006_v10  ;;  %v11314_v3 = vmul.f32 %v13008_v37, %v3671_v42  ;;  %v13010_v7 = vld [vmem:[#allocation84_spill] sm:$0xff]  ;;  %v13011_v10 = vld [vmem:[#allocation185_spill] sm:$0xff] }
 0x336   : > { %v3403_v4 = vpop.f32.mrf.mxu0  ;;  %v3680_v17 = vpop.f32.mrf.mxu1  ;;  %6192 = vmatmul.mubr.bf16.gmra.mxu1 %v7919_v6 }
 0x337   : > { %v3675_v11 = vadd.f32 %v3674_v48, %v3402_v35  ;;  %v3404_v32 = vadd.f32 %v3403_v4, %v13007_v20  ;;  %13009 = vst [vmem:[#allocation149_spill] sm:$0xff] %v11314_v3  ;;  %6199 = vmatprep.mubr.bf16.mxu1 %v7929_v13  ;;  %v11321_v4 = vmul.f32 %v13008_v37, %v3673_v34  ;;  %v13012_v13 = vld [vmem:[#allocation19_spill] sm:$0xff]  ;;  %v7936_v37 = vld [vmem:[%s10033_s9 + $0x2ec] ss:$16 sps:$4 sm:$0xff]  }
 0x338   : > { %v3407_v45 = vpop.f32.mrf.mxu0  ;;  %5967 = vmatmul.mubr.bf16.gmra.mxu0 %v7916_v62  ;;  %v3682_v48 = vpop.f32.mrf.mxu1  ;;  %v7933_v34 = vld [vmem:[%s10033_s9 + $0x2e4] ss:$16 sps:$4 sm:$0xff]  }
 0x339   : > { %v11317_v15 = vmul.f32 %v13010_v7, %v3675_v11  ;;  %v3677_v24 = vadd.f32 %v3676_v27, %v3404_v32  ;;  %v3408_v28 = vadd.f32 %v3407_v45, %v13011_v10  ;;  %5974 = vmatprep.mubr.bf16.mxu0 %v7926_v36  ;;  %v7924_v32 = vld [vmem:[%s10033_s9 + $0x2c0] ss:$16 sps:$4 sm:$0xff]   ;;  %v7927_v36 = vld [vmem:[%s10033_s9 + $0x2c8] ss:$16 sps:$4 sm:$0xff]  }
 0x33a   : > { %v3409_v42 = vpop.f32.mrf.mxu0  ;;  %v3684_v20 = vpop.f32.mrf.mxu1 }
 0x33b   : > { %v11326_v6 = vmul.f32 %v13010_v7, %v3677_v24  ;;  %v3681_v11 = vadd.f32 %v3680_v17, %v3408_v28  ;;  %v3410_v27 = vadd.f32 %v3409_v42, %v10586_v63  ;;  %v13013_v28 = vld [vmem:[#allocation88_spill] sm:$0xff] }
 0x33c   : > { %v3411_v35 = vpop.f32.mrf.mxu0  ;;  %v3686_v62 = vpop.f32.mrf.mxu1 }
 0x33d   : > { %v3683_v45 = vadd.f32 %v3682_v48, %v3410_v27  ;;  %v3412_v10 = vadd.f32 %v3411_v35, %v13012_v13  ;;  %v11338_v17 = vmul.f32 %v13013_v28, %v3681_v11  ;;  %v13016_v27 = vld [vmem:[#allocation187_spill] sm:$0xff]  ;;  %v13017_v13 = vld [vmem:[#allocation92_spill] sm:$0xff]  ;;  %v13018_v11 = vld [vmem:[#allocation190_spill] sm:$0xff] }
 0x33e   : > { %v3413_v16 = vpop.f32.mrf.mxu0  ;;  %v3690_v24 = vpop.f32.mrf.mxu1  ;;  %6200 = vmatmul.mubr.bf16.gmra.mxu1 %v7927_v36 }
 0x33f   : > { %v3685_v3 = vadd.f32 %v3684_v20, %v3412_v10  ;;  %v3414_v7 = vadd.f32 %v3413_v16, %v10598_v26  ;;  %13014 = vst [vmem:[#allocation150_spill] sm:$0xff] %v11338_v17  ;;  %6207 = vmatprep.mubr.bf16.mxu1 %v7936_v37  ;;  %v11345_v20 = vmul.f32 %v13013_v28, %v3683_v45  ;;  %v13024_v45 = vld [vmem:[#allocation102_spill] sm:$0xff] }
 0x340   : > { %v3417_v63 = vpop.f32.mrf.mxu0  ;;  %5975 = vmatmul.mubr.bf16.gmra.mxu0 %v7924_v32  ;;  %v3692_v16 = vpop.f32.mrf.mxu1 }
 0x341   : > { %v11341_v42 = vmul.f32 %v10591_v44, %v3685_v3  ;;  %v3687_v48 = vadd.f32 %v3686_v62, %v3414_v7  ;;  %v3418_v35 = vadd.f32 %v3417_v63, %v13016_v27  ;;  %5982 = vmatprep.mubr.bf16.mxu0 %v7933_v34  ;;  %v7931_v7 = vld [vmem:[%s10033_s9 + $0x2e0] ss:$16 sps:$4 sm:$0xff]   ;;  %v7934_v63 = vld [vmem:[%s10033_s9 + $0x2e8] ss:$16 sps:$4 sm:$0xff]  }
 0x342   : > { %v3419_v26 = vpop.f32.mrf.mxu0  ;;  %v3694_v62 = vpop.f32.mrf.mxu1 }
 0x343   : > { %13015 = vst [vmem:[#allocation54_spill] sm:$0xff] %v11341_v42  ;;  %v11350_v32 = vmul.f32 %v10591_v44, %v3687_v48  ;;  %v3691_v36 = vadd.f32 %v3690_v24, %v3418_v35  ;;  %v3420_v3 = vadd.f32 %v3419_v26, %v13017_v13  ;;  %v13019_v44 = vld [vmem:[#allocation188_spill] sm:$0xff]  ;;  %v13021_v26 = vld [vmem:[#allocation189_spill] sm:$0xff] }
 0x344   : > { %v3421_v10 = vpop.f32.mrf.mxu0  ;;  %v3696_v27 = vpop.f32.mrf.mxu1 }
 0x345   : > { %v3693_v34 = vadd.f32 %v3692_v16, %v3420_v3  ;;  %v3422_v37 = vadd.f32 %v3421_v10, %v10635_v59  ;;  %v11360_v48 = vmul.f32 %v13019_v44, %v3691_v36  ;;  %v13022_v59 = vld [vmem:[#allocation193_spill] sm:$0xff]  ;;  %v13023_v10 = vld [vmem:[#allocation104_spill] sm:$0xff] }
 0x346   : > { %v3423_v28 = vpop.f32.mrf.mxu0  ;;  %v3700_v35 = vpop.f32.mrf.mxu1  ;;  %6208 = vmatmul.mubr.bf16.gmra.mxu1 %v7934_v63  ;;  %v13025_v42 = vpack.c.bf16 %v13023_v10, %v13024_v45  ;;  %v13029_v10 = vld [vmem:[#allocation94_spill] sm:$0xff] }
 0x347   : > { %v3695_v43 = vadd.f32 %v3694_v62, %v3422_v37  ;;  %v3424_v17 = vadd.f32 %v3423_v28, %v13018_v11  ;;  %13020 = vst [vmem:[#allocation52_spill] sm:$0xff] %v11360_v48  ;;  %v13026_v11 = vpack.c.bf16 %v10748_v47, %v10737_v12  ;;  %v11373_v36 = vmul.f32 %v13019_v44, %v3693_v34  ;;  %v13027_v37 = vld [vmem:[#allocation195_spill] sm:$0xff] }
 0x348   : > { %v3427_v24 = vpop.f32.mrf.mxu0  ;;  %5983 = vmatmul.mubr.bf16.gmra.mxu0 %v7931_v7  ;;  %v3702_v7 = vpop.f32.mrf.mxu1 }
 0x349   : > { %v11363_v13 = vmul.f32 %v13021_v26, %v3695_v43  ;;  %v3697_v16 = vadd.f32 %v3696_v27, %v3424_v17  ;;  %v3428_v3 = vadd.f32 %v3427_v24, %v13022_v59  ;;  %6440 = vmatprep.mubr.bf16.mxu0 %v13025_v42  ;;  %6665 = vmatprep.mubr.bf16.mxu1 %v13026_v11  ;;  %v13028_v24 = vld [vmem:[#allocation198_spill] sm:$0xff]  ;;  %v13030_v43 = vld [vmem:[#allocation196_spill] sm:$0xff] }
 0x34a   : > { %v3429_v62 = vpop.f32.mrf.mxu0  ;;  %v3704_v42 = vpop.f32.mrf.mxu1 }
 0x34b   : > { %v11378_v17 = vmul.f32 %v13021_v26, %v3697_v16  ;;  %v3701_v63 = vadd.f32 %v3700_v35, %v3428_v3  ;;  %v3430_v28 = vadd.f32 %v3429_v62, %v13027_v37  ;;  %v13031_v16 = vld [vmem:[#allocation101_spill] sm:$0xff]  ;;  %v13032_v3 = vld [vmem:[#allocation100_spill] sm:$0xff] }
 0x34c   : > { %v3431_v45 = vpop.f32.mrf.mxu0  ;;  %v3706_v44 = vpop.f32.mrf.mxu1  ;;  %v13033_v62 = vpack.c.bf16 %v13031_v16, %v13032_v3  ;;  %v13035_v37 = vld [vmem:[#allocation197_spill] sm:$0xff] }
 0x34d   : > { %v3703_v27 = vadd.f32 %v3702_v7, %v3430_v28  ;;  %v3432_v12 = vadd.f32 %v3431_v45, %v13028_v24  ;;  %v11386_v48 = vmul.f32 %v13030_v43, %v3701_v63  ;;  %v13034_v7 = vpack.c.bf16 %v10733_v56, %v10730_v58  ;;  %v13036_v24 = vld [vmem:[#allocation108_spill] sm:$0xff] }
 0x34e   : > { %v3433_v34 = vpop.f32.mrf.mxu0  ;;  %v6025_v35 = vpop.f32.mrf.mxu1 }
 0x34f   : > { %v3705_v59 = vadd.f32 %v3704_v42, %v3432_v12  ;;  %v3434_v11 = vadd.f32 %v3433_v34, %v13029_v10  ;;  %6666 = vmatmul.mubr.bf16.vlgmr.msra.gmra.mxu1 %v13034_v7  ;;  %v13037_v12 = vld [vmem:[#allocation107_spill] sm:$0xff]  ;;  %v13039_v34 = vpack.c.bf16 %v10788_v55, %v10777_v50  ;;  %v11406_v3 = vmul.f32 %v13030_v43, %v3703_v27  ;;  %v13040_v7 = vld [vmem:[#allocation106_spill] sm:$0xff]  ;;  %v13041_v43 = vld [vmem:[#allocation105_spill] sm:$0xff] }
 0x350   : > { %v5800_v26 = vpop.f32.mrf.mxu0  ;;  %6441 = vmatmul.mubr.bf16.vlgmr.msra.gmra.mxu0 %v13033_v62  ;;  %v13038_v63 = vpack.c.bf16 %v13036_v24, %v13037_v12  ;;  %v6027_v16 = vpop.f32.mrf.mxu1  ;;  %v13042_v27 = vpack.c.bf16 %v13040_v7, %v13041_v43  ;;  %v13043_v24 = vpack.c.bf16 %v10773_v30, %v10770_v41  ;;  %v13045_v12 = vld [vmem:[#allocation111_spill] sm:$0xff] }
 0x351   : > { %v11395_v28 = vmul.f32 %v13035_v37, %v3705_v59  ;;  %v3707_v45 = vadd.f32 %v3706_v44, %v3434_v11  ;;  %v11397_v42 = vadd.f32 %v6025_v35, %v5800_v26  ;;  %6673 = vmatprep.mubr.bf16.mxu1 %v13039_v34  ;;  %v13047_v34 = vpack.c.bf16 %v10828_v49, %v10817_v52  ;;  %v13052_v49 = vld [vmem:[#allocation116_spill] sm:$0xff] }
 0x352   : > { %6448 = vmatprep.mubr.bf16.mxu0 %v13038_v63  ;;  %v5802_v10 = vpop.f32.mrf.mxu0  ;;  %v6028_v59 = vpop.f32.mrf.mxu1 }
 0x353   : > { %v11411_v58 = vmul.f32 %v13035_v37, %v3707_v45  ;;  %v13044_v45 = vld [vmem:[#allocation112_spill] sm:$0xff] }
 0x354   : > { %v5803_v44 = vpop.f32.mrf.mxu0  ;;  %v6030_v55 = vpop.f32.mrf.mxu1  ;;  %v13046_v63 = vpack.c.bf16 %v13044_v45, %v13045_v12  ;;  %v13055_v12 = vpack.c.bf16 %v10868_v57, %v10857_v54  ;;  %v13060_v57 = vld [vmem:[#allocation123_spill] sm:$0xff] }
 0x355   : > { %v11413_v11 = vadd.f32 %v6028_v59, %v5803_v44 }
 0x356   : > { %v5805_v50 = vpop.f32.mrf.mxu0  ;;  %v6033_v62 = vpop.f32.mrf.mxu1 }
 0x357   : > { %6674 = vmatmul.mubr.bf16.gmra.mxu1 %v13043_v24  ;;  %v13053_v24 = vld [vmem:[#allocation115_spill] sm:$0xff] }
 0x358   : > { %v5808_v35 = vpop.f32.mrf.mxu0  ;;  %6449 = vmatmul.mubr.bf16.gmra.mxu0 %v13042_v27  ;;  %6681 = vmatprep.mubr.bf16.mxu1 %v13047_v34  ;;  %v6035_v16 = vpop.f32.mrf.mxu1  ;;  %v13051_v27 = vpack.c.bf16 %v10813_v53, %v10810_v21  ;;  %v13054_v45 = vpack.c.bf16 %v13052_v49, %v13053_v24 }
 0x359   : > { %v11423_v37 = vadd.f32 %v6033_v62, %v5808_v35  ;;  %6456 = vmatprep.mubr.bf16.mxu0 %v13046_v63  ;;  %v13048_v35 = vld [vmem:[#allocation110_spill] sm:$0xff]  ;;  %v13049_v62 = vld [vmem:[#allocation109_spill] sm:$0xff] }
 0x35a   : > { %v5810_v10 = vpop.f32.mrf.mxu0  ;;  %v6036_v59 = vpop.f32.mrf.mxu1  ;;  %v13050_v43 = vpack.c.bf16 %v13048_v35, %v13049_v62  ;;  %v13059_v35 = vpack.c.bf16 %v10853_v9, %v10850_v0  ;;  %v13061_v62 = vld [vmem:[#allocation23_spill] sm:$0xff] }
 0x35c   : > { %v5811_v44 = vpop.f32.mrf.mxu0  ;;  %v6038_v7 = vpop.f32.mrf.mxu1 }
 0x35d   : > { %v11431_v50 = vadd.f32 %v6036_v59, %v5811_v44  ;;  %v13056_v7 = vld [vmem:[#allocation114_spill] sm:$0xff] }
 0x35e   : > { %v5813_v55 = vpop.f32.mrf.mxu0  ;;  %v6041_v30 = vpop.f32.mrf.mxu1 }
 0x35f   : > { %6682 = vmatmul.mubr.bf16.gmra.mxu1 %v13051_v27  ;;  %v13063_v27 = vpack.c.bf16 %v10908_v31, %v10897_v2  ;;  %v13069_v31 = vld [vmem:[#allocation4_spill] sm:$0xff] }
 0x360   : > { %v5816_v41 = vpop.f32.mrf.mxu0  ;;  %6457 = vmatmul.mubr.bf16.gmra.mxu0 %v13050_v43  ;;  %6689 = vmatprep.mubr.bf16.mxu1 %v13055_v12  ;;  %v6043_v34 = vpop.f32.mrf.mxu1  ;;  %v13062_v43 = vpack.c.bf16 %v13060_v57, %v13061_v62 }
 0x361   : > { %v11439_v52 = vadd.f32 %v6041_v30, %v5816_v41  ;;  %6464 = vmatprep.mubr.bf16.mxu0 %v13054_v45  ;;  %v13057_v41 = vld [vmem:[#allocation113_spill] sm:$0xff] }
 0x362   : > { %v5818_v63 = vpop.f32.mrf.mxu0  ;;  %v6044_v16 = vpop.f32.mrf.mxu1  ;;  %v13058_v30 = vpack.c.bf16 %v13056_v7, %v13057_v41  ;;  %v13070_v7 = vld [vmem:[#allocation28_spill] sm:$0xff] }
 0x363   : > { %v13071_v41 = vpack.c.bf16 %v13069_v31, %v13070_v7 }
 0x364   : > { %v5819_v10 = vpop.f32.mrf.mxu0  ;;  %v6046_v55 = vpop.f32.mrf.mxu1 }
 0x365   : > { %v11447_v44 = vadd.f32 %v6044_v16, %v5819_v10  ;;  %v13064_v16 = vld [vmem:[#allocation121_spill] sm:$0xff] }
 0x366   : > { %v5821_v59 = vpop.f32.mrf.mxu0  ;;  %v6049_v53 = vpop.f32.mrf.mxu1 }
 0x367   : > { %6690 = vmatmul.mubr.bf16.gmra.mxu1 %v13059_v35  ;;  %v13065_v59 = vld [vmem:[#allocation120_spill] sm:$0xff] }
 0x368   : > { %v5824_v21 = vpop.f32.mrf.mxu0  ;;  %6465 = vmatmul.mubr.bf16.gmra.mxu0 %v13058_v30  ;;  %6697 = vmatprep.mubr.bf16.mxu1 %v13063_v27  ;;  %v6051_v24 = vpop.f32.mrf.mxu1  ;;  %v13066_v55 = vpack.c.bf16 %v13064_v16, %v13065_v59  ;;  %v13072_v30 = vpack.c.bf16 %v10948_v5, %v10937_v25  ;;  %v13079_v5 = vld [vmem:[#allocation128_spill] sm:$0xff] }
 0x369   : > { %v11455_v54 = vadd.f32 %v6049_v53, %v5824_v21  ;;  %6472 = vmatprep.mubr.bf16.mxu0 %v13062_v43  ;;  %v13067_v21 = vld [vmem:[#allocation96_spill] sm:$0xff] }
 0x36a   : > { %v5826_v49 = vpop.f32.mrf.mxu0  ;;  %v6052_v12 = vpop.f32.mrf.mxu1  ;;  %v13068_v53 = vpack.c.bf16 %v10893_v19, %v13067_v21  ;;  %v13080_v59 = vld [vmem:[#allocation32_spill] sm:$0xff]  ;;  %v13082_v21 = vpack.c.bf16 %v10982_v8, %v10977_v14  ;;  %v13089_v8 = vld [vmem:[#allocation6_spill] sm:$0xff] }
 0x36c   : > { %v5827_v45 = vpop.f32.mrf.mxu0  ;;  %v6054_v10 = vpop.f32.mrf.mxu1 }
 0x36d   : > { %v11463_v63 = vadd.f32 %v6052_v12, %v5827_v45  ;;  %v13073_v12 = vld [vmem:[#allocation125_spill] sm:$0xff] }
 0x36e   : > { %v5829_v34 = vpop.f32.mrf.mxu0  ;;  %v6057_v9 = vpop.f32.mrf.mxu1 }
 0x36f   : > { %6698 = vmatmul.mubr.bf16.gmra.mxu1 %v13068_v53  ;;  %v13074_v34 = vld [vmem:[#allocation124_spill] sm:$0xff] }
 0x370   : > { %v5832_v0 = vpop.f32.mrf.mxu0  ;;  %6473 = vmatmul.mubr.bf16.gmra.mxu0 %v13066_v55  ;;  %6705 = vmatprep.mubr.bf16.mxu1 %v13072_v30  ;;  %v6059_v57 = vpop.f32.mrf.mxu1  ;;  %v13075_v10 = vpack.c.bf16 %v13073_v12, %v13074_v34  ;;  %v13081_v55 = vpack.c.bf16 %v13079_v5, %v13080_v59  ;;  %v13087_v12 = vld [vmem:[#allocation99_spill] sm:$0xff] }
 0x371   : > { %v11471_v2 = vadd.f32 %v6057_v9, %v5832_v0  ;;  %6480 = vmatprep.mubr.bf16.mxu0 %v13071_v41  ;;  %v13076_v0 = vld [vmem:[#allocation98_spill] sm:$0xff]  ;;  %v13077_v9 = vld [vmem:[#allocation97_spill] sm:$0xff] }
 0x372   : > { %v5834_v35 = vpop.f32.mrf.mxu0  ;;  %v6060_v43 = vpop.f32.mrf.mxu1  ;;  %v13078_v16 = vpack.c.bf16 %v13076_v0, %v13077_v9  ;;  %v13092_v9 = vld [vmem:[#allocation22_spill] sm:$0xff] }
 0x374   : > { %v5835_v62 = vpop.f32.mrf.mxu0  ;;  %v6062_v24 = vpop.f32.mrf.mxu1 }
 0x375   : > { %v11479_v27 = vadd.f32 %v6060_v43, %v5835_v62  ;;  %v13084_v24 = vld [vmem:[#allocation30_spill] sm:$0xff] }
 0x376   : > { %v5837_v49 = vpop.f32.mrf.mxu0  ;;  %v6065_v45 = vpop.f32.mrf.mxu1 }
 0x377   : > { %6706 = vmatmul.mubr.bf16.gmra.mxu1 %v13078_v16  ;;  %v13083_v49 = vld [vmem:[#allocation31_spill] sm:$0xff]  ;;  %v13093_v16 = vpack.c.bf16 %v11014_v29, %v13092_v9 }
 0x378   : > { %v5840_v19 = vpop.f32.mrf.mxu0  ;;  %6481 = vmatmul.mubr.bf16.gmra.mxu0 %v13075_v10  ;;  %6713 = vmatprep.mubr.bf16.mxu1 %v13082_v21  ;;  %v6067_v31 = vpop.f32.mrf.mxu1  ;;  %v13090_v10 = vld [vmem:[#allocation35_spill] sm:$0xff] }
 0x379   : > { %v11487_v25 = vadd.f32 %v6065_v45, %v5840_v19  ;;  %6488 = vmatprep.mubr.bf16.mxu0 %v13081_v55  ;;  %v13085_v19 = vpack.c.bf16 %v13083_v49, %v13084_v24  ;;  %v13086_v45 = vld [vmem:[#allocation103_spill] sm:$0xff]  ;;  %v13091_v0 = vpack.c.bf16 %v13089_v8, %v13090_v10  ;;  %v13098_v24 = vld [vmem:[#allocation117_spill] sm:$0xff]  ;;  %v13103_v8 = vld [vmem:[#allocation122_spill] sm:$0xff] }
 0x37a   : > { %v5842_v53 = vpop.f32.mrf.mxu0  ;;  %v6068_v41 = vpop.f32.mrf.mxu1  ;;  %v13088_v34 = vpack.c.bf16 %v13086_v45, %v13087_v12  ;;  %v13097_v49 = vld [vmem:[#allocation119_spill] sm:$0xff]  ;;  %v13100_v45 = vld [vmem:[#allocation138_spill] sm:$0xff]  ;;  %v13104_v10 = vpack.c.bf16 %v11038_v1, %v13103_v8 }
 0x37b   : > { %v13101_v12 = vld [vmem:[#allocation39_spill] sm:$0xff] }
 0x37c   : > { %v5843_v7 = vpop.f32.mrf.mxu0  ;;  %v6070_v57 = vpop.f32.mrf.mxu1 }
 0x37d   : > { %v11495_v30 = vadd.f32 %v6068_v41, %v5843_v7  ;;  %v13094_v57 = vld [vmem:[#allocation132_spill] sm:$0xff] }
 0x37e   : > { %v5845_v35 = vpop.f32.mrf.mxu0  ;;  %v6073_v43 = vpop.f32.mrf.mxu1 }
 0x37f   : > { %6714 = vmatmul.mubr.bf16.gmra.mxu1 %v13088_v34  ;;  %v13102_v34 = vpack.c.bf16 %v13100_v45, %v13101_v12  ;;  %v13114_v12 = vld [vmem:[#allocation27_spill] sm:$0xff] }
 0x380   : > { %v5848_v62 = vpop.f32.mrf.mxu0  ;;  %6489 = vmatmul.mubr.bf16.gmra.mxu0 %v13085_v19  ;;  %6721 = vmatprep.mubr.bf16.mxu1 %v13093_v16  ;;  %v6075_v59 = vpop.f32.mrf.mxu1  ;;  %v13099_v19 = vpack.c.bf16 %v13097_v49, %v13098_v24  ;;  %v13111_v24 = vld [vmem:[#allocation8_spill] sm:$0xff] }
 0x381   : > { %v11503_v14 = vadd.f32 %v6073_v43, %v5848_v62  ;;  %6496 = vmatprep.mubr.bf16.mxu0 %v13091_v0  ;;  %v13095_v62 = vld [vmem:[#allocation131_spill] sm:$0xff] }
 0x382   : > { %v5850_v5 = vpop.f32.mrf.mxu0  ;;  %v6076_v21 = vpop.f32.mrf.mxu1  ;;  %v13096_v43 = vpack.c.bf16 %v13094_v57, %v13095_v62  ;;  %v13108_v62 = vld [vmem:[#allocation21_spill] sm:$0xff] }
 0x384   : > { %v5851_v55 = vpop.f32.mrf.mxu0  ;;  %v6078_v7 = vpop.f32.mrf.mxu1 }
 0x385   : > { %v11511_v53 = vadd.f32 %v6076_v21, %v5851_v55 }
 0x386   : > { %v5853_v31 = vpop.f32.mrf.mxu0  ;;  %v6081_v35 = vpop.f32.mrf.mxu1 }
 0x387   : > { %6722 = vmatmul.mubr.bf16.gmra.mxu1 %v13099_v19  ;;  %v13112_v19 = vld [vmem:[#allocation43_spill] sm:$0xff] }
 0x388   : > { %v5856_v41 = vpop.f32.mrf.mxu0  ;;  %6497 = vmatmul.mubr.bf16.gmra.mxu0 %v13096_v43  ;;  %6729 = vmatprep.mubr.bf16.mxu1 %v13104_v10  ;;  %v6083_v9 = vpop.f32.mrf.mxu1  ;;  %v13109_v43 = vld [vmem:[#allocation118_spill] sm:$0xff]  ;;  %v13113_v45 = vpack.c.bf16 %v13111_v24, %v13112_v19  ;;  %v13123_v24 = vld [vmem:[#allocation47_spill] sm:$0xff] }
 0x389   : > { %v11519_v29 = vadd.f32 %v6081_v35, %v5856_v41  ;;  %6504 = vmatprep.mubr.bf16.mxu0 %v13102_v34  ;;  %v13105_v41 = vld [vmem:[#allocation136_spill] sm:$0xff]  ;;  %v13106_v35 = vld [vmem:[#allocation135_spill] sm:$0xff]  ;;  %v13110_v49 = vpack.c.bf16 %v13108_v62, %v13109_v43  ;;  %v13115_v34 = vpack.c.bf16 %v11062_v38, %v13114_v12 }
 0x38a   : > { %v5858_v0 = vpop.f32.mrf.mxu0  ;;  %v6084_v5 = vpop.f32.mrf.mxu1  ;;  %v13107_v57 = vpack.c.bf16 %v13105_v41, %v13106_v35  ;;  %v13120_v62 = vld [vmem:[#allocation24_spill] sm:$0xff] }
 0x38c   : > { %v5859_v16 = vpop.f32.mrf.mxu0  ;;  %v6086_v21 = vpop.f32.mrf.mxu1 }
 0x38d   : > { %v11527_v59 = vadd.f32 %v6084_v5, %v5859_v16 }
 0x38e   : > { %v5861_v55 = vpop.f32.mrf.mxu0  ;;  %v6089_v7 = vpop.f32.mrf.mxu1 }
 0x38f   : > { %6730 = vmatmul.mubr.bf16.gmra.mxu1 %v13110_v49  ;;  %v13122_v49 = vld [vmem:[#allocation146_spill] sm:$0xff] }
 0x390   : > { %v5864_v31 = vpop.f32.mrf.mxu0  ;;  %6505 = vmatmul.mubr.bf16.gmra.mxu0 %v13107_v57  ;;  %6737 = vmatprep.mubr.bf16.mxu1 %v13115_v34  ;;  %v6091_v10 = vpop.f32.mrf.mxu1  ;;  %v13119_v57 = vld [vmem:[#allocation26_spill] sm:$0xff]  ;;  %v13124_v19 = vpack.c.bf16 %v13122_v49, %v13123_v24  ;;  %v13134_v24 = vld [vmem:[#allocation51_spill] sm:$0xff] }
 0x391   : > { %v11535_v1 = vadd.f32 %v6089_v7, %v5864_v31  ;;  %6512 = vmatprep.mubr.bf16.mxu0 %v13113_v45  ;;  %v13116_v31 = vld [vmem:[#allocation140_spill] sm:$0xff]  ;;  %v13117_v7 = vld [vmem:[#allocation139_spill] sm:$0xff]  ;;  %v13121_v43 = vpack.c.bf16 %v13119_v57, %v13120_v62  ;;  %v13125_v45 = vld [vmem:[#allocation25_spill] sm:$0xff] }
 0x392   : > { %v5866_v8 = vpop.f32.mrf.mxu0  ;;  %v6092_v9 = vpop.f32.mrf.mxu1  ;;  %v13118_v35 = vpack.c.bf16 %v13116_v31, %v13117_v7  ;;  %v13126_v12 = vpack.c.bf16 %v11086_v60, %v13125_v45  ;;  %v13130_v57 = vld [vmem:[#allocation126_spill] sm:$0xff]  ;;  %v13131_v62 = vld [vmem:[#allocation3_spill] sm:$0xff]  ;;  %v13136_v45 = vld [vmem:[#allocation33_spill] sm:$0xff] }
 0x393   : > { %v13133_v49 = vld [vmem:[#allocation10_spill] sm:$0xff] }
 0x394   : > { %v5867_v0 = vpop.f32.mrf.mxu0  ;;  %v6094_v55 = vpop.f32.mrf.mxu1 }
 0x395   : > { %v11543_v16 = vadd.f32 %v6092_v9, %v5867_v0 }
 0x396   : > { %v5869_v5 = vpop.f32.mrf.mxu0  ;;  %v6097_v41 = vpop.f32.mrf.mxu1 }
 0x397   : > { %6738 = vmatmul.mubr.bf16.gmra.mxu1 %v13121_v43  ;;  %v13132_v43 = vpack.c.bf16 %v13130_v57, %v13131_v62  ;;  %v13141_v62 = vld [vmem:[#allocation127_spill] sm:$0xff] }
 0x398   : > { %v5872_v21 = vpop.f32.mrf.mxu0  ;;  %6513 = vmatmul.mubr.bf16.gmra.mxu0 %v13118_v35  ;;  %6745 = vmatprep.mubr.bf16.mxu1 %v13126_v12  ;;  %v6099_v8 = vpop.f32.mrf.mxu1  ;;  %v13137_v12 = vpack.c.bf16 %v11110_v33, %v13136_v45 }
 0x399   : > { %v11551_v38 = vadd.f32 %v6097_v41, %v5872_v21  ;;  %6520 = vmatprep.mubr.bf16.mxu0 %v13124_v19  ;;  %v13127_v21 = vld [vmem:[#allocation144_spill] sm:$0xff]  ;;  %v13128_v41 = vld [vmem:[#allocation143_spill] sm:$0xff]  ;;  %v13135_v19 = vpack.c.bf16 %v13133_v49, %v13134_v24  ;;  %v13144_v24 = vld [vmem:[#allocation154_spill] sm:$0xff] }
 0x39a   : > { %v5874_v34 = vpop.f32.mrf.mxu0  ;;  %v6100_v0 = vpop.f32.mrf.mxu1  ;;  %v13129_v35 = vpack.c.bf16 %v13127_v21, %v13128_v41 }
 0x39c   : > { %v5875_v10 = vpop.f32.mrf.mxu0  ;;  %v6102_v55 = vpop.f32.mrf.mxu1 }
 0x39d   : > { %v11559_v9 = vadd.f32 %v6100_v0, %v5875_v10 }
 0x39e   : > { %v5877_v5 = vpop.f32.mrf.mxu0  ;;  %v6105_v7 = vpop.f32.mrf.mxu1 }
 0x39f   : > { %6746 = vmatmul.mubr.bf16.gmra.mxu1 %v13132_v43  ;;  %v13142_v43 = vld [vmem:[#allocation29_spill] sm:$0xff] }
 0x3a0   : > { %v5880_v31 = vpop.f32.mrf.mxu0  ;;  %6521 = vmatmul.mubr.bf16.gmra.mxu0 %v13129_v35  ;;  %6753 = vmatprep.mubr.bf16.mxu1 %v13137_v12  ;;  %v6107_v8 = vpop.f32.mrf.mxu1  ;;  %v13143_v49 = vpack.c.bf16 %v13141_v62, %v13142_v43  ;;  %v13147_v12 = vld [vmem:[#allocation5_spill] sm:$0xff] }
 0x3a1   : > { %v11567_v60 = vadd.f32 %v6105_v7, %v5880_v31  ;;  %6528 = vmatprep.mubr.bf16.mxu0 %v13135_v19  ;;  %v13138_v31 = vld [vmem:[#allocation148_spill] sm:$0xff]  ;;  %v13139_v7 = vld [vmem:[#allocation147_spill] sm:$0xff] }
 0x3a2   : > { %v5882_v34 = vpop.f32.mrf.mxu0  ;;  %v6108_v0 = vpop.f32.mrf.mxu1  ;;  %v13140_v57 = vpack.c.bf16 %v13138_v31, %v13139_v7  ;;  %v13145_v19 = vld [vmem:[#allocation55_spill] sm:$0xff] }
 0x3a3   : > { %v13146_v45 = vpack.c.bf16 %v13144_v24, %v13145_v19  ;;  %v13148_v34 = vpack.c.bf16 %v11134_v51, %v13147_v12  ;;  %v13153_v24 = vld [vmem:[#allocation130_spill] sm:$0xff]  ;;  %v13156_v12 = vld [vmem:[#allocation59_spill] sm:$0xff] }
 0x3a4   : > { %v5883_v10 = vpop.f32.mrf.mxu0  ;;  %v6110_v21 = vpop.f32.mrf.mxu1 }
 0x3a5   : > { %v11575_v5 = vadd.f32 %v6108_v0, %v5883_v10 }
 0x3a6   : > { %v5885_v55 = vpop.f32.mrf.mxu0  ;;  %v6113_v35 = vpop.f32.mrf.mxu1 }
 0x3a7   : > { %6754 = vmatmul.mubr.bf16.gmra.mxu1 %v13143_v49  ;;  %v13152_v49 = vld [vmem:[#allocation34_spill] sm:$0xff] }
 0x3a8   : > { %v5888_v41 = vpop.f32.mrf.mxu0  ;;  %6529 = vmatmul.mubr.bf16.gmra.mxu0 %v13140_v57  ;;  %6761 = vmatprep.mubr.bf16.mxu1 %v13148_v34  ;;  %v6115_v10 = vpop.f32.mrf.mxu1  ;;  %v13154_v19 = vpack.c.bf16 %v13152_v49, %v13153_v24 }
 0x3a9   : > { %v11583_v33 = vadd.f32 %v6113_v35, %v5888_v41  ;;  %6536 = vmatprep.mubr.bf16.mxu0 %v13146_v45  ;;  %v13149_v41 = vld [vmem:[#allocation152_spill] sm:$0xff]  ;;  %v13150_v35 = vld [vmem:[#allocation151_spill] sm:$0xff] }
 0x3aa   : > { %v5890_v8 = vpop.f32.mrf.mxu0  ;;  %v6116_v55 = vpop.f32.mrf.mxu1  ;;  %v13151_v43 = vpack.c.bf16 %v13149_v41, %v13150_v35  ;;  %v13155_v45 = vld [vmem:[#allocation12_spill] sm:$0xff] }
 0x3ab   : > { %v13157_v34 = vpack.c.bf16 %v13155_v45, %v13156_v12  ;;  %v13158_v8 = vld [vmem:[#allocation134_spill] sm:$0xff]  ;;  %v13163_v45 = vld [vmem:[#allocation133_spill] sm:$0xff] }
 0x3ac   : > { %v5891_v0 = vpop.f32.mrf.mxu0  ;;  %v6118_v7 = vpop.f32.mrf.mxu1  ;;  %v13159_v10 = vpack.c.bf16 %v11158_v39, %v13158_v8  ;;  %v13164_v12 = vld [vmem:[#allocation129_spill] sm:$0xff]  ;;  %v13166_v8 = vld [vmem:[#allocation162_spill] sm:$0xff] }
 0x3ad   : > { %v11591_v21 = vadd.f32 %v6116_v55, %v5891_v0 }
 0x3ae   : > { %v5893_v31 = vpop.f32.mrf.mxu0  ;;  %v6121_v62 = vpop.f32.mrf.mxu1 }
 0x3af   : > { %6762 = vmatmul.mubr.bf16.gmra.mxu1 %v13154_v19 }
 0x3b0   : > { %v5896_v57 = vpop.f32.mrf.mxu0  ;;  %6537 = vmatmul.mubr.bf16.gmra.mxu0 %v13151_v43  ;;  %6769 = vmatprep.mubr.bf16.mxu1 %v13159_v10  ;;  %v6123_v55 = vpop.f32.mrf.mxu1  ;;  %v13167_v10 = vld [vmem:[#allocation63_spill] sm:$0xff] }
 0x3b1   : > { %v11599_v51 = vadd.f32 %v6121_v62, %v5896_v57  ;;  %6544 = vmatprep.mubr.bf16.mxu0 %v13157_v34  ;;  %v13160_v57 = vld [vmem:[#allocation156_spill] sm:$0xff]  ;;  %v13161_v62 = vld [vmem:[#allocation155_spill] sm:$0xff]  ;;  %v13165_v34 = vpack.c.bf16 %v13163_v45, %v13164_v12  ;;  %v13169_v55 = vpack.c.bf16 %v11182_v61, %v11177_v23  ;;  %v13176_v61 = vld [vmem:[#allocation14_spill] sm:$0xff] }
 0x3b2   : > { %v5898_v0 = vpop.f32.mrf.mxu0  ;;  %v6124_v7 = vpop.f32.mrf.mxu1  ;;  %v13162_v19 = vpack.c.bf16 %v13160_v57, %v13161_v62 }
 0x3b3   : > { %v13168_v0 = vpack.c.bf16 %v13166_v8, %v13167_v10  ;;  %v13173_v8 = vld [vmem:[#allocation36_spill] sm:$0xff]  ;;  %v13174_v10 = vld [vmem:[#allocation38_spill] sm:$0xff] }
 0x3b4   : > { %v5899_v31 = vpop.f32.mrf.mxu0  ;;  %v6126_v43 = vpop.f32.mrf.mxu1 }
 0x3b5   : > { %v11607_v41 = vadd.f32 %v6124_v7, %v5899_v31 }
 0x3b6   : > { %v5901_v35 = vpop.f32.mrf.mxu0  ;;  %v6129_v24 = vpop.f32.mrf.mxu1 }
 0x3b7   : > { %6770 = vmatmul.mubr.bf16.gmra.mxu1 %v13165_v34 }
 0x3b8   : > { %v5904_v49 = vpop.f32.mrf.mxu0  ;;  %6545 = vmatmul.mubr.bf16.gmra.mxu0 %v13162_v19  ;;  %6777 = vmatprep.mubr.bf16.mxu1 %v13169_v55  ;;  %v6131_v7 = vpop.f32.mrf.mxu1  ;;  %v13177_v55 = vld [vmem:[#allocation67_spill] sm:$0xff] }
 0x3b9   : > { %v11615_v39 = vadd.f32 %v6129_v24, %v5904_v49  ;;  %6552 = vmatprep.mubr.bf16.mxu0 %v13168_v0  ;;  %v13170_v49 = vld [vmem:[#allocation160_spill] sm:$0xff]  ;;  %v13171_v24 = vld [vmem:[#allocation159_spill] sm:$0xff]  ;;  %v13175_v0 = vpack.c.bf16 %v13173_v8, %v13174_v10  ;;  %v13179_v7 = vld [vmem:[#allocation41_spill] sm:$0xff] }
 0x3ba   : > { %v5906_v31 = vpop.f32.mrf.mxu0  ;;  %v6132_v43 = vpop.f32.mrf.mxu1  ;;  %v13172_v34 = vpack.c.bf16 %v13170_v49, %v13171_v24 }
 0x3bb   : > { %v13178_v31 = vpack.c.bf16 %v13176_v61, %v13177_v55  ;;  %v13184_v61 = vld [vmem:[#allocation137_spill] sm:$0xff] }
 0x3bc   : > { %v5907_v35 = vpop.f32.mrf.mxu0  ;;  %v6134_v19 = vpop.f32.mrf.mxu1  ;;  %v13185_v55 = vld [vmem:[#allocation37_spill] sm:$0xff] }
 0x3bd   : > { %v11623_v57 = vadd.f32 %v6132_v43, %v5907_v35  ;;  %v13180_v35 = vpack.c.bf16 %v11206_v46, %v13179_v7  ;;  %v13187_v7 = vld [vmem:[#allocation170_spill] sm:$0xff] }
 0x3be   : > { %v5909_v62 = vpop.f32.mrf.mxu0  ;;  %v6137_v12 = vpop.f32.mrf.mxu1 }
 0x3bf   : > { %6778 = vmatmul.mubr.bf16.gmra.mxu1 %v13175_v0 }
 0x3c0   : > { %v5912_v45 = vpop.f32.mrf.mxu0  ;;  %6553 = vmatmul.mubr.bf16.gmra.mxu0 %v13172_v34  ;;  %6785 = vmatprep.mubr.bf16.mxu1 %v13180_v35  ;;  %v6139_v62 = vpop.f32.mrf.mxu1  ;;  %v13188_v35 = vld [vmem:[#allocation70_spill] sm:$0xff] }
 0x3c1   : > { %v11631_v23 = vadd.f32 %v6137_v12, %v5912_v45  ;;  %6560 = vmatprep.mubr.bf16.mxu0 %v13178_v31  ;;  %v13181_v45 = vld [vmem:[#allocation163_spill] sm:$0xff]  ;;  %v13182_v12 = vld [vmem:[#allocation66_spill] sm:$0xff]  ;;  %v13186_v31 = vpack.c.bf16 %v13184_v61, %v13185_v55 }
 0x3c2   : > { %v5914_v43 = vpop.f32.mrf.mxu0  ;;  %v6140_v56 = vpop.f32.mrf.mxu1  ;;  %v13183_v0 = vpack.c.bf16 %v13181_v45, %v13182_v12 }
 0x3c3   : > { %v13189_v43 = vpack.c.bf16 %v13187_v7, %v13188_v35  ;;  %v13196_v7 = vld [vmem:[#allocation40_spill] sm:$0xff]  ;;  %v13197_v35 = vld [vmem:[#allocation42_spill] sm:$0xff] }
 0x3c4   : > { %v5915_v19 = vpop.f32.mrf.mxu0  ;;  %v6142_v34 = vpop.f32.mrf.mxu1 }
 0x3c5   : > { %v11639_v49 = vadd.f32 %v6140_v56, %v5915_v19  ;;  %v13190_v56 = vld [vmem:[#allocation7_spill] sm:$0xff] }
 0x3c6   : > { %v5917_v24 = vpop.f32.mrf.mxu0  ;;  %v6145_v10 = vpop.f32.mrf.mxu1  ;;  %v13191_v62 = vpack.c.bf16 %v11230_v40, %v13190_v56  ;;  %v13199_v56 = vld [vmem:[#allocation16_spill] sm:$0xff] }
 0x3c7   : > { %6786 = vmatmul.mubr.bf16.gmra.mxu1 %v13186_v31 }
 0x3c8   : > { %v5920_v8 = vpop.f32.mrf.mxu0  ;;  %6561 = vmatmul.mubr.bf16.gmra.mxu0 %v13183_v0  ;;  %6793 = vmatprep.mubr.bf16.mxu1 %v13191_v62  ;;  %v6147_v24 = vpop.f32.mrf.mxu1  ;;  %v13200_v62 = vld [vmem:[#allocation74_spill] sm:$0xff] }
 0x3c9   : > { %v11647_v46 = vadd.f32 %v6145_v10, %v5920_v8  ;;  %6568 = vmatprep.mubr.bf16.mxu0 %v13189_v43  ;;  %v13193_v8 = vld [vmem:[#allocation168_spill] sm:$0xff]  ;;  %v13194_v10 = vld [vmem:[#allocation167_spill] sm:$0xff]  ;;  %v13198_v43 = vpack.c.bf16 %v13196_v7, %v13197_v35  ;;  %v13203_v24 = vld [vmem:[#allocation46_spill] sm:$0xff] }
 0x3ca   : > { %v5922_v19 = vpop.f32.mrf.mxu0  ;;  %v6148_v26 = vpop.f32.mrf.mxu1  ;;  %v13195_v31 = vpack.c.bf16 %v13193_v8, %v13194_v10 }
 0x3cb   : > { %v13201_v19 = vpack.c.bf16 %v13199_v56, %v13200_v62  ;;  %v13209_v56 = vld [vmem:[#allocation142_spill] sm:$0xff]  ;;  %v13210_v62 = vld [vmem:[#allocation141_spill] sm:$0xff] }
 0x3cc   : > { %v5923_v34 = vpop.f32.mrf.mxu0  ;;  %v6150_v0 = vpop.f32.mrf.mxu1 }
 0x3cd   : > { %v11655_v45 = vadd.f32 %v6148_v26, %v5923_v34  ;;  %v13202_v26 = vld [vmem:[#allocation44_spill] sm:$0xff] }
 0x3ce   : > { %v5925_v12 = vpop.f32.mrf.mxu0  ;;  %v6153_v55 = vpop.f32.mrf.mxu1  ;;  %v13204_v34 = vpack.c.bf16 %v13202_v26, %v13203_v24  ;;  %v13212_v24 = vld [vmem:[#allocation178_spill] sm:$0xff] }
 0x3cf   : > { %13192 = vst [vmem:[#allocation53_spill] sm:$0xff] %v11655_v45  ;;  %6794 = vmatmul.mubr.bf16.gmra.mxu1 %v13198_v43 }
 0x3d0   : > { %v5928_v61 = vpop.f32.mrf.mxu0  ;;  %6569 = vmatmul.mubr.bf16.gmra.mxu0 %v13195_v31  ;;  %6801 = vmatprep.mubr.bf16.mxu1 %v13204_v34  ;;  %v6155_v0 = vpop.f32.mrf.mxu1  ;;  %v13213_v34 = vld [vmem:[#allocation78_spill] sm:$0xff] }
 0x3d1   : > { %v11663_v40 = vadd.f32 %v6153_v55, %v5928_v61  ;;  %6576 = vmatprep.mubr.bf16.mxu0 %v13201_v19  ;;  %v13206_v61 = vld [vmem:[#allocation172_spill] sm:$0xff]  ;;  %v13207_v55 = vld [vmem:[#allocation171_spill] sm:$0xff]  ;;  %v13211_v19 = vpack.c.bf16 %v13209_v56, %v13210_v62 }
 0x3d2   : > { %v5930_v12 = vpop.f32.mrf.mxu0  ;;  %v6156_v45 = vpop.f32.mrf.mxu1  ;;  %v13208_v43 = vpack.c.bf16 %v13206_v61, %v13207_v55 }
 0x3d3   : > { %v13214_v12 = vpack.c.bf16 %v13212_v24, %v13213_v34  ;;  %v13221_v24 = vld [vmem:[#allocation145_spill] sm:$0xff] }
 0x3d4   : > { %v5931_v47 = vpop.f32.mrf.mxu0  ;;  %v6158_v31 = vpop.f32.mrf.mxu1  ;;  %v13222_v34 = vld [vmem:[#allocation45_spill] sm:$0xff] }
 0x3d5   : > { %v11671_v8 = vadd.f32 %v6156_v45, %v5931_v47  ;;  %v13215_v47 = vld [vmem:[#allocation49_spill] sm:$0xff] }
 0x3d6   : > { %v5933_v10 = vpop.f32.mrf.mxu0  ;;  %v6161_v35 = vpop.f32.mrf.mxu1  ;;  %v13216_v45 = vpack.c.bf16 %v11278_v18, %v13215_v47  ;;  %v13224_v47 = vld [vmem:[#allocation18_spill] sm:$0xff] }
 0x3d7   : > { %13205 = vst [vmem:[#allocation153_spill] sm:$0xff] %v11671_v8  ;;  %6802 = vmatmul.mubr.bf16.gmra.mxu1 %v13211_v19 }
 0x3d8   : > { %v5936_v7 = vpop.f32.mrf.mxu0  ;;  %6577 = vmatmul.mubr.bf16.gmra.mxu0 %v13208_v43  ;;  %6809 = vmatprep.mubr.bf16.mxu1 %v13216_v45  ;;  %v6163_v10 = vpop.f32.mrf.mxu1  ;;  %v13225_v45 = vld [vmem:[#allocation83_spill] sm:$0xff] }
 0x3d9   : > { %v11679_v26 = vadd.f32 %v6161_v35, %v5936_v7  ;;  %6584 = vmatprep.mubr.bf16.mxu0 %v13214_v12  ;;  %v13218_v7 = vld [vmem:[#allocation176_spill] sm:$0xff]  ;;  %v13219_v35 = vld [vmem:[#allocation175_spill] sm:$0xff]  ;;  %v13223_v12 = vpack.c.bf16 %v13221_v24, %v13222_v34 }
 0x3da   : > { %v5938_v0 = vpop.f32.mrf.mxu0  ;;  %v6164_v8 = vpop.f32.mrf.mxu1  ;;  %v13220_v19 = vpack.c.bf16 %v13218_v7, %v13219_v35 }
 0x3db   : > { %v13226_v0 = vpack.c.bf16 %v13224_v47, %v13225_v45  ;;  %v13232_v47 = vld [vmem:[#allocation48_spill] sm:$0xff]  ;;  %v13233_v45 = vld [vmem:[#allocation50_spill] sm:$0xff] }
 0x3dc   : > { %v5939_v31 = vpop.f32.mrf.mxu0  ;;  %v6166_v43 = vpop.f32.mrf.mxu1 }
 0x3dd   : > { %v11687_v61 = vadd.f32 %v6164_v8, %v5939_v31  ;;  %v13227_v8 = vld [vmem:[#allocation9_spill] sm:$0xff] }
 0x3de   : > { %v5941_v55 = vpop.f32.mrf.mxu0  ;;  %v6169_v62 = vpop.f32.mrf.mxu1  ;;  %v13228_v10 = vpack.c.bf16 %v11302_v22, %v13227_v8  ;;  %v13235_v8 = vld [vmem:[#allocation186_spill] sm:$0xff] }
 0x3df   : > { %13217 = vst [vmem:[#allocation57_spill] sm:$0xff] %v11687_v61  ;;  %6810 = vmatmul.mubr.bf16.gmra.mxu1 %v13223_v12 }
 0x3e0   : > { %v5944_v56 = vpop.f32.mrf.mxu0  ;;  %6585 = vmatmul.mubr.bf16.gmra.mxu0 %v13220_v19  ;;  %6817 = vmatprep.mubr.bf16.mxu1 %v13228_v10  ;;  %v6171_v55 = vpop.f32.mrf.mxu1  ;;  %v13236_v10 = vld [vmem:[#allocation87_spill] sm:$0xff] }
 0x3e1   : > { %v11695_v18 = vadd.f32 %v6169_v62, %v5944_v56  ;;  %6592 = vmatprep.mubr.bf16.mxu0 %v13226_v0  ;;  %v13229_v56 = vld [vmem:[#allocation181_spill] sm:$0xff]  ;;  %v13230_v62 = vld [vmem:[#allocation180_spill] sm:$0xff]  ;;  %v13234_v0 = vpack.c.bf16 %v13232_v47, %v13233_v45 }
 0x3e2   : > { %v5946_v31 = vpop.f32.mrf.mxu0  ;;  %v6172_v61 = vpop.f32.mrf.mxu1  ;;  %v13231_v12 = vpack.c.bf16 %v13229_v56, %v13230_v62 }
 0x3e3   : > { %v13237_v31 = vpack.c.bf16 %v13235_v8, %v13236_v10  ;;  %v13242_v8 = vld [vmem:[#allocation149_spill] sm:$0xff] }
 0x3e4   : > { %v5947_v43 = vpop.f32.mrf.mxu0  ;;  %v6174_v19 = vpop.f32.mrf.mxu1  ;;  %v13243_v10 = vpack.c.bf16 %v11317_v15, %v13242_v8 }
 0x3e5   : > { %v11703_v7 = vadd.f32 %v6172_v61, %v5947_v43  ;;  %v13238_v61 = vpack.c.bf16 %v11326_v6, %v11321_v4  ;;  %v13244_v6 = vld [vmem:[#allocation20_spill] sm:$0xff] }
 0x3e6   : > { %v5949_v35 = vpop.f32.mrf.mxu0  ;;  %v6177_v34 = vpop.f32.mrf.mxu1 }
 0x3e7   : > { %6818 = vmatmul.mubr.bf16.gmra.mxu1 %v13234_v0 }
 0x3e8   : > { %v5952_v24 = vpop.f32.mrf.mxu0  ;;  %6593 = vmatmul.mubr.bf16.gmra.mxu0 %v13231_v12  ;;  %6825 = vmatprep.mubr.bf16.mxu1 %v13238_v61  ;;  %v6179_v43 = vpop.f32.mrf.mxu1 }
 0x3e9   : > { %v11711_v22 = vadd.f32 %v6177_v34, %v5952_v24  ;;  %6600 = vmatprep.mubr.bf16.mxu0 %v13237_v31  ;;  %v13239_v24 = vld [vmem:[#allocation184_spill] sm:$0xff]  ;;  %v13240_v34 = vld [vmem:[#allocation183_spill] sm:$0xff] }
 0x3ea   : > { %v5954_v55 = vpop.f32.mrf.mxu0  ;;  %v6180_v19 = vpop.f32.mrf.mxu1  ;;  %v13241_v0 = vpack.c.bf16 %v13239_v24, %v13240_v34  ;;  %v13245_v31 = vld [vmem:[#allocation91_spill] sm:$0xff] }
 0x3eb   : > { %v13246_v61 = vpack.c.bf16 %v13244_v6, %v13245_v31  ;;  %v13247_v55 = vpack.c.bf16 %v11350_v32, %v11345_v20  ;;  %v13252_v6 = vld [vmem:[#allocation150_spill] sm:$0xff] }
 0x3ec   : > { %v5955_v35 = vpop.f32.mrf.mxu0  ;;  %v6182_v12 = vpop.f32.mrf.mxu1  ;;  %v13254_v32 = vld [vmem:[#allocation194_spill] sm:$0xff] }
 0x3ed   : > { %v11719_v56 = vadd.f32 %v6180_v19, %v5955_v35 }
 0x3ee   : > { %v5957_v62 = vpop.f32.mrf.mxu0  ;;  %v6185_v45 = vpop.f32.mrf.mxu1 }
 0x3ef   : > { %6826 = vmatmul.mubr.bf16.gmra.mxu1 %v13243_v10  ;;  %v13251_v10 = vld [vmem:[#allocation54_spill] sm:$0xff] }
 0x3f0   : > { %v5960_v47 = vpop.f32.mrf.mxu0  ;;  %6601 = vmatmul.mubr.bf16.gmra.mxu0 %v13241_v0  ;;  %6833 = vmatprep.mubr.bf16.mxu1 %v13247_v55  ;;  %v6187_v35 = vpop.f32.mrf.mxu1  ;;  %v13253_v31 = vpack.c.bf16 %v13251_v10, %v13252_v6 }
 0x3f1   : > { %v11727_v4 = vadd.f32 %v6185_v45, %v5960_v47  ;;  %6608 = vmatprep.mubr.bf16.mxu0 %v13246_v61  ;;  %v13248_v47 = vld [vmem:[#allocation90_spill] sm:$0xff]  ;;  %v13249_v45 = vld [vmem:[#allocation89_spill] sm:$0xff] }
 0x3f2   : > { %v5962_v43 = vpop.f32.mrf.mxu0  ;;  %v6188_v62 = vpop.f32.mrf.mxu1  ;;  %v13250_v8 = vpack.c.bf16 %v13248_v47, %v13249_v45  ;;  %v13255_v61 = vld [vmem:[#allocation93_spill] sm:$0xff] }
 0x3f3   : > { %v13256_v55 = vpack.c.bf16 %v13254_v32, %v13255_v61  ;;  %v13257_v43 = vpack.c.bf16 %v11378_v17, %v11373_v36  ;;  %v13263_v17 = vld [vmem:[#allocation201_spill] sm:$0xff]  ;;  %v13264_v61 = vld [vmem:[#allocation95_spill] sm:$0xff] }
 0x3f4   : > { %v5963_v19 = vpop.f32.mrf.mxu0  ;;  %v6190_v34 = vpop.f32.mrf.mxu1 }
 0x3f5   : > { %v11735_v12 = vadd.f32 %v6188_v62, %v5963_v19 }
 0x3f6   : > { %v5965_v24 = vpop.f32.mrf.mxu0  ;;  %v6193_v0 = vpop.f32.mrf.mxu1 }
 0x3f7   : > { %6834 = vmatmul.mubr.bf16.gmra.mxu1 %v13253_v31  ;;  %v13261_v31 = vld [vmem:[#allocation52_spill] sm:$0xff] }
 0x3f8   : > { %v5968_v15 = vpop.f32.mrf.mxu0  ;;  %6609 = vmatmul.mubr.bf16.gmra.mxu0 %v13250_v8  ;;  %6841 = vmatprep.mubr.bf16.mxu1 %v13257_v43  ;;  %v6195_v19 = vpop.f32.mrf.mxu1  ;;  %v13262_v32 = vpack.c.bf16 %v11363_v13, %v13261_v31  ;;  %v13266_v43 = vpack.c.bf16 %v11411_v58, %v11406_v3  ;;  %v13270_v31 = vpack.c.bf16 %v11395_v28, %v11386_v48  ;;  %v11783_v48 = vld [vmem:[%s11949_s5] ss:$0 sm:$0xff] }
 0x3f9   : > { %v11743_v20 = vadd.f32 %v6193_v0, %v5968_v15  ;;  %6616 = vmatprep.mubr.bf16.mxu0 %v13256_v55  ;;  %v13258_v15 = vld [vmem:[#allocation192_spill] sm:$0xff]  ;;  %v13259_v0 = vld [vmem:[#allocation191_spill] sm:$0xff]  ;;  %v13265_v55 = vpack.c.bf16 %v13263_v17, %v13264_v61 }
 0x3fa   : > { %v5970_v35 = vpop.f32.mrf.mxu0  ;;  %v6196_v24 = vpop.f32.mrf.mxu1  ;;  %v13260_v6 = vpack.c.bf16 %v13258_v15, %v13259_v0 }
 0x3fc   : > { %v5971_v62 = vpop.f32.mrf.mxu0  ;;  %v6198_v45 = vpop.f32.mrf.mxu1 }
 0x3fd   : > { %v11751_v34 = vadd.f32 %v6196_v24, %v5971_v62 }
 0x3fe   : > { %v5973_v47 = vpop.f32.mrf.mxu0  ;;  %v6201_v10 = vpop.f32.mrf.mxu1 }
 0x3ff   : > { %6842 = vmatmul.mubr.bf16.gmra.mxu1 %v13262_v32 }
 0x400   : > { %v5976_v8 = vpop.f32.mrf.mxu0  ;;  %6617 = vmatmul.mubr.bf16.gmra.mxu0 %v13260_v6  ;;  %6849 = vmatprep.mubr.bf16.mxu1 %v13266_v43  ;;  %v6203_v19 = vpop.f32.mrf.mxu1 }
 0x401   : > { %v11759_v36 = vadd.f32 %v6201_v10, %v5976_v8  ;;  %6624 = vmatprep.mubr.bf16.mxu0 %v13265_v55  ;;  %v13267_v8 = vld [vmem:[#allocation200_spill] sm:$0xff]  ;;  %v13268_v10 = vld [vmem:[#allocation199_spill] sm:$0xff] }
 0x402   : > { %v5978_v35 = vpop.f32.mrf.mxu0  ;;  %v6204_v24 = vpop.f32.mrf.mxu1  ;;  %v13269_v6 = vpack.c.bf16 %v13267_v8, %v13268_v10 }
 0x404   : > { %v5979_v62 = vpop.f32.mrf.mxu0  ;;  %v6206_v15 = vpop.f32.mrf.mxu1 }
 0x405   : > { %v11767_v47 = vadd.f32 %v6204_v24, %v5979_v62 }
 0x406   : > { %v5981_v45 = vpop.f32.mrf.mxu0  ;;  %v6209_v0 = vpop.f32.mrf.mxu1 }
 0x407   : > { %6850 = vmatmul.mubr.bf16.gmra.mxu1 %v13270_v31 }
 0x408   : > { %v5984_v13 = vpop.f32.mrf.mxu0  ;;  %6625 = vmatmul.mubr.bf16.gmra.mxu0 %v13269_v6  ;;  %v6211_v32 = vpop.f32.mrf.mxu1 }
 0x409   : > { %v11775_v3 = vadd.f32 %v6209_v0, %v5984_v13 }
 0x40a   : > { %v5986_v58 = vpop.f32.mrf.mxu0  ;;  %v6212_v61 = vpop.f32.mrf.mxu1 }
 0x40c   : > { %v5987_v17 = vpop.f32.mrf.mxu0  ;;  %v6214_v35 = vpop.f32.mrf.mxu1 }
 0x40d   : > { %v11777_v55 = vadd.f32 %v6212_v61, %v5987_v17 }
 0x40e   : > { %v5989_v43 = vpop.f32.mrf.mxu0 }
 0x40f   : > { %v6667_v62 = vpop.f32.mrf.mxu1 }
 0x410   : > { %v6442_v19 = vpop.f32.mrf.mxu0 }
 0x411   : > { %v6443_v24 = vadd.f32 %v6442_v19, %v11397_v42  ;;  %v6669_v45 = vpop.f32.mrf.mxu1 }
 0x412   : > { %v6444_v28 = vpop.f32.mrf.mxu0 }
 0x413   : > { %v6668_v15 = vadd.f32 %v6667_v62, %v6443_v24  ;;  %v6670_v0 = vpop.f32.mrf.mxu1 }
 0x414   : > { %v6445_v13 = vpop.f32.mrf.mxu0 }
 0x415   : > { %v6865_v42 = vadd.f32 %v11783_v48, %v6668_v15  ;;  %v6446_v8 = vadd.f32 %v6445_v13, %v11413_v11  ;;  %v6672_v6 = vpop.f32.mrf.mxu1 }
 0x416   : > { %v6447_v10 = vpop.f32.mrf.mxu0 }
 0x417   : > { %6913 = vst [vmem:[%s11790_s28] sm:$0xff] %v6865_v42  ;;  %v6671_v31 = vadd.f32 %v6670_v0, %v6446_v8  ;;  %v6675_v32 = vpop.f32.mrf.mxu1 }
 0x418   : > { %v6450_v58 = vpop.f32.mrf.mxu0 }
 0x419   : > { %v6866_v17 = vadd.f32 %v11783_v48, %v6671_v31  ;;  %v6451_v61 = vadd.f32 %v6450_v58, %v11423_v37  ;;  %v6677_v35 = vpop.f32.mrf.mxu1 }
 0x41a   : > { %v6452_v43 = vpop.f32.mrf.mxu0 }
 0x41b   : > { %6914 = vst [vmem:[%s11790_s28 + $0x8] sm:$0xff] %v6866_v17  ;;  %v6676_v19 = vadd.f32 %v6675_v32, %v6451_v61  ;;  %v6678_v24 = vpop.f32.mrf.mxu1 }
 0x41c   : > { %v6453_v62 = vpop.f32.mrf.mxu0 }
 0x41d   : > { %v6867_v11 = vadd.f32 %v11783_v48, %v6676_v19  ;;  %v6454_v28 = vadd.f32 %v6453_v62, %v11431_v50  ;;  %v6680_v15 = vpop.f32.mrf.mxu1 }
 0x41e   : > { %v6455_v45 = vpop.f32.mrf.mxu0 }
 0x41f   : > { %6915 = vst [vmem:[%s11790_s28 + $0x10] sm:$0xff] %v6867_v11  ;;  %v6679_v13 = vadd.f32 %v6678_v24, %v6454_v28  ;;  %v6683_v42 = vpop.f32.mrf.mxu1 }
 0x420   : > { %v6458_v0 = vpop.f32.mrf.mxu0 }
 0x421   : > { %v6868_v37 = vadd.f32 %v11783_v48, %v6679_v13  ;;  %v6459_v8 = vadd.f32 %v6458_v0, %v11439_v52  ;;  %v6685_v6 = vpop.f32.mrf.mxu1 }
 0x422   : > { %v6460_v10 = vpop.f32.mrf.mxu0 }
 0x423   : > { %6916 = vst [vmem:[%s11790_s28 + $0x18] sm:$0xff] %v6868_v37  ;;  %v6684_v31 = vadd.f32 %v6683_v42, %v6459_v8  ;;  %v6686_v32 = vpop.f32.mrf.mxu1 }
 0x424   : > { %v6461_v58 = vpop.f32.mrf.mxu0 }
 0x425   : > { %v6869_v50 = vadd.f32 %v11783_v48, %v6684_v31  ;;  %v6462_v17 = vadd.f32 %v6461_v58, %v11447_v44  ;;  %v6688_v43 = vpop.f32.mrf.mxu1 }
 0x426   : > { %v6463_v61 = vpop.f32.mrf.mxu0 }
 0x427   : > { %6917 = vst [vmem:[%s11790_s28 + $0x20] sm:$0xff] %v6869_v50  ;;  %v6687_v35 = vadd.f32 %v6686_v32, %v6462_v17  ;;  %v6691_v62 = vpop.f32.mrf.mxu1 }
 0x428   : > { %v6466_v19 = vpop.f32.mrf.mxu0 }
 0x429   : > { %v6870_v52 = vadd.f32 %v11783_v48, %v6687_v35  ;;  %v6467_v24 = vadd.f32 %v6466_v19, %v11455_v54  ;;  %v6693_v28 = vpop.f32.mrf.mxu1 }
 0x42a   : > { %v6468_v11 = vpop.f32.mrf.mxu0 }
 0x42b   : > { %6918 = vst [vmem:[%s11790_s28 + $0x28] sm:$0xff] %v6870_v52  ;;  %v6692_v45 = vadd.f32 %v6691_v62, %v6467_v24  ;;  %v6694_v13 = vpop.f32.mrf.mxu1 }
 0x42c   : > { %v6469_v15 = vpop.f32.mrf.mxu0 }
 0x42d   : > { %v6871_v44 = vadd.f32 %v11783_v48, %v6692_v45  ;;  %v6470_v0 = vadd.f32 %v6469_v15, %v11463_v63  ;;  %v6696_v37 = vpop.f32.mrf.mxu1 }
 0x42e   : > { %v6471_v42 = vpop.f32.mrf.mxu0 }
 0x42f   : > { %6919 = vst [vmem:[%s11790_s28 + $0x30] sm:$0xff] %v6871_v44  ;;  %v6695_v8 = vadd.f32 %v6694_v13, %v6470_v0  ;;  %v6699_v6 = vpop.f32.mrf.mxu1 }
 0x430   : > { %v6474_v10 = vpop.f32.mrf.mxu0 }
 0x431   : > { %v6872_v54 = vadd.f32 %v11783_v48, %v6695_v8  ;;  %v6475_v31 = vadd.f32 %v6474_v10, %v11471_v2  ;;  %v6701_v32 = vpop.f32.mrf.mxu1 }
 0x432   : > { %v6476_v58 = vpop.f32.mrf.mxu0 }
 0x433   : > { %6920 = vst [vmem:[%s11790_s28 + $0x38] sm:$0xff] %v6872_v54  ;;  %v6700_v50 = vadd.f32 %v6699_v6, %v6475_v31  ;;  %v6702_v61 = vpop.f32.mrf.mxu1 }
 0x434   : > { %v6477_v17 = vpop.f32.mrf.mxu0 }
 0x435   : > { %v6873_v63 = vadd.f32 %v11783_v48, %v6700_v50  ;;  %v6478_v43 = vadd.f32 %v6477_v17, %v11479_v27  ;;  %v6704_v19 = vpop.f32.mrf.mxu1 }
 0x436   : > { %v6479_v35 = vpop.f32.mrf.mxu0 }
 0x437   : > { %6921 = vst [vmem:[%s11790_s28 + $0x40] sm:$0xff] %v6873_v63  ;;  %v6703_v62 = vadd.f32 %v6702_v61, %v6478_v43  ;;  %v6707_v24 = vpop.f32.mrf.mxu1 }
 0x438   : > { %v6482_v52 = vpop.f32.mrf.mxu0 }
 0x439   : > { %v6874_v2 = vadd.f32 %v11783_v48, %v6703_v62  ;;  %v6483_v11 = vadd.f32 %v6482_v52, %v11487_v25  ;;  %v6709_v45 = vpop.f32.mrf.mxu1 }
 0x43a   : > { %v6484_v28 = vpop.f32.mrf.mxu0 }
 0x43b   : > { %6922 = vst [vmem:[%s11790_s28 + $0x48] sm:$0xff] %v6874_v2  ;;  %v6708_v15 = vadd.f32 %v6707_v24, %v6483_v11  ;;  %v6710_v44 = vpop.f32.mrf.mxu1 }
 0x43c   : > { %v6485_v13 = vpop.f32.mrf.mxu0 }
 0x43d   : > { %v6875_v27 = vadd.f32 %v11783_v48, %v6708_v15  ;;  %v6486_v0 = vadd.f32 %v6485_v13, %v11495_v30  ;;  %v6712_v37 = vpop.f32.mrf.mxu1 }
 0x43e   : > { %v6487_v42 = vpop.f32.mrf.mxu0 }
 0x43f   : > { %6923 = vst [vmem:[%s11790_s28 + $0x50] sm:$0xff] %v6875_v27  ;;  %v6711_v8 = vadd.f32 %v6710_v44, %v6486_v0  ;;  %v6715_v6 = vpop.f32.mrf.mxu1 }
 0x440   : > { %v6490_v10 = vpop.f32.mrf.mxu0 }
 0x441   : > { %v6876_v25 = vadd.f32 %v11783_v48, %v6711_v8  ;;  %v6491_v54 = vadd.f32 %v6490_v10, %v11503_v14  ;;  %v6717_v58 = vpop.f32.mrf.mxu1 }
 0x442   : > { %v6492_v31 = vpop.f32.mrf.mxu0 }
 0x443   : > { %6924 = vst [vmem:[%s11790_s28 + $0x58] sm:$0xff] %v6876_v25  ;;  %v6716_v32 = vadd.f32 %v6715_v6, %v6491_v54  ;;  %v6718_v17 = vpop.f32.mrf.mxu1 }
 0x444   : > { %v6493_v50 = vpop.f32.mrf.mxu0 }
 0x445   : > { %v6877_v30 = vadd.f32 %v11783_v48, %v6716_v32  ;;  %v6494_v61 = vadd.f32 %v6493_v50, %v11511_v53  ;;  %v6720_v43 = vpop.f32.mrf.mxu1 }
 0x446   : > { %v6495_v63 = vpop.f32.mrf.mxu0 }
 0x447   : > { %6925 = vst [vmem:[%s11790_s28 + $0x60] sm:$0xff] %v6877_v30  ;;  %v6719_v35 = vadd.f32 %v6718_v17, %v6494_v61  ;;  %v6723_v62 = vpop.f32.mrf.mxu1 }
 0x448   : > { %v6498_v19 = vpop.f32.mrf.mxu0 }
 0x449   : > { %v6878_v14 = vadd.f32 %v11783_v48, %v6719_v35  ;;  %v6499_v52 = vadd.f32 %v6498_v19, %v11519_v29  ;;  %v6725_v2 = vpop.f32.mrf.mxu1 }
 0x44a   : > { %v6500_v24 = vpop.f32.mrf.mxu0 }
 0x44b   : > { %6926 = vst [vmem:[%s11790_s28 + $0x68] sm:$0xff] %v6878_v14  ;;  %v6724_v11 = vadd.f32 %v6723_v62, %v6499_v52  ;;  %v6726_v45 = vpop.f32.mrf.mxu1 }
 0x44c   : > { %v6501_v28 = vpop.f32.mrf.mxu0 }
 0x44d   : > { %v6879_v53 = vadd.f32 %v11783_v48, %v6724_v11  ;;  %v6502_v15 = vadd.f32 %v6501_v28, %v11527_v59  ;;  %v6728_v44 = vpop.f32.mrf.mxu1 }
 0x44e   : > { %v6503_v13 = vpop.f32.mrf.mxu0 }
 0x44f   : > { %6927 = vst [vmem:[%s11790_s28 + $0x70] sm:$0xff] %v6879_v53  ;;  %v6727_v27 = vadd.f32 %v6726_v45, %v6502_v15  ;;  %v6731_v42 = vpop.f32.mrf.mxu1 }
 0x450   : > { %v6506_v0 = vpop.f32.mrf.mxu0 }
 0x451   : > { %v6880_v29 = vadd.f32 %v11783_v48, %v6727_v27  ;;  %v6507_v37 = vadd.f32 %v6506_v0, %v11535_v1  ;;  %v6733_v10 = vpop.f32.mrf.mxu1 }
 0x452   : > { %v6508_v8 = vpop.f32.mrf.mxu0 }
 0x453   : > { %6928 = vst [vmem:[%s11790_s28 + $0x78] sm:$0xff] %v6880_v29  ;;  %v6732_v6 = vadd.f32 %v6731_v42, %v6507_v37  ;;  %v6734_v54 = vpop.f32.mrf.mxu1 }
 0x454   : > { %v6509_v25 = vpop.f32.mrf.mxu0 }
 0x455   : > { %v6881_v59 = vadd.f32 %v11783_v48, %v6732_v6  ;;  %v6510_v31 = vadd.f32 %v6509_v25, %v11543_v16  ;;  %v6736_v32 = vpop.f32.mrf.mxu1 }
 0x456   : > { %v6511_v58 = vpop.f32.mrf.mxu0 }
 0x457   : > { %6929 = vst [vmem:[%s11790_s28 + $0x80] sm:$0xff] %v6881_v59  ;;  %v6735_v50 = vadd.f32 %v6734_v54, %v6510_v31  ;;  %v6739_v30 = vpop.f32.mrf.mxu1 }
 0x458   : > { %v6514_v17 = vpop.f32.mrf.mxu0 }
 0x459   : > { %v6882_v1 = vadd.f32 %v11783_v48, %v6735_v50  ;;  %v6515_v61 = vadd.f32 %v6514_v17, %v11551_v38  ;;  %v6741_v43 = vpop.f32.mrf.mxu1 }
 0x45a   : > { %v6516_v63 = vpop.f32.mrf.mxu0 }
 0x45b   : > { %6930 = vst [vmem:[%s11790_s28 + $0x88] sm:$0xff] %v6882_v1  ;;  %v6740_v35 = vadd.f32 %v6739_v30, %v6515_v61  ;;  %v6742_v62 = vpop.f32.mrf.mxu1 }
 0x45c   : > { %v6517_v19 = vpop.f32.mrf.mxu0 }
 0x45d   : > { %v6883_v16 = vadd.f32 %v11783_v48, %v6740_v35  ;;  %v6518_v14 = vadd.f32 %v6517_v19, %v11559_v9  ;;  %v6744_v24 = vpop.f32.mrf.mxu1 }
 0x45e   : > { %v6519_v52 = vpop.f32.mrf.mxu0 }
 0x45f   : > { %6931 = vst [vmem:[%s11790_s28 + $0x90] sm:$0xff] %v6883_v16  ;;  %v6743_v2 = vadd.f32 %v6742_v62, %v6518_v14  ;;  %v6747_v28 = vpop.f32.mrf.mxu1 }
 0x460   : > { %v6522_v11 = vpop.f32.mrf.mxu0 }
 0x461   : > { %v6884_v38 = vadd.f32 %v11783_v48, %v6743_v2  ;;  %v6523_v45 = vadd.f32 %v6522_v11, %v11567_v60  ;;  %v6749_v15 = vpop.f32.mrf.mxu1 }
 0x462   : > { %v6524_v53 = vpop.f32.mrf.mxu0 }
 0x463   : > { %6932 = vst [vmem:[%s11790_s28 + $0x98] sm:$0xff] %v6884_v38  ;;  %v6748_v13 = vadd.f32 %v6747_v28, %v6523_v45  ;;  %v6750_v27 = vpop.f32.mrf.mxu1 }
 0x464   : > { %v6525_v44 = vpop.f32.mrf.mxu0 }
 0x465   : > { %v6885_v9 = vadd.f32 %v11783_v48, %v6748_v13  ;;  %v6526_v0 = vadd.f32 %v6525_v44, %v11575_v5  ;;  %v6752_v29 = vpop.f32.mrf.mxu1 }
 0x466   : > { %v6527_v42 = vpop.f32.mrf.mxu0 }
 0x467   : > { %6933 = vst [vmem:[%s11790_s28 + $0xa0] sm:$0xff] %v6885_v9  ;;  %v6751_v37 = vadd.f32 %v6750_v27, %v6526_v0  ;;  %v6755_v10 = vpop.f32.mrf.mxu1 }
 0x468   : > { %v6530_v8 = vpop.f32.mrf.mxu0 }
 0x469   : > { %v6886_v60 = vadd.f32 %v11783_v48, %v6751_v37  ;;  %v6531_v6 = vadd.f32 %v6530_v8, %v11583_v33  ;;  %v6757_v54 = vpop.f32.mrf.mxu1 }
 0x46a   : > { %v6532_v25 = vpop.f32.mrf.mxu0 }
 0x46b   : > { %6934 = vst [vmem:[%s11790_s28 + $0xa8] sm:$0xff] %v6886_v60  ;;  %v6756_v59 = vadd.f32 %v6755_v10, %v6531_v6  ;;  %v6758_v58 = vpop.f32.mrf.mxu1 }
 0x46c   : > { %v6533_v31 = vpop.f32.mrf.mxu0 }
 0x46d   : > { %v6887_v5 = vadd.f32 %v11783_v48, %v6756_v59  ;;  %v6534_v32 = vadd.f32 %v6533_v31, %v11591_v21  ;;  %v6760_v17 = vpop.f32.mrf.mxu1 }
 0x46e   : > { %v6535_v50 = vpop.f32.mrf.mxu0 }
 0x46f   : > { %6935 = vst [vmem:[%s11790_s28 + $0xb0] sm:$0xff] %v6887_v5  ;;  %v6759_v30 = vadd.f32 %v6758_v58, %v6534_v32  ;;  %v6763_v61 = vpop.f32.mrf.mxu1 }
 0x470   : > { %v6538_v1 = vpop.f32.mrf.mxu0 }
 0x471   : > { %v6888_v33 = vadd.f32 %v11783_v48, %v6759_v30  ;;  %v6539_v63 = vadd.f32 %v6538_v1, %v11599_v51  ;;  %v6765_v35 = vpop.f32.mrf.mxu1 }
 0x472   : > { %v6540_v43 = vpop.f32.mrf.mxu0 }
 0x473   : > { %6936 = vst [vmem:[%s11790_s28 + $0xb8] sm:$0xff] %v6888_v33  ;;  %v6764_v19 = vadd.f32 %v6763_v61, %v6539_v63  ;;  %v6766_v16 = vpop.f32.mrf.mxu1  ;;  %v13271_v43 = vld [vmem:[#allocation53_spill] sm:$0xff] }
 0x474   : > { %v6541_v62 = vpop.f32.mrf.mxu0 }
 0x475   : > { %v6889_v21 = vadd.f32 %v11783_v48, %v6764_v19  ;;  %v6542_v14 = vadd.f32 %v6541_v62, %v11607_v41  ;;  %v6768_v24 = vpop.f32.mrf.mxu1 }
 0x476   : > { %v6543_v52 = vpop.f32.mrf.mxu0 }
 0x477   : > { %6937 = vst [vmem:[%s11790_s28 + $0xc0] sm:$0xff] %v6889_v21  ;;  %v6767_v2 = vadd.f32 %v6766_v16, %v6542_v14  ;;  %v6771_v28 = vpop.f32.mrf.mxu1 }
 0x478   : > { %v6546_v11 = vpop.f32.mrf.mxu0 }
 0x479   : > { %v6890_v51 = vadd.f32 %v11783_v48, %v6767_v2  ;;  %v6547_v38 = vadd.f32 %v6546_v11, %v11615_v39  ;;  %v6773_v53 = vpop.f32.mrf.mxu1 }
 0x47a   : > { %v6548_v45 = vpop.f32.mrf.mxu0 }
 0x47b   : > { %6938 = vst [vmem:[%s11790_s28 + $0xc8] sm:$0xff] %v6890_v51  ;;  %v6772_v15 = vadd.f32 %v6771_v28, %v6547_v38  ;;  %v6774_v44 = vpop.f32.mrf.mxu1  ;;  %v13272_v45 = vld [vmem:[#allocation153_spill] sm:$0xff] }
 0x47c   : > { %v6549_v13 = vpop.f32.mrf.mxu0 }
 0x47d   : > { %v6891_v41 = vadd.f32 %v11783_v48, %v6772_v15  ;;  %v6550_v27 = vadd.f32 %v6549_v13, %v11623_v57  ;;  %v6776_v0 = vpop.f32.mrf.mxu1 }
 0x47e   : > { %v6551_v9 = vpop.f32.mrf.mxu0 }
 0x47f   : > { %6939 = vst [vmem:[%s11790_s28 + $0xd0] sm:$0xff] %v6891_v41  ;;  %v6775_v42 = vadd.f32 %v6774_v44, %v6550_v27  ;;  %v6779_v37 = vpop.f32.mrf.mxu1 }
 0x480   : > { %v6554_v29 = vpop.f32.mrf.mxu0 }
 0x481   : > { %v6892_v39 = vadd.f32 %v11783_v48, %v6775_v42  ;;  %v6555_v8 = vadd.f32 %v6554_v29, %v11631_v23  ;;  %v6781_v60 = vpop.f32.mrf.mxu1 }
 0x482   : > { %v6556_v10 = vpop.f32.mrf.mxu0 }
 0x483   : > { %6940 = vst [vmem:[%s11790_s28 + $0xd8] sm:$0xff] %v6892_v39  ;;  %v6780_v6 = vadd.f32 %v6779_v37, %v6555_v8  ;;  %v6782_v54 = vpop.f32.mrf.mxu1  ;;  %v13273_v10 = vld [vmem:[#allocation57_spill] sm:$0xff] }
 0x484   : > { %v6557_v25 = vpop.f32.mrf.mxu0 }
 0x485   : > { %v6893_v57 = vadd.f32 %v11783_v48, %v6780_v6  ;;  %v6558_v59 = vadd.f32 %v6557_v25, %v11639_v49  ;;  %v6784_v58 = vpop.f32.mrf.mxu1 }
 0x486   : > { %v6559_v31 = vpop.f32.mrf.mxu0 }
 0x487   : > { %6941 = vst [vmem:[%s11790_s28 + $0xe0] sm:$0xff] %v6893_v57  ;;  %v6783_v5 = vadd.f32 %v6782_v54, %v6558_v59  ;;  %v6787_v50 = vpop.f32.mrf.mxu1 }
 0x488   : > { %v6562_v32 = vpop.f32.mrf.mxu0 }
 0x489   : > { %v6894_v23 = vadd.f32 %v11783_v48, %v6783_v5  ;;  %v6563_v17 = vadd.f32 %v6562_v32, %v11647_v46  ;;  %v6789_v1 = vpop.f32.mrf.mxu1 }
 0x48a   : > { %v6564_v30 = vpop.f32.mrf.mxu0 }
 0x48b   : > { %6942 = vst [vmem:[%s11790_s28 + $0xe8] sm:$0xff] %v6894_v23  ;;  %v6788_v61 = vadd.f32 %v6787_v50, %v6563_v17  ;;  %v6790_v63 = vpop.f32.mrf.mxu1 }
 0x48c   : > { %v6565_v33 = vpop.f32.mrf.mxu0 }
 0x48d   : > { %v6895_v49 = vadd.f32 %v11783_v48, %v6788_v61  ;;  %v6566_v35 = vadd.f32 %v6565_v33, %v13271_v43  ;;  %v6792_v62 = vpop.f32.mrf.mxu1 }
 0x48e   : > { %v6567_v19 = vpop.f32.mrf.mxu0 }
 0x48f   : > { %6943 = vst [vmem:[%s11790_s28 + $0xf0] sm:$0xff] %v6895_v49  ;;  %v6791_v16 = vadd.f32 %v6790_v63, %v6566_v35  ;;  %v6795_v14 = vpop.f32.mrf.mxu1 }
 0x490   : > { %v6570_v21 = vpop.f32.mrf.mxu0 }
 0x491   : > { %v6896_v46 = vadd.f32 %v11783_v48, %v6791_v16  ;;  %v6571_v52 = vadd.f32 %v6570_v21, %v11663_v40  ;;  %v6797_v2 = vpop.f32.mrf.mxu1 }
 0x492   : > { %v6572_v24 = vpop.f32.mrf.mxu0 }
 0x493   : > { %6944 = vst [vmem:[%s11790_s28 + $0xf8] sm:$0xff] %v6896_v46  ;;  %v6796_v11 = vadd.f32 %v6795_v14, %v6571_v52  ;;  %v6798_v51 = vpop.f32.mrf.mxu1 }
 0x494   : > { %v6573_v28 = vpop.f32.mrf.mxu0 }
 0x495   : > { %v6897_v38 = vadd.f32 %v11783_v48, %v6796_v11  ;;  %v6574_v53 = vadd.f32 %v6573_v28, %v13272_v45  ;;  %v6800_v13 = vpop.f32.mrf.mxu1 }
 0x496   : > { %v6575_v15 = vpop.f32.mrf.mxu0 }
 0x497   : > { %6945 = vst [vmem:[%s11790_s28 + $0x100] sm:$0xff] %v6897_v38  ;;  %v6799_v44 = vadd.f32 %v6798_v51, %v6574_v53  ;;  %v6803_v27 = vpop.f32.mrf.mxu1 }
 0x498   : > { %v6578_v41 = vpop.f32.mrf.mxu0 }
 0x499   : > { %v6898_v40 = vadd.f32 %v11783_v48, %v6799_v44  ;;  %v6579_v9 = vadd.f32 %v6578_v41, %v11679_v26  ;;  %v6805_v42 = vpop.f32.mrf.mxu1 }
 0x49a   : > { %v6580_v0 = vpop.f32.mrf.mxu0 }
 0x49b   : > { %6946 = vst [vmem:[%s11790_s28 + $0x108] sm:$0xff] %v6898_v40  ;;  %v6804_v29 = vadd.f32 %v6803_v27, %v6579_v9  ;;  %v6806_v39 = vpop.f32.mrf.mxu1 }
 0x49c   : > { %v6581_v37 = vpop.f32.mrf.mxu0 }
 0x49d   : > { %v6899_v8 = vadd.f32 %v11783_v48, %v6804_v29  ;;  %v6582_v60 = vadd.f32 %v6581_v37, %v13273_v10  ;;  %v6808_v25 = vpop.f32.mrf.mxu1 }
 0x49e   : > { %v6583_v6 = vpop.f32.mrf.mxu0 }
 0x49f   : > { %6947 = vst [vmem:[%s11790_s28 + $0x110] sm:$0xff] %v6899_v8  ;;  %v6807_v54 = vadd.f32 %v6806_v39, %v6582_v60  ;;  %v6811_v59 = vpop.f32.mrf.mxu1 }
 0x4a0   : > { %v6586_v57 = vpop.f32.mrf.mxu0 }
 0x4a1   : > { %v6900_v26 = vadd.f32 %v11783_v48, %v6807_v54  ;;  %v6587_v31 = vadd.f32 %v6586_v57, %v11695_v18  ;;  %v6813_v5 = vpop.f32.mrf.mxu1 }
 0x4a2   : > { %v6588_v58 = vpop.f32.mrf.mxu0 }
 0x4a3   : > { %6948 = vst [vmem:[%s11790_s28 + $0x118] sm:$0xff] %v6900_v26  ;;  %v6812_v32 = vadd.f32 %v6811_v59, %v6587_v31  ;;  %v6814_v23 = vpop.f32.mrf.mxu1 }
 0x4a4   : > { %v6589_v50 = vpop.f32.mrf.mxu0 }
 0x4a5   : > { %v6901_v17 = vadd.f32 %v11783_v48, %v6812_v32  ;;  %v6590_v30 = vadd.f32 %v6589_v50, %v11703_v7  ;;  %v6816_v61 = vpop.f32.mrf.mxu1 }
 0x4a6   : > { %v6591_v1 = vpop.f32.mrf.mxu0 }
 0x4a7   : > { %6949 = vst [vmem:[%s11790_s28 + $0x120] sm:$0xff] %v6901_v17  ;;  %v6815_v33 = vadd.f32 %v6814_v23, %v6590_v30  ;;  %v6819_v49 = vpop.f32.mrf.mxu1 }
 0x4a8   : > { %v6594_v63 = vpop.f32.mrf.mxu0 }
 0x4a9   : > { %v6902_v18 = vadd.f32 %v11783_v48, %v6815_v33  ;;  %v6595_v43 = vadd.f32 %v6594_v63, %v11711_v22  ;;  %v6821_v19 = vpop.f32.mrf.mxu1 }
 0x4aa   : > { %v6596_v35 = vpop.f32.mrf.mxu0 }
 0x4ab   : > { %6950 = vst [vmem:[%s11790_s28 + $0x128] sm:$0xff] %v6902_v18  ;;  %v6820_v62 = vadd.f32 %v6819_v49, %v6595_v43  ;;  %v6822_v21 = vpop.f32.mrf.mxu1 }
 0x4ac   : > { %v6597_v16 = vpop.f32.mrf.mxu0 }
 0x4ad   : > { %v6903_v7 = vadd.f32 %v11783_v48, %v6820_v62  ;;  %v6598_v14 = vadd.f32 %v6597_v16, %v11719_v56  ;;  %v6824_v52 = vpop.f32.mrf.mxu1 }
 0x4ae   : > { %v6599_v46 = vpop.f32.mrf.mxu0 }
 0x4af   : > { %6951 = vst [vmem:[%s11790_s28 + $0x130] sm:$0xff] %v6903_v7  ;;  %v6823_v24 = vadd.f32 %v6822_v21, %v6598_v14  ;;  %v6827_v11 = vpop.f32.mrf.mxu1 }
 0x4b0   : > { %v6602_v2 = vpop.f32.mrf.mxu0 }
 0x4b1   : > { %v6904_v22 = vadd.f32 %v11783_v48, %v6823_v24  ;;  %v6603_v28 = vadd.f32 %v6602_v2, %v11727_v4  ;;  %v6829_v38 = vpop.f32.mrf.mxu1 }
 0x4b2   : > { %v6604_v51 = vpop.f32.mrf.mxu0 }
 0x4b3   : > { %6952 = vst [vmem:[%s11790_s28 + $0x138] sm:$0xff] %v6904_v22  ;;  %v6828_v45 = vadd.f32 %v6827_v11, %v6603_v28  ;;  %v6830_v15 = vpop.f32.mrf.mxu1 }
 0x4b4   : > { %v6605_v53 = vpop.f32.mrf.mxu0 }
 0x4b5   : > { %v6905_v56 = vadd.f32 %v11783_v48, %v6828_v45  ;;  %v6606_v13 = vadd.f32 %v6605_v53, %v11735_v12  ;;  %v6832_v41 = vpop.f32.mrf.mxu1 }
 0x4b6   : > { %v6607_v44 = vpop.f32.mrf.mxu0 }
 0x4b7   : > { %6953 = vst [vmem:[%s11790_s28 + $0x140] sm:$0xff] %v6905_v56  ;;  %v6831_v27 = vadd.f32 %v6830_v15, %v6606_v13  ;;  %v6835_v9 = vpop.f32.mrf.mxu1 }
 0x4b8   : > { %v6610_v40 = vpop.f32.mrf.mxu0 }
 0x4b9   : > { %v6906_v4 = vadd.f32 %v11783_v48, %v6831_v27  ;;  %v6611_v0 = vadd.f32 %v6610_v40, %v11743_v20  ;;  %v6837_v29 = vpop.f32.mrf.mxu1 }
 0x4ba   : > { %v6612_v42 = vpop.f32.mrf.mxu0 }
 0x4bb   : > { %6954 = vst [vmem:[%s11790_s28 + $0x148] sm:$0xff] %v6906_v4  ;;  %v6836_v37 = vadd.f32 %v6835_v9, %v6611_v0  ;;  %v6838_v8 = vpop.f32.mrf.mxu1 }
 0x4bc   : > { %v6613_v39 = vpop.f32.mrf.mxu0 }
 0x4bd   : > { %v6907_v12 = vadd.f32 %v11783_v48, %v6836_v37  ;;  %v6614_v10 = vadd.f32 %v6613_v39, %v11751_v34  ;;  %v6840_v6 = vpop.f32.mrf.mxu1 }
 0x4be   : > { %v6615_v60 = vpop.f32.mrf.mxu0 }
 0x4bf   : > { %6955 = vst [vmem:[%s11790_s28 + $0x150] sm:$0xff] %v6907_v12  ;;  %v6839_v25 = vadd.f32 %v6838_v8, %v6614_v10  ;;  %v6843_v57 = vpop.f32.mrf.mxu1 }
 0x4c0   : > { %v6618_v54 = vpop.f32.mrf.mxu0 }
 0x4c1   : > { %v6908_v20 = vadd.f32 %v11783_v48, %v6839_v25  ;;  %v6619_v59 = vadd.f32 %v6618_v54, %v11759_v36  ;;  %v6845_v31 = vpop.f32.mrf.mxu1 }
 0x4c2   : > { %v6620_v26 = vpop.f32.mrf.mxu0 }
 0x4c3   : > { %6956 = vst [vmem:[%s11790_s28 + $0x158] sm:$0xff] %v6908_v20  ;;  %v6844_v58 = vadd.f32 %v6843_v57, %v6619_v59  ;;  %v6846_v32 = vpop.f32.mrf.mxu1 }
 0x4c4   : > { %v6621_v5 = vpop.f32.mrf.mxu0 }
 0x4c5   : > { %v6909_v34 = vadd.f32 %v11783_v48, %v6844_v58  ;;  %v6622_v50 = vadd.f32 %v6621_v5, %v11767_v47  ;;  %v6848_v17 = vpop.f32.mrf.mxu1 }
 0x4c6   : > { %v6623_v23 = vpop.f32.mrf.mxu0 }
 0x4c7   : > { %6957 = vst [vmem:[%s11790_s28 + $0x160] sm:$0xff] %v6909_v34  ;;  %v6847_v30 = vadd.f32 %v6846_v32, %v6622_v50  ;;  %v6851_v61 = vpop.f32.mrf.mxu1 }
 0x4c8   : > { %v6626_v1 = vpop.f32.mrf.mxu0 }
 0x4c9   : > { %v6910_v36 = vadd.f32 %v11783_v48, %v6847_v30  ;;  %v6627_v33 = vadd.f32 %v6626_v1, %v11775_v3  ;;  %v6853_v49 = vpop.f32.mrf.mxu1 }
 0x4ca   : > { %v6628_v63 = vpop.f32.mrf.mxu0 }
 0x4cb   : > { %6958 = vst [vmem:[%s11790_s28 + $0x168] sm:$0xff] %v6910_v36  ;;  %v6852_v18 = vadd.f32 %v6851_v61, %v6627_v33  ;;  %v6854_v35 = vpop.f32.mrf.mxu1 }
 0x4cc   : > { %v6629_v43 = vpop.f32.mrf.mxu0 }
 0x4cd   : > { %v6911_v47 = vadd.f32 %v11783_v48, %v6852_v18  ;;  %v6630_v19 = vadd.f32 %v6629_v43, %v11777_v55  ;;  %v6856_v16 = vpop.f32.mrf.mxu1 }
 0x4ce   : > { %v6631_v62 = vpop.f32.mrf.mxu0 }
 0x4cf   : > { %6959 = vst [vmem:[%s11790_s28 + $0x170] sm:$0xff] %v6911_v47  ;;  %v6855_v21 = vadd.f32 %v6854_v35, %v6630_v19 }
 0x4d1   : > { %v6912_v7 = vadd.f32 %v11783_v48, %v6855_v21 }
 0x4d3   : > { %6960 = vst [vmem:[%s11790_s28 + $0x178] sm:$0xff] %v6912_v7 }
 0x4d4 PF: > { %s16_s23 = sadd.s32 1, %s7960_s23   ;;  %s13274_s21 = smov %s7956_s22 }
 0x4d5   : > { %p13_p6 = scmp.ge.s32.totalorder %s16_s23, 4   ;;  %s13275_s22 = smov %s13277_s24 }
 0x4d7   :  { %15 = sbr.rel (!%p13_p6) target bundleno = 2 (0x2), region = 87 }

</bundles_post_ra>
